<compile_context>
chip_gen: v7x
topology: tpu7x:2x2x1
jax: 0.10.0
libtpu: 0.0.40
codegen_flags: <defaults>
</compile_context>

<pallas_src>
import math

import numpy as np
import jax
import jax.numpy as jnp
from jax import lax
from jax.experimental import pallas as pl
from jax.experimental.pallas import tpu as pltpu

F32 = jnp.float32


# ------------------------------------------------------------------------------------
# constant maps (become compile-time constants inside the jitted wrapper)
# ------------------------------------------------------------------------------------
def _cos_map(n):
    i = jnp.arange(n, dtype=F32)
    x = (i + 0.5) / n
    w = jnp.cos(i[:, None] * x[None, :] * jnp.pi) * math.sqrt(2.0 / n)
    return w.at[0, :].multiply(1.0 / math.sqrt(2.0))


def _decay_map(h, w):
    wn = jnp.linspace(0.0, jnp.pi, h + 1)[:h].astype(F32)[:, None]
    wm = jnp.linspace(0.0, jnp.pi, w + 1)[:w].astype(F32)[None, :]
    return jnp.exp(-(wn * wn + wm * wm))


def _haar_mats(n):
    """(fwd, inv) matrices s.t. haar_1d(x) == fwd @ x and inverse_haar_1d(y) == inv @ y."""
    fwd = np.zeros((n, n), np.float32)
    inv = np.zeros((n, n), np.float32)
    for i in range(n // 2):
        fwd[i, 2 * i] = 0.5
        fwd[i, 2 * i + 1] = 0.5
        fwd[n // 2 + i, 2 * i] = 0.5
        fwd[n // 2 + i, 2 * i + 1] = -0.5
        inv[2 * i, i] = 1.0
        inv[2 * i, n // 2 + i] = 1.0
        inv[2 * i + 1, i] = 1.0
        inv[2 * i + 1, n // 2 + i] = -1.0
    return jnp.asarray(fwd), jnp.asarray(inv)


def _fftn4(x):
    # torch.fft.fftn over all 4 dims; XLA FFT is limited to rank-3 transforms, so the
    # separable 4-D DFT is computed as fftn(axes 1..3) followed by fft(axis 0).
    return jnp.fft.fft(jnp.fft.fftn(x, axes=(1, 2, 3)), axis=0)


def _ifftn4(x):
    return jnp.fft.ifft(jnp.fft.ifftn(x, axes=(1, 2, 3)), axis=0)


# ------------------------------------------------------------------------------------
# Kernel 1: fused [depthwise 3x3 conv -> Linear(C, 2C)] as one im2col matmul (B folded
# into M) + the PolicyNet MLP producing the MoE logits.
# ------------------------------------------------------------------------------------
def _make_front_kernel(B, S, C):
    def kernel(patch_ref, wcomb_ref, bcomb_ref,
               pw1_ref, pb1_ref, pa1_ref, pc1_ref,
               pw2_ref, pb2_ref, pa2_ref, pc2_ref,
               pw3_ref, pb3_ref,
               xz_ref, logits_ref):
        # one wide-K matmul: (B*S, 9C) x (9C, 2C)
        xz = jnp.dot(patch_ref[...], wcomb_ref[...],
                     preferred_element_type=F32) + bcomb_ref[...]
        xz_ref[...] = xz
        # PolicyNet input: per-batch spatial mean of the first C channels
        xm = jnp.mean(xz[:, :C].reshape(B, S, C), axis=1)                 # (B, C)
        h = jnp.dot(xm, pw1_ref[...], preferred_element_type=F32) + pb1_ref[...]
        h = jnp.where(h >= 0.0, h, 0.1 * h)                               # LeakyReLU(0.1)
        h = h * pa1_ref[...] + pc1_ref[...]                               # BN1d (eval, folded)
        h = jnp.dot(h, pw2_ref[...], preferred_element_type=F32) + pb2_ref[...]
        h = jnp.where(h >= 0.0, h, 0.1 * h)
        h = h * pa2_ref[...] + pc2_ref[...]
        logits_ref[...] = jnp.dot(h, pw3_ref[...],
                                  preferred_element_type=F32) + pb3_ref[...]
    return kernel


# ------------------------------------------------------------------------------------
# Kernel 2: k_exp = decay ** relu(to_k(freq_embed))      (shared across batches)
# ------------------------------------------------------------------------------------
def _kexp_kernel(freq_ref, wk_ref, bk_ref, decay_ref, out_ref):
    e = jnp.dot(freq_ref[...], wk_ref[...], preferred_element_type=F32) + bk_ref[...]
    e = jnp.maximum(e, 0.0)
    # decay ** e == exp(e * log(decay));  decay in (0, 1]
    out_ref[...] = jnp.exp(e * jnp.log(decay_ref[...]))


# ------------------------------------------------------------------------------------
# Kernel 3 (per batch): spectral branches (DCT / precomputed FFT / Haar), decay
# weighting, MoE hard mix, out_norm, SiLU gate, out_linear, and the HeatBlock tail
# (norm1 + residual, 1x1-conv MLP, norm2 + residual).  Everything stays strictly 2-D:
# rows = flattened (h, w), lanes = channels.
# ------------------------------------------------------------------------------------
def _core_kernel(xin_ref, xb_ref, xf_ref, z_ref, moe_ref,
                 kexp_ref, mdct_ref, mdct_t_ref, haar_f_ref, haar_i_ref, avgw_ref,
                 ong_ref, onb_ref, wout_ref, bout_ref,
                 n1g_ref, n1b_ref, w1_ref, b1_ref, w2_ref, b2_ref,
                 n2g_ref, n2b_ref, out_ref):
    x = xb_ref[0]                                  # (S, C)
    kexp = kexp_ref[...]

    # --- DCT branch: 2-D DCT fused into a single (S,S)x(S,C) matmul (kron(cos_n, cos_m))
    xd = jnp.dot(mdct_ref[...], x, preferred_element_type=F32)
    xd = xd * kexp
    xd = jnp.dot(mdct_t_ref[...], xd, preferred_element_type=F32)

    # --- Haar branch (module semantics: with W == C both flatten-passes act on channels)
    xh = jnp.dot(x, haar_f_ref[...], preferred_element_type=F32)
    xh = xh * kexp
    xh = jnp.dot(xh, haar_i_ref[...], preferred_element_type=F32)

    # --- FFT branch (complex FFT computed in the wrapper)
    xf = xf_ref[0]

    # --- MoE hard mix: moe row is the gumbel-softmax one-hot, order (dct, fft, haar)
    mm = moe_ref[0]                                # (1, 3)
    xm = mm[:, 0:1] * xd + mm[:, 1:2] * xf + mm[:, 2:3] * xh

    # --- out_norm: LayerNorm over channels (lanes), eps = 1e-5
    mu = jnp.mean(xm, axis=-1, keepdims=True)
    d = xm - mu
    var = jnp.mean(d * d, axis=-1, keepdims=True)
    xn = d * lax.rsqrt(var + 1e-5) * ong_ref[...] + onb_ref[...]

    # --- SiLU(z) gate + out_linear
    z = z_ref[0]
    xg = xn * (z * jax.nn.sigmoid(z))
    op = jnp.dot(xg, wout_ref[...], preferred_element_type=F32) + bout_ref[...]

    # --- HeatBlock tail.  In NCHW, norm1/norm2 normalize over the W axis, i.e. over each
    #     length-W row group of the (S, C) slab; group mean/var are computed with the
    #     precomputed averaging matrix A = kron(I_H, 11^T / W) (keeps the kernel 2-D).
    A = avgw_ref[...]
    mu1 = jnp.dot(A, op, preferred_element_type=F32)
    d1 = op - mu1
    v1 = jnp.dot(A, d1 * d1, preferred_element_type=F32)
    n1 = d1 * lax.rsqrt(v1 + 1e-6) * n1g_ref[...] + n1b_ref[...]
    x1 = xin_ref[0] + n1

    h = jnp.dot(x1, w1_ref[...], preferred_element_type=F32) + b1_ref[...]
    # TODO(synk): torch nn.GELU() is the exact erf GELU; tanh approximation used here
    # (the in-script reference uses the same approximation).
    h = jax.nn.gelu(h, approximate=True)
    m = jnp.dot(h, w2_ref[...], preferred_element_type=F32) + b2_ref[...]

    mu2 = jnp.dot(A, m, preferred_element_type=F32)
    d2 = m - mu2
    v2 = jnp.dot(A, d2 * d2, preferred_element_type=F32)
    n2 = d2 * lax.rsqrt(v2 + 1e-6) * n2g_ref[...] + n2b_ref[...]

    out_ref[0] = (x1 + n2).astype(out_ref.dtype)


# ------------------------------------------------------------------------------------
# wrapper: HeatBlock.forward (post_norm=True, mlp_ratio=4, drop_path=0, no layer_scale,
# infer_mode=False, use_checkpoint=False)
# ------------------------------------------------------------------------------------
@jax.jit
def heat_block_forward(x_nchw, freq_embed, params, gumbel_key):
    B, C, H, W = x_nchw.shape
    # TODO(synk): Heat2D's odd-H/W pad+crop path is not implemented (even sizes only).
    assert H % 2 == 0 and W % 2 == 0
    assert W == C, "HeatBlock's LayerNorm(hidden_dim) over the last NCHW axis needs W == hidden_dim"
    S = H * W
    CH = 4 * C                                             # MLP hidden (mlp_ratio = 4)

    # ----- compile-time constants (hoisted out of the kernels / recurrent loop) -------
    cosn, cosm = _cos_map(H), _cos_map(W)
    decay = _decay_map(H, W)                               # (H, W)
    mdct = jnp.kron(cosn, cosm)                            # (S, S) forward 2-D DCT
    mdct_t = mdct.T                                        # inverse 2-D DCT
    hw_f, hw_i = _haar_mats(W)
    hc_f, hc_i = _haar_mats(C)
    # with W == C both flatten passes of haar_transform act on the channel axis, so the
    # two passes compose into single (C, C) right-multipliers
    haar_f = hw_f.T @ hc_f.T
    haar_i = hw_i.T @ hc_i.T
    avgw = jnp.kron(jnp.eye(H, dtype=F32), jnp.full((W, W), 1.0 / W, F32))   # (S, S)

    # ----- wrapper glue: layout + im2col ----------------------------------------------
    x_nhwc = jnp.transpose(x_nchw.astype(F32), (0, 2, 3, 1))        # (B, H, W, C)
    xin_flat = x_nhwc.reshape(B, S, C)
    xp = jnp.pad(x_nhwc, ((0, 0), (1, 1), (1, 1), (0, 0)))
    patches = jnp.concatenate(
        [xp[:, dy:dy + H, dx:dx + W, :] for dy in range(3) for dx in range(3)],
        axis=-1).reshape(B * S, 9 * C)                              # feature = tap*C + c

    # fold depthwise conv + Linear(C -> 2C) into one (9C, 2C) weight
    dwk = params["dw_w"].reshape(C, 9)                              # (C, 9), tap = ky*3+kx
    lin_w = params["lin_w"]                                         # (2C, C)
    wcomb = (dwk.T[:, :, None] * lin_w.T[None, :, :]).reshape(9 * C, 2 * C)
    bcomb = params["lin_b"] + lin_w @ params["dw_b"]

    # fold BatchNorm1d into per-feature scale/shift.
    # TODO(synk): BatchNorm1d uses eval-mode running statistics; train-mode batch stats
    # are not implemented.
    a1 = params["bn1_g"] * lax.rsqrt(params["bn1_rv"] + 1e-5)
    c1 = params["bn1_b"] - params["bn1_rm"] * a1
    a2 = params["bn2_g"] * lax.rsqrt(params["bn2_rv"] + 1e-5)
    c2 = params["bn2_b"] - params["bn2_rm"] * a2

    xz_flat, logits = pl.pallas_call(
        _make_front_kernel(B, S, C),
        out_shape=(jax.ShapeDtypeStruct((B * S, 2 * C), F32),
                   jax.ShapeDtypeStruct((B, 3), F32)),
    )(patches, wcomb, bcomb.reshape(1, 2 * C),
      params["p_w1"].T, params["p_b1"].reshape(1, -1), a1.reshape(1, -1), c1.reshape(1, -1),
      params["p_w2"].T, params["p_b2"].reshape(1, -1), a2.reshape(1, -1), c2.reshape(1, -1),
      params["p_w3"].T, params["p_b3"].reshape(1, -1))

    xz = xz_flat.reshape(B, S, 2 * C)
    xb_flat = xz[..., :C]
    z_flat = xz[..., C:]

    # k_exp = decay ** relu(to_k(freq_embed))   (shared by all three branches)
    kexp = pl.pallas_call(
        _kexp_kernel, out_shape=jax.ShapeDtypeStruct((S, C), F32),
    )(freq_embed.reshape(S, C).astype(F32), params["tok_w"].T,
      params["tok_b"].reshape(1, C), decay.reshape(S, 1))

    # MoE gate: gumbel-softmax(tau=1, hard=True) -> one-hot forward value
    # TODO(synk): F.gumbel_softmax uses PyTorch RNG; gumbel noise is drawn with jax.random.
    gnoise = jax.random.gumbel(gumbel_key, logits.shape, F32)
    soft = jax.nn.softmax((logits + gnoise) / 1.0, axis=-1)
    moe = jax.nn.one_hot(jnp.argmax(soft, axis=-1), 3, dtype=F32)

    # FFT branch: torch.fft.fftn/ifftn over all 4 dims + decay weighting.
    # TODO(synk): complex FFT has no Pallas/Mosaic equivalent; computed with jnp.fft (XLA).
    xb4 = xb_flat.reshape(B, H, W, C)
    xf4 = _ifftn4(_fftn4(xb4) * kexp.reshape(H, W, C)[None]).real.astype(F32)
    xf_flat = xf4.reshape(B, S, C)

    # per-(h,w)-row affine columns for the W-axis LayerNorms of the HeatBlock tail
    n1g_col = jnp.tile(params["n1_g"], H).reshape(S, 1)
    n1b_col = jnp.tile(params["n1_b"], H).reshape(S, 1)
    n2g_col = jnp.tile(params["n2_g"], H).reshape(S, 1)
    n2b_col = jnp.tile(params["n2_b"], H).reshape(S, 1)

    def _full(shape):
        return pl.BlockSpec(shape, lambda b: (0,) * len(shape))

    bspec = pl.BlockSpec((1, S, C), lambda b: (b, 0, 0))
    in_specs = [
        bspec, bspec, bspec, bspec,                        # xin, xb, xf, z
        pl.BlockSpec((1, 1, 3), lambda b: (b, 0, 0)),       # moe (one-hot row)
        _full((S, C)),                                      # kexp
        _full((S, S)), _full((S, S)),                       # mdct, mdct^T
        _full((C, C)), _full((C, C)),                       # haar fwd / inv
        _full((S, S)),                                      # avgw
        _full((1, C)), _full((1, C)),                       # out_norm gamma / beta
        _full((C, C)), _full((1, C)),                       # out_linear W^T, b
        _full((S, 1)), _full((S, 1)),                       # norm1 gamma / beta columns
        _full((C, CH)), _full((1, CH)),                     # mlp fc1 W^T, b
        _full((CH, C)), _full((1, C)),                      # mlp fc2 W^T, b
        _full((S, 1)), _full((S, 1)),                       # norm2 gamma / beta columns
    ]

    y_flat = pl.pallas_call(
        _core_kernel,
        out_shape=jax.ShapeDtypeStruct((B, S, C), F32),
        grid=(B,),
        in_specs=in_specs,
        out_specs=pl.BlockSpec((1, S, C), lambda b: (b, 0, 0)),
        compiler_params=pltpu.CompilerParams(dimension_semantics=("parallel",)),
    )(xin_flat, xb_flat, xf_flat, z_flat, moe.reshape(B, 1, 3),
      kexp, mdct, mdct_t, haar_f, haar_i, avgw,
      params["on_g"].reshape(1, C), params["on_b"].reshape(1, C),
      params["out_w"].T, params["out_b"].reshape(1, C),
      n1g_col, n1b_col,
      params["fc1_w"].reshape(CH, C).T, params["fc1_b"].reshape(1, CH),
      params["fc2_w"].reshape(C, CH).T, params["fc2_b"].reshape(1, C),
      n2g_col, n2b_col)

    return jnp.transpose(y_flat.reshape(B, H, W, C), (0, 3, 1, 2))


# ------------------------------------------------------------------------------------
# pure-JAX reference (mirrors the PyTorch code; used only for the correctness check)
# ------------------------------------------------------------------------------------
def _ln(x, g, b, eps):
    mu = jnp.mean(x, axis=-1, keepdims=True)
    v = jnp.mean((x - mu) ** 2, axis=-1, keepdims=True)
    return (x - mu) / jnp.sqrt(v + eps) * g + b


def _haar_ref(x, dims=(-2, -1)):
    t = x
    for dim in dims:
        shape = t.shape
        t2 = t.reshape(-1, shape[dim])
        avg = (t2[:, ::2] + t2[:, 1::2]) / 2
        diff = (t2[:, ::2] - t2[:, 1::2]) / 2
        t = jnp.concatenate([avg, diff], axis=-1).reshape(shape)
    return t


def _inv_haar_ref(x, dims=(-2, -1)):
    t = x
    for dim in dims:
        shape = t.shape
        t2 = t.reshape(-1, shape[dim])
        n = t2.shape[-1]
        avg, diff = t2[:, :n // 2], t2[:, n // 2:]
        rec = jnp.zeros_like(t2)
        rec = rec.at[:, ::2].set(avg + diff)
        rec = rec.at[:, 1::2].set(avg - diff)
        t = rec.reshape(shape)
    return t


@jax.jit
def _reference(x_nchw, freq_embed, params, gumbel_key):
    B, C, H, W = x_nchw.shape
    hp = lax.Precision.HIGHEST

    # ---- Heat2D ----
    xd = lax.conv_general_dilated(
        x_nchw, params["dw_w"], (1, 1), [(1, 1), (1, 1)],
        dimension_numbers=("NCHW", "OIHW", "NCHW"), feature_group_count=C,
        precision=hp) + params["dw_b"].reshape(1, C, 1, 1)
    xl = jnp.transpose(xd, (0, 2, 3, 1))
    xl = jnp.einsum("bhwc,kc->bhwk", xl, params["lin_w"], precision=hp) + params["lin_b"]
    xb, z = xl[..., :C], xl[..., C:]

    cosn, cosm, decay = _cos_map(H), _cos_map(W), _decay_map(H, W)

    # PolicyNet (eval-mode BN) + gumbel-softmax (hard)
    h = jnp.mean(xb, axis=(1, 2)) @ params["p_w1"].T + params["p_b1"]
    h = jnp.where(h >= 0.0, h, 0.1 * h)
    h = (h - params["bn1_rm"]) / jnp.sqrt(params["bn1_rv"] + 1e-5) * params["bn1_g"] + params["bn1_b"]
    h = h @ params["p_w2"].T + params["p_b2"]
    h = jnp.where(h >= 0.0, h, 0.1 * h)
    h = (h - params["bn2_rm"]) / jnp.sqrt(params["bn2_rv"] + 1e-5) * params["bn2_g"] + params["bn2_b"]
    logits = h @ params["p_w3"].T + params["p_b3"]
    gnoise = jax.random.gumbel(gumbel_key, logits.shape, F32)
    soft = jax.nn.softmax((logits + gnoise) / 1.0, axis=-1)
    moe = jax.nn.one_hot(jnp.argmax(soft, axis=-1), 3, dtype=F32)

    # forward DCT (mirrors the two F.conv1d calls)
    t = jnp.einsum("nh,bhl->bnl", cosn, xb.reshape(B, H, W * C), precision=hp)
    t = jnp.einsum("mw,gwc->gmc", cosm, t.reshape(B * H, W, C), precision=hp)
    x_dct = t.reshape(B, H, W, C)

    tk = jnp.einsum("hwc,kc->hwk", freq_embed, params["tok_w"], precision=hp) + params["tok_b"]
    wexp = jnp.power(decay[:, :, None], jnp.maximum(tk, 0.0))

    x_fft = _fftn4(xb)
    x_haar = _haar_ref(xb)

    x_dct = x_dct * wexp[None]
    x_fft = x_fft * wexp[None]
    x_haar = x_haar * wexp[None]

    # inverse DCT
    t = jnp.einsum("nh,bnl->bhl", cosn, x_dct.reshape(B, H, W * C), precision=hp)
    t = jnp.einsum("mw,gmc->gwc", cosm, t.reshape(B * H, W, C), precision=hp)
    x_dct = t.reshape(B, H, W, C)
    x_fft = _ifftn4(x_fft).real
    x_haar = _inv_haar_ref(x_haar)

    xs = jnp.stack([x_dct, x_fft, x_haar], axis=1)
    xx = jnp.einsum("brhwc,br->bhwc", xs, moe)
    xx = _ln(xx, params["on_g"], params["on_b"], 1e-5)
    xx = xx * jax.nn.silu(z)
    xx = jnp.einsum("bhwc,kc->bhwk", xx, params["out_w"], precision=hp) + params["out_b"]
    op = jnp.transpose(xx, (0, 3, 1, 2))                     # (B, C, H, W)

    # ---- HeatBlock tail (post_norm, drop_path = Identity, no layer_scale) ----
    x1 = x_nchw + _ln(op, params["n1_g"], params["n1_b"], 1e-6)
    h = jnp.einsum("bchw,kc->bkhw", x1, params["fc1_w"].reshape(-1, C), precision=hp)
    h = jax.nn.gelu(h + params["fc1_b"].reshape(1, -1, 1, 1), approximate=True)
    m = jnp.einsum("bkhw,ck->bchw", h, params["fc2_w"].reshape(C, -1), precision=hp)
    m = m + params["fc2_b"].reshape(1, C, 1, 1)
    return x1 + _ln(m, params["n2_g"], params["n2_b"], 1e-6)


if __name__ == "__main__":
    # norm1/norm2 = LayerNorm(hidden_dim) over the last NCHW axis -> W == hidden_dim == C
    B, C, H, W = 2, 16, 16, 16
    CH = 4 * C

    kit = iter(jax.random.split(jax.random.PRNGKey(0), 48))

    def nrm(shape, scale=1.0):
        return scale * jax.random.normal(next(kit), shape, F32)

    params = {
        "dw_w": nrm((C, 1, 3, 3), 0.3), "dw_b": nrm((C,), 0.1),
        "lin_w": nrm((2 * C, C), C ** -0.5), "lin_b": nrm((2 * C,), 0.05),
        "p_w1": nrm((256, C), C ** -0.5), "p_b1": nrm((256,), 0.05),
        "bn1_g": 1.0 + nrm((256,), 0.1), "bn1_b": nrm((256,), 0.1),
        "bn1_rm": nrm((256,), 0.1), "bn1_rv": 1.0 + jnp.abs(nrm((256,), 0.1)),
        "p_w2": nrm((32, 256), 256 ** -0.5), "p_b2": nrm((32,), 0.05),
        "bn2_g": 1.0 + nrm((32,), 0.1), "bn2_b": nrm((32,), 0.1),
        "bn2_rm": nrm((32,), 0.1), "bn2_rv": 1.0 + jnp.abs(nrm((32,), 0.1)),
        "p_w3": nrm((3, 32), 32 ** -0.5), "p_b3": nrm((3,), 0.05),
        "tok_w": nrm((C, C), C ** -0.5), "tok_b": nrm((C,), 0.05),
        "on_g": 1.0 + nrm((C,), 0.1), "on_b": nrm((C,), 0.1),
        "out_w": nrm((C, C), C ** -0.5), "out_b": nrm((C,), 0.05),
        "n1_g": 1.0 + nrm((C,), 0.1), "n1_b": nrm((C,), 0.1),
        "fc1_w": nrm((CH, C, 1, 1), C ** -0.5), "fc1_b": nrm((CH,), 0.05),
        "fc2_w": nrm((C, CH, 1, 1), CH ** -0.5), "fc2_b": nrm((C,), 0.05),
        "n2_g": 1.0 + nrm((C,), 0.1), "n2_b": nrm((C,), 0.1),
    }
    x = nrm((B, C, H, W), 1.0)
    freq_embed = nrm((H, W, C), 1.0)
    gumbel_key = jax.random.PRNGKey(1)

    out = heat_block_forward(x, freq_embed, params, gumbel_key)
    out = jax.block_until_ready(out)

    ref = jax.block_until_ready(_reference(x, freq_embed, params, gumbel_key))
    assert out.shape == (B, C, H, W)
    assert bool(jnp.all(jnp.isfinite(out)))
    assert jnp.allclose(out, ref, atol=1e-2, rtol=1e-2), float(jnp.max(jnp.abs(out - ref)))
    print("KERNEL_OK")
</pallas_src>

<mosaic_0001>
module attributes {stable_mosaic.version = 11 : i64} {
  func.func @kernel(%arg0: memref<512x144xf32, #tpu.memory_space<vmem>>, %arg1: memref<144x32xf32, #tpu.memory_space<vmem>>, %arg2: memref<1x32xf32, #tpu.memory_space<vmem>>, %arg3: memref<16x256xf32, #tpu.memory_space<vmem>>, %arg4: memref<1x256xf32, #tpu.memory_space<vmem>>, %arg5: memref<1x256xf32, #tpu.memory_space<vmem>>, %arg6: memref<1x256xf32, #tpu.memory_space<vmem>>, %arg7: memref<256x32xf32, #tpu.memory_space<vmem>>, %arg8: memref<1x32xf32, #tpu.memory_space<vmem>>, %arg9: memref<1x32xf32, #tpu.memory_space<vmem>>, %arg10: memref<1x32xf32, #tpu.memory_space<vmem>>, %arg11: memref<32x3xf32, #tpu.memory_space<vmem>>, %arg12: memref<1x3xf32, #tpu.memory_space<vmem>>, %arg13: memref<512x32xf32, #tpu.memory_space<vmem>>, %arg14: memref<2x3xf32, #tpu.memory_space<vmem>>) attributes {dimension_semantics = [], scalar_prefetch = 0 : i64, scratch_operands = 0 : i64, tpu.core_type = #tpu.core_type<tc>} {
    %c0 = arith.constant 0 : index
    %c0_0 = arith.constant 0 : index
    %0 = vector.load %arg0[%c0, %c0_0] : memref<512x144xf32, #tpu.memory_space<vmem>>, vector<512x144xf32>
    %c0_1 = arith.constant 0 : index
    %c0_2 = arith.constant 0 : index
    %1 = vector.load %arg1[%c0_1, %c0_2] : memref<144x32xf32, #tpu.memory_space<vmem>>, vector<144x32xf32>
    %cst = arith.constant dense<0.000000e+00> : vector<512x32xf32>
    %2 = tpu.matmul %0, %1, %cst {dimension_numbers = #tpu.dot_dimension_numbers<[1], [0], [0], [1], [0, 0, 1, 1], [], []>} : vector<512x144xf32>, vector<144x32xf32>, vector<512x32xf32> -> vector<512x32xf32>
    %c0_3 = arith.constant 0 : index
    %c0_4 = arith.constant 0 : index
    %3 = vector.load %arg2[%c0_3, %c0_4] : memref<1x32xf32, #tpu.memory_space<vmem>>, vector<1x32xf32>
    %4 = vector.broadcast %3 : vector<1x32xf32> to vector<512x32xf32>
    %5 = arith.addf %2, %4 : vector<512x32xf32>
    %c0_5 = arith.constant 0 : index
    %c0_6 = arith.constant 0 : index
    %6 = vector.load %arg13[%c0_5, %c0_6] : memref<512x32xf32, #tpu.memory_space<vmem>>, vector<512x32xf32>
    tpu.vector_store %arg13[%c0_5, %c0_6], %5 {strides = array<i32>} : memref<512x32xf32, #tpu.memory_space<vmem>>, vector<512x32xf32>,
    %7 = vector.extract_strided_slice %5 {offsets = [0, 0], sizes = [512, 16], strides = [1, 1]} : vector<512x32xf32> to vector<512x16xf32>
    %8 = vector.shape_cast %7 : vector<512x16xf32> to vector<2x256x16xf32>
    %cst_7 = arith.constant dense<0.000000e+00> : vector<2x16xf32>
    %9 = vector.multi_reduction <add>, %8, %cst_7 [1] : vector<2x256x16xf32> to vector<2x16xf32>
    %cst_8 = arith.constant 2.560000e+02 : f32
    %10 = vector.broadcast %cst_8 : f32 to vector<2x16xf32>
    %11 = arith.divf %9, %10 : vector<2x16xf32>
    %c0_9 = arith.constant 0 : index
    %c0_10 = arith.constant 0 : index
    %12 = vector.load %arg3[%c0_9, %c0_10] : memref<16x256xf32, #tpu.memory_space<vmem>>, vector<16x256xf32>
    %cst_11 = arith.constant dense<0.000000e+00> : vector<2x256xf32>
    %13 = tpu.matmul %11, %12, %cst_11 {dimension_numbers = #tpu.dot_dimension_numbers<[1], [0], [0], [1], [0, 0, 1, 1], [], []>} : vector<2x16xf32>, vector<16x256xf32>, vector<2x256xf32> -> vector<2x256xf32>
    %c0_12 = arith.constant 0 : index
    %c0_13 = arith.constant 0 : index
    %14 = vector.load %arg4[%c0_12, %c0_13] : memref<1x256xf32, #tpu.memory_space<vmem>>, vector<1x256xf32>
    %15 = vector.broadcast %14 : vector<1x256xf32> to vector<2x256xf32>
    %16 = arith.addf %13, %15 : vector<2x256xf32>
    %cst_14 = arith.constant 0.000000e+00 : f32
    %17 = vector.broadcast %cst_14 : f32 to vector<2x256xf32>
    %18 = arith.cmpf oge, %16, %17 : vector<2x256xf32>
    %cst_15 = arith.constant 1.000000e-01 : f32
    %19 = vector.broadcast %cst_15 : f32 to vector<2x256xf32>
    %20 = arith.mulf %19, %16 : vector<2x256xf32>
    %21 = arith.select %18, %16, %20 : vector<2x256xi1>, vector<2x256xf32>
    %c0_16 = arith.constant 0 : index
    %c0_17 = arith.constant 0 : index
    %22 = vector.load %arg5[%c0_16, %c0_17] : memref<1x256xf32, #tpu.memory_space<vmem>>, vector<1x256xf32>
    %23 = vector.broadcast %22 : vector<1x256xf32> to vector<2x256xf32>
    %24 = arith.mulf %21, %23 : vector<2x256xf32>
    %c0_18 = arith.constant 0 : index
    %c0_19 = arith.constant 0 : index
    %25 = vector.load %arg6[%c0_18, %c0_19] : memref<1x256xf32, #tpu.memory_space<vmem>>, vector<1x256xf32>
    %26 = vector.broadcast %25 : vector<1x256xf32> to vector<2x256xf32>
    %27 = arith.addf %24, %26 : vector<2x256xf32>
    %c0_20 = arith.constant 0 : index
    %c0_21 = arith.constant 0 : index
    %28 = vector.load %arg7[%c0_20, %c0_21] : memref<256x32xf32, #tpu.memory_space<vmem>>, vector<256x32xf32>
    %cst_22 = arith.constant dense<0.000000e+00> : vector<2x32xf32>
    %29 = tpu.matmul %27, %28, %cst_22 {dimension_numbers = #tpu.dot_dimension_numbers<[1], [0], [0], [1], [0, 0, 1, 1], [], []>} : vector<2x256xf32>, vector<256x32xf32>, vector<2x32xf32> -> vector<2x32xf32>
    %c0_23 = arith.constant 0 : index
    %c0_24 = arith.constant 0 : index
    %30 = vector.load %arg8[%c0_23, %c0_24] : memref<1x32xf32, #tpu.memory_space<vmem>>, vector<1x32xf32>
    %31 = vector.broadcast %30 : vector<1x32xf32> to vector<2x32xf32>
    %32 = arith.addf %29, %31 : vector<2x32xf32>
    %cst_25 = arith.constant 0.000000e+00 : f32
    %33 = vector.broadcast %cst_25 : f32 to vector<2x32xf32>
    %34 = arith.cmpf oge, %32, %33 : vector<2x32xf32>
    %cst_26 = arith.constant 1.000000e-01 : f32
    %35 = vector.broadcast %cst_26 : f32 to vector<2x32xf32>
    %36 = arith.mulf %35, %32 : vector<2x32xf32>
    %37 = arith.select %34, %32, %36 : vector<2x32xi1>, vector<2x32xf32>
    %c0_27 = arith.constant 0 : index
    %c0_28 = arith.constant 0 : index
    %38 = vector.load %arg9[%c0_27, %c0_28] : memref<1x32xf32, #tpu.memory_space<vmem>>, vector<1x32xf32>
    %39 = vector.broadcast %38 : vector<1x32xf32> to vector<2x32xf32>
    %40 = arith.mulf %37, %39 : vector<2x32xf32>
    %c0_29 = arith.constant 0 : index
    %c0_30 = arith.constant 0 : index
    %41 = vector.load %arg10[%c0_29, %c0_30] : memref<1x32xf32, #tpu.memory_space<vmem>>, vector<1x32xf32>
    %42 = vector.broadcast %41 : vector<1x32xf32> to vector<2x32xf32>
    %43 = arith.addf %40, %42 : vector<2x32xf32>
    %c0_31 = arith.constant 0 : index
    %c0_32 = arith.constant 0 : index
    %44 = vector.load %arg11[%c0_31, %c0_32] : memref<32x3xf32, #tpu.memory_space<vmem>>, vector<32x3xf32>
    %cst_33 = arith.constant dense<0.000000e+00> : vector<2x3xf32>
    %45 = tpu.matmul %43, %44, %cst_33 {dimension_numbers = #tpu.dot_dimension_numbers<[1], [0], [0], [1], [0, 0, 1, 1], [], []>} : vector<2x32xf32>, vector<32x3xf32>, vector<2x3xf32> -> vector<2x3xf32>
    %c0_34 = arith.constant 0 : index
    %c0_35 = arith.constant 0 : index
    %46 = vector.load %arg12[%c0_34, %c0_35] : memref<1x3xf32, #tpu.memory_space<vmem>>, vector<1x3xf32>
    %47 = vector.broadcast %46 : vector<1x3xf32> to vector<2x3xf32>
    %48 = arith.addf %45, %47 : vector<2x3xf32>
    %c0_36 = arith.constant 0 : index
    %c0_37 = arith.constant 0 : index
    %49 = vector.load %arg14[%c0_36, %c0_37] : memref<2x3xf32, #tpu.memory_space<vmem>>, vector<2x3xf32>
    tpu.vector_store %arg14[%c0_36, %c0_37], %48 {strides = array<i32>} : memref<2x3xf32, #tpu.memory_space<vmem>>, vector<2x3xf32>,
    return
  }
}

module attributes {stable_mosaic.version = 11 : i64} {
  func.func @_kexp_kernel(%arg0: memref<256x16xf32, #tpu.memory_space<vmem>>, %arg1: memref<16x16xf32, #tpu.memory_space<vmem>>, %arg2: memref<1x16xf32, #tpu.memory_space<vmem>>, %arg3: memref<256x1xf32, #tpu.memory_space<vmem>>, %arg4: memref<256x16xf32, #tpu.memory_space<vmem>>) attributes {dimension_semantics = [], scalar_prefetch = 0 : i64, scratch_operands = 0 : i64, tpu.core_type = #tpu.core_type<tc>} {
    %c0 = arith.constant 0 : index
    %c0_0 = arith.constant 0 : index
    %0 = vector.load %arg0[%c0, %c0_0] : memref<256x16xf32, #tpu.memory_space<vmem>>, vector<256x16xf32>
    %c0_1 = arith.constant 0 : index
    %c0_2 = arith.constant 0 : index
    %1 = vector.load %arg1[%c0_1, %c0_2] : memref<16x16xf32, #tpu.memory_space<vmem>>, vector<16x16xf32>
    %cst = arith.constant dense<0.000000e+00> : vector<256x16xf32>
    %2 = tpu.matmul %0, %1, %cst {dimension_numbers = #tpu.dot_dimension_numbers<[1], [0], [0], [1], [0, 0, 1, 1], [], []>} : vector<256x16xf32>, vector<16x16xf32>, vector<256x16xf32> -> vector<256x16xf32>
    %c0_3 = arith.constant 0 : index
    %c0_4 = arith.constant 0 : index
    %3 = vector.load %arg2[%c0_3, %c0_4] : memref<1x16xf32, #tpu.memory_space<vmem>>, vector<1x16xf32>
    %4 = vector.broadcast %3 : vector<1x16xf32> to vector<256x16xf32>
    %5 = arith.addf %2, %4 : vector<256x16xf32>
    %cst_5 = arith.constant 0.000000e+00 : f32
    %6 = vector.broadcast %cst_5 : f32 to vector<256x16xf32>
    %7 = arith.maximumf %5, %6 : vector<256x16xf32>
    %c0_6 = arith.constant 0 : index
    %c0_7 = arith.constant 0 : index
    %8 = vector.load %arg3[%c0_6, %c0_7] : memref<256x1xf32, #tpu.memory_space<vmem>>, vector<256x1xf32>
    %9 = math.log %8 : vector<256x1xf32>
    %10 = vector.broadcast %9 : vector<256x1xf32> to vector<256x16xf32>
    %11 = arith.mulf %7, %10 : vector<256x16xf32>
    %12 = math.exp %11 : vector<256x16xf32>
    %c0_8 = arith.constant 0 : index
    %c0_9 = arith.constant 0 : index
    %13 = vector.load %arg4[%c0_8, %c0_9] : memref<256x16xf32, #tpu.memory_space<vmem>>, vector<256x16xf32>
    tpu.vector_store %arg4[%c0_8, %c0_9], %12 {strides = array<i32>} : memref<256x16xf32, #tpu.memory_space<vmem>>, vector<256x16xf32>,
    return
  }
}

module attributes {stable_mosaic.version = 11 : i64} {
  func.func @_core_kernel(%arg0: i32, %arg1: memref<1x256x16xf32, #tpu.memory_space<vmem>>, %arg2: memref<1x256x16xf32, #tpu.memory_space<vmem>>, %arg3: memref<1x256x16xf32, #tpu.memory_space<vmem>>, %arg4: memref<1x256x16xf32, #tpu.memory_space<vmem>>, %arg5: memref<1x1x3xf32, #tpu.memory_space<vmem>>, %arg6: memref<256x16xf32, #tpu.memory_space<vmem>>, %arg7: memref<256x256xf32, #tpu.memory_space<vmem>>, %arg8: memref<256x256xf32, #tpu.memory_space<vmem>>, %arg9: memref<16x16xf32, #tpu.memory_space<vmem>>, %arg10: memref<16x16xf32, #tpu.memory_space<vmem>>, %arg11: memref<256x256xf32, #tpu.memory_space<vmem>>, %arg12: memref<1x16xf32, #tpu.memory_space<vmem>>, %arg13: memref<1x16xf32, #tpu.memory_space<vmem>>, %arg14: memref<16x16xf32, #tpu.memory_space<vmem>>, %arg15: memref<1x16xf32, #tpu.memory_space<vmem>>, %arg16: memref<256x1xf32, #tpu.memory_space<vmem>>, %arg17: memref<256x1xf32, #tpu.memory_space<vmem>>, %arg18: memref<16x64xf32, #tpu.memory_space<vmem>>, %arg19: memref<1x64xf32, #tpu.memory_space<vmem>>, %arg20: memref<64x16xf32, #tpu.memory_space<vmem>>, %arg21: memref<1x16xf32, #tpu.memory_space<vmem>>, %arg22: memref<256x1xf32, #tpu.memory_space<vmem>>, %arg23: memref<256x1xf32, #tpu.memory_space<vmem>>, %arg24: memref<1x256x16xf32, #tpu.memory_space<vmem>>) attributes {dimension_semantics = [#tpu.dimension_semantics<parallel>], iteration_bounds = array<i64: 2>, scalar_prefetch = 0 : i64, scratch_operands = 0 : i64, tpu.core_type = #tpu.core_type<tc>, window_params = [{transform_indices = @transform_0, window_bounds = array<i64: 1, 256, 16>}, {transform_indices = @transform_1, window_bounds = array<i64: 1, 256, 16>}, {transform_indices = @transform_2, window_bounds = array<i64: 1, 256, 16>}, {transform_indices = @transform_3, window_bounds = array<i64: 1, 256, 16>}, {transform_indices = @transform_4, window_bounds = array<i64: 1, 1, 3>}, {pipeline_mode = #tpu.pipeline_mode<synchronous>, transform_indices = @transform_5, window_bounds = array<i64: 256, 16>}, {pipeline_mode = #tpu.pipeline_mode<synchronous>, transform_indices = @transform_6, window_bounds = array<i64: 256, 256>}, {pipeline_mode = #tpu.pipeline_mode<synchronous>, transform_indices = @transform_7, window_bounds = array<i64: 256, 256>}, {pipeline_mode = #tpu.pipeline_mode<synchronous>, transform_indices = @transform_8, window_bounds = array<i64: 16, 16>}, {pipeline_mode = #tpu.pipeline_mode<synchronous>, transform_indices = @transform_9, window_bounds = array<i64: 16, 16>}, {pipeline_mode = #tpu.pipeline_mode<synchronous>, transform_indices = @transform_10, window_bounds = array<i64: 256, 256>}, {pipeline_mode = #tpu.pipeline_mode<synchronous>, transform_indices = @transform_11, window_bounds = array<i64: 1, 16>}, {pipeline_mode = #tpu.pipeline_mode<synchronous>, transform_indices = @transform_12, window_bounds = array<i64: 1, 16>}, {pipeline_mode = #tpu.pipeline_mode<synchronous>, transform_indices = @transform_13, window_bounds = array<i64: 16, 16>}, {pipeline_mode = #tpu.pipeline_mode<synchronous>, transform_indices = @transform_14, window_bounds = array<i64: 1, 16>}, {pipeline_mode = #tpu.pipeline_mode<synchronous>, transform_indices = @transform_15, window_bounds = array<i64: 256, 1>}, {pipeline_mode = #tpu.pipeline_mode<synchronous>, transform_indices = @transform_16, window_bounds = array<i64: 256, 1>}, {pipeline_mode = #tpu.pipeline_mode<synchronous>, transform_indices = @transform_17, window_bounds = array<i64: 16, 64>}, {pipeline_mode = #tpu.pipeline_mode<synchronous>, transform_indices = @transform_18, window_bounds = array<i64: 1, 64>}, {pipeline_mode = #tpu.pipeline_mode<synchronous>, transform_indices = @transform_19, window_bounds = array<i64: 64, 16>}, {pipeline_mode = #tpu.pipeline_mode<synchronous>, transform_indices = @transform_20, window_bounds = array<i64: 1, 16>}, {pipeline_mode = #tpu.pipeline_mode<synchronous>, transform_indices = @transform_21, window_bounds = array<i64: 256, 1>}, {pipeline_mode = #tpu.pipeline_mode<synchronous>, transform_indices = @transform_22, window_bounds = array<i64: 256, 1>}, {transform_indices = @transform_23, window_bounds = array<i64: 1, 256, 16>}]} {
    %c0 = arith.constant 0 : index
    %c0_0 = arith.constant 0 : index
    %c0_1 = arith.constant 0 : index
    %0 = vector.load %arg2[%c0, %c0_0, %c0_1] : memref<1x256x16xf32, #tpu.memory_space<vmem>>, vector<1x256x16xf32>
    %1 = vector.shape_cast %0 : vector<1x256x16xf32> to vector<256x16xf32>
    %c0_2 = arith.constant 0 : index
    %c0_3 = arith.constant 0 : index
    %2 = vector.load %arg6[%c0_2, %c0_3] : memref<256x16xf32, #tpu.memory_space<vmem>>, vector<256x16xf32>
    %c0_4 = arith.constant 0 : index
    %c0_5 = arith.constant 0 : index
    %3 = vector.load %arg7[%c0_4, %c0_5] : memref<256x256xf32, #tpu.memory_space<vmem>>, vector<256x256xf32>
    %cst = arith.constant dense<0.000000e+00> : vector<256x16xf32>
    %4 = tpu.matmul %3, %1, %cst {dimension_numbers = #tpu.dot_dimension_numbers<[1], [0], [0], [1], [0, 0, 1, 1], [], []>} : vector<256x256xf32>, vector<256x16xf32>, vector<256x16xf32> -> vector<256x16xf32>
    %5 = arith.mulf %4, %2 : vector<256x16xf32>
    %c0_6 = arith.constant 0 : index
    %c0_7 = arith.constant 0 : index
    %6 = vector.load %arg8[%c0_6, %c0_7] : memref<256x256xf32, #tpu.memory_space<vmem>>, vector<256x256xf32>
    %cst_8 = arith.constant dense<0.000000e+00> : vector<256x16xf32>
    %7 = tpu.matmul %6, %5, %cst_8 {dimension_numbers = #tpu.dot_dimension_numbers<[1], [0], [0], [1], [0, 0, 1, 1], [], []>} : vector<256x256xf32>, vector<256x16xf32>, vector<256x16xf32> -> vector<256x16xf32>
    %c0_9 = arith.constant 0 : index
    %c0_10 = arith.constant 0 : index
    %8 = vector.load %arg9[%c0_9, %c0_10] : memref<16x16xf32, #tpu.memory_space<vmem>>, vector<16x16xf32>
    %cst_11 = arith.constant dense<0.000000e+00> : vector<256x16xf32>
    %9 = tpu.matmul %1, %8, %cst_11 {dimension_numbers = #tpu.dot_dimension_numbers<[1], [0], [0], [1], [0, 0, 1, 1], [], []>} : vector<256x16xf32>, vector<16x16xf32>, vector<256x16xf32> -> vector<256x16xf32>
    %10 = arith.mulf %9, %2 : vector<256x16xf32>
    %c0_12 = arith.constant 0 : index
    %c0_13 = arith.constant 0 : index
    %11 = vector.load %arg10[%c0_12, %c0_13] : memref<16x16xf32, #tpu.memory_space<vmem>>, vector<16x16xf32>
    %cst_14 = arith.constant dense<0.000000e+00> : vector<256x16xf32>
    %12 = tpu.matmul %10, %11, %cst_14 {dimension_numbers = #tpu.dot_dimension_numbers<[1], [0], [0], [1], [0, 0, 1, 1], [], []>} : vector<256x16xf32>, vector<16x16xf32>, vector<256x16xf32> -> vector<256x16xf32>
    %c0_15 = arith.constant 0 : index
    %c0_16 = arith.constant 0 : index
    %c0_17 = arith.constant 0 : index
    %13 = vector.load %arg3[%c0_15, %c0_16, %c0_17] : memref<1x256x16xf32, #tpu.memory_space<vmem>>, vector<1x256x16xf32>
    %14 = vector.shape_cast %13 : vector<1x256x16xf32> to vector<256x16xf32>
    %c0_18 = arith.constant 0 : index
    %c0_19 = arith.constant 0 : index
    %c0_20 = arith.constant 0 : index
    %15 = vector.load %arg5[%c0_18, %c0_19, %c0_20] : memref<1x1x3xf32, #tpu.memory_space<vmem>>, vector<1x1x3xf32>
    %16 = vector.shape_cast %15 : vector<1x1x3xf32> to vector<1x3xf32>
    %17 = vector.extract_strided_slice %16 {offsets = [0, 0], sizes = [1, 1], strides = [1, 1]} : vector<1x3xf32> to vector<1x1xf32>
    %18 = vector.broadcast %17 : vector<1x1xf32> to vector<256x16xf32>
    %19 = arith.mulf %18, %7 : vector<256x16xf32>
    %20 = vector.extract_strided_slice %16 {offsets = [0, 1], sizes = [1, 1], strides = [1, 1]} : vector<1x3xf32> to vector<1x1xf32>
    %21 = vector.broadcast %20 : vector<1x1xf32> to vector<256x16xf32>
    %22 = arith.mulf %21, %14 : vector<256x16xf32>
    %23 = arith.addf %19, %22 : vector<256x16xf32>
    %24 = vector.extract_strided_slice %16 {offsets = [0, 2], sizes = [1, 1], strides = [1, 1]} : vector<1x3xf32> to vector<1x1xf32>
    %25 = vector.broadcast %24 : vector<1x1xf32> to vector<256x16xf32>
    %26 = arith.mulf %25, %12 : vector<256x16xf32>
    %27 = arith.addf %23, %26 : vector<256x16xf32>
    %cst_21 = arith.constant dense<0.000000e+00> : vector<256xf32>
    %28 = vector.multi_reduction <add>, %27, %cst_21 [1] : vector<256x16xf32> to vector<256xf32>
    %29 = vector.shape_cast %28 : vector<256xf32> to vector<256x1xf32>
    %cst_22 = arith.constant 1.600000e+01 : f32
    %30 = vector.broadcast %cst_22 : f32 to vector<256x1xf32>
    %31 = arith.divf %29, %30 : vector<256x1xf32>
    %32 = vector.broadcast %31 : vector<256x1xf32> to vector<256x16xf32>
    %33 = arith.subf %27, %32 : vector<256x16xf32>
    %34 = arith.mulf %33, %33 : vector<256x16xf32>
    %cst_23 = arith.constant dense<0.000000e+00> : vector<256xf32>
    %35 = vector.multi_reduction <add>, %34, %cst_23 [1] : vector<256x16xf32> to vector<256xf32>
    %36 = vector.shape_cast %35 : vector<256xf32> to vector<256x1xf32>
    %cst_24 = arith.constant 1.600000e+01 : f32
    %37 = vector.broadcast %cst_24 : f32 to vector<256x1xf32>
    %38 = arith.divf %36, %37 : vector<256x1xf32>
    %cst_25 = arith.constant 9.99999974E-6 : f32
    %39 = vector.broadcast %cst_25 : f32 to vector<256x1xf32>
    %40 = arith.addf %38, %39 : vector<256x1xf32>
    %41 = math.rsqrt %40 : vector<256x1xf32>
    %42 = vector.broadcast %41 : vector<256x1xf32> to vector<256x16xf32>
    %43 = arith.mulf %33, %42 : vector<256x16xf32>
    %c0_26 = arith.constant 0 : index
    %c0_27 = arith.constant 0 : index
    %44 = vector.load %arg12[%c0_26, %c0_27] : memref<1x16xf32, #tpu.memory_space<vmem>>, vector<1x16xf32>
    %45 = vector.broadcast %44 : vector<1x16xf32> to vector<256x16xf32>
    %46 = arith.mulf %43, %45 : vector<256x16xf32>
    %c0_28 = arith.constant 0 : index
    %c0_29 = arith.constant 0 : index
    %47 = vector.load %arg13[%c0_28, %c0_29] : memref<1x16xf32, #tpu.memory_space<vmem>>, vector<1x16xf32>
    %48 = vector.broadcast %47 : vector<1x16xf32> to vector<256x16xf32>
    %49 = arith.addf %46, %48 : vector<256x16xf32>
    %c0_30 = arith.constant 0 : index
    %c0_31 = arith.constant 0 : index
    %c0_32 = arith.constant 0 : index
    %50 = vector.load %arg4[%c0_30, %c0_31, %c0_32] : memref<1x256x16xf32, #tpu.memory_space<vmem>>, vector<1x256x16xf32>
    %51 = vector.shape_cast %50 : vector<1x256x16xf32> to vector<256x16xf32>
    %52 = arith.negf %51 : vector<256x16xf32>
    %53 = math.exp %52 : vector<256x16xf32>
    %cst_33 = arith.constant 1.000000e+00 : f32
    %54 = vector.broadcast %cst_33 : f32 to vector<256x16xf32>
    %55 = arith.addf %54, %53 : vector<256x16xf32>
    %56 = arith.divf %54, %55 : vector<256x16xf32>
    %57 = arith.mulf %51, %56 : vector<256x16xf32>
    %58 = arith.mulf %49, %57 : vector<256x16xf32>
    %c0_34 = arith.constant 0 : index
    %c0_35 = arith.constant 0 : index
    %59 = vector.load %arg14[%c0_34, %c0_35] : memref<16x16xf32, #tpu.memory_space<vmem>>, vector<16x16xf32>
    %cst_36 = arith.constant dense<0.000000e+00> : vector<256x16xf32>
    %60 = tpu.matmul %58, %59, %cst_36 {dimension_numbers = #tpu.dot_dimension_numbers<[1], [0], [0], [1], [0, 0, 1, 1], [], []>} : vector<256x16xf32>, vector<16x16xf32>, vector<256x16xf32> -> vector<256x16xf32>
    %c0_37 = arith.constant 0 : index
    %c0_38 = arith.constant 0 : index
    %61 = vector.load %arg15[%c0_37, %c0_38] : memref<1x16xf32, #tpu.memory_space<vmem>>, vector<1x16xf32>
    %62 = vector.broadcast %61 : vector<1x16xf32> to vector<256x16xf32>
    %63 = arith.addf %60, %62 : vector<256x16xf32>
    %c0_39 = arith.constant 0 : index
    %c0_40 = arith.constant 0 : index
    %64 = vector.load %arg11[%c0_39, %c0_40] : memref<256x256xf32, #tpu.memory_space<vmem>>, vector<256x256xf32>
    %cst_41 = arith.constant dense<0.000000e+00> : vector<256x16xf32>
    %65 = tpu.matmul %64, %63, %cst_41 {dimension_numbers = #tpu.dot_dimension_numbers<[1], [0], [0], [1], [0, 0, 1, 1], [], []>} : vector<256x256xf32>, vector<256x16xf32>, vector<256x16xf32> -> vector<256x16xf32>
    %66 = arith.subf %63, %65 : vector<256x16xf32>
    %67 = arith.mulf %66, %66 : vector<256x16xf32>
    %cst_42 = arith.constant dense<0.000000e+00> : vector<256x16xf32>
    %68 = tpu.matmul %64, %67, %cst_42 {dimension_numbers = #tpu.dot_dimension_numbers<[1], [0], [0], [1], [0, 0, 1, 1], [], []>} : vector<256x256xf32>, vector<256x16xf32>, vector<256x16xf32> -> vector<256x16xf32>
    %cst_43 = arith.constant 9.99999997E-7 : f32
    %69 = vector.broadcast %cst_43 : f32 to vector<256x16xf32>
    %70 = arith.addf %68, %69 : vector<256x16xf32>
    %71 = math.rsqrt %70 : vector<256x16xf32>
    %72 = arith.mulf %66, %71 : vector<256x16xf32>
    %c0_44 = arith.constant 0 : index
    %c0_45 = arith.constant 0 : index
    %73 = vector.load %arg16[%c0_44, %c0_45] : memref<256x1xf32, #tpu.memory_space<vmem>>, vector<256x1xf32>
    %74 = vector.broadcast %73 : vector<256x1xf32> to vector<256x16xf32>
    %75 = arith.mulf %72, %74 : vector<256x16xf32>
    %c0_46 = arith.constant 0 : index
    %c0_47 = arith.constant 0 : index
    %76 = vector.load %arg17[%c0_46, %c0_47] : memref<256x1xf32, #tpu.memory_space<vmem>>, vector<256x1xf32>
    %77 = vector.broadcast %76 : vector<256x1xf32> to vector<256x16xf32>
    %78 = arith.addf %75, %77 : vector<256x16xf32>
    %c0_48 = arith.constant 0 : index
    %c0_49 = arith.constant 0 : index
    %c0_50 = arith.constant 0 : index
    %79 = vector.load %arg1[%c0_48, %c0_49, %c0_50] : memref<1x256x16xf32, #tpu.memory_space<vmem>>, vector<1x256x16xf32>
    %80 = vector.shape_cast %79 : vector<1x256x16xf32> to vector<256x16xf32>
    %81 = arith.addf %80, %78 : vector<256x16xf32>
    %c0_51 = arith.constant 0 : index
    %c0_52 = arith.constant 0 : index
    %82 = vector.load %arg18[%c0_51, %c0_52] : memref<16x64xf32, #tpu.memory_space<vmem>>, vector<16x64xf32>
    %cst_53 = arith.constant dense<0.000000e+00> : vector<256x64xf32>
    %83 = tpu.matmul %81, %82, %cst_53 {dimension_numbers = #tpu.dot_dimension_numbers<[1], [0], [0], [1], [0, 0, 1, 1], [], []>} : vector<256x16xf32>, vector<16x64xf32>, vector<256x64xf32> -> vector<256x64xf32>
    %c0_54 = arith.constant 0 : index
    %c0_55 = arith.constant 0 : index
    %84 = vector.load %arg19[%c0_54, %c0_55] : memref<1x64xf32, #tpu.memory_space<vmem>>, vector<1x64xf32>
    %85 = vector.broadcast %84 : vector<1x64xf32> to vector<256x64xf32>
    %86 = arith.addf %83, %85 : vector<256x64xf32>
    %87 = arith.mulf %86, %86 : vector<256x64xf32>
    %88 = arith.mulf %86, %87 : vector<256x64xf32>
    %cst_56 = arith.constant 4.471500e-02 : f32
    %89 = vector.broadcast %cst_56 : f32 to vector<256x64xf32>
    %90 = arith.mulf %89, %88 : vector<256x64xf32>
    %91 = arith.addf %86, %90 : vector<256x64xf32>
    %cst_57 = arith.constant 0.797884583 : f32
    %92 = vector.broadcast %cst_57 : f32 to vector<256x64xf32>
    %93 = arith.mulf %92, %91 : vector<256x64xf32>
    %94 = math.tanh %93 : vector<256x64xf32>
    %cst_58 = arith.constant 1.000000e+00 : f32
    %95 = vector.broadcast %cst_58 : f32 to vector<256x64xf32>
    %96 = arith.addf %95, %94 : vector<256x64xf32>
    %cst_59 = arith.constant 5.000000e-01 : f32
    %97 = vector.broadcast %cst_59 : f32 to vector<256x64xf32>
    %98 = arith.mulf %97, %96 : vector<256x64xf32>
    %99 = arith.mulf %86, %98 : vector<256x64xf32>
    %c0_60 = arith.constant 0 : index
    %c0_61 = arith.constant 0 : index
    %100 = vector.load %arg20[%c0_60, %c0_61] : memref<64x16xf32, #tpu.memory_space<vmem>>, vector<64x16xf32>
    %cst_62 = arith.constant dense<0.000000e+00> : vector<256x16xf32>
    %101 = tpu.matmul %99, %100, %cst_62 {dimension_numbers = #tpu.dot_dimension_numbers<[1], [0], [0], [1], [0, 0, 1, 1], [], []>} : vector<256x64xf32>, vector<64x16xf32>, vector<256x16xf32> -> vector<256x16xf32>
    %c0_63 = arith.constant 0 : index
    %c0_64 = arith.constant 0 : index
    %102 = vector.load %arg21[%c0_63, %c0_64] : memref<1x16xf32, #tpu.memory_space<vmem>>, vector<1x16xf32>
    %103 = vector.broadcast %102 : vector<1x16xf32> to vector<256x16xf32>
    %104 = arith.addf %101, %103 : vector<256x16xf32>
    %cst_65 = arith.constant dense<0.000000e+00> : vector<256x16xf32>
    %105 = tpu.matmul %64, %104, %cst_65 {dimension_numbers = #tpu.dot_dimension_numbers<[1], [0], [0], [1], [0, 0, 1, 1], [], []>} : vector<256x256xf32>, vector<256x16xf32>, vector<256x16xf32> -> vector<256x16xf32>
    %106 = arith.subf %104, %105 : vector<256x16xf32>
    %107 = arith.mulf %106, %106 : vector<256x16xf32>
    %cst_66 = arith.constant dense<0.000000e+00> : vector<256x16xf32>
    %108 = tpu.matmul %64, %107, %cst_66 {dimension_numbers = #tpu.dot_dimension_numbers<[1], [0], [0], [1], [0, 0, 1, 1], [], []>} : vector<256x256xf32>, vector<256x16xf32>, vector<256x16xf32> -> vector<256x16xf32>
    %cst_67 = arith.constant 9.99999997E-7 : f32
    %109 = vector.broadcast %cst_67 : f32 to vector<256x16xf32>
    %110 = arith.addf %108, %109 : vector<256x16xf32>
    %111 = math.rsqrt %110 : vector<256x16xf32>
    %112 = arith.mulf %106, %111 : vector<256x16xf32>
    %c0_68 = arith.constant 0 : index
    %c0_69 = arith.constant 0 : index
    %113 = vector.load %arg22[%c0_68, %c0_69] : memref<256x1xf32, #tpu.memory_space<vmem>>, vector<256x1xf32>
    %114 = vector.broadcast %113 : vector<256x1xf32> to vector<256x16xf32>
    %115 = arith.mulf %112, %114 : vector<256x16xf32>
    %c0_70 = arith.constant 0 : index
    %c0_71 = arith.constant 0 : index
    %116 = vector.load %arg23[%c0_70, %c0_71] : memref<256x1xf32, #tpu.memory_space<vmem>>, vector<256x1xf32>
    %117 = vector.broadcast %116 : vector<256x1xf32> to vector<256x16xf32>
    %118 = arith.addf %115, %117 : vector<256x16xf32>
    %119 = arith.addf %81, %118 : vector<256x16xf32>
    %c0_72 = arith.constant 0 : index
    %c0_73 = arith.constant 0 : index
    %c0_74 = arith.constant 0 : index
    %120 = vector.load %arg24[%c0_72, %c0_73, %c0_74] : memref<1x256x16xf32, #tpu.memory_space<vmem>>, vector<1x256x16xf32>
    %121 = vector.shape_cast %120 : vector<1x256x16xf32> to vector<256x16xf32>
    %122 = vector.shape_cast %119 : vector<256x16xf32> to vector<1x256x16xf32>
    tpu.vector_store %arg24[%c0_72, %c0_73, %c0_74], %122 {strides = array<i32>} : memref<1x256x16xf32, #tpu.memory_space<vmem>>, vector<1x256x16xf32>,
    return
  }
  func.func @transform_0(%arg0: i32) -> (i32, i32, i32) {
    %c0_i32 = arith.constant 0 : i32
    %c0_i32_0 = arith.constant 0 : i32
    %c0_i32_1 = arith.constant 0 : i32
    return %arg0, %c0_i32, %c0_i32_0 : i32, i32, i32
  }
  func.func @transform_1(%arg0: i32) -> (i32, i32, i32) {
    %c0_i32 = arith.constant 0 : i32
    %c0_i32_0 = arith.constant 0 : i32
    %c0_i32_1 = arith.constant 0 : i32
    return %arg0, %c0_i32, %c0_i32_0 : i32, i32, i32
  }
  func.func @transform_2(%arg0: i32) -> (i32, i32, i32) {
    %c0_i32 = arith.constant 0 : i32
    %c0_i32_0 = arith.constant 0 : i32
    %c0_i32_1 = arith.constant 0 : i32
    return %arg0, %c0_i32, %c0_i32_0 : i32, i32, i32
  }
  func.func @transform_3(%arg0: i32) -> (i32, i32, i32) {
    %c0_i32 = arith.constant 0 : i32
    %c0_i32_0 = arith.constant 0 : i32
    %c0_i32_1 = arith.constant 0 : i32
    return %arg0, %c0_i32, %c0_i32_0 : i32, i32, i32
  }
  func.func @transform_4(%arg0: i32) -> (i32, i32, i32) {
    %c0_i32 = arith.constant 0 : i32
    %c0_i32_0 = arith.constant 0 : i32
    %c0_i32_1 = arith.constant 0 : i32
    return %arg0, %c0_i32, %c0_i32_0 : i32, i32, i32
  }
  func.func @transform_5(%arg0: i32) -> (i32, i32) {
    %c0_i32 = arith.constant 0 : i32
    %c0_i32_0 = arith.constant 0 : i32
    %c0_i32_1 = arith.constant 0 : i32
    return %c0_i32, %c0_i32_0 : i32, i32
  }
  func.func @transform_6(%arg0: i32) -> (i32, i32) {
    %c0_i32 = arith.constant 0 : i32
    %c0_i32_0 = arith.constant 0 : i32
    %c0_i32_1 = arith.constant 0 : i32
    return %c0_i32, %c0_i32_0 : i32, i32
  }
  func.func @transform_7(%arg0: i32) -> (i32, i32) {
    %c0_i32 = arith.constant 0 : i32
    %c0_i32_0 = arith.constant 0 : i32
    %c0_i32_1 = arith.constant 0 : i32
    return %c0_i32, %c0_i32_0 : i32, i32
  }
  func.func @transform_8(%arg0: i32) -> (i32, i32) {
    %c0_i32 = arith.constant 0 : i32
    %c0_i32_0 = arith.constant 0 : i32
    %c0_i32_1 = arith.constant 0 : i32
    return %c0_i32, %c0_i32_0 : i32, i32
  }
  func.func @transform_9(%arg0: i32) -> (i32, i32) {
    %c0_i32 = arith.constant 0 : i32
    %c0_i32_0 = arith.constant 0 : i32
    %c0_i32_1 = arith.constant 0 : i32
    return %c0_i32, %c0_i32_0 : i32, i32
  }
  func.func @transform_10(%arg0: i32) -> (i32, i32) {
    %c0_i32 = arith.constant 0 : i32
    %c0_i32_0 = arith.constant 0 : i32
    %c0_i32_1 = arith.constant 0 : i32
    return %c0_i32, %c0_i32_0 : i32, i32
  }
  func.func @transform_11(%arg0: i32) -> (i32, i32) {
    %c0_i32 = arith.constant 0 : i32
    %c0_i32_0 = arith.constant 0 : i32
    %c0_i32_1 = arith.constant 0 : i32
    return %c0_i32, %c0_i32_0 : i32, i32
  }
  func.func @transform_12(%arg0: i32) -> (i32, i32) {
    %c0_i32 = arith.constant 0 : i32
    %c0_i32_0 = arith.constant 0 : i32
    %c0_i32_1 = arith.constant 0 : i32
    return %c0_i32, %c0_i32_0 : i32, i32
  }
  func.func @transform_13(%arg0: i32) -> (i32, i32) {
    %c0_i32 = arith.constant 0 : i32
    %c0_i32_0 = arith.constant 0 : i32
    %c0_i32_1 = arith.constant 0 : i32
    return %c0_i32, %c0_i32_0 : i32, i32
  }
  func.func @transform_14(%arg0: i32) -> (i32, i32) {
    %c0_i32 = arith.constant 0 : i32
    %c0_i32_0 = arith.constant 0 : i32
    %c0_i32_1 = arith.constant 0 : i32
    return %c0_i32, %c0_i32_0 : i32, i32
  }
  func.func @transform_15(%arg0: i32) -> (i32, i32) {
    %c0_i32 = arith.constant 0 : i32
    %c0_i32_0 = arith.constant 0 : i32
    %c0_i32_1 = arith.constant 0 : i32
    return %c0_i32, %c0_i32_0 : i32, i32
  }
  func.func @transform_16(%arg0: i32) -> (i32, i32) {
    %c0_i32 = arith.constant 0 : i32
    %c0_i32_0 = arith.constant 0 : i32
    %c0_i32_1 = arith.constant 0 : i32
    return %c0_i32, %c0_i32_0 : i32, i32
  }
  func.func @transform_17(%arg0: i32) -> (i32, i32) {
    %c0_i32 = arith.constant 0 : i32
    %c0_i32_0 = arith.constant 0 : i32
    %c0_i32_1 = arith.constant 0 : i32
    return %c0_i32, %c0_i32_0 : i32, i32
  }
  func.func @transform_18(%arg0: i32) -> (i32, i32) {
    %c0_i32 = arith.constant 0 : i32
    %c0_i32_0 = arith.constant 0 : i32
    %c0_i32_1 = arith.constant 0 : i32
    return %c0_i32, %c0_i32_0 : i32, i32
  }
  func.func @transform_19(%arg0: i32) -> (i32, i32) {
    %c0_i32 = arith.constant 0 : i32
    %c0_i32_0 = arith.constant 0 : i32
    %c0_i32_1 = arith.constant 0 : i32
    return %c0_i32, %c0_i32_0 : i32, i32
  }
  func.func @transform_20(%arg0: i32) -> (i32, i32) {
    %c0_i32 = arith.constant 0 : i32
    %c0_i32_0 = arith.constant 0 : i32
    %c0_i32_1 = arith.constant 0 : i32
    return %c0_i32, %c0_i32_0 : i32, i32
  }
  func.func @transform_21(%arg0: i32) -> (i32, i32) {
    %c0_i32 = arith.constant 0 : i32
    %c0_i32_0 = arith.constant 0 : i32
    %c0_i32_1 = arith.constant 0 : i32
    return %c0_i32, %c0_i32_0 : i32, i32
  }
  func.func @transform_22(%arg0: i32) -> (i32, i32) {
    %c0_i32 = arith.constant 0 : i32
    %c0_i32_0 = arith.constant 0 : i32
    %c0_i32_1 = arith.constant 0 : i32
    return %c0_i32, %c0_i32_0 : i32, i32
  }
  func.func @transform_23(%arg0: i32) -> (i32, i32, i32) {
    %c0_i32 = arith.constant 0 : i32
    %c0_i32_0 = arith.constant 0 : i32
    %c0_i32_1 = arith.constant 0 : i32
    return %arg0, %c0_i32, %c0_i32_0 : i32, i32, i32
  }
}

</mosaic_0001>

<bundles_post_ra>
// kernel: heat_block_forward.3
= control target key start
LH: loop header
LB: loop body
LE: loop exit
PB: predicated region body
PF: predicated region fallthrough
CT: control target
= control target key end

     0   :  { %v1544_v0 = vmov 0.0|0.0   ;;  %vm199_vm0 = vcmask 130048   ;;  %vm777_vm1 = vcmask 261120   ;;  %vm1001_vm2 = vcmask 1041409   ;;  %s2789_s1 = inlined_call_operand.vmem [shape: f32[144,32], index: 1, kind: input, shape index: {}]   ;;  %s2790_s0 = inlined_call_operand.vmem [shape: f32[512,144], index: 0, kind: input, shape index: {}]   ;;  %s2791_s3 = inlined_call_operand.vmem [shape: f32[16,256], index: 3, kind: input, shape index: {}]   ;;  %s2792_s2 = inlined_call_operand.vmem [shape: f32[1,32], index: 2, kind: input, shape index: {}]   ;;  %s2793_s13 = inlined_call_operand.vmem [shape: f32[512,32], index: 13, kind: output, shape index: {0}]   ;;  %s2794_s7 = inlined_call_operand.vmem [shape: f32[256,32], index: 7, kind: input, shape index: {}]   ;;  %s2795_s4 = inlined_call_operand.vmem [shape: f32[1,256], index: 4, kind: input, shape index: {}]   ;;  %s2796_s5 = inlined_call_operand.vmem [shape: f32[1,256], index: 5, kind: input, shape index: {}]   ;;  %s2797_s6 = inlined_call_operand.vmem [shape: f32[1,256], index: 6, kind: input, shape index: {}]   ;;  %s2798_s11 = inlined_call_operand.vmem [shape: f32[32,3], index: 11, kind: input, shape index: {}]   ;;  %s2799_s8 = inlined_call_operand.vmem [shape: f32[1,32], index: 8, kind: input, shape index: {}]   ;;  %s2800_s9 = inlined_call_operand.vmem [shape: f32[1,32], index: 9, kind: input, shape index: {}]   ;;  %s2801_s10 = inlined_call_operand.vmem [shape: f32[1,32], index: 10, kind: input, shape index: {}]   ;;  %s2802_s12 = inlined_call_operand.vmem [shape: f32[1,3], index: 12, kind: input, shape index: {}]   ;;  %s2803_s14 = inlined_call_operand.vmem [shape: f32[2,3], index: 14, kind: output, shape index: {1}]  }
   0x1   :  { %1454 = vmatprep.subr.bf16.mxu0 %v1544_v0  ;;  %v174_v1 = vld [vmem:[%s2789_s1] sm:$0xff]  ;;  %v175_v2 = vld [vmem:[%s2789_s1 + $0x8] sm:$0xff]  ;;  %v176_v3 = vld [vmem:[%s2789_s1 + $0x10] sm:$0xff]  ;;  %1523 = vmatprep.subr.bf16.mxu1 %v1544_v0  ;;  %vm1546_vm5 = vmmov 0   ;;  %vm1322_vm7 = vcmask 17408  }
   0x2   :  { %v1455_v4 = vpack.c.bf16 %v175_v2, %v174_v1  ;;  %v177_v5 = vld [vmem:[%s2789_s1 + $0x18] sm:$0xff]  ;;  %v178_v7 = vld [vmem:[%s2789_s1 + $0x20] sm:$0xff]  ;;  %v179_v8 = vld [vmem:[%s2789_s1 + $0x28] sm:$0xff] }
   0x3   :  { %v1458_v6 = vpack.c.bf16 %v177_v5, %v176_v3  ;;  %v47_v9 = vld [vmem:[%s2790_s0 + $0x8] sm:$0xff]  ;;  %v1461_v10 = vpack.c.bf16 %v179_v8, %v178_v7  ;;  %v180_v11 = vld [vmem:[%s2789_s1 + $0x30] sm:$0xff]  ;;  %v181_v12 = vld [vmem:[%s2789_s1 + $0x38] sm:$0xff] }
   0x4   :  { %1456 = vmatpush1.bf16.msra.mxu0 %v1455_v4  ;;  %1532 = vmatpush1.bf16.msra.mxu1 %v1455_v4  ;;  %v1464_v13 = vpack.c.bf16 %v181_v12, %v180_v11  ;;  %v182_v14 = vld [vmem:[%s2789_s1 + $0x40] sm:$0xff]  ;;  %v183_v15 = vld [vmem:[%s2789_s1 + $0x48] sm:$0xff]  ;;  %v184_v17 = vld [vmem:[%s2789_s1 + $0x50] sm:$0xff] }
   0x5   :  { %1457 = vmatprep.subr.bf16.mxu0 %v1544_v0  ;;  %1524 = vmatprep.subr.bf16.mxu1 %v1544_v0  ;;  %v1467_v16 = vpack.c.bf16 %v183_v15, %v182_v14  ;;  %v185_v18 = vld [vmem:[%s2789_s1 + $0x58] sm:$0xff]  ;;  %v186_v20 = vld [vmem:[%s2789_s1 + $0x60] sm:$0xff]  ;;  %v187_v21 = vld [vmem:[%s2789_s1 + $0x68] sm:$0xff] }
   0x6   :  { %1333 = vmatprep.mubr.msk.f32.mxu0 %vm199_vm0, %v47_v9  ;;  %v1470_v19 = vpack.c.bf16 %v185_v18, %v184_v17  ;;  %v123_v22 = vld [vmem:[%s2790_s0 + $0x268] sm:$0xff]  ;;  %v1473_v23 = vpack.c.bf16 %v187_v21, %v186_v20  ;;  %v188_v24 = vld [vmem:[%s2789_s1 + $0x70] sm:$0xff]  ;;  %v189_v25 = vld [vmem:[%s2789_s1 + $0x78] sm:$0xff] }
   0x7   :  { %1371 = vmatprep.mubr.msk.f32.mxu1 %vm199_vm0, %v123_v22  ;;  %v1476_v26 = vpack.c.bf16 %v189_v25, %v188_v24  ;;  %v190_v27 = vld [vmem:[%s2789_s1 + $0x80] sm:$0xff]  ;;  %v191_v28 = vld [vmem:[%s2789_s1 + $0x88] sm:$0xff]  ;;  %v49_v31 = vld [vmem:[%s2790_s0 + $0x18] sm:$0xff] }
   0x8   :  { %1459 = vmatpush1.bf16.msra.mxu0 %v1458_v6  ;;  %1533 = vmatpush1.bf16.msra.mxu1 %v1458_v6  ;;  %v1479_v29 = vpack.c.bf16 %v191_v28, %v190_v27  ;;  %v46_v30 = vld [vmem:[%s2790_s0] sm:$0xff]  ;;  %v125_v33 = vld [vmem:[%s2790_s0 + $0x278] sm:$0xff]  ;;  %v48_v34 = vld [vmem:[%s2790_s0 + $0x10] sm:$0xff] }
   0x9   :  { %1460 = vmatprep.subr.bf16.mxu0 %v1544_v0  ;;  %1525 = vmatprep.subr.bf16.mxu1 %v1544_v0  ;;  %v122_v32 = vld [vmem:[%s2790_s0 + $0x260] sm:$0xff]  ;;  %v51_v35 = vld [vmem:[%s2790_s0 + $0x28] sm:$0xff]  ;;  %v124_v36 = vld [vmem:[%s2790_s0 + $0x270] sm:$0xff] }
   0xa   :  { %v127_v37 = vld [vmem:[%s2790_s0 + $0x288] sm:$0xff]  ;;  %v50_v38 = vld [vmem:[%s2790_s0 + $0x20] sm:$0xff]  ;;  %v53_v39 = vld [vmem:[%s2790_s0 + $0x38] sm:$0xff] }
   0xb   :  { %v126_v40 = vld [vmem:[%s2790_s0 + $0x280] sm:$0xff]  ;;  %v129_v41 = vld [vmem:[%s2790_s0 + $0x298] sm:$0xff]  ;;  %v52_v42 = vld [vmem:[%s2790_s0 + $0x30] sm:$0xff] }
   0xc   :  { %1462 = vmatpush1.bf16.msra.mxu0 %v1461_v10  ;;  %1534 = vmatpush1.bf16.msra.mxu1 %v1461_v10  ;;  %v55_v43 = vld [vmem:[%s2790_s0 + $0x48] sm:$0xff]  ;;  %v128_v44 = vld [vmem:[%s2790_s0 + $0x290] sm:$0xff]  ;;  %v54_v46 = vld [vmem:[%s2790_s0 + $0x40] sm:$0xff] }
   0xd   :  { %1463 = vmatprep.subr.bf16.mxu0 %v1544_v0  ;;  %1526 = vmatprep.subr.bf16.mxu1 %v1544_v0  ;;  %v131_v45 = vld [vmem:[%s2790_s0 + $0x2a8] sm:$0xff]  ;;  %v57_v47 = vld [vmem:[%s2790_s0 + $0x58] sm:$0xff]  ;;  %v130_v48 = vld [vmem:[%s2790_s0 + $0x2a0] sm:$0xff] }
   0xe   :  { %v133_v49 = vld [vmem:[%s2790_s0 + $0x2b8] sm:$0xff]  ;;  %v56_v50 = vld [vmem:[%s2790_s0 + $0x50] sm:$0xff]  ;;  %v59_v51 = vld [vmem:[%s2790_s0 + $0x68] sm:$0xff] }
   0xf   :  { %v132_v52 = vld [vmem:[%s2790_s0 + $0x2b0] sm:$0xff]  ;;  %v135_v53 = vld [vmem:[%s2790_s0 + $0x2c8] sm:$0xff]  ;;  %v58_v54 = vld [vmem:[%s2790_s0 + $0x60] sm:$0xff] }
  0x10   :  { %1465 = vmatpush1.bf16.msra.mxu0 %v1464_v13  ;;  %1535 = vmatpush1.bf16.msra.mxu1 %v1464_v13  ;;  %v61_v55 = vld [vmem:[%s2790_s0 + $0x78] sm:$0xff]  ;;  %v134_v56 = vld [vmem:[%s2790_s0 + $0x2c0] sm:$0xff]  ;;  %v60_v58 = vld [vmem:[%s2790_s0 + $0x70] sm:$0xff] }
  0x11   :  { %1466 = vmatprep.subr.bf16.mxu0 %v1544_v0  ;;  %1527 = vmatprep.subr.bf16.mxu1 %v1544_v0  ;;  %v137_v57 = vld [vmem:[%s2790_s0 + $0x2d8] sm:$0xff]  ;;  %v63_v59 = vld [vmem:[%s2790_s0 + $0x88] sm:$0xff]  ;;  %v136_v60 = vld [vmem:[%s2790_s0 + $0x2d0] sm:$0xff] }
  0x12   :  { %v139_v61 = vld [vmem:[%s2790_s0 + $0x2e8] sm:$0xff]  ;;  %v62_v62 = vld [vmem:[%s2790_s0 + $0x80] sm:$0xff]  ;;  %v65_v63 = vld [vmem:[%s2790_s0 + $0x98] sm:$0xff] }
  0x13   :  { %v138_v1 = vld [vmem:[%s2790_s0 + $0x2e0] sm:$0xff]  ;;  %v141_v2 = vld [vmem:[%s2790_s0 + $0x2f8] sm:$0xff]  ;;  %v64_v3 = vld [vmem:[%s2790_s0 + $0x90] sm:$0xff] }
  0x14   :  { %1468 = vmatpush1.bf16.msra.mxu0 %v1467_v16  ;;  %1536 = vmatpush1.bf16.msra.mxu1 %v1467_v16  ;;  %v67_v4 = vld [vmem:[%s2790_s0 + $0xa8] sm:$0xff]  ;;  %v140_v5 = vld [vmem:[%s2790_s0 + $0x2f0] sm:$0xff]  ;;  %v66_v7 = vld [vmem:[%s2790_s0 + $0xa0] sm:$0xff] }
  0x15   :  { %1469 = vmatprep.subr.bf16.mxu0 %v1544_v0  ;;  %1528 = vmatprep.subr.bf16.mxu1 %v1544_v0  ;;  %v143_v6 = vld [vmem:[%s2790_s0 + $0x308] sm:$0xff]  ;;  %v69_v8 = vld [vmem:[%s2790_s0 + $0xb8] sm:$0xff]  ;;  %v142_v9 = vld [vmem:[%s2790_s0 + $0x300] sm:$0xff] }
  0x16   :  { %v145_v10 = vld [vmem:[%s2790_s0 + $0x318] sm:$0xff]  ;;  %v68_v11 = vld [vmem:[%s2790_s0 + $0xb0] sm:$0xff]  ;;  %v71_v12 = vld [vmem:[%s2790_s0 + $0xc8] sm:$0xff] }
  0x17   :  { %v144_v13 = vld [vmem:[%s2790_s0 + $0x310] sm:$0xff]  ;;  %v147_v14 = vld [vmem:[%s2790_s0 + $0x328] sm:$0xff]  ;;  %v70_v15 = vld [vmem:[%s2790_s0 + $0xc0] sm:$0xff] }
  0x18   :  { %1471 = vmatpush1.bf16.msra.mxu0 %v1470_v19  ;;  %1537 = vmatpush1.bf16.msra.mxu1 %v1470_v19  ;;  %v73_v16 = vld [vmem:[%s2790_s0 + $0xd8] sm:$0xff]  ;;  %v146_v17 = vld [vmem:[%s2790_s0 + $0x320] sm:$0xff]  ;;  %v72_v19 = vld [vmem:[%s2790_s0 + $0xd0] sm:$0xff] }
  0x19   :  { %1472 = vmatprep.subr.bf16.mxu0 %v1544_v0  ;;  %1529 = vmatprep.subr.bf16.mxu1 %v1544_v0  ;;  %v149_v18 = vld [vmem:[%s2790_s0 + $0x338] sm:$0xff]  ;;  %v75_v20 = vld [vmem:[%s2790_s0 + $0xe8] sm:$0xff]  ;;  %v148_v21 = vld [vmem:[%s2790_s0 + $0x330] sm:$0xff] }
  0x1a   :  { %v151_v22 = vld [vmem:[%s2790_s0 + $0x348] sm:$0xff]  ;;  %v77_v24 = vld [vmem:[%s2790_s0 + $0xf8] sm:$0xff]  ;;  %v150_v25 = vld [vmem:[%s2790_s0 + $0x340] sm:$0xff] }
  0x1b   :  { %v76_v27 = vld [vmem:[%s2790_s0 + $0xf0] sm:$0xff]  ;;  %v79_v28 = vld [vmem:[%s2790_s0 + $0x108] sm:$0xff] }
  0x1c   :  { %1474 = vmatpush1.bf16.msra.mxu0 %v1473_v23  ;;  %1538 = vmatpush1.bf16.msra.mxu1 %v1473_v23  ;;  %v74_v23 = vld [vmem:[%s2790_s0 + $0xe0] sm:$0xff] }
  0x1d   :  { %1475 = vmatprep.subr.bf16.mxu0 %v1544_v0  ;;  %1530 = vmatprep.subr.bf16.mxu1 %v1544_v0 }
  0x20   :  { %1477 = vmatpush1.bf16.msra.mxu0 %v1476_v26  ;;  %1539 = vmatpush1.bf16.msra.mxu1 %v1476_v26  ;;  %v153_v26 = vld [vmem:[%s2790_s0 + $0x358] sm:$0xff] }
  0x21   :  { %1478 = vmatprep.subr.bf16.mxu0 %v1544_v0  ;;  %1531 = vmatprep.subr.bf16.mxu1 %v1544_v0 }
  0x24   :  { %1480 = vmatpush1.bf16.msra.mxu0 %v1479_v29  ;;  %1540 = vmatpush1.bf16.msra.mxu1 %v1479_v29  ;;  %v152_v29 = vld [vmem:[%s2790_s0 + $0x350] sm:$0xff] }
  0x27   :  { %457 = vmatmul.mubr.f32.vlgmr.msra.gmra.mrb[0].mxu0 %v46_v30  ;;  %647 = vmatmul.mubr.f32.vlgmr.msra.gmra.mrb[0].mxu1 %v122_v32  ;;  %v155_v30 = vld [vmem:[%s2790_s0 + $0x368] sm:$0xff]  ;;  %v81_v32 = vld [vmem:[%s2790_s0 + $0x118] sm:$0xff] }
  0x28   :  { %1334 = vmatprep.mubr.msk.f32.mxu0 %vm199_vm0, %v49_v31  ;;  %1372 = vmatprep.mubr.msk.f32.mxu1 %vm199_vm0, %v125_v33  ;;  %v78_v31 = vld [vmem:[%s2790_s0 + $0x100] sm:$0xff] }
  0x29   :  { %v154_v33 = vld [vmem:[%s2790_s0 + $0x360] sm:$0xff] }
  0x2b   :  { %462 = vmatmul.mubr.f32.gmra.mrb[2].mxu0 %v48_v34  ;;  %652 = vmatmul.mubr.f32.gmra.mrb[2].mxu1 %v124_v36  ;;  %v157_v34 = vld [vmem:[%s2790_s0 + $0x378] sm:$0xff]  ;;  %v83_v36 = vld [vmem:[%s2790_s0 + $0x128] sm:$0xff] }
  0x2c   :  { %1335 = vmatprep.mubr.msk.f32.mxu0 %vm199_vm0, %v51_v35  ;;  %1373 = vmatprep.mubr.msk.f32.mxu1 %vm199_vm0, %v127_v37  ;;  %v80_v35 = vld [vmem:[%s2790_s0 + $0x110] sm:$0xff] }
  0x2d   :  { %v156_v37 = vld [vmem:[%s2790_s0 + $0x370] sm:$0xff] }
  0x2f   :  { %467 = vmatmul.mubr.f32.gmra.mrb[4].mxu0 %v50_v38  ;;  %657 = vmatmul.mubr.f32.gmra.mrb[4].mxu1 %v126_v40  ;;  %v159_v38 = vld [vmem:[%s2790_s0 + $0x388] sm:$0xff]  ;;  %v85_v40 = vld [vmem:[%s2790_s0 + $0x138] sm:$0xff] }
  0x30   :  { %1336 = vmatprep.mubr.msk.f32.mxu0 %vm199_vm0, %v53_v39  ;;  %1374 = vmatprep.mubr.msk.f32.mxu1 %vm199_vm0, %v129_v41  ;;  %v82_v39 = vld [vmem:[%s2790_s0 + $0x120] sm:$0xff] }
  0x31   :  { %v158_v41 = vld [vmem:[%s2790_s0 + $0x380] sm:$0xff] }
  0x33   :  { %472 = vmatmul.mubr.f32.gmra.mrb[6].mxu0 %v52_v42  ;;  %662 = vmatmul.mubr.f32.gmra.mrb[6].mxu1 %v128_v44  ;;  %v161_v42 = vld [vmem:[%s2790_s0 + $0x398] sm:$0xff]  ;;  %v87_v44 = vld [vmem:[%s2790_s0 + $0x148] sm:$0xff] }
  0x34   :  { %1337 = vmatprep.mubr.msk.f32.mxu0 %vm199_vm0, %v55_v43  ;;  %1375 = vmatprep.mubr.msk.f32.mxu1 %vm199_vm0, %v131_v45  ;;  %v84_v43 = vld [vmem:[%s2790_s0 + $0x130] sm:$0xff] }
  0x35   :  { %v160_v45 = vld [vmem:[%s2790_s0 + $0x390] sm:$0xff] }
  0x37   :  { %477 = vmatmul.mubr.f32.gmra.mrb[8].mxu0 %v54_v46  ;;  %667 = vmatmul.mubr.f32.gmra.mrb[8].mxu1 %v130_v48  ;;  %v163_v46 = vld [vmem:[%s2790_s0 + $0x3a8] sm:$0xff]  ;;  %v89_v48 = vld [vmem:[%s2790_s0 + $0x158] sm:$0xff] }
  0x38   :  { %1338 = vmatprep.mubr.msk.f32.mxu0 %vm199_vm0, %v57_v47  ;;  %1376 = vmatprep.mubr.msk.f32.mxu1 %vm199_vm0, %v133_v49  ;;  %v86_v47 = vld [vmem:[%s2790_s0 + $0x140] sm:$0xff] }
  0x39   :  { %v162_v49 = vld [vmem:[%s2790_s0 + $0x3a0] sm:$0xff] }
  0x3b   :  { %482 = vmatmul.mubr.f32.gmra.mrb[10].mxu0 %v56_v50  ;;  %672 = vmatmul.mubr.f32.gmra.mrb[10].mxu1 %v132_v52  ;;  %v165_v50 = vld [vmem:[%s2790_s0 + $0x3b8] sm:$0xff]  ;;  %v91_v52 = vld [vmem:[%s2790_s0 + $0x168] sm:$0xff] }
  0x3c   :  { %1339 = vmatprep.mubr.msk.f32.mxu0 %vm199_vm0, %v59_v51  ;;  %1377 = vmatprep.mubr.msk.f32.mxu1 %vm199_vm0, %v135_v53  ;;  %v88_v51 = vld [vmem:[%s2790_s0 + $0x150] sm:$0xff] }
  0x3d   :  { %v164_v53 = vld [vmem:[%s2790_s0 + $0x3b0] sm:$0xff] }
  0x3f   :  { %487 = vmatmul.mubr.f32.gmra.mrb[12].mxu0 %v58_v54  ;;  %677 = vmatmul.mubr.f32.gmra.mrb[12].mxu1 %v134_v56  ;;  %v167_v54 = vld [vmem:[%s2790_s0 + $0x3c8] sm:$0xff]  ;;  %v93_v56 = vld [vmem:[%s2790_s0 + $0x178] sm:$0xff] }
  0x40   :  { %1340 = vmatprep.mubr.msk.f32.mxu0 %vm199_vm0, %v61_v55  ;;  %1378 = vmatprep.mubr.msk.f32.mxu1 %vm199_vm0, %v137_v57  ;;  %v90_v55 = vld [vmem:[%s2790_s0 + $0x160] sm:$0xff] }
  0x41   :  { %v166_v57 = vld [vmem:[%s2790_s0 + $0x3c0] sm:$0xff] }
  0x43   :  { %492 = vmatmul.mubr.f32.gmra.mrb[14].mxu0 %v60_v58  ;;  %682 = vmatmul.mubr.f32.gmra.mrb[14].mxu1 %v136_v60  ;;  %v169_v58 = vld [vmem:[%s2790_s0 + $0x3d8] sm:$0xff]  ;;  %v95_v60 = vld [vmem:[%s2790_s0 + $0x188] sm:$0xff] }
  0x44   :  { %1341 = vmatprep.mubr.msk.f32.mxu0 %vm199_vm0, %v63_v59  ;;  %1379 = vmatprep.mubr.msk.f32.mxu1 %vm199_vm0, %v139_v61  ;;  %v92_v59 = vld [vmem:[%s2790_s0 + $0x170] sm:$0xff] }
  0x45   :  { %v168_v61 = vld [vmem:[%s2790_s0 + $0x3d0] sm:$0xff] }
  0x47   :  { %497 = vmatmul.mubr.f32.gmra.mrb[16].mxu0 %v62_v62  ;;  %687 = vmatmul.mubr.f32.gmra.mrb[16].mxu1 %v138_v1  ;;  %v171_v62 = vld [vmem:[%s2790_s0 + $0x3e8] sm:$0xff]  ;;  %v97_v1 = vld [vmem:[%s2790_s0 + $0x198] sm:$0xff] }
  0x48   :  { %1342 = vmatprep.mubr.msk.f32.mxu0 %vm199_vm0, %v65_v63  ;;  %1380 = vmatprep.mubr.msk.f32.mxu1 %vm199_vm0, %v141_v2  ;;  %v94_v63 = vld [vmem:[%s2790_s0 + $0x180] sm:$0xff] }
  0x49   :  { %v170_v2 = vld [vmem:[%s2790_s0 + $0x3e0] sm:$0xff] }
  0x4b   :  { %502 = vmatmul.mubr.f32.gmra.mrb[18].mxu0 %v64_v3  ;;  %692 = vmatmul.mubr.f32.gmra.mrb[18].mxu1 %v140_v5  ;;  %v173_v3 = vld [vmem:[%s2790_s0 + $0x3f8] sm:$0xff]  ;;  %v99_v5 = vld [vmem:[%s2790_s0 + $0x1a8] sm:$0xff] }
  0x4c   :  { %1343 = vmatprep.mubr.msk.f32.mxu0 %vm199_vm0, %v67_v4  ;;  %1381 = vmatprep.mubr.msk.f32.mxu1 %vm199_vm0, %v143_v6  ;;  %v96_v4 = vld [vmem:[%s2790_s0 + $0x190] sm:$0xff] }
  0x4d   :  { %v172_v6 = vld [vmem:[%s2790_s0 + $0x3f0] sm:$0xff] }
  0x4f   :  { %507 = vmatmul.mubr.f32.gmra.mrb[20].mxu0 %v66_v7  ;;  %697 = vmatmul.mubr.f32.gmra.mrb[20].mxu1 %v142_v9  ;;  %v98_v7 = vld [vmem:[%s2790_s0 + $0x1a0] sm:$0xff]  ;;  %v100_v9 = vld [vmem:[%s2790_s0 + $0x1b0] sm:$0xff] }
  0x50   :  { %1344 = vmatprep.mubr.msk.f32.mxu0 %vm199_vm0, %v69_v8  ;;  %1382 = vmatprep.mubr.msk.f32.mxu1 %vm199_vm0, %v145_v10  ;;  %v101_v8 = vld [vmem:[%s2790_s0 + $0x1b8] sm:$0xff]  ;;  %v103_v10 = vld [vmem:[%s2790_s0 + $0x1c8] sm:$0xff] }
  0x53   :  { %512 = vmatmul.mubr.f32.gmra.mrb[22].mxu0 %v68_v11  ;;  %702 = vmatmul.mubr.f32.gmra.mrb[22].mxu1 %v144_v13  ;;  %v102_v11 = vld [vmem:[%s2790_s0 + $0x1c0] sm:$0xff]  ;;  %v104_v13 = vld [vmem:[%s2790_s0 + $0x1d0] sm:$0xff] }
  0x54   :  { %1345 = vmatprep.mubr.msk.f32.mxu0 %vm199_vm0, %v71_v12  ;;  %1383 = vmatprep.mubr.msk.f32.mxu1 %vm199_vm0, %v147_v14  ;;  %v105_v12 = vld [vmem:[%s2790_s0 + $0x1d8] sm:$0xff]  ;;  %v107_v14 = vld [vmem:[%s2790_s0 + $0x1e8] sm:$0xff] }
  0x57   :  { %517 = vmatmul.mubr.f32.gmra.mrb[24].mxu0 %v70_v15  ;;  %707 = vmatmul.mubr.f32.gmra.mrb[24].mxu1 %v146_v17  ;;  %v106_v15 = vld [vmem:[%s2790_s0 + $0x1e0] sm:$0xff]  ;;  %v108_v17 = vld [vmem:[%s2790_s0 + $0x1f0] sm:$0xff] }
  0x58   :  { %1346 = vmatprep.mubr.msk.f32.mxu0 %vm199_vm0, %v73_v16  ;;  %1384 = vmatprep.mubr.msk.f32.mxu1 %vm199_vm0, %v149_v18  ;;  %v109_v16 = vld [vmem:[%s2790_s0 + $0x1f8] sm:$0xff]  ;;  %v111_v18 = vld [vmem:[%s2790_s0 + $0x208] sm:$0xff] }
  0x5b   :  { %522 = vmatmul.mubr.f32.gmra.mrb[26].mxu0 %v72_v19  ;;  %712 = vmatmul.mubr.f32.gmra.mrb[26].mxu1 %v148_v21  ;;  %v110_v19 = vld [vmem:[%s2790_s0 + $0x200] sm:$0xff]  ;;  %v112_v21 = vld [vmem:[%s2790_s0 + $0x210] sm:$0xff] }
  0x5c   :  { %1347 = vmatprep.mubr.msk.f32.mxu0 %vm199_vm0, %v75_v20  ;;  %1385 = vmatprep.mubr.msk.f32.mxu1 %vm199_vm0, %v151_v22  ;;  %v113_v20 = vld [vmem:[%s2790_s0 + $0x218] sm:$0xff]  ;;  %v115_v22 = vld [vmem:[%s2790_s0 + $0x228] sm:$0xff] }
  0x5f   :  { %527 = vmatmul.mubr.f32.gmra.mrb[28].mxu0 %v74_v23  ;;  %717 = vmatmul.mubr.f32.gmra.mrb[28].mxu1 %v150_v25  ;;  %v114_v23 = vld [vmem:[%s2790_s0 + $0x220] sm:$0xff]  ;;  %v116_v25 = vld [vmem:[%s2790_s0 + $0x230] sm:$0xff] }
  0x60   :  { %1348 = vmatprep.mubr.msk.f32.mxu0 %vm199_vm0, %v77_v24  ;;  %1386 = vmatprep.mubr.msk.f32.mxu1 %vm199_vm0, %v153_v26  ;;  %v117_v24 = vld [vmem:[%s2790_s0 + $0x238] sm:$0xff]  ;;  %v119_v26 = vld [vmem:[%s2790_s0 + $0x248] sm:$0xff] }
  0x63   :  { %532 = vmatmul.mubr.f32.gmra.mrb[30].mxu0 %v76_v27  ;;  %722 = vmatmul.mubr.f32.gmra.mrb[30].mxu1 %v152_v29  ;;  %v118_v27 = vld [vmem:[%s2790_s0 + $0x240] sm:$0xff]  ;;  %v120_v29 = vld [vmem:[%s2790_s0 + $0x250] sm:$0xff] }
  0x64   :  { %1349 = vmatprep.mubr.msk.f32.mxu0 %vm199_vm0, %v79_v28  ;;  %1387 = vmatprep.mubr.msk.f32.mxu1 %vm199_vm0, %v155_v30  ;;  %v121_v28 = vld [vmem:[%s2790_s0 + $0x258] sm:$0xff]  ;;  %v984_v30 = vld [vmem:[%s2791_s3 + $0x8] sm:$0xff] }
  0x67   :  { %537 = vmatmul.mubr.f32.gmra.mrb[32].mxu0 %v78_v31  ;;  %727 = vmatmul.mubr.f32.gmra.mrb[32].mxu1 %v154_v33  ;;  %v986_v31 = vld [vmem:[%s2791_s3 + $0x18] sm:$0xff] }
  0x68   :  { %1350 = vmatprep.mubr.msk.f32.mxu0 %vm199_vm0, %v81_v32  ;;  %1388 = vmatprep.mubr.msk.f32.mxu1 %vm199_vm0, %v157_v34  ;;  %v983_v32 = vld [vmem:[%s2791_s3] sm:$0xff]  ;;  %v1481_v33 = vpack.c.bf16 %v986_v31, %v984_v30  ;;  %v985_v34 = vld [vmem:[%s2791_s3 + $0x10] sm:$0xff] }
  0x6a   :  { %1482 = vmatprep.subr.bf16.mxu1 %v1481_v33 }
  0x6b   :  { %542 = vmatmul.mubr.f32.gmra.mrb[34].mxu0 %v80_v35  ;;  %732 = vmatmul.mubr.f32.gmra.mrb[34].mxu1 %v156_v37  ;;  %v1483_v35 = vpack.c.bf16 %v985_v34, %v983_v32 }
  0x6c   :  { %1351 = vmatprep.mubr.msk.f32.mxu0 %vm199_vm0, %v83_v36  ;;  %1389 = vmatprep.mubr.msk.f32.mxu1 %vm199_vm0, %v159_v38  ;;  %v2157_v36 = vld [vmem:[%s2792_s2] ss:$0 sm:$0xff] }
  0x6d   :  { %1484 = vmatpush1.bf16.msra.mxu1 %v1483_v35 }
  0x6f   :  { %547 = vmatmul.mubr.f32.gmra.mrb[36].mxu0 %v82_v39  ;;  %737 = vmatmul.mubr.f32.gmra.mrb[36].mxu1 %v158_v41 }
  0x70   :  { %1352 = vmatprep.mubr.msk.f32.mxu0 %vm199_vm0, %v85_v40  ;;  %1390 = vmatprep.mubr.msk.f32.mxu1 %vm199_vm0, %v161_v42 }
  0x73   :  { %552 = vmatmul.mubr.f32.gmra.mrb[38].mxu0 %v84_v43  ;;  %742 = vmatmul.mubr.f32.gmra.mrb[38].mxu1 %v160_v45 }
  0x74   :  { %1353 = vmatprep.mubr.msk.f32.mxu0 %vm199_vm0, %v87_v44  ;;  %1391 = vmatprep.mubr.msk.f32.mxu1 %vm199_vm0, %v163_v46 }
  0x77   :  { %557 = vmatmul.mubr.f32.gmra.mrb[40].mxu0 %v86_v47  ;;  %747 = vmatmul.mubr.f32.gmra.mrb[40].mxu1 %v162_v49 }
  0x78   :  { %1354 = vmatprep.mubr.msk.f32.mxu0 %vm199_vm0, %v89_v48  ;;  %1392 = vmatprep.mubr.msk.f32.mxu1 %vm199_vm0, %v165_v50 }
  0x7b   :  { %562 = vmatmul.mubr.f32.gmra.mrb[42].mxu0 %v88_v51  ;;  %752 = vmatmul.mubr.f32.gmra.mrb[42].mxu1 %v164_v53 }
  0x7c   :  { %1355 = vmatprep.mubr.msk.f32.mxu0 %vm199_vm0, %v91_v52  ;;  %1393 = vmatprep.mubr.msk.f32.mxu1 %vm199_vm0, %v167_v54 }
  0x7f   :  { %567 = vmatmul.mubr.f32.gmra.mrb[44].mxu0 %v90_v55  ;;  %757 = vmatmul.mubr.f32.gmra.mrb[44].mxu1 %v166_v57 }
  0x80   :  { %1356 = vmatprep.mubr.msk.f32.mxu0 %vm199_vm0, %v93_v56  ;;  %1394 = vmatprep.mubr.msk.f32.mxu1 %vm199_vm0, %v169_v58 }
  0x83   :  { %572 = vmatmul.mubr.f32.gmra.mrb[46].mxu0 %v92_v59  ;;  %762 = vmatmul.mubr.f32.gmra.mrb[46].mxu1 %v168_v61 }
  0x84   :  { %1357 = vmatprep.mubr.msk.f32.mxu0 %vm199_vm0, %v95_v60  ;;  %1395 = vmatprep.mubr.msk.f32.mxu1 %vm199_vm0, %v171_v62 }
  0x87   :  { %577 = vmatmul.mubr.f32.gmra.mrb[48].mxu0 %v94_v63  ;;  %767 = vmatmul.mubr.f32.gmra.mrb[48].mxu1 %v170_v2 }
  0x88   :  { %1358 = vmatprep.mubr.msk.f32.mxu0 %vm199_vm0, %v97_v1  ;;  %1396 = vmatprep.mubr.msk.f32.mxu1 %vm199_vm0, %v173_v3 }
  0x8b   :  { %582 = vmatmul.mubr.f32.gmra.mrb[50].mxu0 %v96_v4  ;;  %772 = vmatmul.mubr.f32.gmra.mrb[50].mxu1 %v172_v6 }
  0x8c   :  { %1359 = vmatprep.mubr.msk.f32.mxu0 %vm199_vm0, %v99_v5 }
  0x8f   :  { %587 = vmatmul.mubr.f32.gmra.mrb[52].mxu0 %v98_v7 }
  0x90   :  { %1360 = vmatprep.mubr.msk.f32.mxu0 %vm199_vm0, %v101_v8 }
  0x93   :  { %592 = vmatmul.mubr.f32.gmra.mrb[54].mxu0 %v100_v9 }
  0x94   :  { %1361 = vmatprep.mubr.msk.f32.mxu0 %vm199_vm0, %v103_v10 }
  0x97   :  { %597 = vmatmul.mubr.f32.gmra.mrb[56].mxu0 %v102_v11 }
  0x98   :  { %1362 = vmatprep.mubr.msk.f32.mxu0 %vm199_vm0, %v105_v12 }
  0x9b   :  { %602 = vmatmul.mubr.f32.gmra.mrb[58].mxu0 %v104_v13 }
  0x9c   :  { %1363 = vmatprep.mubr.msk.f32.mxu0 %vm199_vm0, %v107_v14 }
  0x9f   :  { %607 = vmatmul.mubr.f32.gmra.mrb[60].mxu0 %v106_v15 }
  0xa0   :  { %1364 = vmatprep.mubr.msk.f32.mxu0 %vm199_vm0, %v109_v16 }
  0xa3   :  { %612 = vmatmul.mubr.f32.gmra.mrb[62].mxu0 %v108_v17 }
  0xa4   :  { %1365 = vmatprep.mubr.msk.f32.mxu0 %vm199_vm0, %v111_v18 }
  0xa7   :  { %617 = vmatmul.mubr.f32.gmra.mrb[64].mxu0 %v110_v19 }
  0xa8   :  { %1366 = vmatprep.mubr.msk.f32.mxu0 %vm199_vm0, %v113_v20 }
  0xab   :  { %622 = vmatmul.mubr.f32.gmra.mrb[66].mxu0 %v112_v21 }
  0xac   :  { %1367 = vmatprep.mubr.msk.f32.mxu0 %vm199_vm0, %v115_v22 }
  0xaf   :  { %627 = vmatmul.mubr.f32.gmra.mrb[68].mxu0 %v114_v23 }
  0xb0   :  { %1368 = vmatprep.mubr.msk.f32.mxu0 %vm199_vm0, %v117_v24 }
  0xb3   :  { %632 = vmatmul.mubr.f32.gmra.mrb[70].mxu0 %v116_v25 }
  0xb4   :  { %1369 = vmatprep.mubr.msk.f32.mxu0 %vm199_vm0, %v119_v26 }
  0xb7   :  { %637 = vmatmul.mubr.f32.gmra.mrb[72].mxu0 %v118_v27 }
  0xb8   :  { %1370 = vmatprep.mubr.msk.f32.mxu0 %vm199_vm0, %v121_v28 }
  0xbb   :  { %642 = vmatmul.mubr.f32.gmra.mrb[74].mxu0 %v120_v29 }
  0xfa   :  { %v458_v37 = vpop.f32.mrb[0].mxu0  ;;  %v648_v40 = vpop.f32.mrb[0].mxu1 }
  0xfb   :  { %v459_v38 = vadd.f32 %v2157_v36, %v458_v37  ;;  %v460_v39 = vpop.f32.mrb[1].mxu0  ;;  %v2161_v41 = vadd.f32 %v2157_v36, %v648_v40  ;;  %v650_v42 = vpop.f32.mrb[1].mxu1 }
  0xfd   :  { %778 = vst.msk [vmem:[%s2793_s13] sm:$0xff] %vm777_vm1, %v459_v38  ;;  %816 = vst.msk [vmem:[%s2793_s13 + $0x130] sm:$0xff] %vm777_vm1, %v2161_v41  ;;  %v842_v49 = vsel %vm199_vm0, %v459_v38, 0.0 }
  0xfe   :  { %v463_v43 = vpop.f32.mrb[2].mxu0  ;;  %v653_v46 = vpop.f32.mrb[2].mxu1 }
  0xff   :  { %v464_v44 = vadd.f32 %v2157_v36, %v463_v43  ;;  %v465_v45 = vpop.f32.mrb[3].mxu0  ;;  %v2174_v47 = vadd.f32 %v2157_v36, %v653_v46  ;;  %v655_v48 = vpop.f32.mrb[3].mxu1 }
 0x101   :  { %779 = vst.msk [vmem:[%s2793_s13 + $0x8] sm:$0xff] %vm777_vm1, %v464_v44  ;;  %v843_v50 = vsel %vm199_vm0, %v464_v44, 0.0  ;;  %817 = vst.msk [vmem:[%s2793_s13 + $0x138] sm:$0xff] %vm777_vm1, %v2174_v47 }
 0x102   :  { %v844_v51 = vadd.f32 %v843_v50, %v842_v49  ;;  %v468_v52 = vpop.f32.mrb[4].mxu0  ;;  %v658_v55 = vpop.f32.mrb[4].mxu1 }
 0x103   :  { %v469_v53 = vadd.f32 %v2157_v36, %v468_v52  ;;  %v470_v54 = vpop.f32.mrb[5].mxu0  ;;  %v2189_v56 = vadd.f32 %v2157_v36, %v658_v55  ;;  %v660_v57 = vpop.f32.mrb[5].mxu1 }
 0x105   :  { %780 = vst.msk [vmem:[%s2793_s13 + $0x10] sm:$0xff] %vm777_vm1, %v469_v53  ;;  %v845_v58 = vsel %vm199_vm0, %v469_v53, 0.0  ;;  %818 = vst.msk [vmem:[%s2793_s13 + $0x140] sm:$0xff] %vm777_vm1, %v2189_v56 }
 0x106   :  { %v846_v59 = vadd.f32 %v845_v58, %v844_v51  ;;  %v473_v60 = vpop.f32.mrb[6].mxu0  ;;  %v663_v63 = vpop.f32.mrb[6].mxu1 }
 0x107   :  { %v474_v61 = vadd.f32 %v2157_v36, %v473_v60  ;;  %v475_v62 = vpop.f32.mrb[7].mxu0  ;;  %v2203_v1 = vadd.f32 %v2157_v36, %v663_v63  ;;  %v665_v2 = vpop.f32.mrb[7].mxu1 }
 0x109   :  { %781 = vst.msk [vmem:[%s2793_s13 + $0x18] sm:$0xff] %vm777_vm1, %v474_v61  ;;  %v847_v3 = vsel %vm199_vm0, %v474_v61, 0.0  ;;  %819 = vst.msk [vmem:[%s2793_s13 + $0x148] sm:$0xff] %vm777_vm1, %v2203_v1 }
 0x10a   :  { %v848_v4 = vadd.f32 %v847_v3, %v846_v59  ;;  %v478_v5 = vpop.f32.mrb[8].mxu0  ;;  %v668_v8 = vpop.f32.mrb[8].mxu1 }
 0x10b   :  { %v479_v6 = vadd.f32 %v2157_v36, %v478_v5  ;;  %v480_v7 = vpop.f32.mrb[9].mxu0  ;;  %v2217_v9 = vadd.f32 %v2157_v36, %v668_v8  ;;  %v670_v10 = vpop.f32.mrb[9].mxu1 }
 0x10d   :  { %782 = vst.msk [vmem:[%s2793_s13 + $0x20] sm:$0xff] %vm777_vm1, %v479_v6  ;;  %v849_v11 = vsel %vm199_vm0, %v479_v6, 0.0  ;;  %820 = vst.msk [vmem:[%s2793_s13 + $0x150] sm:$0xff] %vm777_vm1, %v2217_v9 }
 0x10e   :  { %v850_v12 = vadd.f32 %v849_v11, %v848_v4  ;;  %v483_v13 = vpop.f32.mrb[10].mxu0  ;;  %v673_v16 = vpop.f32.mrb[10].mxu1 }
 0x10f   :  { %v484_v14 = vadd.f32 %v2157_v36, %v483_v13  ;;  %v485_v15 = vpop.f32.mrb[11].mxu0  ;;  %v2231_v17 = vadd.f32 %v2157_v36, %v673_v16  ;;  %v675_v18 = vpop.f32.mrb[11].mxu1 }
 0x111   :  { %783 = vst.msk [vmem:[%s2793_s13 + $0x28] sm:$0xff] %vm777_vm1, %v484_v14  ;;  %v851_v19 = vsel %vm199_vm0, %v484_v14, 0.0  ;;  %821 = vst.msk [vmem:[%s2793_s13 + $0x158] sm:$0xff] %vm777_vm1, %v2231_v17 }
 0x112   :  { %v852_v20 = vadd.f32 %v851_v19, %v850_v12  ;;  %v488_v21 = vpop.f32.mrb[12].mxu0  ;;  %v678_v24 = vpop.f32.mrb[12].mxu1 }
 0x113   :  { %v489_v22 = vadd.f32 %v2157_v36, %v488_v21  ;;  %v490_v23 = vpop.f32.mrb[13].mxu0  ;;  %v2245_v25 = vadd.f32 %v2157_v36, %v678_v24  ;;  %v680_v26 = vpop.f32.mrb[13].mxu1 }
 0x115   :  { %784 = vst.msk [vmem:[%s2793_s13 + $0x30] sm:$0xff] %vm777_vm1, %v489_v22  ;;  %v853_v27 = vsel %vm199_vm0, %v489_v22, 0.0  ;;  %822 = vst.msk [vmem:[%s2793_s13 + $0x160] sm:$0xff] %vm777_vm1, %v2245_v25 }
 0x116   :  { %v854_v28 = vadd.f32 %v853_v27, %v852_v20  ;;  %v493_v29 = vpop.f32.mrb[14].mxu0  ;;  %v683_v32 = vpop.f32.mrb[14].mxu1 }
 0x117   :  { %v494_v30 = vadd.f32 %v2157_v36, %v493_v29  ;;  %v495_v31 = vpop.f32.mrb[15].mxu0  ;;  %v2259_v33 = vadd.f32 %v2157_v36, %v683_v32  ;;  %v685_v34 = vpop.f32.mrb[15].mxu1 }
 0x119   :  { %785 = vst.msk [vmem:[%s2793_s13 + $0x38] sm:$0xff] %vm777_vm1, %v494_v30  ;;  %v855_v35 = vsel %vm199_vm0, %v494_v30, 0.0  ;;  %823 = vst.msk [vmem:[%s2793_s13 + $0x168] sm:$0xff] %vm777_vm1, %v2259_v33 }
 0x11a   :  { %v856_v37 = vadd.f32 %v855_v35, %v854_v28  ;;  %v498_v38 = vpop.f32.mrb[16].mxu0  ;;  %v688_v42 = vpop.f32.mrb[16].mxu1 }
 0x11b   :  { %v499_v39 = vadd.f32 %v2157_v36, %v498_v38  ;;  %v500_v40 = vpop.f32.mrb[17].mxu0  ;;  %v2273_v43 = vadd.f32 %v2157_v36, %v688_v42  ;;  %v690_v44 = vpop.f32.mrb[17].mxu1 }
 0x11d   :  { %786 = vst.msk [vmem:[%s2793_s13 + $0x40] sm:$0xff] %vm777_vm1, %v499_v39  ;;  %v857_v45 = vsel %vm199_vm0, %v499_v39, 0.0  ;;  %824 = vst.msk [vmem:[%s2793_s13 + $0x170] sm:$0xff] %vm777_vm1, %v2273_v43 }
 0x11e   :  { %v858_v46 = vadd.f32 %v857_v45, %v856_v37  ;;  %v503_v48 = vpop.f32.mrb[18].mxu0  ;;  %v693_v51 = vpop.f32.mrb[18].mxu1 }
 0x11f   :  { %v504_v49 = vadd.f32 %v2157_v36, %v503_v48  ;;  %v505_v50 = vpop.f32.mrb[19].mxu0  ;;  %v2287_v52 = vadd.f32 %v2157_v36, %v693_v51  ;;  %v695_v53 = vpop.f32.mrb[19].mxu1 }
 0x121   :  { %787 = vst.msk [vmem:[%s2793_s13 + $0x48] sm:$0xff] %vm777_vm1, %v504_v49  ;;  %v859_v54 = vsel %vm199_vm0, %v504_v49, 0.0  ;;  %825 = vst.msk [vmem:[%s2793_s13 + $0x178] sm:$0xff] %vm777_vm1, %v2287_v52 }
 0x122   :  { %v860_v55 = vadd.f32 %v859_v54, %v858_v46  ;;  %v508_v57 = vpop.f32.mrb[20].mxu0  ;;  %v698_v60 = vpop.f32.mrb[20].mxu1 }
 0x123   :  { %v509_v58 = vadd.f32 %v2157_v36, %v508_v57  ;;  %v510_v59 = vpop.f32.mrb[21].mxu0  ;;  %v2301_v61 = vadd.f32 %v2157_v36, %v698_v60  ;;  %v700_v62 = vpop.f32.mrb[21].mxu1 }
 0x125   :  { %788 = vst.msk [vmem:[%s2793_s13 + $0x50] sm:$0xff] %vm777_vm1, %v509_v58  ;;  %v861_v63 = vsel %vm199_vm0, %v509_v58, 0.0  ;;  %826 = vst.msk [vmem:[%s2793_s13 + $0x180] sm:$0xff] %vm777_vm1, %v2301_v61 }
 0x126   :  { %v862_v2 = vadd.f32 %v861_v63, %v860_v55  ;;  %v513_v3 = vpop.f32.mrb[22].mxu0  ;;  %v703_v6 = vpop.f32.mrb[22].mxu1 }
 0x127   :  { %v514_v4 = vadd.f32 %v2157_v36, %v513_v3  ;;  %v515_v5 = vpop.f32.mrb[23].mxu0  ;;  %v2315_v7 = vadd.f32 %v2157_v36, %v703_v6  ;;  %v705_v8 = vpop.f32.mrb[23].mxu1 }
 0x129   :  { %789 = vst.msk [vmem:[%s2793_s13 + $0x58] sm:$0xff] %vm777_vm1, %v514_v4  ;;  %v863_v10 = vsel %vm199_vm0, %v514_v4, 0.0  ;;  %827 = vst.msk [vmem:[%s2793_s13 + $0x188] sm:$0xff] %vm777_vm1, %v2315_v7 }
 0x12a   :  { %v864_v11 = vadd.f32 %v863_v10, %v862_v2  ;;  %v518_v12 = vpop.f32.mrb[24].mxu0  ;;  %v708_v15 = vpop.f32.mrb[24].mxu1 }
 0x12b   :  { %v519_v13 = vadd.f32 %v2157_v36, %v518_v12  ;;  %v520_v14 = vpop.f32.mrb[25].mxu0  ;;  %v2329_v16 = vadd.f32 %v2157_v36, %v708_v15  ;;  %v710_v18 = vpop.f32.mrb[25].mxu1 }
 0x12d   :  { %790 = vst.msk [vmem:[%s2793_s13 + $0x60] sm:$0xff] %vm777_vm1, %v519_v13  ;;  %v865_v19 = vsel %vm199_vm0, %v519_v13, 0.0  ;;  %828 = vst.msk [vmem:[%s2793_s13 + $0x190] sm:$0xff] %vm777_vm1, %v2329_v16 }
 0x12e   :  { %v866_v20 = vadd.f32 %v865_v19, %v864_v11  ;;  %v523_v21 = vpop.f32.mrb[26].mxu0  ;;  %v713_v24 = vpop.f32.mrb[26].mxu1 }
 0x12f   :  { %v524_v22 = vadd.f32 %v2157_v36, %v523_v21  ;;  %v525_v23 = vpop.f32.mrb[27].mxu0  ;;  %v2343_v26 = vadd.f32 %v2157_v36, %v713_v24  ;;  %v715_v27 = vpop.f32.mrb[27].mxu1 }
 0x131   :  { %791 = vst.msk [vmem:[%s2793_s13 + $0x68] sm:$0xff] %vm777_vm1, %v524_v22  ;;  %v867_v28 = vsel %vm199_vm0, %v524_v22, 0.0  ;;  %829 = vst.msk [vmem:[%s2793_s13 + $0x198] sm:$0xff] %vm777_vm1, %v2343_v26 }
 0x132   :  { %v868_v29 = vadd.f32 %v867_v28, %v866_v20  ;;  %v528_v30 = vpop.f32.mrb[28].mxu0  ;;  %v718_v34 = vpop.f32.mrb[28].mxu1 }
 0x133   :  { %v529_v31 = vadd.f32 %v2157_v36, %v528_v30  ;;  %v530_v32 = vpop.f32.mrb[29].mxu0  ;;  %v2357_v35 = vadd.f32 %v2157_v36, %v718_v34  ;;  %v720_v37 = vpop.f32.mrb[29].mxu1 }
 0x135   :  { %792 = vst.msk [vmem:[%s2793_s13 + $0x70] sm:$0xff] %vm777_vm1, %v529_v31  ;;  %v869_v38 = vsel %vm199_vm0, %v529_v31, 0.0  ;;  %830 = vst.msk [vmem:[%s2793_s13 + $0x1a0] sm:$0xff] %vm777_vm1, %v2357_v35 }
 0x136   :  { %v870_v39 = vadd.f32 %v869_v38, %v868_v29  ;;  %v533_v40 = vpop.f32.mrb[30].mxu0  ;;  %v723_v45 = vpop.f32.mrb[30].mxu1 }
 0x137   :  { %v534_v42 = vadd.f32 %v2157_v36, %v533_v40  ;;  %v535_v44 = vpop.f32.mrb[31].mxu0  ;;  %v2371_v46 = vadd.f32 %v2157_v36, %v723_v45  ;;  %v725_v48 = vpop.f32.mrb[31].mxu1 }
 0x139   :  { %793 = vst.msk [vmem:[%s2793_s13 + $0x78] sm:$0xff] %vm777_vm1, %v534_v42  ;;  %v871_v49 = vsel %vm199_vm0, %v534_v42, 0.0  ;;  %831 = vst.msk [vmem:[%s2793_s13 + $0x1a8] sm:$0xff] %vm777_vm1, %v2371_v46 }
 0x13a   :  { %v872_v50 = vadd.f32 %v871_v49, %v870_v39  ;;  %v538_v51 = vpop.f32.mrb[32].mxu0  ;;  %v728_v55 = vpop.f32.mrb[32].mxu1 }
 0x13b   :  { %v539_v53 = vadd.f32 %v2157_v36, %v538_v51  ;;  %v540_v54 = vpop.f32.mrb[33].mxu0  ;;  %v2385_v57 = vadd.f32 %v2157_v36, %v728_v55  ;;  %v730_v58 = vpop.f32.mrb[33].mxu1 }
 0x13d   :  { %794 = vst.msk [vmem:[%s2793_s13 + $0x80] sm:$0xff] %vm777_vm1, %v539_v53  ;;  %v873_v59 = vsel %vm199_vm0, %v539_v53, 0.0  ;;  %832 = vst.msk [vmem:[%s2793_s13 + $0x1b0] sm:$0xff] %vm777_vm1, %v2385_v57 }
 0x13e   :  { %v874_v60 = vadd.f32 %v873_v59, %v872_v50  ;;  %v543_v62 = vpop.f32.mrb[34].mxu0  ;;  %v733_v3 = vpop.f32.mrb[34].mxu1 }
 0x13f   :  { %v544_v63 = vadd.f32 %v2157_v36, %v543_v62  ;;  %v545_v2 = vpop.f32.mrb[35].mxu0  ;;  %v2399_v4 = vadd.f32 %v2157_v36, %v733_v3  ;;  %v735_v5 = vpop.f32.mrb[35].mxu1 }
 0x140   :  { %v1545_v2 = vmov 0.0  }
 0x141   :  { %795 = vst.msk [vmem:[%s2793_s13 + $0x88] sm:$0xff] %vm777_vm1, %v544_v63  ;;  %v875_v6 = vsel %vm199_vm0, %v544_v63, 0.0  ;;  %833 = vst.msk [vmem:[%s2793_s13 + $0x1b8] sm:$0xff] %vm777_vm1, %v2399_v4  ;;  %1069 = vmatprep.mubr.f32.mxu1 %v1545_v2 }
 0x142   :  { %v876_v8 = vadd.f32 %v875_v6, %v874_v60  ;;  %v548_v10 = vpop.f32.mrb[36].mxu0  ;;  %v738_v13 = vpop.f32.mrb[36].mxu1 }
 0x143   :  { %v549_v11 = vadd.f32 %v2157_v36, %v548_v10  ;;  %v550_v12 = vpop.f32.mrb[37].mxu0  ;;  %v2413_v14 = vadd.f32 %v2157_v36, %v738_v13  ;;  %v740_v15 = vpop.f32.mrb[37].mxu1  ;;  %v1126_v13 = vld [vmem:[%s2794_s7 + $0x80] sm:$0xff] }
 0x144   :  { %v1127_v15 = vld [vmem:[%s2794_s7 + $0x88] sm:$0xff] }
 0x145   :  { %796 = vst.msk [vmem:[%s2793_s13 + $0x90] sm:$0xff] %vm777_vm1, %v549_v11  ;;  %v877_v18 = vsel %vm199_vm0, %v549_v11, 0.0  ;;  %834 = vst.msk [vmem:[%s2793_s13 + $0x1c0] sm:$0xff] %vm777_vm1, %v2413_v14 }
 0x146   :  { %v878_v19 = vadd.f32 %v877_v18, %v876_v8  ;;  %v553_v20 = vpop.f32.mrb[38].mxu0  ;;  %v743_v23 = vpop.f32.mrb[38].mxu1 }
 0x147   :  { %v554_v21 = vadd.f32 %v2157_v36, %v553_v20  ;;  %v555_v22 = vpop.f32.mrb[39].mxu0  ;;  %v2427_v24 = vadd.f32 %v2157_v36, %v743_v23  ;;  %v745_v27 = vpop.f32.mrb[39].mxu1 }
 0x149   :  { %797 = vst.msk [vmem:[%s2793_s13 + $0x98] sm:$0xff] %vm777_vm1, %v554_v21  ;;  %v879_v28 = vsel %vm199_vm0, %v554_v21, 0.0  ;;  %835 = vst.msk [vmem:[%s2793_s13 + $0x1c8] sm:$0xff] %vm777_vm1, %v2427_v24 }
 0x14a   :  { %v880_v29 = vadd.f32 %v879_v28, %v878_v19  ;;  %v558_v30 = vpop.f32.mrb[40].mxu0  ;;  %v748_v34 = vpop.f32.mrb[40].mxu1  ;;  %v1485_v19 = vpack.c.bf16 %v1127_v15, %v1126_v13 }
 0x14b   :  { %v559_v31 = vadd.f32 %v2157_v36, %v558_v30  ;;  %v560_v32 = vpop.f32.mrb[41].mxu0  ;;  %v2441_v37 = vadd.f32 %v2157_v36, %v748_v34  ;;  %v750_v38 = vpop.f32.mrb[41].mxu1 }
 0x14c   :  { %1486 = vmatprep.subr.bf16.mxu1 %v1485_v19 }
 0x14d   :  { %798 = vst.msk [vmem:[%s2793_s13 + $0xa0] sm:$0xff] %vm777_vm1, %v559_v31  ;;  %v881_v39 = vsel %vm199_vm0, %v559_v31, 0.0  ;;  %836 = vst.msk [vmem:[%s2793_s13 + $0x1d0] sm:$0xff] %vm777_vm1, %v2441_v37 }
 0x14e   :  { %v882_v40 = vadd.f32 %v881_v39, %v880_v29  ;;  %v563_v42 = vpop.f32.mrb[42].mxu0  ;;  %v753_v48 = vpop.f32.mrb[42].mxu1 }
 0x14f   :  { %v564_v44 = vadd.f32 %v2157_v36, %v563_v42  ;;  %v565_v45 = vpop.f32.mrb[43].mxu0  ;;  %v2455_v49 = vadd.f32 %v2157_v36, %v753_v48  ;;  %v755_v50 = vpop.f32.mrb[43].mxu1 }
 0x151   :  { %799 = vst.msk [vmem:[%s2793_s13 + $0xa8] sm:$0xff] %vm777_vm1, %v564_v44  ;;  %v883_v51 = vsel %vm199_vm0, %v564_v44, 0.0  ;;  %837 = vst.msk [vmem:[%s2793_s13 + $0x1d8] sm:$0xff] %vm777_vm1, %v2455_v49 }
 0x152   :  { %v884_v53 = vadd.f32 %v883_v51, %v882_v40  ;;  %v568_v54 = vpop.f32.mrb[44].mxu0  ;;  %v758_v59 = vpop.f32.mrb[44].mxu1 }
 0x153   :  { %v569_v55 = vadd.f32 %v2157_v36, %v568_v54  ;;  %v570_v58 = vpop.f32.mrb[45].mxu0  ;;  %v2469_v60 = vadd.f32 %v2157_v36, %v758_v59  ;;  %v760_v62 = vpop.f32.mrb[45].mxu1 }
 0x155   :  { %800 = vst.msk [vmem:[%s2793_s13 + $0xb0] sm:$0xff] %vm777_vm1, %v569_v55  ;;  %v885_v63 = vsel %vm199_vm0, %v569_v55, 0.0  ;;  %838 = vst.msk [vmem:[%s2793_s13 + $0x1e0] sm:$0xff] %vm777_vm1, %v2469_v60 }
 0x156   :  { %v886_v3 = vadd.f32 %v885_v63, %v884_v53  ;;  %v573_v5 = vpop.f32.mrb[46].mxu0  ;;  %v763_v10 = vpop.f32.mrb[46].mxu1 }
 0x157   :  { %v574_v6 = vadd.f32 %v2157_v36, %v573_v5  ;;  %v575_v8 = vpop.f32.mrb[47].mxu0  ;;  %v2484_v11 = vadd.f32 %v2157_v36, %v763_v10  ;;  %v765_v12 = vpop.f32.mrb[47].mxu1 }
 0x159   :  { %801 = vst.msk [vmem:[%s2793_s13 + $0xb8] sm:$0xff] %vm777_vm1, %v574_v6  ;;  %v887_v18 = vsel %vm199_vm0, %v574_v6, 0.0  ;;  %839 = vst.msk [vmem:[%s2793_s13 + $0x1e8] sm:$0xff] %vm777_vm1, %v2484_v11 }
 0x15a   :  { %v888_v20 = vadd.f32 %v887_v18, %v886_v3  ;;  %v578_v21 = vpop.f32.mrb[48].mxu0  ;;  %v768_v27 = vpop.f32.mrb[48].mxu1 }
 0x15b   :  { %v579_v22 = vadd.f32 %v2157_v36, %v578_v21  ;;  %v580_v23 = vpop.f32.mrb[49].mxu0  ;;  %v2504_v28 = vadd.f32 %v2157_v36, %v768_v27  ;;  %v770_v29 = vpop.f32.mrb[49].mxu1 }
 0x15d   :  { %802 = vst.msk [vmem:[%s2793_s13 + $0xc0] sm:$0xff] %vm777_vm1, %v579_v22  ;;  %v889_v30 = vsel %vm199_vm0, %v579_v22, 0.0  ;;  %840 = vst.msk [vmem:[%s2793_s13 + $0x1f0] sm:$0xff] %vm777_vm1, %v2504_v28 }
 0x15e   :  { %v890_v31 = vadd.f32 %v889_v30, %v888_v20  ;;  %v583_v32 = vpop.f32.mrb[50].mxu0  ;;  %v773_v39 = vpop.f32.mrb[50].mxu1 }
 0x15f   :  { %v584_v34 = vadd.f32 %v2157_v36, %v583_v32  ;;  %v585_v38 = vpop.f32.mrb[51].mxu0  ;;  %v2518_v40 = vadd.f32 %v2157_v36, %v773_v39  ;;  %v775_v42 = vpop.f32.mrb[51].mxu1 }
 0x161   :  { %803 = vst.msk [vmem:[%s2793_s13 + $0xc8] sm:$0xff] %vm777_vm1, %v584_v34  ;;  %v891_v44 = vsel %vm199_vm0, %v584_v34, 0.0  ;;  %841 = vst.msk [vmem:[%s2793_s13 + $0x1f8] sm:$0xff] %vm777_vm1, %v2518_v40 }
 0x162   :  { %v892_v45 = vadd.f32 %v891_v44, %v890_v31  ;;  %v588_v48 = vpop.f32.mrb[52].mxu0 }
 0x163   :  { %v589_v50 = vadd.f32 %v2157_v36, %v588_v48  ;;  %v590_v51 = vpop.f32.mrb[53].mxu0 }
 0x165   :  { %804 = vst.msk [vmem:[%s2793_s13 + $0xd0] sm:$0xff] %vm777_vm1, %v589_v50  ;;  %v893_v53 = vsel %vm199_vm0, %v589_v50, 0.0 }
 0x166   :  { %v894_v54 = vadd.f32 %v893_v53, %v892_v45  ;;  %v593_v55 = vpop.f32.mrb[54].mxu0 }
 0x167   :  { %v594_v58 = vadd.f32 %v2157_v36, %v593_v55  ;;  %v595_v59 = vpop.f32.mrb[55].mxu0 }
 0x169   :  { %805 = vst.msk [vmem:[%s2793_s13 + $0xd8] sm:$0xff] %vm777_vm1, %v594_v58  ;;  %v895_v62 = vsel %vm199_vm0, %v594_v58, 0.0 }
 0x16a   :  { %v896_v63 = vadd.f32 %v895_v62, %v894_v54  ;;  %v598_v3 = vpop.f32.mrb[56].mxu0 }
 0x16b   :  { %v599_v5 = vadd.f32 %v2157_v36, %v598_v3  ;;  %v600_v6 = vpop.f32.mrb[57].mxu0 }
 0x16d   :  { %806 = vst.msk [vmem:[%s2793_s13 + $0xe0] sm:$0xff] %vm777_vm1, %v599_v5  ;;  %v897_v8 = vsel %vm199_vm0, %v599_v5, 0.0 }
 0x16e   :  { %v898_v10 = vadd.f32 %v897_v8, %v896_v63  ;;  %v603_v12 = vpop.f32.mrb[58].mxu0 }
 0x16f   :  { %v604_v13 = vadd.f32 %v2157_v36, %v603_v12  ;;  %v605_v15 = vpop.f32.mrb[59].mxu0 }
 0x171   :  { %807 = vst.msk [vmem:[%s2793_s13 + $0xe8] sm:$0xff] %vm777_vm1, %v604_v13  ;;  %v899_v18 = vsel %vm199_vm0, %v604_v13, 0.0 }
 0x172   :  { %v900_v19 = vadd.f32 %v899_v18, %v898_v10  ;;  %v608_v20 = vpop.f32.mrb[60].mxu0 }
 0x173   :  { %v609_v21 = vadd.f32 %v2157_v36, %v608_v20  ;;  %v610_v22 = vpop.f32.mrb[61].mxu0 }
 0x175   :  { %808 = vst.msk [vmem:[%s2793_s13 + $0xf0] sm:$0xff] %vm777_vm1, %v609_v21  ;;  %v901_v23 = vsel %vm199_vm0, %v609_v21, 0.0 }
 0x176   :  { %v902_v27 = vadd.f32 %v901_v23, %v900_v19  ;;  %v613_v29 = vpop.f32.mrb[62].mxu0 }
 0x177   :  { %v614_v30 = vadd.f32 %v2157_v36, %v613_v29  ;;  %v615_v31 = vpop.f32.mrb[63].mxu0 }
 0x179   :  { %809 = vst.msk [vmem:[%s2793_s13 + $0xf8] sm:$0xff] %vm777_vm1, %v614_v30  ;;  %v903_v32 = vsel %vm199_vm0, %v614_v30, 0.0  ;;  %v924_v30 = vsel %vm199_vm0, %v2174_v47, 0.0  ;;  %v934_v47 = vsel %vm199_vm0, %v2245_v25, 0.0  ;;  %v944_v25 = vsel %vm199_vm0, %v2315_v7, 0.0 }
 0x17a   :  { %v2566_v34 = vadd.f32 %v903_v32, %v902_v27  ;;  %v618_v38 = vpop.f32.mrb[64].mxu0  ;;  %v922_v27 = vsel %vm199_vm0, %v2161_v41, 0.0  ;;  %v932_v41 = vsel %vm199_vm0, %v2231_v17, 0.0  ;;  %v942_v17 = vsel %vm199_vm0, %v2301_v61, 0.0 }
 0x17b   :  { %v619_v39 = vadd.f32 %v2157_v36, %v618_v38  ;;  %v620_v42 = vpop.f32.mrb[65].mxu0  ;;  %v928_v38 = vsel %vm199_vm0, %v2203_v1, 0.0  ;;  %v938_v1 = vsel %vm199_vm0, %v2273_v43, 0.0  ;;  %v948_v43 = vsel %vm199_vm0, %v2343_v26, 0.0 }
 0x17c   :  { %v930_v42 = vsel %vm199_vm0, %v2217_v9, 0.0  ;;  %v940_v9 = vsel %vm199_vm0, %v2287_v52, 0.0  ;;  %v950_v52 = vsel %vm199_vm0, %v2357_v35, 0.0  ;;  %v952_v61 = vsel %vm199_vm0, %v2371_v46, 0.0 }
 0x17d   :  { %810 = vst.msk [vmem:[%s2793_s13 + $0x100] sm:$0xff] %vm777_vm1, %v619_v39  ;;  %v911_v50 = vsel %vm199_vm0, %v619_v39, 0.0  ;;  %v954_v7 = vsel %vm199_vm0, %v2385_v57, 0.0  ;;  %v958_v26 = vsel %vm199_vm0, %v2413_v14, 0.0  ;;  %v960_v35 = vsel %vm199_vm0, %v2427_v24, 0.0 }
 0x17e   :  { %v623_v44 = vpop.f32.mrb[66].mxu0  ;;  %v962_v46 = vsel %vm199_vm0, %v2441_v37, 0.0  ;;  %v964_v57 = vsel %vm199_vm0, %v2455_v49, 0.0  ;;  %v968_v24 = vsel %vm199_vm0, %v2484_v11, 0.0  ;;  %v970_v37 = vsel %vm199_vm0, %v2504_v28, 0.0  ;;  %v1110_v11 = vld [vmem:[%s2794_s7] sm:$0xff] }
 0x17f   :  { %v624_v45 = vadd.f32 %v2157_v36, %v623_v44  ;;  %v625_v48 = vpop.f32.mrb[67].mxu0  ;;  %v1111_v28 = vld [vmem:[%s2794_s7 + $0x8] sm:$0xff] }
 0x181   :  { %811 = vst.msk [vmem:[%s2793_s13 + $0x108] sm:$0xff] %vm777_vm1, %v624_v45  ;;  %v912_v51 = vsel %vm199_vm0, %v624_v45, 0.0 }
 0x182   :  { %v913_v53 = vadd.f32 %v912_v51, %v911_v50  ;;  %v628_v54 = vpop.f32.mrb[68].mxu0 }
 0x183   :  { %v629_v55 = vadd.f32 %v2157_v36, %v628_v54  ;;  %v630_v58 = vpop.f32.mrb[69].mxu0 }
 0x185   :  { %812 = vst.msk [vmem:[%s2793_s13 + $0x110] sm:$0xff] %vm777_vm1, %v629_v55  ;;  %v914_v59 = vsel %vm199_vm0, %v629_v55, 0.0 }
 0x186   :  { %v915_v62 = vadd.f32 %v914_v59, %v913_v53  ;;  %v633_v63 = vpop.f32.mrb[70].mxu0 }
 0x187   :  { %v634_v3 = vadd.f32 %v2157_v36, %v633_v63  ;;  %v635_v5 = vpop.f32.mrb[71].mxu0 }
 0x189   :  { %813 = vst.msk [vmem:[%s2793_s13 + $0x118] sm:$0xff] %vm777_vm1, %v634_v3  ;;  %v916_v6 = vsel %vm199_vm0, %v634_v3, 0.0 }
 0x18a   :  { %v917_v8 = vadd.f32 %v916_v6, %v915_v62  ;;  %v638_v10 = vpop.f32.mrb[72].mxu0 }
 0x18b   :  { %v639_v12 = vadd.f32 %v2157_v36, %v638_v10  ;;  %v640_v13 = vpop.f32.mrb[73].mxu0  ;;  %v905_v10 = vrot.slane %v2566_v34, 4 }
 0x18d   :  { %814 = vst.msk [vmem:[%s2793_s13 + $0x120] sm:$0xff] %vm777_vm1, %v639_v12  ;;  %v918_v15 = vsel %vm199_vm0, %v639_v12, 0.0  ;;  %v906_v14 = vadd.f32 %v905_v10, %v2566_v34  ;;  %v1122_v10 = vld [vmem:[%s2794_s7 + $0x60] sm:$0xff] }
 0x18e   :  { %v919_v18 = vadd.f32 %v918_v15, %v917_v8  ;;  %v643_v19 = vpop.f32.mrb[74].mxu0 }
 0x18f   :  { %v644_v20 = vadd.f32 %v2157_v36, %v643_v19  ;;  %v645_v21 = vpop.f32.mrb[75].mxu0  ;;  %v926_v36 = vsel %vm199_vm0, %v2189_v56, 0.0  ;;  %v936_v56 = vsel %vm199_vm0, %v2259_v33, 0.0  ;;  %v946_v33 = vsel %vm199_vm0, %v2329_v16, 0.0 }
 0x190   :  { %v956_v16 = vsel %vm199_vm0, %v2399_v4, 0.0  ;;  %v966_v4 = vsel %vm199_vm0, %v2469_v60, 0.0  ;;  %v972_v19 = vsel %vm199_vm0, %v2518_v40, 0.0 }
 0x191   :  { %815 = vst.msk [vmem:[%s2793_s13 + $0x128] sm:$0xff] %vm777_vm1, %v644_v20  ;;  %v920_v22 = vsel %vm199_vm0, %v644_v20, 0.0  ;;  %v907_v20 = vrot.slane %v906_v14, 2 }
 0x192   :  { %v921_v23 = vadd.f32 %v920_v22, %v919_v18 }
 0x193   :  { %v908_v22 = vadd.f32 %v907_v20, %v906_v14 }
 0x194   :  { %v923_v29 = vadd.f32 %v922_v27, %v921_v23 }
 0x195   :  { %v909_v60 = vrot.slane %v908_v22, 1 }
 0x196   :  { %v925_v31 = vadd.f32 %v924_v30, %v923_v29 }
 0x197   :  { %v910_v30 = vadd.f32 %v909_v60, %v908_v22 }
 0x198   :  { %v927_v32 = vadd.f32 %v926_v36, %v925_v31  ;;  %v1128_v36 = vld [vmem:[%s2794_s7 + $0x90] sm:$0xff] }
 0x19a   :  { %v929_v39 = vadd.f32 %v928_v38, %v927_v32  ;;  %v1129_v32 = vld [vmem:[%s2794_s7 + $0x98] sm:$0xff]  ;;  %v981_v38 = vmul.f32 0.00390625, %v910_v30 }
 0x19c   :  { %v931_v44 = vadd.f32 %v930_v42, %v929_v39  ;;  %v1487_v42 = vpack.c.bf16 %v1111_v28, %v1110_v11  ;;  %v1096_v11 = vld [vmem:[%s2797_s6] sm:$0x3] }
 0x19e   :  { %v933_v45 = vadd.f32 %v932_v41, %v931_v44  ;;  %v1489_v44 = vpack.c.bf16 %v1129_v32, %v1128_v36  ;;  %v1112_v41 = vld [vmem:[%s2794_s7 + $0x10] sm:$0xff] }
 0x1a0   :  { %v935_v48 = vadd.f32 %v934_v47, %v933_v45  ;;  %v1113_v45 = vld [vmem:[%s2794_s7 + $0x18] sm:$0xff] }
 0x1a2   :  { %v937_v50 = vadd.f32 %v936_v56, %v935_v48  ;;  %v1130_v48 = vld [vmem:[%s2794_s7 + $0xa0] sm:$0xff]  ;;  %v1131_v56 = vld [vmem:[%s2794_s7 + $0xa8] sm:$0xff] }
 0x1a4   :  { %v939_v51 = vadd.f32 %v938_v1, %v937_v50  ;;  %v1491_v50 = vpack.c.bf16 %v1113_v45, %v1112_v41  ;;  %v1493_v1 = vpack.c.bf16 %v1131_v56, %v1130_v48  ;;  %v1238_v48 = vld [vmem:[%s2798_s11] sm:$0xff]  ;;  %v1239_v56 = vld [vmem:[%s2798_s11 + $0x8] sm:$0xff] }
 0x1a6   :  { %v941_v53 = vadd.f32 %v940_v9, %v939_v51  ;;  %v1114_v51 = vld [vmem:[%s2794_s7 + $0x20] sm:$0xff]  ;;  %v1115_v9 = vld [vmem:[%s2794_s7 + $0x28] sm:$0xff] }
 0x1a8   :  { %v943_v54 = vadd.f32 %v942_v17, %v941_v53  ;;  %v1132_v53 = vld [vmem:[%s2794_s7 + $0xb0] sm:$0xff]  ;;  %v1133_v17 = vld [vmem:[%s2794_s7 + $0xb8] sm:$0xff] }
 0x1aa   :  { %v945_v55 = vadd.f32 %v944_v25, %v943_v54  ;;  %v1495_v54 = vpack.c.bf16 %v1115_v9, %v1114_v51  ;;  %v1497_v25 = vpack.c.bf16 %v1133_v17, %v1132_v53  ;;  %v1241_v51 = vld [vmem:[%s2798_s11 + $0x18] sm:$0xff]  ;;  %v1398_v17 = vld [vmem:[%s2799_s8] ss:$0 sm:$0xff] }
 0x1ac   :  { %v947_v58 = vadd.f32 %v946_v33, %v945_v55  ;;  %v1116_v55 = vld [vmem:[%s2794_s7 + $0x30] sm:$0xff]  ;;  %v1117_v33 = vld [vmem:[%s2794_s7 + $0x38] sm:$0xff] }
 0x1ae   :  { %v949_v59 = vadd.f32 %v948_v43, %v947_v58  ;;  %v1134_v58 = vld [vmem:[%s2794_s7 + $0xc0] sm:$0xff]  ;;  %v1135_v43 = vld [vmem:[%s2794_s7 + $0xc8] sm:$0xff] }
 0x1b0   :  { %v951_v62 = vadd.f32 %v950_v52, %v949_v59  ;;  %v1499_v59 = vpack.c.bf16 %v1117_v33, %v1116_v55  ;;  %v1501_v52 = vpack.c.bf16 %v1135_v43, %v1134_v58  ;;  %v1399_v33 = vld [vmem:[%s2800_s9] ss:$0 sm:$0xff] }
 0x1b1   :  { %v1400_v43 = vld [vmem:[%s2801_s10] ss:$0 sm:$0xff] }
 0x1b2   :  { %v953_v63 = vadd.f32 %v952_v61, %v951_v62  ;;  %v1118_v62 = vld [vmem:[%s2794_s7 + $0x40] sm:$0xff]  ;;  %v1119_v61 = vld [vmem:[%s2794_s7 + $0x48] sm:$0xff] }
 0x1b4   :  { %v955_v3 = vadd.f32 %v954_v7, %v953_v63  ;;  %v1503_v63 = vpack.c.bf16 %v1119_v61, %v1118_v62  ;;  %v1136_v7 = vld [vmem:[%s2794_s7 + $0xd0] sm:$0xff] }
 0x1b6   :  { %v957_v5 = vadd.f32 %v956_v16, %v955_v3  ;;  %v1137_v3 = vld [vmem:[%s2794_s7 + $0xd8] sm:$0xff] }
 0x1b7   :  { %v1505_v16 = vpack.c.bf16 %v1137_v3, %v1136_v7 }
 0x1b8   :  { %v959_v6 = vadd.f32 %v958_v26, %v957_v5  ;;  %v1120_v5 = vld [vmem:[%s2794_s7 + $0x50] sm:$0xff]  ;;  %v1121_v26 = vld [vmem:[%s2794_s7 + $0x58] sm:$0xff] }
 0x1ba   :  { %v961_v8 = vadd.f32 %v960_v35, %v959_v6  ;;  %v1507_v6 = vpack.c.bf16 %v1121_v26, %v1120_v5  ;;  %v1138_v35 = vld [vmem:[%s2794_s7 + $0xe0] sm:$0xff] }
 0x1bc   :  { %v963_v12 = vadd.f32 %v962_v46, %v961_v8  ;;  %v1139_v8 = vld [vmem:[%s2794_s7 + $0xe8] sm:$0xff] }
 0x1bd   :  { %v1509_v46 = vpack.c.bf16 %v1139_v8, %v1138_v35 }
 0x1be   :  { %v965_v13 = vadd.f32 %v964_v57, %v963_v12  ;;  %v1123_v12 = vld [vmem:[%s2794_s7 + $0x68] sm:$0xff] }
 0x1bf   :  { %v1511_v57 = vpack.c.bf16 %v1123_v12, %v1122_v10 }
 0x1c0   :  { %v967_v15 = vadd.f32 %v966_v4, %v965_v13  ;;  %v1140_v13 = vld [vmem:[%s2794_s7 + $0xf0] sm:$0xff]  ;;  %v1141_v4 = vld [vmem:[%s2794_s7 + $0xf8] sm:$0xff] }
 0x1c1   :  { %v1513_v14 = vpack.c.bf16 %v1141_v4, %v1140_v13 }
 0x1c2   :  { %v969_v18 = vadd.f32 %v968_v24, %v967_v15  ;;  %v1124_v15 = vld [vmem:[%s2794_s7 + $0x70] sm:$0xff]  ;;  %v1125_v24 = vld [vmem:[%s2794_s7 + $0x78] sm:$0xff] }
 0x1c4   :  { %v971_v21 = vadd.f32 %v970_v37, %v969_v18  ;;  %v1515_v18 = vpack.c.bf16 %v1125_v24, %v1124_v15  ;;  %v989_v37 = vlaneseq }
 0x1c6   :  { %v973_v49 = vadd.f32 %v972_v19, %v971_v21  ;;  %v990_v19 = vshrl.u32 %v989_v37, 7  ;;  %v987_v21 = vld [vmem:[%s2795_s4] sm:$0x3] }
 0x1c8   :  { %v974_v23 = vrot.slane %v973_v49, 4  ;;  %v991_v20 = vsub.s32 0, %v990_v19 }
 0x1ca   :  { %v975_v27 = vadd.f32 %v974_v23, %v973_v49  ;;  %v995_v49 = vsub.s32 1, %v990_v19  ;;  %v992_v22 = vrot.slane %v987_v21, %v991_v20 }
 0x1cc   :  { %v976_v29 = vrot.slane %v975_v27, 2  ;;  %v996_v23 = vrot.slane %v987_v21, %v995_v49 }
 0x1ce   :  { %v977_v34 = vadd.f32 %v976_v29, %v975_v27  ;;  %v1082_v27 = vld [vmem:[%s2796_s5] sm:$0x3] }
 0x1cf   :  { %v1087_v30 = vrot.slane %v1082_v27, %v991_v20 }
 0x1d0   :  { %v978_v31 = vrot.slane %v977_v34, 1 }
 0x1d2   :  { %v979_v40 = vadd.f32 %v978_v31, %v977_v34 }
 0x1d4   :  { %v982_v39 = vmul.f32 0.00390625, %v979_v40  ;;  %v1091_v40 = vrot.slane %v1082_v27, %v995_v49 }
 0x1d6   :  { %v1002_v47 = vsel %vm1001_vm2, %v982_v39, %v981_v38  ;;  %v1105_v38 = vrot.slane %v1096_v11, %v995_v49 }
 0x1d7   :  { %1397 = vmatmul.mubr.msk.f32.vlgmr.msra.gmra.mrb[52].mxu1 %vm199_vm0, %v1002_v47 }
 0x1d8   :  { %1488 = vmatpush3.bf16.msra.mxu1 %v1487_v42 }
 0x1d9   :  { %1490 = vmatprep.subr.bf16.mxu1 %v1489_v44  ;;  %v1101_v44 = vrot.slane %v1096_v11, %v991_v20 }
 0x1dc   :  { %1492 = vmatpush3.bf16.msra.mxu1 %v1491_v50  ;;  %v1518_v50 = vpack.c.bf16 %v1239_v56, %v1238_v48 }
 0x1dd   :  { %1494 = vmatprep.subr.bf16.mxu1 %v1493_v1  ;;  %v1240_v1 = vld [vmem:[%s2798_s11 + $0x10] sm:$0xff] }
 0x1de   :  { %v1521_v9 = vpack.c.bf16 %v1241_v51, %v1240_v1 }
 0x1e0   :  { %1496 = vmatpush3.bf16.msra.mxu1 %v1495_v54 }
 0x1e1   :  { %1498 = vmatprep.subr.bf16.mxu1 %v1497_v25 }
 0x1e4   :  { %1500 = vmatpush3.bf16.msra.mxu1 %v1499_v59 }
 0x1e5   :  { %1502 = vmatprep.subr.bf16.mxu1 %v1501_v52  ;;  %v1401_v52 = vld [vmem:[%s2802_s12] ss:$0 sm:$0xff] }
 0x1e8   :  { %1504 = vmatpush3.bf16.msra.mxu1 %v1503_v63 }
 0x1e9   :  { %1506 = vmatprep.subr.bf16.mxu1 %v1505_v16 }
 0x1ec   :  { %1508 = vmatpush3.bf16.msra.mxu1 %v1507_v6 }
 0x1ed   :  { %1510 = vmatprep.subr.bf16.mxu1 %v1509_v46 }
 0x1f0   :  { %1512 = vmatpush3.bf16.msra.mxu1 %v1511_v57 }
 0x1f1   :  { %1514 = vmatprep.subr.bf16.mxu1 %v1513_v14 }
 0x1f4   :  { %1516 = vmatpush3.bf16.msra.mxu1 %v1515_v18 }
 0x1f5   :  { %1517 = vmatprep.subr.bf16.mxu1 %v1544_v0 }
 0x2aa   :  { %v1071_v60 = vpop.f32.mrb[52].mxu1 }
 0x2ab   :  { %v1072_v29 = vadd.f32 %v1071_v60, %v992_v22  ;;  %v1073_v34 = vpop.f32.mrb[53].mxu1 }
 0x2ac   :  { %v1074_v31 = vadd.f32 %v1073_v34, %v996_v23 }
 0x2ad   :  { %vm1076_vm3 = vcmp.ge.f32.partialorder %v1072_v29, 0.0  ;;  %v1078_v28 = vmul.f32 0.1, %v1072_v29 }
 0x2ae   :  { %vm1077_vm4 = vcmp.ge.f32.partialorder %v1074_v31, 0.0  ;;  %v1079_v36 = vmul.f32 0.1, %v1074_v31 }
 0x2af   :  { %v1080_v32 = vsel %vm1076_vm3, %v1072_v29, %v1078_v28 }
 0x2b0   :  { %v1094_v39 = vmul.f32 %v1087_v30, %v1080_v32  ;;  %v1081_v42 = vsel %vm1077_vm4, %v1074_v31, %v1079_v36 }
 0x2b1   :  { %v1095_v41 = vmul.f32 %v1091_v40, %v1081_v42 }
 0x2b2   :  { %v1108_v47 = vadd.f32 %v1101_v44, %v1094_v39 }
 0x2b3   :  { %v1109_v45 = vadd.f32 %v1105_v38, %v1095_v41 }
 0x2b5   :  { %1213 = vmatprep.mubr.f32.mxu1 %v1109_v45 }
 0x2b6   :  { %1214 = vmatmul.mubr.f32.vlgmr.msra.gmra.mrb[54].mxu1 %v1108_v47 }
 0x2b7   :  { %1519 = vmatpush3.bf16.msra.mxu1 %v1518_v50  ;;  %1451 = vmatprep.mubr.msk.f32.mxu1 %vm1546_vm5, %v1545_v2 }
 0x2b8   :  { %1520 = vmatprep.subr.bf16.mxu1 %v1544_v0 }
 0x2bb   :  { %1522 = vmatpush3.bf16.msra.mxu1 %v1521_v9 }
 0x389   :  { %v1435_v53 = vpop.f32.mrb[54].mxu1 }
 0x38a   :  { %v1436_v54 = vpop.f32.mrb[55].mxu1 }
 0x38b   :  { %v1437_v0 = vadd.f32 %v1436_v54, %v1435_v53 }
 0x38d   :  { %v1216_v25 = vadd.f32 %v1437_v0, %v1398_v17 }
 0x38f   :  { %vm1219_vm6 = vcmp.ge.f32.partialorder %v1216_v25, 0.0  ;;  %v1220_v55 = vmul.f32 0.1, %v1216_v25 }
 0x391   :  { %v1221_v58 = vsel %vm1219_vm6, %v1216_v25, %v1220_v55 }
 0x392   :  { %v1229_v2 = vmul.f32 %v1399_v33, %v1221_v58 }
 0x394   :  { %v1237_v59 = vadd.f32 %v1400_v43, %v1229_v2 }
 0x396   :  { %1452 = vmatmul.mubr.msk.f32.vlgmr.msra.gmra.mrb[56].mxu1 %vm777_vm1, %v1237_v59 }
 0x469   :  { %v1318_v62 = vpop.f32.mrb[56].mxu1 }
 0x46a   :  { %v1319_v61 = vadd.f32 %v1401_v52, %v1318_v62  ;;  %v1453_v63 = vpop.f32.mrb[57].mxu1 }
 0x46c   :  { %1323 = vst.msk [vmem:[%s2803_s14] sm:$0x3] %vm1322_vm7, %v1319_v61 }

// kernel: heat_block_forward.4
= control target key start
LH: loop header
LB: loop body
LE: loop exit
PB: predicated region body
PF: predicated region fallthrough
CT: control target
= control target key end

     0   :  { %vm58_vm0 = vcmask 130048   ;;  %v1056_v3 = vmov 0   ;;  %s1513_s1 = inlined_call_operand.vmem [shape: f32[16,16], index: 1, kind: input, shape index: {}]   ;;  %s1514_s0 = inlined_call_operand.vmem [shape: f32[256,16], index: 0, kind: input, shape index: {}]   ;;  %s1515_s3 = inlined_call_operand.vmem [shape: f32[256,1], index: 3, kind: input, shape index: {}]   ;;  %s1516_s2 = inlined_call_operand.vmem [shape: f32[1,16], index: 2, kind: input, shape index: {}]   ;;  %s1517_s4 = inlined_call_operand.vmem [shape: f32[256,16], index: 4, kind: output, shape index: {}]  }
   0x1   :  { %v49_v0 = vld [vmem:[%s1513_s1] sm:$0xff]  ;;  %v50_v1 = vld [vmem:[%s1513_s1 + $0x8] sm:$0xff]  ;;  %927 = vset.pattern.permute.xlu1 %v1056_v3  ;;  %926 = vset.pattern.permute.xlu0 %v1056_v3  ;;  %v414_v6 = vld [vmem:[%s1515_s3 + $0x10] sm:$0xff] }
   0x2   :  { %v17_v2 = vld [vmem:[%s1514_s0] sm:$0xff]  ;;  %v919_v4 = vpack.c.bf16 %v50_v1, %v49_v0  ;;  %v18_v8 = vld [vmem:[%s1514_s0 + $0x8] sm:$0xff]  ;;  %v19_v10 = vld [vmem:[%s1514_s0 + $0x10] sm:$0xff]  ;;  %928 = vlog2.f32 %v414_v6 }
   0x3   :  { %871 = vmatprep.mubr.msk.f32.mxu0 %vm58_vm0, %v17_v2  ;;  %v33_v5 = vld [vmem:[%s1514_s0 + $0x80] sm:$0xff]  ;;  %v34_v9 = vld [vmem:[%s1514_s0 + $0x88] sm:$0xff]  ;;  %v35_v11 = vld [vmem:[%s1514_s0 + $0x90] sm:$0xff] }
   0x4   :  { %895 = vmatprep.mubr.msk.f32.mxu1 %vm58_vm0, %v33_v5  ;;  %920 = vmatprep.subr.bf16.mxu0 %v919_v4  ;;  %v412_v7 = vld [vmem:[%s1515_s3] sm:$0xff]  ;;  %v415_v12 = vld [vmem:[%s1515_s3 + $0x18] sm:$0xff]  ;;  %v413_v13 = vld [vmem:[%s1515_s3 + $0x8] sm:$0xff] }
   0x5   :  { %923 = vmatprep.subr.bf16.mxu1 %v919_v4  ;;  %922 = vmatpush3.bf16.msra.mxu0 %v919_v4  ;;  %930 = vlog2.f32 %v412_v7  ;;  %v417_v14 = vld [vmem:[%s1515_s3 + $0x28] sm:$0xff]  ;;  %v416_v15 = vld [vmem:[%s1515_s3 + $0x20] sm:$0xff]  ;;  %v20_v16 = vld [vmem:[%s1514_s0 + $0x18] sm:$0xff] }
   0x6   :  { %924 = vmatpush3.bf16.msra.mxu1 %v919_v4  ;;  %932 = vlog2.f32 %v415_v12  ;;  %v36_v17 = vld [vmem:[%s1514_s0 + $0x98] sm:$0xff]  ;;  %v21_v18 = vld [vmem:[%s1514_s0 + $0x20] sm:$0xff]  ;;  %v418_v21 = vld [vmem:[%s1515_s3 + $0x30] sm:$0xff] }
   0x7   :  { %934 = vlog2.f32 %v413_v13  ;;  %v37_v19 = vld [vmem:[%s1514_s0 + $0xa0] sm:$0xff]  ;;  %v419_v20 = vld [vmem:[%s1515_s3 + $0x38] sm:$0xff]  ;;  %v22_v22 = vld [vmem:[%s1514_s0 + $0x28] sm:$0xff] }
   0x8   :  { %872 = vmatmul.mubr.msk.f32.vlgmr.msra.gmra.mrb[0].mxu0 %vm58_vm0, %v18_v8  ;;  %936 = vlog2.f32 %v417_v14  ;;  %v38_v23 = vld [vmem:[%s1514_s0 + $0xa8] sm:$0xff]  ;;  %v23_v24 = vld [vmem:[%s1514_s0 + $0x30] sm:$0xff]  ;;  %v420_v28 = vld [vmem:[%s1515_s3 + $0x40] sm:$0xff] }
   0x9   :  { %896 = vmatmul.mubr.msk.f32.vlgmr.msra.gmra.mrb[0].mxu1 %vm58_vm0, %v34_v9  ;;  %874 = vmatprep.mubr.msk.f32.mxu0 %vm58_vm0, %v19_v10  ;;  %938 = vlog2.f32 %v416_v15  ;;  %v39_v25 = vld [vmem:[%s1514_s0 + $0xb0] sm:$0xff]  ;;  %v421_v26 = vld [vmem:[%s1515_s3 + $0x48] sm:$0xff]  ;;  %v24_v33 = vld [vmem:[%s1514_s0 + $0x38] sm:$0xff] }
   0xa   :  { %898 = vmatprep.mubr.msk.f32.mxu1 %vm58_vm0, %v35_v11  ;;  %940 = vlog2.f32 %v419_v20  ;;  %v40_v34 = vld [vmem:[%s1514_s0 + $0xb8] sm:$0xff]  ;;  %v25_v37 = vld [vmem:[%s1514_s0 + $0x40] sm:$0xff]  ;;  %v422_v42 = vld [vmem:[%s1515_s3 + $0x50] sm:$0xff] }
   0xb   :  { %942 = vlog2.f32 %v418_v21  ;;  %v41_v38 = vld [vmem:[%s1514_s0 + $0xc0] sm:$0xff]  ;;  %v423_v39 = vld [vmem:[%s1515_s3 + $0x58] sm:$0xff]  ;;  %v26_v44 = vld [vmem:[%s1514_s0 + $0x48] sm:$0xff] }
   0xc   :  { %875 = vmatmul.mubr.msk.f32.gmra.mrb[2].mxu0 %vm58_vm0, %v20_v16  ;;  %v929_v27 = vpop.eup %928  ;;  %944 = vlog2.f32 %v421_v26  ;;  %v42_v45 = vld [vmem:[%s1514_s0 + $0xc8] sm:$0xff]  ;;  %v27_v47 = vld [vmem:[%s1514_s0 + $0x50] sm:$0xff]  ;;  %v424_v52 = vld [vmem:[%s1515_s3 + $0x60] sm:$0xff] }
   0xd   :  { %899 = vmatmul.mubr.msk.f32.gmra.mrb[2].mxu1 %vm58_vm0, %v36_v17  ;;  %877 = vmatprep.mubr.msk.f32.mxu0 %vm58_vm0, %v21_v18  ;;  %v449_v30 = vmul.f32 0.6931472, %v929_v27  ;;  %946 = vlog2.f32 %v420_v28  ;;  %v43_v48 = vld [vmem:[%s1514_s0 + $0xd0] sm:$0xff]  ;;  %v425_v49 = vld [vmem:[%s1515_s3 + $0x68] sm:$0xff]  ;;  %v28_v54 = vld [vmem:[%s1514_s0 + $0x58] sm:$0xff] }
   0xe   :  { %901 = vmatprep.mubr.msk.f32.mxu1 %vm58_vm0, %v37_v19  ;;  %948 = vlog2.f32 %v423_v39  ;;  %v44_v55 = vld [vmem:[%s1514_s0 + $0xd8] sm:$0xff]  ;;  %v29_v57 = vld [vmem:[%s1514_s0 + $0x60] sm:$0xff]  ;;  %v426_v62 = vld [vmem:[%s1515_s3 + $0x70] sm:$0xff] }
   0xf   :  { %v931_v29 = vpop.eup %930  ;;  %520 = vperm.xlu1 %927, %v449_v30   ;;  %950 = vlog2.f32 %v422_v42  ;;  %v45_v58 = vld [vmem:[%s1514_s0 + $0xe0] sm:$0xff]  ;;  %v427_v59 = vld [vmem:[%s1515_s3 + $0x78] sm:$0xff]  ;;  %v30_v0 = vld [vmem:[%s1514_s0 + $0x68] sm:$0xff] }
  0x10   :  { %878 = vmatmul.mubr.msk.f32.gmra.mrb[4].mxu0 %vm58_vm0, %v22_v22  ;;  %v933_v31 = vpop.eup %932  ;;  %v445_v32 = vmul.f32 0.6931472, %v931_v29  ;;  %952 = vlog2.f32 %v425_v49  ;;  %v46_v1 = vld [vmem:[%s1514_s0 + $0xe8] sm:$0xff]  ;;  %v31_v3 = vld [vmem:[%s1514_s0 + $0x70] sm:$0xff]  ;;  %v428_v8 = vld [vmem:[%s1515_s3 + $0x80] sm:$0xff] }
  0x11   :  { %902 = vmatmul.mubr.msk.f32.gmra.mrb[4].mxu1 %vm58_vm0, %v38_v23  ;;  %880 = vmatprep.mubr.msk.f32.mxu0 %vm58_vm0, %v23_v24  ;;  %v935_v35 = vpop.eup %934  ;;  %v451_v36 = vmul.f32 0.6931472, %v933_v31  ;;  %954 = vlog2.f32 %v424_v52  ;;  %v47_v4 = vld [vmem:[%s1514_s0 + $0xf0] sm:$0xff]  ;;  %v429_v5 = vld [vmem:[%s1515_s3 + $0x88] sm:$0xff]  ;;  %v32_v10 = vld [vmem:[%s1514_s0 + $0x78] sm:$0xff] }
  0x12   :  { %904 = vmatprep.mubr.msk.f32.mxu1 %vm58_vm0, %v39_v25  ;;  %v937_v40 = vpop.eup %936  ;;  %510 = vperm.xlu0 %926, %v445_v32   ;;  %v447_v41 = vmul.f32 0.6931472, %v935_v35  ;;  %956 = vlog2.f32 %v427_v59  ;;  %v48_v11 = vld [vmem:[%s1514_s0 + $0xf8] sm:$0xff]  ;;  %v430_v16 = vld [vmem:[%s1515_s3 + $0x90] sm:$0xff]  ;;  %v433_v19 = vld [vmem:[%s1515_s3 + $0xa8] sm:$0xff] }
  0x13   :  { %v939_v43 = vpop.eup %938  ;;  %525 = vperm.xlu1 %927, %v451_v36   ;;  %v455_v46 = vmul.f32 0.6931472, %v937_v40  ;;  %958 = vlog2.f32 %v426_v62  ;;  %v431_v13 = vld [vmem:[%s1515_s3 + $0x98] sm:$0xff]  ;;  %v432_v22 = vld [vmem:[%s1515_s3 + $0xa0] sm:$0xff]  ;;  %v434_v28 = vld [vmem:[%s1515_s3 + $0xb0] sm:$0xff] }
  0x14   :  { %881 = vmatmul.mubr.msk.f32.gmra.mrb[6].mxu0 %vm58_vm0, %v24_v33  ;;  %v941_v50 = vpop.eup %940  ;;  %v453_v51 = vmul.f32 0.6931472, %v939_v43  ;;  %960 = vlog2.f32 %v429_v5  ;;  %v435_v25 = vld [vmem:[%s1515_s3 + $0xb8] sm:$0xff]  ;;  %v437_v31 = vld [vmem:[%s1515_s3 + $0xc8] sm:$0xff]  ;;  %v438_v40 = vld [vmem:[%s1515_s3 + $0xd0] sm:$0xff] }
  0x15   :  { %905 = vmatmul.mubr.msk.f32.gmra.mrb[6].mxu1 %vm58_vm0, %v40_v34  ;;  %883 = vmatprep.mubr.msk.f32.mxu0 %vm58_vm0, %v25_v37  ;;  %v943_v53 = vpop.eup %942  ;;  %v459_v56 = vmul.f32 0.6931472, %v941_v50  ;;  %962 = vlog2.f32 %v428_v8  ;;  %v436_v34 = vld [vmem:[%s1515_s3 + $0xc0] sm:$0xff]  ;;  %v439_v37 = vld [vmem:[%s1515_s3 + $0xd8] sm:$0xff]  ;;  %v441_v43 = vld [vmem:[%s1515_s3 + $0xe8] sm:$0xff] }
  0x16   :  { %907 = vmatprep.mubr.msk.f32.mxu1 %vm58_vm0, %v41_v38  ;;  %515 = vperm.xlu0 %926, %v447_v41   ;;  %v945_v60 = vpop.eup %944  ;;  %v457_v61 = vmul.f32 0.6931472, %v943_v53  ;;  %964 = vlog2.f32 %v431_v13  ;;  %v443_v49 = vld [vmem:[%s1515_s3 + $0xf8] sm:$0xff]  ;;  %v442_v52 = vld [vmem:[%s1515_s3 + $0xf0] sm:$0xff] }
  0x17   :  { %535 = vperm.xlu1 %927, %v455_v46   ;;  %v947_v63 = vpop.eup %946  ;;  %v463_v2 = vmul.f32 0.6931472, %v945_v60  ;;  %966 = vlog2.f32 %v430_v16  ;;  %v440_v46 = vld [vmem:[%s1515_s3 + $0xe0] sm:$0xff] }
  0x18   :  { %884 = vmatmul.mubr.msk.f32.gmra.mrb[8].mxu0 %vm58_vm0, %v26_v44  ;;  %v949_v6 = vpop.eup %948  ;;  %v461_v7 = vmul.f32 0.6931472, %v947_v63  ;;  %968 = vlog2.f32 %v433_v19 }
  0x19   :  { %908 = vmatmul.mubr.msk.f32.gmra.mrb[8].mxu1 %vm58_vm0, %v42_v45  ;;  %886 = vmatprep.mubr.msk.f32.mxu0 %vm58_vm0, %v27_v47  ;;  %v951_v9 = vpop.eup %950  ;;  %v467_v12 = vmul.f32 0.6931472, %v949_v6  ;;  %970 = vlog2.f32 %v432_v22  ;;  %v1339_v22 = vld [vmem:[%s1516_s2] ss:$0 sm:$0xff] }
  0x1a   :  { %910 = vmatprep.mubr.msk.f32.mxu1 %vm58_vm0, %v43_v48  ;;  %530 = vperm.xlu0 %926, %v453_v51   ;;  %v953_v14 = vpop.eup %952  ;;  %v465_v15 = vmul.f32 0.6931472, %v951_v9  ;;  %972 = vlog2.f32 %v435_v25 }
  0x1b   :  { %545 = vperm.xlu1 %927, %v459_v56   ;;  %v955_v17 = vpop.eup %954  ;;  %v471_v18 = vmul.f32 0.6931472, %v953_v14  ;;  %974 = vlog2.f32 %v434_v28 }
  0x1c   :  { %887 = vmatmul.mubr.msk.f32.gmra.mrb[10].mxu0 %vm58_vm0, %v28_v54  ;;  %v957_v20 = vpop.eup %956  ;;  %v469_v21 = vmul.f32 0.6931472, %v955_v17  ;;  %976 = vlog2.f32 %v437_v31 }
  0x1d   :  { %911 = vmatmul.mubr.msk.f32.gmra.mrb[10].mxu1 %vm58_vm0, %v44_v55  ;;  %889 = vmatprep.mubr.msk.f32.mxu0 %vm58_vm0, %v29_v57  ;;  %v959_v23 = vpop.eup %958  ;;  %v475_v24 = vmul.f32 0.6931472, %v957_v20  ;;  %978 = vlog2.f32 %v436_v34 }
  0x1e   :  { %913 = vmatprep.mubr.msk.f32.mxu1 %vm58_vm0, %v45_v58  ;;  %540 = vperm.xlu0 %926, %v457_v61   ;;  %v961_v26 = vpop.eup %960  ;;  %v473_v27 = vmul.f32 0.6931472, %v959_v23  ;;  %980 = vlog2.f32 %v439_v37 }
  0x1f   :  { %555 = vperm.xlu1 %927, %v463_v2   ;;  %v963_v29 = vpop.eup %962  ;;  %v479_v30 = vmul.f32 0.6931472, %v961_v26  ;;  %982 = vlog2.f32 %v438_v40 }
  0x20   :  { %890 = vmatmul.mubr.msk.f32.gmra.mrb[12].mxu0 %vm58_vm0, %v30_v0  ;;  %v965_v32 = vpop.eup %964  ;;  %v477_v33 = vmul.f32 0.6931472, %v963_v29  ;;  %984 = vlog2.f32 %v441_v43 }
  0x21   :  { %914 = vmatmul.mubr.msk.f32.gmra.mrb[12].mxu1 %vm58_vm0, %v46_v1  ;;  %892 = vmatprep.mubr.msk.f32.mxu0 %vm58_vm0, %v31_v3  ;;  %v967_v35 = vpop.eup %966  ;;  %v483_v36 = vmul.f32 0.6931472, %v965_v32  ;;  %986 = vlog2.f32 %v440_v46 }
  0x22   :  { %916 = vmatprep.mubr.msk.f32.mxu1 %vm58_vm0, %v47_v4  ;;  %550 = vperm.xlu0 %926, %v461_v7   ;;  %v969_v38 = vpop.eup %968  ;;  %v481_v39 = vmul.f32 0.6931472, %v967_v35  ;;  %988 = vlog2.f32 %v443_v49 }
  0x23   :  { %565 = vperm.xlu1 %927, %v467_v12   ;;  %v971_v41 = vpop.eup %970  ;;  %v487_v42 = vmul.f32 0.6931472, %v969_v38  ;;  %990 = vlog2.f32 %v442_v52 }
  0x24   :  { %893 = vmatmul.mubr.msk.f32.gmra.mrb[14].mxu0 %vm58_vm0, %v32_v10  ;;  %v973_v44 = vpop.eup %972  ;;  %v485_v45 = vmul.f32 0.6931472, %v971_v41 }
  0x25   :  { %917 = vmatmul.mubr.msk.f32.gmra.mrb[14].mxu1 %vm58_vm0, %v48_v11  ;;  %v975_v47 = vpop.eup %974  ;;  %v491_v48 = vmul.f32 0.6931472, %v973_v44 }
  0x26   :  { %560 = vperm.xlu0 %926, %v465_v15   ;;  %v977_v50 = vpop.eup %976  ;;  %v489_v51 = vmul.f32 0.6931472, %v975_v47 }
  0x27   :  { %575 = vperm.xlu1 %927, %v471_v18   ;;  %v979_v53 = vpop.eup %978  ;;  %v495_v54 = vmul.f32 0.6931472, %v977_v50 }
  0x28   :  { %v981_v55 = vpop.eup %980  ;;  %v493_v56 = vmul.f32 0.6931472, %v979_v53 }
  0x29   :  { %v983_v57 = vpop.eup %982  ;;  %v499_v58 = vmul.f32 0.6931472, %v981_v55 }
  0x2a   :  { %570 = vperm.xlu0 %926, %v469_v21   ;;  %v985_v59 = vpop.eup %984  ;;  %v497_v60 = vmul.f32 0.6931472, %v983_v57 }
  0x2b   :  { %585 = vperm.xlu1 %927, %v475_v24   ;;  %v987_v61 = vpop.eup %986  ;;  %v503_v62 = vmul.f32 0.6931472, %v985_v59 }
  0x2c   :  { %v989_v63 = vpop.eup %988  ;;  %v501_v0 = vmul.f32 0.6931472, %v987_v61 }
  0x2d   :  { %v991_v1 = vpop.eup %990  ;;  %v507_v2 = vmul.f32 0.6931472, %v989_v63 }
  0x2e   :  { %580 = vperm.xlu0 %926, %v473_v27   ;;  %v505_v3 = vmul.f32 0.6931472, %v991_v1 }
  0x2f   :  { %595 = vperm.xlu1 %927, %v479_v30  }
  0x32   :  { %590 = vperm.xlu0 %926, %v477_v33  }
  0x33   :  { %605 = vperm.xlu1 %927, %v483_v36  }
  0x36   :  { %600 = vperm.xlu0 %926, %v481_v39  }
  0x37   :  { %615 = vperm.xlu1 %927, %v487_v42  }
  0x3a   :  { %610 = vperm.xlu0 %926, %v485_v45  }
  0x3b   :  { %625 = vperm.xlu1 %927, %v491_v48  }
  0x3e   :  { %620 = vperm.xlu0 %926, %v489_v51  }
  0x3f   :  { %635 = vperm.xlu1 %927, %v495_v54  }
  0x42   :  { %630 = vperm.xlu0 %926, %v493_v56  }
  0x43   :  { %645 = vperm.xlu1 %927, %v499_v58  }
  0x46   :  { %640 = vperm.xlu0 %926, %v497_v60  }
  0x47   :  { %655 = vperm.xlu1 %927, %v503_v62  }
  0x4a   :  { %650 = vperm.xlu0 %926, %v501_v0  }
  0x4b   :  { %665 = vperm.xlu1 %927, %v507_v2  }
  0x4e   :  { %660 = vperm.xlu0 %926, %v505_v3  }
  0x8e   :  { %v521_v4 = vpop.permute.xlu1 %520 }
  0x91   :  { %v511_v5 = vpop.permute.xlu0 %510 }
  0x92   :  { %v526_v6 = vpop.permute.xlu1 %525 }
  0x95   :  { %v516_v7 = vpop.permute.xlu0 %515 }
  0x96   :  { %v1312_v8 = vpop.permute.xlu1 %535 }
  0x99   :  { %v1314_v9 = vpop.permute.xlu0 %530 }
  0x9a   :  { %v1316_v10 = vpop.permute.xlu1 %545 }
  0x9d   :  { %v1318_v11 = vpop.permute.xlu0 %540 }
  0x9e   :  { %v1320_v12 = vpop.permute.xlu1 %555 }
  0xa1   :  { %v1322_v13 = vpop.permute.xlu0 %550 }
  0xa2   :  { %v1324_v14 = vpop.permute.xlu1 %565 }
  0xa5   :  { %v1326_v15 = vpop.permute.xlu0 %560 }
  0xa6   :  { %v1328_v16 = vpop.permute.xlu1 %575 }
  0xa9   :  { %v1330_v17 = vpop.permute.xlu0 %570 }
  0xaa   :  { %v1332_v18 = vpop.permute.xlu1 %585 }
  0xad   :  { %v1334_v19 = vpop.permute.xlu0 %580 }
  0xae   :  { %v596_v20 = vpop.permute.xlu1 %595 }
  0xb1   :  { %v591_v21 = vpop.permute.xlu0 %590 }
  0xb2   :  { %v606_v23 = vpop.permute.xlu1 %605 }
  0xb5   :  { %v601_v30 = vpop.permute.xlu0 %600 }
  0xb6   :  { %v616_v45 = vpop.permute.xlu1 %615 }
  0xb9   :  { %v611_v54 = vpop.permute.xlu0 %610 }
  0xdb   :  { %v873_v24 = vpop.f32.mrb[0].mxu0 }
  0xdc   :  { %v897_v25 = vpop.f32.mrb[0].mxu1  ;;  %v227_v26 = vadd.f32 %v873_v24, %v1339_v22  ;;  %v221_v28 = vpop.f32.mrb[1].mxu0 }
  0xdd   :  { %v307_v27 = vadd.f32 %v897_v25, %v1339_v22  ;;  %v301_v29 = vpop.f32.mrb[1].mxu1  ;;  %v222_v31 = vadd.f32 %v1339_v22, %v221_v28 }
  0xde   :  { %v302_v32 = vadd.f32 %v1339_v22, %v301_v29  ;;  %v381_v33 = vmax.f32 %v227_v26, 0.0 }
  0xdf   :  { %v397_v34 = vmax.f32 %v307_v27, 0.0  ;;  %v380_v35 = vmax.f32 %v222_v31, 0.0  ;;  %v876_v37 = vpop.f32.mrb[2].mxu0 }
  0xe0   :  { %v396_v36 = vmax.f32 %v302_v32, 0.0  ;;  %v900_v38 = vpop.f32.mrb[2].mxu1  ;;  %v669_v39 = vmul.f32 %v516_v7, %v381_v33  ;;  %v237_v41 = vadd.f32 %v876_v37, %v1339_v22  ;;  %v231_v43 = vpop.f32.mrb[3].mxu0 }
  0xe1   :  { %v685_v40 = vmul.f32 %v596_v20, %v397_v34  ;;  %v317_v42 = vadd.f32 %v900_v38, %v1339_v22  ;;  %v311_v44 = vpop.f32.mrb[3].mxu1  ;;  %v668_v46 = vmul.f32 %v511_v5, %v380_v35  ;;  %v232_v48 = vadd.f32 %v1339_v22, %v231_v43 }
  0xe2   :  { %v684_v47 = vmul.f32 %v591_v21, %v396_v36  ;;  %v312_v49 = vadd.f32 %v1339_v22, %v311_v44  ;;  %v702_v50 = vmul.f32 1.442695, %v669_v39  ;;  %v383_v52 = vmax.f32 %v237_v41, 0.0  ;;  %v626_v21 = vpop.permute.xlu1 %625 }
  0xe3   :  { %v734_v51 = vmul.f32 1.442695, %v685_v40  ;;  %v399_v53 = vmax.f32 %v317_v42, 0.0  ;;  %v700_v55 = vmul.f32 1.442695, %v668_v46  ;;  %v382_v57 = vmax.f32 %v232_v48, 0.0 }
  0xe4   :  { %v732_v56 = vmul.f32 1.442695, %v684_v47  ;;  %v398_v58 = vmax.f32 %v312_v49, 0.0  ;;  %992 = vpow2.f32 %v702_v50  ;;  %v671_v59 = vmul.f32 %v526_v6, %v383_v52  ;;  %v879_v61 = vpop.f32.mrb[4].mxu0  ;;  %v903_v62 = vpop.f32.mrb[4].mxu1 }
  0xe5   :  { %v687_v60 = vmul.f32 %v606_v23, %v399_v53  ;;  %994 = vpow2.f32 %v734_v51  ;;  %v670_v63 = vmul.f32 %v521_v4, %v382_v57  ;;  %v247_v1 = vadd.f32 %v879_v61, %v1339_v22  ;;  %v241_v2 = vpop.f32.mrb[5].mxu0  ;;  %v321_v3 = vpop.f32.mrb[5].mxu1 }
  0xe6   :  { %v686_v0 = vmul.f32 %v601_v30, %v398_v58  ;;  %996 = vpow2.f32 %v700_v55  ;;  %v706_v5 = vmul.f32 1.442695, %v671_v59  ;;  %v327_v20 = vadd.f32 %v903_v62, %v1339_v22  ;;  %v621_v30 = vpop.permute.xlu0 %620  ;;  %v636_v52 = vpop.permute.xlu1 %635 }
  0xe7   :  { %v738_v7 = vmul.f32 1.442695, %v687_v60  ;;  %998 = vpow2.f32 %v732_v56  ;;  %v704_v24 = vmul.f32 1.442695, %v670_v63  ;;  %v385_v6 = vmax.f32 %v247_v1, 0.0  ;;  %v882_v23 = vpop.f32.mrb[6].mxu0 }
  0xe8   :  { %v736_v25 = vmul.f32 1.442695, %v686_v0  ;;  %1000 = vpow2.f32 %v706_v5  ;;  %v401_v26 = vmax.f32 %v327_v20, 0.0  ;;  %v242_v4 = vadd.f32 %v1339_v22, %v241_v2  ;;  %v906_v28 = vpop.f32.mrb[6].mxu1  ;;  %v251_v29 = vpop.f32.mrb[7].mxu0 }
  0xe9   :  { %v322_v27 = vadd.f32 %v1339_v22, %v321_v3  ;;  %1002 = vpow2.f32 %v738_v7  ;;  %v673_v31 = vmul.f32 %v1312_v8, %v385_v6  ;;  %v257_v32 = vadd.f32 %v882_v23, %v1339_v22  ;;  %v331_v34 = vpop.f32.mrb[7].mxu1 }
  0xea   :  { %v337_v33 = vadd.f32 %v906_v28, %v1339_v22  ;;  %1004 = vpow2.f32 %v704_v24  ;;  %v689_v35 = vmul.f32 %v616_v45, %v401_v26  ;;  %v384_v36 = vmax.f32 %v242_v4, 0.0  ;;  %v631_v58 = vpop.permute.xlu0 %630 }
  0xeb   :  { %v400_v37 = vmax.f32 %v322_v27, 0.0  ;;  %1006 = vpow2.f32 %v736_v25  ;;  %v710_v38 = vmul.f32 1.442695, %v673_v31  ;;  %v387_v39 = vmax.f32 %v257_v32, 0.0  ;;  %v885_v41 = vpop.f32.mrb[8].mxu0 }
  0xec   :  { %v403_v40 = vmax.f32 %v337_v33, 0.0  ;;  %v909_v42 = vpop.f32.mrb[8].mxu1  ;;  %v742_v43 = vmul.f32 1.442695, %v689_v35  ;;  %v672_v44 = vmul.f32 %v1314_v9, %v384_v36  ;;  %v252_v8 = vadd.f32 %v1339_v22, %v251_v29  ;;  %v261_v47 = vpop.f32.mrb[9].mxu0 }
  0xed   :  { %v688_v46 = vmul.f32 %v611_v54, %v400_v37  ;;  %v341_v48 = vpop.f32.mrb[9].mxu1  ;;  %1008 = vpow2.f32 %v710_v38  ;;  %v675_v49 = vmul.f32 %v1316_v10, %v387_v39  ;;  %v332_v50 = vadd.f32 %v1339_v22, %v331_v34  ;;  %v646_v39 = vpop.permute.xlu1 %645 }
  0xee   :  { %v691_v45 = vmul.f32 %v626_v21, %v403_v40  ;;  %v993_v51 = vpop.eup %992  ;;  %1010 = vpow2.f32 %v742_v43  ;;  %v708_v53 = vmul.f32 1.442695, %v672_v44  ;;  %v386_v56 = vmax.f32 %v252_v8, 0.0  ;;  %v641_v40 = vpop.permute.xlu0 %640 }
  0xef   :  { %v740_v55 = vmul.f32 1.442695, %v688_v46  ;;  %v995_v57 = vpop.eup %994  ;;  %765 = vst.msk [vmem:[%s1517_s4 + $0x8] sm:$0xff] %vm58_vm0, %v993_v51  ;;  %v714_v9 = vmul.f32 1.442695, %v675_v49  ;;  %v402_v59 = vmax.f32 %v332_v50, 0.0  ;;  %v267_v10 = vadd.f32 %v885_v41, %v1339_v22 }
  0xf0   :  { %v746_v54 = vmul.f32 1.442695, %v691_v45  ;;  %v888_v60 = vpop.f32.mrb[10].mxu0  ;;  %v997_v61 = vpop.eup %996  ;;  %781 = vst.msk [vmem:[%s1517_s4 + $0x88] sm:$0xff] %vm58_vm0, %v995_v57  ;;  %1012 = vpow2.f32 %v708_v53  ;;  %v674_v62 = vmul.f32 %v1318_v11, %v386_v56  ;;  %v347_v63 = vadd.f32 %v909_v42, %v1339_v22 }
  0xf1   :  { %v262_v0 = vadd.f32 %v1339_v22, %v261_v47  ;;  %v912_v1 = vpop.f32.mrb[10].mxu1  ;;  %v271_v2 = vpop.f32.mrb[11].mxu0  ;;  %764 = vst.msk [vmem:[%s1517_s4] sm:$0xff] %vm58_vm0, %v997_v61  ;;  %1014 = vpow2.f32 %v740_v55  ;;  %v690_v5 = vmul.f32 %v621_v30, %v402_v59  ;;  %v389_v7 = vmax.f32 %v267_v10, 0.0 }
  0xf2   :  { %v999_v3 = vpop.eup %998  ;;  %v342_v20 = vadd.f32 %v1339_v22, %v341_v48  ;;  %v351_v21 = vpop.f32.mrb[11].mxu1  ;;  %1016 = vpow2.f32 %v714_v9  ;;  %v712_v11 = vmul.f32 1.442695, %v674_v62  ;;  %v405_v25 = vmax.f32 %v347_v63, 0.0 }
  0xf3   :  { %v1001_v24 = vpop.eup %1000  ;;  %780 = vst.msk [vmem:[%s1517_s4 + $0x80] sm:$0xff] %vm58_vm0, %v999_v3  ;;  %v388_v6 = vmax.f32 %v262_v0, 0.0  ;;  %1018 = vpow2.f32 %v746_v54  ;;  %v744_v26 = vmul.f32 1.442695, %v690_v5  ;;  %v677_v4 = vmul.f32 %v1320_v12, %v389_v7  ;;  %v891_v28 = vpop.f32.mrb[12].mxu0 }
  0xf4   :  { %v1003_v23 = vpop.eup %1002  ;;  %767 = vst.msk [vmem:[%s1517_s4 + $0x18] sm:$0xff] %vm58_vm0, %v1001_v24  ;;  %v404_v27 = vmax.f32 %v342_v20, 0.0  ;;  %v915_v29 = vpop.f32.mrb[12].mxu1  ;;  %1020 = vpow2.f32 %v712_v11  ;;  %v693_v31 = vmul.f32 %v636_v52, %v405_v25  ;;  %v277_v33 = vadd.f32 %v888_v60, %v1339_v22 }
  0xf5   :  { %v1005_v30 = vpop.eup %1004  ;;  %783 = vst.msk [vmem:[%s1517_s4 + $0x98] sm:$0xff] %vm58_vm0, %v1003_v23  ;;  %v676_v32 = vmul.f32 %v1322_v13, %v388_v6  ;;  %v281_v34 = vpop.f32.mrb[13].mxu0  ;;  %1022 = vpow2.f32 %v744_v26  ;;  %v718_v12 = vmul.f32 1.442695, %v677_v4  ;;  %v357_v38 = vadd.f32 %v912_v1, %v1339_v22 }
  0xf6   :  { %v361_v35 = vpop.f32.mrb[13].mxu1  ;;  %v1007_v36 = vpop.eup %1006  ;;  %766 = vst.msk [vmem:[%s1517_s4 + $0x10] sm:$0xff] %vm58_vm0, %v1005_v30  ;;  %v692_v37 = vmul.f32 %v631_v58, %v404_v27  ;;  %v750_v13 = vmul.f32 1.442695, %v693_v31  ;;  %v391_v42 = vmax.f32 %v277_v33, 0.0  ;;  %v272_v43 = vadd.f32 %v1339_v22, %v271_v2 }
  0xf7   :  { %782 = vst.msk [vmem:[%s1517_s4 + $0x90] sm:$0xff] %vm58_vm0, %v1007_v36  ;;  %v716_v41 = vmul.f32 1.442695, %v676_v32  ;;  %v1009_v44 = vpop.eup %1008  ;;  %1024 = vpow2.f32 %v718_v12  ;;  %v407_v8 = vmax.f32 %v357_v38, 0.0  ;;  %v352_v47 = vadd.f32 %v1339_v22, %v351_v21  ;;  %v894_v48 = vpop.f32.mrb[14].mxu0 }
  0xf8   :  { %v748_v46 = vmul.f32 1.442695, %v692_v37  ;;  %v918_v49 = vpop.f32.mrb[14].mxu1  ;;  %v1011_v45 = vpop.eup %1010  ;;  %769 = vst.msk [vmem:[%s1517_s4 + $0x28] sm:$0xff] %vm58_vm0, %v1009_v44  ;;  %1026 = vpow2.f32 %v750_v13  ;;  %v679_v50 = vmul.f32 %v1324_v14, %v391_v42  ;;  %v390_v51 = vmax.f32 %v272_v43, 0.0 }
  0xf9   :  { %v287_v52 = vadd.f32 %v891_v28, %v1339_v22  ;;  %v291_v53 = vpop.f32.mrb[15].mxu0  ;;  %v371_v55 = vpop.f32.mrb[15].mxu1  ;;  %785 = vst.msk [vmem:[%s1517_s4 + $0xa8] sm:$0xff] %vm58_vm0, %v1011_v45  ;;  %1028 = vpow2.f32 %v716_v41  ;;  %v695_v56 = vmul.f32 %v646_v39, %v407_v8  ;;  %v406_v57 = vmax.f32 %v352_v47, 0.0 }
  0xfa   :  { %v367_v58 = vadd.f32 %v915_v29, %v1339_v22  ;;  %v1013_v9 = vpop.eup %1012  ;;  %1030 = vpow2.f32 %v748_v46  ;;  %v722_v54 = vmul.f32 1.442695, %v679_v50  ;;  %v678_v14 = vmul.f32 %v1326_v15, %v390_v51  ;;  %v656_v1 = vpop.permute.xlu1 %655 }
  0xfb   :  { %v393_v59 = vmax.f32 %v287_v52, 0.0  ;;  %v1015_v10 = vpop.eup %1014  ;;  %768 = vst.msk [vmem:[%s1517_s4 + $0x20] sm:$0xff] %vm58_vm0, %v1013_v9  ;;  %v754_v60 = vmul.f32 1.442695, %v695_v56  ;;  %v694_v61 = vmul.f32 %v641_v40, %v406_v57  ;;  %v282_v63 = vadd.f32 %v1339_v22, %v281_v34  ;;  %v651_v11 = vpop.permute.xlu0 %650 }
  0xfc   :  { %v409_v62 = vmax.f32 %v367_v58, 0.0  ;;  %v1017_v0 = vpop.eup %1016  ;;  %784 = vst.msk [vmem:[%s1517_s4 + $0xa0] sm:$0xff] %vm58_vm0, %v1015_v10  ;;  %1032 = vpow2.f32 %v722_v54  ;;  %v720_v15 = vmul.f32 1.442695, %v678_v14  ;;  %v362_v3 = vadd.f32 %v1339_v22, %v361_v35 }
  0xfd   :  { %v681_v2 = vmul.f32 %v1328_v16, %v393_v59  ;;  %v1019_v5 = vpop.eup %1018  ;;  %771 = vst.msk [vmem:[%s1517_s4 + $0x38] sm:$0xff] %vm58_vm0, %v1017_v0  ;;  %1034 = vpow2.f32 %v754_v60  ;;  %v752_v7 = vmul.f32 1.442695, %v694_v61  ;;  %v392_v21 = vmax.f32 %v282_v63, 0.0 }
  0xfe   :  { %v697_v20 = vmul.f32 %v656_v1, %v409_v62  ;;  %v1021_v24 = vpop.eup %1020  ;;  %787 = vst.msk [vmem:[%s1517_s4 + $0xb8] sm:$0xff] %vm58_vm0, %v1019_v5  ;;  %1036 = vpow2.f32 %v720_v15  ;;  %v408_v25 = vmax.f32 %v362_v3, 0.0  ;;  %v297_v6 = vadd.f32 %v894_v48, %v1339_v22 }
  0xff   :  { %v726_v16 = vmul.f32 1.442695, %v681_v2  ;;  %v1023_v23 = vpop.eup %1022  ;;  %770 = vst.msk [vmem:[%s1517_s4 + $0x30] sm:$0xff] %vm58_vm0, %v1021_v24  ;;  %1038 = vpow2.f32 %v752_v7  ;;  %v680_v4 = vmul.f32 %v1330_v17, %v392_v21  ;;  %v377_v27 = vadd.f32 %v918_v49, %v1339_v22  ;;  %v666_v17 = vpop.permute.xlu1 %665 }
 0x100   :  { %v758_v26 = vmul.f32 1.442695, %v697_v20  ;;  %786 = vst.msk [vmem:[%s1517_s4 + $0xb0] sm:$0xff] %vm58_vm0, %v1023_v23  ;;  %v696_v28 = vmul.f32 %v651_v11, %v408_v25  ;;  %v395_v29 = vmax.f32 %v297_v6, 0.0  ;;  %v292_v30 = vadd.f32 %v1339_v22, %v291_v53  ;;  %v661_v13 = vpop.permute.xlu0 %660 }
 0x101   :  { %1040 = vpow2.f32 %v726_v16  ;;  %v1025_v31 = vpop.eup %1024  ;;  %v724_v32 = vmul.f32 1.442695, %v680_v4  ;;  %v411_v33 = vmax.f32 %v377_v27, 0.0  ;;  %v372_v34 = vadd.f32 %v1339_v22, %v371_v55 }
 0x102   :  { %1042 = vpow2.f32 %v758_v26  ;;  %v1027_v35 = vpop.eup %1026  ;;  %773 = vst.msk [vmem:[%s1517_s4 + $0x48] sm:$0xff] %vm58_vm0, %v1025_v31  ;;  %v756_v36 = vmul.f32 1.442695, %v696_v28  ;;  %v683_v12 = vmul.f32 %v1332_v18, %v395_v29  ;;  %v394_v37 = vmax.f32 %v292_v30, 0.0 }
 0x103   :  { %v1029_v38 = vpop.eup %1028  ;;  %789 = vst.msk [vmem:[%s1517_s4 + $0xc8] sm:$0xff] %vm58_vm0, %v1027_v35  ;;  %1044 = vpow2.f32 %v724_v32  ;;  %v699_v39 = vmul.f32 %v666_v17, %v411_v33  ;;  %v410_v22 = vmax.f32 %v372_v34, 0.0 }
 0x104   :  { %v1031_v40 = vpop.eup %1030  ;;  %772 = vst.msk [vmem:[%s1517_s4 + $0x40] sm:$0xff] %vm58_vm0, %v1029_v38  ;;  %1046 = vpow2.f32 %v756_v36  ;;  %v730_v41 = vmul.f32 1.442695, %v683_v12  ;;  %v682_v18 = vmul.f32 %v1334_v19, %v394_v37 }
 0x105   :  { %788 = vst.msk [vmem:[%s1517_s4 + $0xc0] sm:$0xff] %vm58_vm0, %v1031_v40  ;;  %v762_v42 = vmul.f32 1.442695, %v699_v39  ;;  %v698_v43 = vmul.f32 %v661_v13, %v410_v22 }
 0x106   :  { %v1033_v44 = vpop.eup %1032  ;;  %1048 = vpow2.f32 %v730_v41  ;;  %v728_v46 = vmul.f32 1.442695, %v682_v18 }
 0x107   :  { %v1035_v8 = vpop.eup %1034  ;;  %775 = vst.msk [vmem:[%s1517_s4 + $0x58] sm:$0xff] %vm58_vm0, %v1033_v44  ;;  %1050 = vpow2.f32 %v762_v42  ;;  %v760_v47 = vmul.f32 1.442695, %v698_v43 }
 0x108   :  { %v1037_v48 = vpop.eup %1036  ;;  %791 = vst.msk [vmem:[%s1517_s4 + $0xd8] sm:$0xff] %vm58_vm0, %v1035_v8  ;;  %1052 = vpow2.f32 %v728_v46 }
 0x109   :  { %v1039_v19 = vpop.eup %1038  ;;  %774 = vst.msk [vmem:[%s1517_s4 + $0x50] sm:$0xff] %vm58_vm0, %v1037_v48  ;;  %1054 = vpow2.f32 %v760_v47 }
 0x10a   :  { %790 = vst.msk [vmem:[%s1517_s4 + $0xd0] sm:$0xff] %vm58_vm0, %v1039_v19 }
 0x10b   :  { %v1041_v49 = vpop.eup %1040 }
 0x10c   :  { %v1043_v45 = vpop.eup %1042  ;;  %777 = vst.msk [vmem:[%s1517_s4 + $0x68] sm:$0xff] %vm58_vm0, %v1041_v49 }
 0x10d   :  { %793 = vst.msk [vmem:[%s1517_s4 + $0xe8] sm:$0xff] %vm58_vm0, %v1043_v45  ;;  %v1045_v50 = vpop.eup %1044 }
 0x10e   :  { %v1047_v51 = vpop.eup %1046  ;;  %776 = vst.msk [vmem:[%s1517_s4 + $0x60] sm:$0xff] %vm58_vm0, %v1045_v50 }
 0x10f   :  { %792 = vst.msk [vmem:[%s1517_s4 + $0xe0] sm:$0xff] %vm58_vm0, %v1047_v51 }
 0x110   :  { %v1049_v52 = vpop.eup %1048 }
 0x111   :  { %v1051_v53 = vpop.eup %1050  ;;  %779 = vst.msk [vmem:[%s1517_s4 + $0x78] sm:$0xff] %vm58_vm0, %v1049_v52 }
 0x112   :  { %v1053_v55 = vpop.eup %1052  ;;  %795 = vst.msk [vmem:[%s1517_s4 + $0xf8] sm:$0xff] %vm58_vm0, %v1051_v53 }
 0x113   :  { %v1055_v56 = vpop.eup %1054  ;;  %778 = vst.msk [vmem:[%s1517_s4 + $0x70] sm:$0xff] %vm58_vm0, %v1053_v55 }
 0x114   :  { %794 = vst.msk [vmem:[%s1517_s4 + $0xf0] sm:$0xff] %vm58_vm0, %v1055_v56 }

// kernel: tile.23
= control target key start
LH: loop header
LB: loop body
LE: loop exit
PB: predicated region body
PF: predicated region fallthrough
CT: control target
= control target key end

     0   :  { %s28_s0 = inlined_call_operand.vmem [shape: f32[16], index: 0, kind: input, shape index: {}]   ;;  %s29_s1 = inlined_call_operand.vmem [shape: f32[16,16], index: 1, kind: output, shape index: {}]  }
   0x1   :  { %v4_v0 = vld [vmem:[%s28_s0] ss:$0 sm:$0xff] }
   0x2   :  { %5 = vst [vmem:[%s29_s1] sm:$0xff] %v4_v0  ;;  %8 = vst [vmem:[%s29_s1 + $0x8] sm:$0xff] %v4_v0 }

// kernel: heat_block_forward.5
= control target key start
LH: loop header
LB: loop body
LE: loop exit
PB: predicated region body
PF: predicated region fallthrough
CT: control target
= control target key end

     0   :  { %s12998_s0 = inlined_call_operand.vmem [shape: f32[2,256,16], index: 0, kind: input, shape index: {}]   ;;  %s12999_s1 = inlined_call_operand.vmem [shape: f32[2,256,16], index: 1, kind: input, shape index: {}]   ;;  %s13000_s2 = inlined_call_operand.vmem [shape: f32[2,256,16], index: 2, kind: input, shape index: {}]   ;;  %s13001_s3 = inlined_call_operand.vmem [shape: f32[2,256,16], index: 3, kind: input, shape index: {}]   ;;  %s13002_s4 = inlined_call_operand.vmem [shape: f32[2,1,3], index: 4, kind: input, shape index: {}]   ;;  %s13003_s5 = inlined_call_operand.vmem [shape: f32[256,16], index: 5, kind: input, shape index: {}]   ;;  %s13004_s6 = inlined_call_operand.vmem [shape: f32[256,256], index: 6, kind: input, shape index: {}]   ;;  %s13005_s7 = inlined_call_operand.vmem [shape: f32[256,256], index: 7, kind: input, shape index: {}]   ;;  %s13006_s8 = inlined_call_operand.vmem [shape: f32[16,16], index: 8, kind: input, shape index: {}]   ;;  %s13007_s9 = inlined_call_operand.vmem [shape: f32[16,16], index: 9, kind: input, shape index: {}]   ;;  %s13008_s10 = inlined_call_operand.vmem [shape: f32[256,256], index: 10, kind: input, shape index: {}]   ;;  %s13009_s11 = inlined_call_operand.vmem [shape: f32[1,16], index: 11, kind: input, shape index: {}]   ;;  %s13010_s12 = inlined_call_operand.vmem [shape: f32[1,16], index: 12, kind: input, shape index: {}]   ;;  %s13011_s13 = inlined_call_operand.vmem [shape: f32[16,16], index: 13, kind: input, shape index: {}]   ;;  %s13012_s14 = inlined_call_operand.vmem [shape: f32[1,16], index: 14, kind: input, shape index: {}]   ;;  %s13013_s15 = inlined_call_operand.vmem [shape: f32[256,1], index: 15, kind: input, shape index: {}]   ;;  %s13014_s16 = inlined_call_operand.vmem [shape: f32[256,1], index: 16, kind: input, shape index: {}]   ;;  %s13015_s17 = inlined_call_operand.vmem [shape: f32[16,64], index: 17, kind: input, shape index: {}]   ;;  %s13016_s18 = inlined_call_operand.vmem [shape: f32[1,64], index: 18, kind: input, shape index: {}]   ;;  %s13017_s19 = inlined_call_operand.vmem [shape: f32[64,16], index: 19, kind: input, shape index: {}]   ;;  %s13018_s20 = inlined_call_operand.vmem [shape: f32[1,16], index: 20, kind: input, shape index: {}]   ;;  %s13019_s21 = inlined_call_operand.vmem [shape: f32[256,1], index: 21, kind: input, shape index: {}]   ;;  %s13020_s22 = inlined_call_operand.vmem [shape: f32[256,1], index: 22, kind: input, shape index: {}]   ;;  %s13021_s23 = inlined_call_operand.vmem [shape: f32[2,256,16], index: 23, kind: output, shape index: {}]  }
   0x1   :  { %13141 = sst [smem:[#allocation85_spill]] %s12998_s0 }
   0x2   :  { %13142 = sst [smem:[#allocation86_spill]] %s12999_s1 }
   0x3   :  { %13143 = sst [smem:[#allocation87_spill]] %s13000_s2 }
   0x4   :  { %13144 = sst [smem:[#allocation88_spill]] %s13001_s3 }
   0x5   :  { %13145 = sst [smem:[#allocation89_spill]] %s13002_s4  ;;  %s8409_s4 = smov 0  }
   0x6   :  { %13146 = sst [smem:[#allocation90_spill]] %s13003_s5 }
   0x7   :  { %13147 = sst [smem:[#allocation91_spill]] %s13004_s6 }
   0x8   :  { %13148 = sst [smem:[#allocation92_spill]] %s13005_s7 }
   0x9 LB: > { %s6760_s30 = sadd.s32 4294967295, %s8283_s4   ;;  %p6764_p0 = scmp.ge.s32.totalorder %s8283_s4, 1  ;;  %s8283_s4 = sphi %s8409_s4, %s33_s4  }
   0xa   : > { %p675_p1 = scmp.lt.s32.totalorder %s8283_s4, 3 }
   0xc   : > { %p676_p2 = pnand %p6764_p0, %p675_p1 }
   0xe   : > { %679 = sbr.rel (%p676_p2) target bundleno = 3431 (0xd67), region = 112 }
  0x15   : > { %p757_p3 = scmp.lt.s32.totalorder %s6760_s30, 1  ;;  %s13149_s5 = sld [smem:[#allocation91_spill]]  ;;  %v13026_v1 = vmov 0.0|0.0   ;;  %vm1461_vm0 = vcmask 130048   ;;  %vm5248_vm1 = vcmask 523264  }
  0x16   : > { %7428 = vmatprep.subr.bf16.mxu0 %v13026_v1  ;;  %7476 = vmatprep.subr.bf16.mxu1 %v13026_v1  ;;  %s13150_s6 = sld [smem:[#allocation86_spill]]  ;;  %s13151_s29 = sld [smem:[#allocation92_spill]] }
  0x17   : > { %s13407_s30 = smov (!%p757_p3, %s6760_s30), 1  ;;  %s13152_s24 = sld [smem:[#allocation90_spill]] }
  0x18   : > { %s8425_s1 = sshll.u32 %s13407_s30, 8  ;;  %s13153_s25 = sld [smem:[#allocation89_spill]] }
  0x19   : > { %s13155_s0 = sld [smem:[#allocation88_spill]] }
  0x1b   : > { %v850_v0 = vld [vmem:[%s13149_s5 + $0x8] sm:$0xff]  ;;  %v849_v50 = vld [vmem:[%s13149_s5] sm:$0xff]  ;;  %v852_v51 = vld [vmem:[%s13149_s5 + $0x18] sm:$0xff] }
  0x1c   : > { %977 = vmatprep.mubr.f32.mxu0 %v850_v0  ;;  %s8431_s27 = scalar_lea.vmem %s13150_s6, %s8425_s1  ;;  %v851_v52 = vld [vmem:[%s13149_s5 + $0x10] sm:$0xff]  ;;  %v854_v53 = vld [vmem:[%s13149_s5 + $0x28] sm:$0xff]  ;;  %v853_v54 = vld [vmem:[%s13149_s5 + $0x20] sm:$0xff] }
  0x1d   : > { %v8434_v2 = vld [vmem:[%s8431_s27] sm:$0xff]  ;;  %v8437_v3 = vld [vmem:[%s8431_s27 + $0x8] sm:$0xff]  ;;  %v8440_v4 = vld [vmem:[%s8431_s27 + $0x10] sm:$0xff] }
  0x1e   : > { %v7429_v5 = vpack.c.bf16 %v8437_v3, %v8434_v2  ;;  %v8445_v6 = vld [vmem:[%s8431_s27 + $0x18] sm:$0xff]  ;;  %v8451_v8 = vld [vmem:[%s8431_s27 + $0x20] sm:$0xff]  ;;  %v8454_v9 = vld [vmem:[%s8431_s27 + $0x28] sm:$0xff]  ;;  %s779_s26 = scalar_lea.vmem %s13153_s25, %s13407_s30  ;;  %s12837_s25 = scalar_lea.vmem %s13021_s23, %s8425_s1 }
  0x1f   : > { %v7432_v7 = vpack.c.bf16 %v8445_v6, %v8440_v4  ;;  %v7435_v10 = vpack.c.bf16 %v8454_v9, %v8451_v8  ;;  %v8460_v11 = vld [vmem:[%s8431_s27 + $0x30] sm:$0xff]  ;;  %v8463_v12 = vld [vmem:[%s8431_s27 + $0x38] sm:$0xff]  ;;  %v8469_v14 = vld [vmem:[%s8431_s27 + $0x40] sm:$0xff] }
  0x20   : > { %7430 = vmatpush1.bf16.msra.mxu0 %v7429_v5  ;;  %v7438_v13 = vpack.c.bf16 %v8463_v12, %v8460_v11  ;;  %v8472_v15 = vld [vmem:[%s8431_s27 + $0x48] sm:$0xff]  ;;  %v8478_v17 = vld [vmem:[%s8431_s27 + $0x50] sm:$0xff]  ;;  %v8481_v18 = vld [vmem:[%s8431_s27 + $0x58] sm:$0xff] }
  0x21   : > { %7431 = vmatprep.subr.bf16.mxu0 %v13026_v1  ;;  %v7441_v16 = vpack.c.bf16 %v8472_v15, %v8469_v14  ;;  %v7444_v19 = vpack.c.bf16 %v8481_v18, %v8478_v17  ;;  %v8487_v20 = vld [vmem:[%s8431_s27 + $0x60] sm:$0xff]  ;;  %v8490_v21 = vld [vmem:[%s8431_s27 + $0x68] sm:$0xff]  ;;  %v8496_v23 = vld [vmem:[%s8431_s27 + $0x70] sm:$0xff] }
  0x22   : > { %v7447_v22 = vpack.c.bf16 %v8490_v21, %v8487_v20  ;;  %v8499_v24 = vld [vmem:[%s8431_s27 + $0x78] sm:$0xff]  ;;  %v801_v26 = vld [vmem:[%s8431_s27 + $0x80] sm:$0xff]  ;;  %v802_v27 = vld [vmem:[%s8431_s27 + $0x88] sm:$0xff] }
  0x23   : > { %v7450_v25 = vpack.c.bf16 %v8499_v24, %v8496_v23  ;;  %v7453_v28 = vpack.c.bf16 %v802_v27, %v801_v26  ;;  %v803_v29 = vld [vmem:[%s8431_s27 + $0x90] sm:$0xff]  ;;  %v804_v30 = vld [vmem:[%s8431_s27 + $0x98] sm:$0xff]  ;;  %v805_v32 = vld [vmem:[%s8431_s27 + $0xa0] sm:$0xff] }
  0x24   : > { %7433 = vmatpush1.bf16.msra.mxu0 %v7432_v7  ;;  %v7456_v31 = vpack.c.bf16 %v804_v30, %v803_v29  ;;  %v806_v33 = vld [vmem:[%s8431_s27 + $0xa8] sm:$0xff]  ;;  %v807_v35 = vld [vmem:[%s8431_s27 + $0xb0] sm:$0xff]  ;;  %v808_v36 = vld [vmem:[%s8431_s27 + $0xb8] sm:$0xff] }
  0x25   : > { %7434 = vmatprep.subr.bf16.mxu0 %v13026_v1  ;;  %v7459_v34 = vpack.c.bf16 %v806_v33, %v805_v32  ;;  %v7462_v37 = vpack.c.bf16 %v808_v36, %v807_v35  ;;  %v809_v38 = vld [vmem:[%s8431_s27 + $0xc0] sm:$0xff]  ;;  %v810_v39 = vld [vmem:[%s8431_s27 + $0xc8] sm:$0xff]  ;;  %v811_v41 = vld [vmem:[%s8431_s27 + $0xd0] sm:$0xff] }
  0x26   : > { %v7465_v40 = vpack.c.bf16 %v810_v39, %v809_v38  ;;  %v812_v42 = vld [vmem:[%s8431_s27 + $0xd8] sm:$0xff]  ;;  %v8523_v44 = vld [vmem:[%s8431_s27 + $0xe0] sm:$0xff]  ;;  %v8526_v45 = vld [vmem:[%s8431_s27 + $0xe8] sm:$0xff] }
  0x27   : > { %v7468_v43 = vpack.c.bf16 %v812_v42, %v811_v41  ;;  %v7471_v46 = vpack.c.bf16 %v8526_v45, %v8523_v44  ;;  %v8532_v47 = vld [vmem:[%s8431_s27 + $0xf0] sm:$0xff]  ;;  %v8535_v48 = vld [vmem:[%s8431_s27 + $0xf8] sm:$0xff]  ;;  %v858_v57 = vld [vmem:[%s13149_s5 + $0x48] sm:$0xff] }
  0x28   : > { %7436 = vmatpush1.bf16.msra.mxu0 %v7435_v10  ;;  %v7474_v49 = vpack.c.bf16 %v8535_v48, %v8532_v47  ;;  %v856_v55 = vld [vmem:[%s13149_s5 + $0x38] sm:$0xff]  ;;  %v855_v56 = vld [vmem:[%s13149_s5 + $0x30] sm:$0xff]  ;;  %v857_v58 = vld [vmem:[%s13149_s5 + $0x40] sm:$0xff] }
  0x29   : > { %7437 = vmatprep.subr.bf16.mxu0 %v13026_v1  ;;  %v860_v59 = vld [vmem:[%s13149_s5 + $0x58] sm:$0xff]  ;;  %v859_v60 = vld [vmem:[%s13149_s5 + $0x50] sm:$0xff]  ;;  %v862_v61 = vld [vmem:[%s13149_s5 + $0x68] sm:$0xff] }
  0x2a   : > { %v861_v62 = vld [vmem:[%s13149_s5 + $0x60] sm:$0xff]  ;;  %v864_v63 = vld [vmem:[%s13149_s5 + $0x78] sm:$0xff]  ;;  %v863_v0 = vld [vmem:[%s13149_s5 + $0x70] sm:$0xff] }
  0x2b   : > { %v866_v5 = vld [vmem:[%s13149_s5 + $0x88] sm:$0xff]  ;;  %v865_v7 = vld [vmem:[%s13149_s5 + $0x80] sm:$0xff]  ;;  %v868_v10 = vld [vmem:[%s13149_s5 + $0x98] sm:$0xff] }
  0x2c   : > { %7439 = vmatpush1.bf16.msra.mxu0 %v7438_v13  ;;  %v867_v13 = vld [vmem:[%s13149_s5 + $0x90] sm:$0xff]  ;;  %v874_v26 = vld [vmem:[%s13149_s5 + $0xc8] sm:$0xff]  ;;  %v873_v27 = vld [vmem:[%s13149_s5 + $0xc0] sm:$0xff] }
  0x2d   : > { %7440 = vmatprep.subr.bf16.mxu0 %v13026_v1  ;;  %v875_v29 = vld [vmem:[%s13149_s5 + $0xd0] sm:$0xff]  ;;  %v878_v30 = vld [vmem:[%s13149_s5 + $0xe8] sm:$0xff]  ;;  %v880_v32 = vld [vmem:[%s13149_s5 + $0xf8] sm:$0xff] }
  0x2e   : > { %v879_v33 = vld [vmem:[%s13149_s5 + $0xf0] sm:$0xff]  ;;  %v881_v35 = vld [vmem:[%s13149_s5 + $0x100] sm:$0xff]  ;;  %v884_v36 = vld [vmem:[%s13149_s5 + $0x118] sm:$0xff] }
  0x2f   : > { %v886_v38 = vld [vmem:[%s13149_s5 + $0x128] sm:$0xff]  ;;  %v885_v39 = vld [vmem:[%s13149_s5 + $0x120] sm:$0xff]  ;;  %v887_v41 = vld [vmem:[%s13149_s5 + $0x130] sm:$0xff] }
  0x30   : > { %7442 = vmatpush1.bf16.msra.mxu0 %v7441_v16  ;;  %v870_v16 = vld [vmem:[%s13149_s5 + $0xa8] sm:$0xff] }
  0x31   : > { %7443 = vmatprep.subr.bf16.mxu0 %v13026_v1  ;;  %v890_v42 = vld [vmem:[%s13149_s5 + $0x148] sm:$0xff] }
  0x34   : > { %7445 = vmatpush1.bf16.msra.mxu0 %v7444_v19  ;;  %v869_v19 = vld [vmem:[%s13149_s5 + $0xa0] sm:$0xff] }
  0x35   : > { %7446 = vmatprep.subr.bf16.mxu0 %v13026_v1 }
  0x38   : > { %7448 = vmatpush1.bf16.msra.mxu0 %v7447_v22  ;;  %v872_v22 = vld [vmem:[%s13149_s5 + $0xb8] sm:$0xff] }
  0x39   : > { %7449 = vmatprep.subr.bf16.mxu0 %v13026_v1 }
  0x3c   : > { %7451 = vmatpush1.bf16.msra.mxu0 %v7450_v25  ;;  %v871_v25 = vld [vmem:[%s13149_s5 + $0xb0] sm:$0xff] }
  0x3d   : > { %7452 = vmatprep.subr.bf16.mxu0 %v13026_v1 }
  0x40   : > { %7454 = vmatpush1.bf16.msra.mxu0 %v7453_v28  ;;  %v876_v28 = vld [vmem:[%s13149_s5 + $0xd8] sm:$0xff] }
  0x41   : > { %7455 = vmatprep.subr.bf16.mxu0 %v13026_v1 }
  0x44   : > { %7457 = vmatpush1.bf16.msra.mxu0 %v7456_v31  ;;  %v877_v31 = vld [vmem:[%s13149_s5 + $0xe0] sm:$0xff] }
  0x45   : > { %7458 = vmatprep.subr.bf16.mxu0 %v13026_v1 }
  0x48   : > { %7460 = vmatpush1.bf16.msra.mxu0 %v7459_v34  ;;  %v882_v34 = vld [vmem:[%s13149_s5 + $0x108] sm:$0xff] }
  0x49   : > { %7461 = vmatprep.subr.bf16.mxu0 %v13026_v1 }
  0x4c   : > { %7463 = vmatpush1.bf16.msra.mxu0 %v7462_v37  ;;  %v883_v37 = vld [vmem:[%s13149_s5 + $0x110] sm:$0xff] }
  0x4d   : > { %7464 = vmatprep.subr.bf16.mxu0 %v13026_v1 }
  0x50   : > { %7466 = vmatpush1.bf16.msra.mxu0 %v7465_v40  ;;  %v888_v40 = vld [vmem:[%s13149_s5 + $0x138] sm:$0xff] }
  0x51   : > { %7467 = vmatprep.subr.bf16.mxu0 %v13026_v1 }
  0x54   : > { %7469 = vmatpush1.bf16.msra.mxu0 %v7468_v43  ;;  %v889_v43 = vld [vmem:[%s13149_s5 + $0x140] sm:$0xff] }
  0x55   : > { %7470 = vmatprep.subr.bf16.mxu0 %v13026_v1 }
  0x58   : > { %7472 = vmatpush1.bf16.msra.mxu0 %v7471_v46  ;;  %v892_v46 = vld [vmem:[%s13149_s5 + $0x158] sm:$0xff] }
  0x59   : > { %7473 = vmatprep.subr.bf16.mxu0 %v13026_v1 }
  0x5c   : > { %7475 = vmatpush1.bf16.msra.mxu0 %v7474_v49  ;;  %v891_v49 = vld [vmem:[%s13149_s5 + $0x150] sm:$0xff] }
  0x5f   : > { %978 = vmatmul.mubr.f32.vlgmr.msra.gmra.mrb[0].mxu0 %v849_v50  ;;  %v894_v50 = vld [vmem:[%s13149_s5 + $0x168] sm:$0xff] }
  0x60   : > { %982 = vmatprep.mubr.f32.mxu0 %v852_v51  ;;  %v893_v51 = vld [vmem:[%s13149_s5 + $0x160] sm:$0xff] }
  0x63   : > { %983 = vmatmul.mubr.f32.gmra.mrb[2].mxu0 %v851_v52  ;;  %v896_v52 = vld [vmem:[%s13149_s5 + $0x178] sm:$0xff] }
  0x64   : > { %987 = vmatprep.mubr.f32.mxu0 %v854_v53  ;;  %v895_v53 = vld [vmem:[%s13149_s5 + $0x170] sm:$0xff] }
  0x67   : > { %988 = vmatmul.mubr.f32.gmra.mrb[4].mxu0 %v853_v54  ;;  %v898_v54 = vld [vmem:[%s13149_s5 + $0x188] sm:$0xff] }
  0x68   : > { %992 = vmatprep.mubr.f32.mxu0 %v856_v55  ;;  %v897_v55 = vld [vmem:[%s13149_s5 + $0x180] sm:$0xff] }
  0x6b   : > { %993 = vmatmul.mubr.f32.gmra.mrb[6].mxu0 %v855_v56  ;;  %v900_v56 = vld [vmem:[%s13149_s5 + $0x198] sm:$0xff] }
  0x6c   : > { %997 = vmatprep.mubr.f32.mxu0 %v858_v57  ;;  %v899_v57 = vld [vmem:[%s13149_s5 + $0x190] sm:$0xff] }
  0x6f   : > { %998 = vmatmul.mubr.f32.gmra.mrb[8].mxu0 %v857_v58  ;;  %v902_v58 = vld [vmem:[%s13149_s5 + $0x1a8] sm:$0xff] }
  0x70   : > { %1002 = vmatprep.mubr.f32.mxu0 %v860_v59  ;;  %v901_v59 = vld [vmem:[%s13149_s5 + $0x1a0] sm:$0xff] }
  0x73   : > { %1003 = vmatmul.mubr.f32.gmra.mrb[10].mxu0 %v859_v60  ;;  %v904_v60 = vld [vmem:[%s13149_s5 + $0x1b8] sm:$0xff] }
  0x74   : > { %1007 = vmatprep.mubr.f32.mxu0 %v862_v61  ;;  %v903_v61 = vld [vmem:[%s13149_s5 + $0x1b0] sm:$0xff] }
  0x77   : > { %1008 = vmatmul.mubr.f32.gmra.mrb[12].mxu0 %v861_v62  ;;  %v906_v62 = vld [vmem:[%s13149_s5 + $0x1c8] sm:$0xff] }
  0x78   : > { %1012 = vmatprep.mubr.f32.mxu0 %v864_v63  ;;  %v905_v63 = vld [vmem:[%s13149_s5 + $0x1c0] sm:$0xff] }
  0x7b   : > { %1013 = vmatmul.mubr.f32.gmra.mrb[14].mxu0 %v863_v0  ;;  %v908_v0 = vld [vmem:[%s13149_s5 + $0x1d8] sm:$0xff] }
  0x7c   : > { %1017 = vmatprep.mubr.f32.mxu0 %v866_v5  ;;  %v907_v5 = vld [vmem:[%s13149_s5 + $0x1d0] sm:$0xff] }
  0x7f   : > { %1018 = vmatmul.mubr.f32.gmra.mrb[16].mxu0 %v865_v7  ;;  %v910_v7 = vld [vmem:[%s13149_s5 + $0x1e8] sm:$0xff] }
  0x80   : > { %1022 = vmatprep.mubr.f32.mxu0 %v868_v10  ;;  %v909_v10 = vld [vmem:[%s13149_s5 + $0x1e0] sm:$0xff] }
  0x83   : > { %1023 = vmatmul.mubr.f32.gmra.mrb[18].mxu0 %v867_v13  ;;  %v912_v13 = vld [vmem:[%s13149_s5 + $0x1f8] sm:$0xff] }
  0x84   : > { %1027 = vmatprep.mubr.f32.mxu0 %v870_v16  ;;  %v911_v16 = vld [vmem:[%s13149_s5 + $0x1f0] sm:$0xff] }
  0x87   : > { %1028 = vmatmul.mubr.f32.gmra.mrb[20].mxu0 %v869_v19  ;;  %v1459_v19 = vld [vmem:[%s13006_s8] sm:$0xff] }
  0x88   : > { %1032 = vmatprep.mubr.f32.mxu0 %v872_v22  ;;  %v1460_v22 = vld [vmem:[%s13006_s8 + $0x8] sm:$0xff] }
  0x8b   : > { %1033 = vmatmul.mubr.f32.gmra.mrb[22].mxu0 %v871_v25  ;;  %v8735_v25 = vpack.c.bf16 %v1460_v22, %v1459_v19  ;;  %v8854_v22 = vld [vmem:[%s13152_s24 + $0x60] sm:$0xff] }
  0x8c   : > { %1037 = vmatprep.mubr.f32.mxu0 %v874_v26 }
  0x8d   : > { %7525 = vmatprep.subr.bf16.mxu0 %v8735_v25 }
  0x8e   : > { %7527 = vmatpush3.bf16.msra.mxu0 %v8735_v25 }
  0x8f   : > { %1038 = vmatmul.mubr.f32.gmra.mrb[24].mxu0 %v873_v27 }
  0x90   : > { %1042 = vmatprep.mubr.f32.mxu0 %v876_v28 }
  0x93   : > { %1043 = vmatmul.mubr.f32.gmra.mrb[26].mxu0 %v875_v29 }
  0x94   : > { %1047 = vmatprep.mubr.f32.mxu0 %v878_v30 }
  0x97   : > { %1048 = vmatmul.mubr.f32.gmra.mrb[28].mxu0 %v877_v31  ;;  %v8802_v31 = vld [vmem:[%s13152_s24 + $0x20] sm:$0xff] }
  0x98   : > { %1052 = vmatprep.mubr.f32.mxu0 %v880_v32  ;;  %v8807_v32 = vld [vmem:[%s13152_s24 + $0x28] sm:$0xff] }
  0x9b   : > { %1053 = vmatmul.mubr.f32.gmra.mrb[30].mxu0 %v879_v33 }
  0x9c   : > { %1057 = vmatprep.mubr.f32.mxu0 %v882_v34 }
  0x9f   : > { %1058 = vmatmul.mubr.f32.gmra.mrb[32].mxu0 %v881_v35 }
  0xa0   : > { %1062 = vmatprep.mubr.f32.mxu0 %v884_v36 }
  0xa3   : > { %1063 = vmatmul.mubr.f32.gmra.mrb[34].mxu0 %v883_v37 }
  0xa4   : > { %1067 = vmatprep.mubr.f32.mxu0 %v886_v38 }
  0xa7   : > { %1068 = vmatmul.mubr.f32.gmra.mrb[36].mxu0 %v885_v39 }
  0xa8   : > { %1072 = vmatprep.mubr.f32.mxu0 %v888_v40  ;;  %v8815_v40 = vld [vmem:[%s13152_s24 + $0x30] sm:$0xff] }
  0xab   : > { %1073 = vmatmul.mubr.f32.gmra.mrb[38].mxu0 %v887_v41  ;;  %v8820_v41 = vld [vmem:[%s13152_s24 + $0x38] sm:$0xff] }
  0xac   : > { %1077 = vmatprep.mubr.f32.mxu0 %v890_v42 }
  0xaf   : > { %1078 = vmatmul.mubr.f32.gmra.mrb[40].mxu0 %v889_v43 }
  0xb0   : > { %1082 = vmatprep.mubr.f32.mxu0 %v892_v46 }
  0xb3   : > { %1083 = vmatmul.mubr.f32.gmra.mrb[42].mxu0 %v891_v49 }
  0xb4   : > { %1087 = vmatprep.mubr.f32.mxu0 %v894_v50 }
  0xb7   : > { %1088 = vmatmul.mubr.f32.gmra.mrb[44].mxu0 %v893_v51 }
  0xb8   : > { %1092 = vmatprep.mubr.f32.mxu0 %v896_v52 }
  0xbb   : > { %1093 = vmatmul.mubr.f32.gmra.mrb[46].mxu0 %v895_v53  ;;  %v8828_v53 = vld [vmem:[%s13152_s24 + $0x40] sm:$0xff] }
  0xbc   : > { %1097 = vmatprep.mubr.f32.mxu0 %v898_v54  ;;  %v8833_v54 = vld [vmem:[%s13152_s24 + $0x48] sm:$0xff] }
  0xbf   : > { %1098 = vmatmul.mubr.f32.gmra.mrb[48].mxu0 %v897_v55 }
  0xc0   : > { %1102 = vmatprep.mubr.f32.mxu0 %v900_v56 }
  0xc3   : > { %1103 = vmatmul.mubr.f32.gmra.mrb[50].mxu0 %v899_v57 }
  0xc4   : > { %1107 = vmatprep.mubr.f32.mxu0 %v902_v58 }
  0xc7   : > { %1108 = vmatmul.mubr.f32.gmra.mrb[52].mxu0 %v901_v59 }
  0xc8   : > { %1112 = vmatprep.mubr.f32.mxu0 %v904_v60 }
  0xcb   : > { %1113 = vmatmul.mubr.f32.gmra.mrb[54].mxu0 %v903_v61 }
  0xcc   : > { %1117 = vmatprep.mubr.f32.mxu0 %v906_v62  ;;  %v8841_v62 = vld [vmem:[%s13152_s24 + $0x50] sm:$0xff] }
  0xcf   : > { %1118 = vmatmul.mubr.f32.gmra.mrb[56].mxu0 %v905_v63  ;;  %v8846_v63 = vld [vmem:[%s13152_s24 + $0x58] sm:$0xff] }
  0xd0   : > { %1122 = vmatprep.mubr.f32.mxu0 %v908_v0 }
  0xd3   : > { %1123 = vmatmul.mubr.f32.gmra.mrb[58].mxu0 %v907_v5 }
  0xd4   : > { %1127 = vmatprep.mubr.f32.mxu0 %v910_v7 }
  0xd7   : > { %1128 = vmatmul.mubr.f32.gmra.mrb[60].mxu0 %v909_v10 }
  0xd8   : > { %1132 = vmatprep.mubr.f32.mxu0 %v912_v13 }
  0xdb   : > { %1133 = vmatmul.mubr.f32.gmra.mrb[62].mxu0 %v911_v16 }
  0xdc   : > { %7160 = vmatprep.mubr.msk.f32.mxu0 %vm1461_vm0, %v8434_v2 }
  0xdf   : > { %7161 = vmatmul.mubr.msk.f32.vlgmr.msra.gmra.mrb[64].mxu0 %vm1461_vm0, %v8437_v3 }
  0xe0   : > { %7163 = vmatprep.mubr.msk.f32.mxu0 %vm1461_vm0, %v8440_v4  ;;  %v1171_v4 = vld [vmem:[%s13151_s29 + $0x8] sm:$0xff] }
  0xe1   : > { %1298 = vmatprep.mubr.f32.mxu1 %v1171_v4 }
  0xe3   : > { %7164 = vmatmul.mubr.msk.f32.gmra.mrb[66].mxu0 %vm1461_vm0, %v8445_v6  ;;  %v8777_v6 = vld [vmem:[%s13152_s24] sm:$0xff] }
  0xe4   : > { %7166 = vmatprep.mubr.msk.f32.mxu0 %vm1461_vm0, %v8451_v8  ;;  %v8782_v8 = vld [vmem:[%s13152_s24 + $0x8] sm:$0xff] }
  0xe7   : > { %7167 = vmatmul.mubr.msk.f32.gmra.mrb[68].mxu0 %vm1461_vm0, %v8454_v9 }
  0xe8   : > { %7169 = vmatprep.mubr.msk.f32.mxu0 %vm1461_vm0, %v8460_v11 }
  0xeb   : > { %7170 = vmatmul.mubr.msk.f32.gmra.mrb[70].mxu0 %vm1461_vm0, %v8463_v12 }
  0xec   : > { %7172 = vmatprep.mubr.msk.f32.mxu0 %vm1461_vm0, %v8469_v14 }
  0xef   : > { %7173 = vmatmul.mubr.msk.f32.gmra.mrb[72].mxu0 %vm1461_vm0, %v8472_v15 }
  0xf0   : > { %7175 = vmatprep.mubr.msk.f32.mxu0 %vm1461_vm0, %v8478_v17 }
  0xf3   : > { %7176 = vmatmul.mubr.msk.f32.gmra.mrb[74].mxu0 %vm1461_vm0, %v8481_v18 }
  0xf4   : > { %7178 = vmatprep.mubr.msk.f32.mxu0 %vm1461_vm0, %v8487_v20  ;;  %v8789_v20 = vld [vmem:[%s13152_s24 + $0x10] sm:$0xff] }
  0xf7   : > { %7179 = vmatmul.mubr.msk.f32.gmra.mrb[76].mxu0 %vm1461_vm0, %v8490_v21  ;;  %v8794_v21 = vld [vmem:[%s13152_s24 + $0x18] sm:$0xff] }
  0xf8   : > { %7181 = vmatprep.mubr.msk.f32.mxu0 %vm1461_vm0, %v8496_v23 }
  0xfb   : > { %7182 = vmatmul.mubr.msk.f32.gmra.mrb[78].mxu0 %vm1461_vm0, %v8499_v24 }
 0x132   : > { %v979_v2 = vpop.f32.mrb[0].mxu0 }
 0x133   : > { %v981_v3 = vpop.f32.mrb[1].mxu0  ;;  %v1138_v12 = vmul.f32 %v979_v2, %v8777_v6  ;;  %v8859_v2 = vld [vmem:[%s13152_s24 + $0x68] sm:$0xff] }
 0x136   : > { %v984_v9 = vpop.f32.mrb[2].mxu0 }
 0x137   : > { %v986_v11 = vpop.f32.mrb[3].mxu0  ;;  %v1139_v14 = vmul.f32 %v984_v9, %v8782_v8 }
 0x139   : > { %v7477_v15 = vpack.c.bf16 %v1139_v14, %v1138_v12 }
 0x13a   : > { %v989_v17 = vpop.f32.mrb[4].mxu0 }
 0x13b   : > { %v991_v18 = vpop.f32.mrb[5].mxu0  ;;  %7478 = vmatpush1.bf16.msra.mxu1 %v7477_v15  ;;  %v1140_v24 = vmul.f32 %v989_v17, %v8789_v20  ;;  %v8867_v17 = vld [vmem:[%s13152_s24 + $0x70] sm:$0xff] }
 0x13c   : > { %7479 = vmatprep.subr.bf16.mxu1 %v13026_v1  ;;  %v8872_v18 = vld [vmem:[%s13152_s24 + $0x78] sm:$0xff] }
 0x13e   : > { %v994_v23 = vpop.f32.mrb[6].mxu0 }
 0x13f   : > { %v1141_v26 = vmul.f32 %v994_v23, %v8794_v21  ;;  %v996_v27 = vpop.f32.mrb[7].mxu0 }
 0x141   : > { %v7480_v28 = vpack.c.bf16 %v1141_v26, %v1140_v24 }
 0x142   : > { %v999_v29 = vpop.f32.mrb[8].mxu0 }
 0x143   : > { %v1001_v30 = vpop.f32.mrb[9].mxu0  ;;  %7481 = vmatpush1.bf16.msra.mxu1 %v7480_v28  ;;  %v1142_v34 = vmul.f32 %v999_v29, %v8802_v31 }
 0x144   : > { %7482 = vmatprep.subr.bf16.mxu1 %v13026_v1 }
 0x146   : > { %v1004_v33 = vpop.f32.mrb[10].mxu0 }
 0x147   : > { %v1143_v35 = vmul.f32 %v1004_v33, %v8807_v32  ;;  %v1006_v36 = vpop.f32.mrb[11].mxu0  ;;  %v8880_v33 = vld [vmem:[%s13152_s24 + $0x80] sm:$0xff] }
 0x149   : > { %v7483_v37 = vpack.c.bf16 %v1143_v35, %v1142_v34  ;;  %v8885_v34 = vld [vmem:[%s13152_s24 + $0x88] sm:$0xff] }
 0x14a   : > { %v1009_v38 = vpop.f32.mrb[12].mxu0 }
 0x14b   : > { %v1011_v39 = vpop.f32.mrb[13].mxu0  ;;  %7484 = vmatpush1.bf16.msra.mxu1 %v7483_v37  ;;  %v1144_v43 = vmul.f32 %v1009_v38, %v8815_v40 }
 0x14c   : > { %7485 = vmatprep.subr.bf16.mxu1 %v13026_v1 }
 0x14e   : > { %v1014_v42 = vpop.f32.mrb[14].mxu0 }
 0x14f   : > { %v1145_v46 = vmul.f32 %v1014_v42, %v8820_v41  ;;  %v1016_v49 = vpop.f32.mrb[15].mxu0 }
 0x150   : > { %v8898_v49 = vld [vmem:[%s13152_s24 + $0x98] sm:$0xff] }
 0x151   : > { %v7486_v50 = vpack.c.bf16 %v1145_v46, %v1144_v43  ;;  %v8893_v46 = vld [vmem:[%s13152_s24 + $0x90] sm:$0xff] }
 0x152   : > { %v1019_v51 = vpop.f32.mrb[16].mxu0 }
 0x153   : > { %v1021_v52 = vpop.f32.mrb[17].mxu0  ;;  %7487 = vmatpush1.bf16.msra.mxu1 %v7486_v50  ;;  %v1146_v56 = vmul.f32 %v1019_v51, %v8828_v53 }
 0x154   : > { %7488 = vmatprep.subr.bf16.mxu1 %v13026_v1 }
 0x156   : > { %v1024_v55 = vpop.f32.mrb[18].mxu0 }
 0x157   : > { %v1147_v57 = vmul.f32 %v1024_v55, %v8833_v54  ;;  %v1026_v58 = vpop.f32.mrb[19].mxu0 }
 0x159   : > { %v7489_v59 = vpack.c.bf16 %v1147_v57, %v1146_v56 }
 0x15a   : > { %v1029_v60 = vpop.f32.mrb[20].mxu0 }
 0x15b   : > { %v1031_v61 = vpop.f32.mrb[21].mxu0  ;;  %7490 = vmatpush1.bf16.msra.mxu1 %v7489_v59  ;;  %v1148_v5 = vmul.f32 %v1029_v60, %v8841_v62  ;;  %v8286_v59 = vmov 0   ;;  %v8908_v60 = vld [vmem:[%s779_s26] ss:$0 sm:$0xff]  ;;  %s13154_s26 = sld [smem:[#allocation87_spill]] }
 0x15c   : > { %7491 = vmatprep.subr.bf16.mxu1 %v13026_v1  ;;  %7762 = vset.pattern.permute.xlu0 %v8286_v59  ;;  %v8913_v61 = vld [vmem:[%s13152_s24 + $0xa0] sm:$0xff] }
 0x15d   : > { %2177 = vperm.xlu0 %7762, %v8908_v60  }
 0x15e   : > { %v1034_v0 = vpop.f32.mrb[22].mxu0 }
 0x15f   : > { %v1149_v7 = vmul.f32 %v1034_v0, %v8846_v63  ;;  %v1036_v10 = vpop.f32.mrb[23].mxu0  ;;  %v8918_v0 = vld [vmem:[%s13152_s24 + $0xa8] sm:$0xff] }
 0x161   : > { %v7492_v13 = vpack.c.bf16 %v1149_v7, %v1148_v5  ;;  %s9399_s5 = scalar_lea.vmem %s13154_s26, %s8425_s1  ;;  %s13202_s26 = sld [smem:[#allocation85_spill]] }
 0x162   : > { %v1039_v16 = vpop.f32.mrb[24].mxu0 }
 0x163   : > { %v1041_v19 = vpop.f32.mrb[25].mxu0  ;;  %7493 = vmatpush1.bf16.msra.mxu1 %v7492_v13  ;;  %v1150_v4 = vmul.f32 %v1039_v16, %v8854_v22  ;;  %v8287_v16 = vmov 1  }
 0x164   : > { %7494 = vmatprep.subr.bf16.mxu1 %v13026_v1  ;;  %7763 = vset.pattern.permute.xlu0 %v8287_v16 }
 0x165   : > { %2213 = vperm.xlu0 %7763, %v8908_v60  }
 0x166   : > { %v1044_v3 = vpop.f32.mrb[26].mxu0 }
 0x167   : > { %v1151_v9 = vmul.f32 %v1044_v3, %v8859_v2  ;;  %v1046_v11 = vpop.f32.mrb[27].mxu0 }
 0x168   : > { %v8933_v11 = vld [vmem:[%s13152_s24 + $0xb8] sm:$0xff] }
 0x169   : > { %v7495_v12 = vpack.c.bf16 %v1151_v9, %v1150_v4  ;;  %v8928_v9 = vld [vmem:[%s13152_s24 + $0xb0] sm:$0xff]  ;;  %7766 = vset.pattern.permute.xlu0 %v8286_v59 }
 0x16a   : > { %v1049_v14 = vpop.f32.mrb[28].mxu0 }
 0x16b   : > { %v1051_v15 = vpop.f32.mrb[29].mxu0  ;;  %7496 = vmatpush1.bf16.msra.mxu1 %v7495_v12  ;;  %v1152_v24 = vmul.f32 %v1049_v14, %v8867_v17 }
 0x16c   : > { %7497 = vmatprep.subr.bf16.mxu1 %v13026_v1 }
 0x16e   : > { %v1054_v23 = vpop.f32.mrb[30].mxu0 }
 0x16f   : > { %v1153_v26 = vmul.f32 %v1054_v23, %v8872_v18  ;;  %v1056_v27 = vpop.f32.mrb[31].mxu0 }
 0x171   : > { %v7498_v28 = vpack.c.bf16 %v1153_v26, %v1152_v24 }
 0x172   : > { %v1059_v29 = vpop.f32.mrb[32].mxu0 }
 0x173   : > { %v1061_v30 = vpop.f32.mrb[33].mxu0  ;;  %7499 = vmatpush1.bf16.msra.mxu1 %v7498_v28  ;;  %v1154_v36 = vmul.f32 %v1059_v29, %v8880_v33  ;;  %v8942_v28 = vld [vmem:[%s13152_s24 + $0xc0] sm:$0xff]  ;;  %v8947_v29 = vld [vmem:[%s13152_s24 + $0xc8] sm:$0xff] }
 0x174   : > { %7500 = vmatprep.subr.bf16.mxu1 %v13026_v1 }
 0x176   : > { %v1064_v35 = vpop.f32.mrb[34].mxu0 }
 0x177   : > { %v1155_v37 = vmul.f32 %v1064_v35, %v8885_v34  ;;  %v1066_v38 = vpop.f32.mrb[35].mxu0 }
 0x179   : > { %v7501_v39 = vpack.c.bf16 %v1155_v37, %v1154_v36 }
 0x17a   : > { %v1069_v42 = vpop.f32.mrb[36].mxu0 }
 0x17b   : > { %v1071_v43 = vpop.f32.mrb[37].mxu0  ;;  %7502 = vmatpush1.bf16.msra.mxu1 %v7501_v39  ;;  %v1156_v51 = vmul.f32 %v1069_v42, %v8893_v46 }
 0x17c   : > { %7503 = vmatprep.subr.bf16.mxu1 %v13026_v1  ;;  %v8955_v43 = vld [vmem:[%s13152_s24 + $0xd0] sm:$0xff] }
 0x17e   : > { %v1074_v50 = vpop.f32.mrb[38].mxu0 }
 0x17f   : > { %v1157_v52 = vmul.f32 %v1074_v50, %v8898_v49  ;;  %v1076_v55 = vpop.f32.mrb[39].mxu0  ;;  %v8960_v50 = vld [vmem:[%s13152_s24 + $0xd8] sm:$0xff] }
 0x181   : > { %v7504_v56 = vpack.c.bf16 %v1157_v52, %v1156_v51 }
 0x182   : > { %v1079_v57 = vpop.f32.mrb[40].mxu0 }
 0x183   : > { %v1081_v58 = vpop.f32.mrb[41].mxu0  ;;  %7505 = vmatpush1.bf16.msra.mxu1 %v7504_v56  ;;  %v1158_v7 = vmul.f32 %v1079_v57, %v8913_v61 }
 0x184   : > { %7506 = vmatprep.subr.bf16.mxu1 %v13026_v1 }
 0x186   : > { %v1084_v5 = vpop.f32.mrb[42].mxu0 }
 0x187   : > { %v1159_v10 = vmul.f32 %v1084_v5, %v8918_v0  ;;  %v1086_v13 = vpop.f32.mrb[43].mxu0 }
 0x189   : > { %v7507_v19 = vpack.c.bf16 %v1159_v10, %v1158_v7  ;;  %v8968_v7 = vld [vmem:[%s13152_s24 + $0xe0] sm:$0xff]  ;;  %v8973_v10 = vld [vmem:[%s13152_s24 + $0xe8] sm:$0xff] }
 0x18a   : > { %v1089_v3 = vpop.f32.mrb[44].mxu0 }
 0x18b   : > { %v1091_v4 = vpop.f32.mrb[45].mxu0  ;;  %7508 = vmatpush1.bf16.msra.mxu1 %v7507_v19  ;;  %v1160_v14 = vmul.f32 %v1089_v3, %v8928_v9 }
 0x18c   : > { %7509 = vmatprep.subr.bf16.mxu1 %v13026_v1 }
 0x18e   : > { %v1094_v12 = vpop.f32.mrb[46].mxu0 }
 0x18f   : > { %v1161_v15 = vmul.f32 %v1094_v12, %v8933_v11  ;;  %v1096_v23 = vpop.f32.mrb[47].mxu0 }
 0x190   : > { %v8986_v23 = vld [vmem:[%s13152_s24 + $0xf8] sm:$0xff] }
 0x191   : > { %v7510_v24 = vpack.c.bf16 %v1161_v15, %v1160_v14  ;;  %v8981_v15 = vld [vmem:[%s13152_s24 + $0xf0] sm:$0xff] }
 0x192   : > { %v1099_v26 = vpop.f32.mrb[48].mxu0 }
 0x193   : > { %v1101_v27 = vpop.f32.mrb[49].mxu0  ;;  %7511 = vmatpush1.bf16.msra.mxu1 %v7510_v24  ;;  %v1162_v35 = vmul.f32 %v1099_v26, %v8942_v28 }
 0x194   : > { %7512 = vmatprep.subr.bf16.mxu1 %v13026_v1 }
 0x196   : > { %v1104_v30 = vpop.f32.mrb[50].mxu0 }
 0x197   : > { %v1163_v36 = vmul.f32 %v1104_v30, %v8947_v29  ;;  %v1106_v37 = vpop.f32.mrb[51].mxu0 }
 0x198   : > { %v1173_v37 = vld [vmem:[%s13151_s29 + $0x18] sm:$0xff] }
 0x199   : > { %v7513_v38 = vpack.c.bf16 %v1163_v36, %v1162_v35  ;;  %v1170_v36 = vld [vmem:[%s13151_s29] sm:$0xff] }
 0x19a   : > { %v1109_v39 = vpop.f32.mrb[52].mxu0 }
 0x19b   : > { %v1111_v42 = vpop.f32.mrb[53].mxu0  ;;  %7514 = vmatpush1.bf16.msra.mxu1 %v7513_v38  ;;  %v1164_v52 = vmul.f32 %v1109_v39, %v8955_v43  ;;  %v1172_v38 = vld [vmem:[%s13151_s29 + $0x10] sm:$0xff]  ;;  %v1175_v39 = vld [vmem:[%s13151_s29 + $0x28] sm:$0xff] }
 0x19c   : > { %7515 = vmatprep.subr.bf16.mxu1 %v13026_v1  ;;  %v1174_v42 = vld [vmem:[%s13151_s29 + $0x20] sm:$0xff] }
 0x19e   : > { %v1114_v51 = vpop.f32.mrb[54].mxu0 }
 0x19f   : > { %v1165_v55 = vmul.f32 %v1114_v51, %v8960_v50  ;;  %v1116_v56 = vpop.f32.mrb[55].mxu0  ;;  %v1177_v51 = vld [vmem:[%s13151_s29 + $0x38] sm:$0xff] }
 0x1a0   : > { %v1181_v56 = vld [vmem:[%s13151_s29 + $0x58] sm:$0xff] }
 0x1a1   : > { %v7516_v57 = vpack.c.bf16 %v1165_v55, %v1164_v52  ;;  %v1179_v52 = vld [vmem:[%s13151_s29 + $0x48] sm:$0xff]  ;;  %v1178_v55 = vld [vmem:[%s13151_s29 + $0x40] sm:$0xff] }
 0x1a2   : > { %v1119_v58 = vpop.f32.mrb[56].mxu0 }
 0x1a3   : > { %v1121_v5 = vpop.f32.mrb[57].mxu0  ;;  %7517 = vmatpush1.bf16.msra.mxu1 %v7516_v57  ;;  %v1166_v16 = vmul.f32 %v1119_v58, %v8968_v7  ;;  %v1180_v57 = vld [vmem:[%s13151_s29 + $0x50] sm:$0xff]  ;;  %v1183_v58 = vld [vmem:[%s13151_s29 + $0x68] sm:$0xff] }
 0x1a4   : > { %7518 = vmatprep.subr.bf16.mxu1 %v13026_v1  ;;  %v1182_v5 = vld [vmem:[%s13151_s29 + $0x60] sm:$0xff] }
 0x1a6   : > { %v1124_v13 = vpop.f32.mrb[58].mxu0 }
 0x1a7   : > { %v1167_v19 = vmul.f32 %v1124_v13, %v8973_v10  ;;  %v1126_v3 = vpop.f32.mrb[59].mxu0  ;;  %v1185_v13 = vld [vmem:[%s13151_s29 + $0x78] sm:$0xff] }
 0x1a8   : > { %v1816_v3 = vld [vmem:[%s13007_s9 + $0x8] sm:$0xff] }
 0x1a9   : > { %v7519_v4 = vpack.c.bf16 %v1167_v19, %v1166_v16  ;;  %v1184_v16 = vld [vmem:[%s13151_s29 + $0x70] sm:$0xff]  ;;  %v1815_v19 = vld [vmem:[%s13007_s9] sm:$0xff] }
 0x1aa   : > { %v1129_v12 = vpop.f32.mrb[60].mxu0 }
 0x1ab   : > { %v1131_v14 = vpop.f32.mrb[61].mxu0  ;;  %7520 = vmatpush1.bf16.msra.mxu1 %v7519_v4  ;;  %v1168_v26 = vmul.f32 %v1129_v12, %v8981_v15  ;;  %v1187_v4 = vld [vmem:[%s13151_s29 + $0x88] sm:$0xff]  ;;  %v9047_v12 = vpack.c.bf16 %v1816_v3, %v1815_v19  ;;  %v1196_v3 = vld [vmem:[%s13151_s29 + $0xd0] sm:$0xff] }
 0x1ac   : > { %7521 = vmatprep.subr.bf16.mxu1 %v13026_v1 }
 0x1ae   : > { %v1134_v24 = vpop.f32.mrb[62].mxu0 }
 0x1af   : > { %v1169_v27 = vmul.f32 %v1134_v24, %v8986_v23  ;;  %v1136_v30 = vpop.f32.mrb[63].mxu0 }
 0x1b1   : > { %v7522_v35 = vpack.c.bf16 %v1169_v27, %v1168_v26  ;;  %v1186_v26 = vld [vmem:[%s13151_s29 + $0x80] sm:$0xff]  ;;  %v1189_v27 = vld [vmem:[%s13151_s29 + $0x98] sm:$0xff] }
 0x1b2   : > { %v9049_v14 = vpop.f32.mrb[64].mxu0 }
 0x1b3   : > { %7523 = vmatpush1.bf16.msra.mxu1 %v7522_v35  ;;  %v9051_v24 = vpop.f32.mrb[65].mxu0 }
 0x1b4   : > { %7748 = vmatprep.subr.bf16.mxu1 %v8735_v25 }
 0x1b6   : > { %1299 = vmatmul.mubr.f32.vlgmr.msra.gmra.mrb[0].mxu1 %v1170_v36  ;;  %v9060_v30 = vpop.f32.mrb[66].mxu0  ;;  %v1188_v36 = vld [vmem:[%s13151_s29 + $0x90] sm:$0xff] }
 0x1b7   : > { %7749 = vmatpush3.bf16.msra.mxu1 %v8735_v25  ;;  %1303 = vmatprep.mubr.f32.mxu1 %v1173_v37  ;;  %v1176_v25 = vld [vmem:[%s13151_s29 + $0x30] sm:$0xff]  ;;  %v9062_v35 = vpop.f32.mrb[67].mxu0  ;;  %v1191_v37 = vld [vmem:[%s13151_s29 + $0xa8] sm:$0xff] }
 0x1b8   : > { %7529 = vmatprep.subr.bf16.mxu1 %v9047_v12 }
 0x1ba   : > { %1304 = vmatmul.mubr.f32.gmra.mrb[2].mxu1 %v1172_v38  ;;  %v9070_v38 = vpop.f32.mrb[68].mxu0 }
 0x1bb   : > { %1308 = vmatprep.mubr.f32.mxu1 %v1175_v39  ;;  %v9072_v39 = vpop.f32.mrb[69].mxu0 }
 0x1be   : > { %1309 = vmatmul.mubr.f32.gmra.mrb[4].mxu1 %v1174_v42  ;;  %v1190_v42 = vld [vmem:[%s13151_s29 + $0xa0] sm:$0xff] }
 0x1bf   : > { %1313 = vmatprep.mubr.f32.mxu1 %v1177_v51  ;;  %v1193_v51 = vld [vmem:[%s13151_s29 + $0xb8] sm:$0xff] }
 0x1c2   : > { %1314 = vmatmul.mubr.f32.gmra.mrb[6].mxu1 %v1176_v25  ;;  %v9080_v25 = vpop.f32.mrb[70].mxu0 }
 0x1c3   : > { %1318 = vmatprep.mubr.f32.mxu1 %v1179_v52  ;;  %v9082_v52 = vpop.f32.mrb[71].mxu0 }
 0x1c6   : > { %1319 = vmatmul.mubr.f32.gmra.mrb[8].mxu1 %v1178_v55  ;;  %v1192_v55 = vld [vmem:[%s13151_s29 + $0xb0] sm:$0xff] }
 0x1c7   : > { %1323 = vmatprep.mubr.f32.mxu1 %v1181_v56  ;;  %v1195_v56 = vld [vmem:[%s13151_s29 + $0xc8] sm:$0xff] }
 0x1ca   : > { %1324 = vmatmul.mubr.f32.gmra.mrb[10].mxu1 %v1180_v57  ;;  %v9090_v57 = vpop.f32.mrb[72].mxu0 }
 0x1cb   : > { %1328 = vmatprep.mubr.f32.mxu1 %v1183_v58  ;;  %v9092_v58 = vpop.f32.mrb[73].mxu0 }
 0x1ce   : > { %1329 = vmatmul.mubr.f32.gmra.mrb[12].mxu1 %v1182_v5  ;;  %v1194_v5 = vld [vmem:[%s13151_s29 + $0xc0] sm:$0xff] }
 0x1cf   : > { %1333 = vmatprep.mubr.f32.mxu1 %v1185_v13  ;;  %v1197_v13 = vld [vmem:[%s13151_s29 + $0xd8] sm:$0xff] }
 0x1d2   : > { %1334 = vmatmul.mubr.f32.gmra.mrb[14].mxu1 %v1184_v16  ;;  %v9100_v16 = vpop.f32.mrb[74].mxu0 }
 0x1d3   : > { %1338 = vmatprep.mubr.f32.mxu1 %v1187_v4  ;;  %v9102_v19 = vpop.f32.mrb[75].mxu0  ;;  %v1199_v4 = vld [vmem:[%s13151_s29 + $0xe8] sm:$0xff] }
 0x1d6   : > { %1339 = vmatmul.mubr.f32.gmra.mrb[16].mxu1 %v1186_v26  ;;  %v9110_v26 = vpop.f32.mrb[76].mxu0 }
 0x1d7   : > { %1343 = vmatprep.mubr.f32.mxu1 %v1189_v27  ;;  %v9112_v27 = vpop.f32.mrb[77].mxu0 }
 0x1da   : > { %1344 = vmatmul.mubr.f32.gmra.mrb[18].mxu1 %v1188_v36  ;;  %v1198_v36 = vld [vmem:[%s13151_s29 + $0xe0] sm:$0xff] }
 0x1db   : > { %1348 = vmatprep.mubr.f32.mxu1 %v1191_v37  ;;  %v1201_v37 = vld [vmem:[%s13151_s29 + $0xf8] sm:$0xff] }
 0x1de   : > { %1349 = vmatmul.mubr.f32.gmra.mrb[20].mxu1 %v1190_v42  ;;  %v9120_v42 = vpop.f32.mrb[78].mxu0 }
 0x1df   : > { %1353 = vmatprep.mubr.f32.mxu1 %v1193_v51  ;;  %v9122_v51 = vpop.f32.mrb[79].mxu0 }
 0x1e2   : > { %1354 = vmatmul.mubr.f32.gmra.mrb[22].mxu1 %v1192_v55  ;;  %v1200_v55 = vld [vmem:[%s13151_s29 + $0xf0] sm:$0xff] }
 0x1e3   : > { %1358 = vmatprep.mubr.f32.mxu1 %v1195_v56  ;;  %v1203_v56 = vld [vmem:[%s13151_s29 + $0x108] sm:$0xff] }
 0x1e6   : > { %1359 = vmatmul.mubr.f32.gmra.mrb[24].mxu1 %v1194_v5  ;;  %v1202_v5 = vld [vmem:[%s13151_s29 + $0x100] sm:$0xff] }
 0x1e7   : > { %1363 = vmatprep.mubr.f32.mxu1 %v1197_v13  ;;  %v1205_v13 = vld [vmem:[%s13151_s29 + $0x118] sm:$0xff] }
 0x1ea   : > { %1364 = vmatmul.mubr.f32.gmra.mrb[26].mxu1 %v1196_v3  ;;  %v1204_v3 = vld [vmem:[%s13151_s29 + $0x110] sm:$0xff] }
 0x1eb   : > { %1368 = vmatprep.mubr.f32.mxu1 %v1199_v4  ;;  %v1207_v4 = vld [vmem:[%s13151_s29 + $0x128] sm:$0xff] }
 0x1ee   : > { %1369 = vmatmul.mubr.f32.gmra.mrb[28].mxu1 %v1198_v36  ;;  %v1206_v36 = vld [vmem:[%s13151_s29 + $0x120] sm:$0xff] }
 0x1ef   : > { %1373 = vmatprep.mubr.f32.mxu1 %v1201_v37  ;;  %v1209_v37 = vld [vmem:[%s13151_s29 + $0x138] sm:$0xff] }
 0x1f2   : > { %1374 = vmatmul.mubr.f32.gmra.mrb[30].mxu1 %v1200_v55  ;;  %v1208_v55 = vld [vmem:[%s13151_s29 + $0x130] sm:$0xff] }
 0x1f3   : > { %1378 = vmatprep.mubr.f32.mxu1 %v1203_v56  ;;  %v1211_v56 = vld [vmem:[%s13151_s29 + $0x148] sm:$0xff] }
 0x1f6   : > { %1379 = vmatmul.mubr.f32.gmra.mrb[32].mxu1 %v1202_v5  ;;  %v1210_v5 = vld [vmem:[%s13151_s29 + $0x140] sm:$0xff] }
 0x1f7   : > { %1383 = vmatprep.mubr.f32.mxu1 %v1205_v13  ;;  %v1213_v13 = vld [vmem:[%s13151_s29 + $0x158] sm:$0xff] }
 0x1fa   : > { %1384 = vmatmul.mubr.f32.gmra.mrb[34].mxu1 %v1204_v3  ;;  %v1212_v3 = vld [vmem:[%s13151_s29 + $0x150] sm:$0xff] }
 0x1fb   : > { %1388 = vmatprep.mubr.f32.mxu1 %v1207_v4  ;;  %v1215_v4 = vld [vmem:[%s13151_s29 + $0x168] sm:$0xff] }
 0x1fe   : > { %1389 = vmatmul.mubr.f32.gmra.mrb[36].mxu1 %v1206_v36  ;;  %v1214_v36 = vld [vmem:[%s13151_s29 + $0x160] sm:$0xff] }
 0x1ff   : > { %1393 = vmatprep.mubr.f32.mxu1 %v1209_v37  ;;  %v1217_v37 = vld [vmem:[%s13151_s29 + $0x178] sm:$0xff] }
 0x202   : > { %1394 = vmatmul.mubr.f32.gmra.mrb[38].mxu1 %v1208_v55  ;;  %v1216_v55 = vld [vmem:[%s13151_s29 + $0x170] sm:$0xff] }
 0x203   : > { %1398 = vmatprep.mubr.f32.mxu1 %v1211_v56  ;;  %v1219_v56 = vld [vmem:[%s13151_s29 + $0x188] sm:$0xff] }
 0x206   : > { %1399 = vmatmul.mubr.f32.gmra.mrb[40].mxu1 %v1210_v5  ;;  %v1218_v5 = vld [vmem:[%s13151_s29 + $0x180] sm:$0xff] }
 0x207   : > { %1403 = vmatprep.mubr.f32.mxu1 %v1213_v13  ;;  %v1221_v13 = vld [vmem:[%s13151_s29 + $0x198] sm:$0xff] }
 0x20a   : > { %1404 = vmatmul.mubr.f32.gmra.mrb[42].mxu1 %v1212_v3  ;;  %v1220_v3 = vld [vmem:[%s13151_s29 + $0x190] sm:$0xff] }
 0x20b   : > { %1408 = vmatprep.mubr.f32.mxu1 %v1215_v4  ;;  %v1223_v4 = vld [vmem:[%s13151_s29 + $0x1a8] sm:$0xff] }
 0x20e   : > { %1409 = vmatmul.mubr.f32.gmra.mrb[44].mxu1 %v1214_v36  ;;  %v1222_v36 = vld [vmem:[%s13151_s29 + $0x1a0] sm:$0xff] }
 0x20f   : > { %1413 = vmatprep.mubr.f32.mxu1 %v1217_v37  ;;  %v1225_v37 = vld [vmem:[%s13151_s29 + $0x1b8] sm:$0xff] }
 0x212   : > { %1414 = vmatmul.mubr.f32.gmra.mrb[46].mxu1 %v1216_v55  ;;  %v1224_v55 = vld [vmem:[%s13151_s29 + $0x1b0] sm:$0xff] }
 0x213   : > { %1418 = vmatprep.mubr.f32.mxu1 %v1219_v56  ;;  %v1227_v56 = vld [vmem:[%s13151_s29 + $0x1c8] sm:$0xff] }
 0x216   : > { %1419 = vmatmul.mubr.f32.gmra.mrb[48].mxu1 %v1218_v5  ;;  %v1226_v5 = vld [vmem:[%s13151_s29 + $0x1c0] sm:$0xff] }
 0x217   : > { %1423 = vmatprep.mubr.f32.mxu1 %v1221_v13  ;;  %v1229_v13 = vld [vmem:[%s13151_s29 + $0x1d8] sm:$0xff] }
 0x21a   : > { %1424 = vmatmul.mubr.f32.gmra.mrb[50].mxu1 %v1220_v3  ;;  %v1228_v3 = vld [vmem:[%s13151_s29 + $0x1d0] sm:$0xff] }
 0x21b   : > { %1428 = vmatprep.mubr.f32.mxu1 %v1223_v4  ;;  %v8288_v4 = vmov 2  }
 0x21c   : > { %7764 = vset.pattern.permute.xlu1 %v8288_v4  ;;  %v8156_v4 = vld [vmem:[%s8431_s27 + $0xa8] sm:$0xff] }
 0x21d   : > { %2281 = vperm.xlu1 %7764, %v8908_v60   ;;  %v1232_v60 = vld [vmem:[%s13151_s29 + $0x1f0] sm:$0xff] }
 0x21e   : > { %1429 = vmatmul.mubr.f32.gmra.mrb[52].mxu1 %v1222_v36  ;;  %v1231_v36 = vld [vmem:[%s13151_s29 + $0x1e8] sm:$0xff] }
 0x21f   : > { %1433 = vmatprep.mubr.f32.mxu1 %v1225_v37  ;;  %v1230_v37 = vld [vmem:[%s13151_s29 + $0x1e0] sm:$0xff] }
 0x221   : > { %7765 = vset.pattern.permute.xlu1 %v8286_v59  ;;  %v8154_v59 = vld [vmem:[%s8431_s27 + $0x98] sm:$0xff] }
 0x222   : > { %1434 = vmatmul.mubr.f32.gmra.mrb[54].mxu1 %v1224_v55  ;;  %v1233_v55 = vld [vmem:[%s13151_s29 + $0x1f8] sm:$0xff] }
 0x223   : > { %1438 = vmatprep.mubr.f32.mxu1 %v1227_v56  ;;  %v8151_v56 = vld [vmem:[%s8431_s27 + $0x80] sm:$0xff] }
 0x226   : > { %1439 = vmatmul.mubr.f32.gmra.mrb[56].mxu1 %v1226_v5  ;;  %v8152_v5 = vld [vmem:[%s8431_s27 + $0x88] sm:$0xff] }
 0x227   : > { %1443 = vmatprep.mubr.f32.mxu1 %v1229_v13  ;;  %v8153_v13 = vld [vmem:[%s8431_s27 + $0x90] sm:$0xff] }
 0x22a   : > { %1444 = vmatmul.mubr.f32.gmra.mrb[58].mxu1 %v1228_v3  ;;  %v8155_v3 = vld [vmem:[%s8431_s27 + $0xa0] sm:$0xff] }
 0x22b   : > { %1448 = vmatprep.mubr.f32.mxu1 %v1231_v36  ;;  %v8157_v36 = vld [vmem:[%s8431_s27 + $0xb0] sm:$0xff] }
 0x22e   : > { %1449 = vmatmul.mubr.f32.gmra.mrb[60].mxu1 %v1230_v37  ;;  %v8158_v37 = vld [vmem:[%s8431_s27 + $0xb8] sm:$0xff] }
 0x22f   : > { %1453 = vmatprep.mubr.f32.mxu1 %v1233_v55  ;;  %v8160_v55 = vld [vmem:[%s8431_s27 + $0xc8] sm:$0xff] }
 0x232   : > { %1454 = vmatmul.mubr.f32.gmra.mrb[62].mxu1 %v1232_v60  ;;  %v8161_v60 = vld [vmem:[%s8431_s27 + $0xd0] sm:$0xff] }
 0x233   : > { %7184 = vmatprep.mubr.msk.f32.mxu1 %vm1461_vm0, %v8151_v56  ;;  %v8162_v56 = vld [vmem:[%s8431_s27 + $0xd8] sm:$0xff] }
 0x236   : > { %7185 = vmatmul.mubr.msk.f32.vlgmr.msra.gmra.mrb[64].mxu1 %vm1461_vm0, %v8152_v5  ;;  %v1783_v5 = vmul.f32 %v9051_v24, %v8777_v6  ;;  %v1788_v6 = vmul.f32 %v9070_v38, %v8807_v32  ;;  %v1794_v32 = vmul.f32 %v9100_v16, %v8846_v63 }
 0x237   : > { %7187 = vmatprep.mubr.msk.f32.mxu1 %vm1461_vm0, %v8153_v13  ;;  %7531 = vmatpush3.bf16.msra.mxu1 %v9047_v12  ;;  %v8159_v12 = vld [vmem:[%s8431_s27 + $0xc0] sm:$0xff]  ;;  %v1784_v13 = vmul.f32 %v9049_v14, %v8782_v8  ;;  %v1790_v8 = vmul.f32 %v9080_v25, %v8820_v41  ;;  %v1796_v41 = vmul.f32 %v9110_v26, %v8859_v2  ;;  %s9822_s27 = scalar_lea.vmem %s13155_s0, %s8425_s1 }
 0x238   : > { %7536 = vmatprep.subr.bf16.mxu1 %v13026_v1 }
 0x23a   : > { %7188 = vmatmul.mubr.msk.f32.gmra.mrb[66].mxu1 %vm1461_vm0, %v8154_v59 }
 0x23b   : > { %7190 = vmatprep.mubr.msk.f32.mxu1 %vm1461_vm0, %v8155_v3 }
 0x23e   : > { %7191 = vmatmul.mubr.msk.f32.gmra.mrb[68].mxu1 %vm1461_vm0, %v8156_v4 }
 0x23f   : > { %7193 = vmatprep.mubr.msk.f32.mxu1 %vm1461_vm0, %v8157_v36 }
 0x242   : > { %7194 = vmatmul.mubr.msk.f32.gmra.mrb[70].mxu1 %vm1461_vm0, %v8158_v37 }
 0x243   : > { %7196 = vmatprep.mubr.msk.f32.mxu1 %vm1461_vm0, %v8159_v12 }
 0x246   : > { %7197 = vmatmul.mubr.msk.f32.gmra.mrb[72].mxu1 %vm1461_vm0, %v8160_v55 }
 0x247   : > { %7199 = vmatprep.mubr.msk.f32.mxu1 %vm1461_vm0, %v8161_v60 }
 0x24a   : > { %7200 = vmatmul.mubr.msk.f32.gmra.mrb[74].mxu1 %vm1461_vm0, %v8162_v56 }
 0x24b   : > { %7202 = vmatprep.mubr.msk.f32.mxu1 %vm1461_vm0, %v8523_v44  ;;  %v1785_v44 = vmul.f32 %v9062_v35, %v8789_v20  ;;  %v1791_v20 = vmul.f32 %v9092_v58, %v8828_v53  ;;  %v1797_v53 = vmul.f32 %v9122_v51, %v8867_v17 }
 0x24e   : > { %7203 = vmatmul.mubr.msk.f32.gmra.mrb[76].mxu1 %vm1461_vm0, %v8526_v45  ;;  %v1786_v45 = vmul.f32 %v9060_v30, %v8794_v21  ;;  %v1792_v21 = vmul.f32 %v9090_v57, %v8833_v54  ;;  %v1798_v54 = vmul.f32 %v9120_v42, %v8872_v18 }
 0x24f   : > { %7205 = vmatprep.mubr.msk.f32.mxu1 %vm1461_vm0, %v8532_v47  ;;  %v1787_v47 = vmul.f32 %v9072_v39, %v8802_v31  ;;  %v1793_v31 = vmul.f32 %v9102_v19, %v8841_v62 }
 0x252   : > { %7206 = vmatmul.mubr.msk.f32.gmra.mrb[78].mxu1 %vm1461_vm0, %v8535_v48  ;;  %v1789_v48 = vmul.f32 %v9082_v52, %v8815_v40  ;;  %v1795_v40 = vmul.f32 %v9112_v27, %v8854_v22 }
 0x253   : > { %7212 = vmatprep.mubr.msk.f32.mxu1 %vm1461_vm0, %v1783_v5 }
 0x256   : > { %7213 = vmatmul.mubr.msk.f32.vlgmr.msra.gmra.mrb[80].mxu1 %vm1461_vm0, %v1784_v13 }
 0x257   : > { %7215 = vmatprep.mubr.msk.f32.mxu1 %vm1461_vm0, %v1785_v44 }
 0x25a   : > { %7216 = vmatmul.mubr.msk.f32.gmra.mrb[82].mxu1 %vm1461_vm0, %v1786_v45 }
 0x25b   : > { %7218 = vmatprep.mubr.msk.f32.mxu1 %vm1461_vm0, %v1787_v47 }
 0x25e   : > { %7219 = vmatmul.mubr.msk.f32.gmra.mrb[84].mxu1 %vm1461_vm0, %v1788_v6 }
 0x25f   : > { %7221 = vmatprep.mubr.msk.f32.mxu1 %vm1461_vm0, %v1789_v48 }
 0x262   : > { %7222 = vmatmul.mubr.msk.f32.gmra.mrb[86].mxu1 %vm1461_vm0, %v1790_v8 }
 0x263   : > { %7224 = vmatprep.mubr.msk.f32.mxu1 %vm1461_vm0, %v1791_v20 }
 0x266   : > { %7225 = vmatmul.mubr.msk.f32.gmra.mrb[88].mxu1 %vm1461_vm0, %v1792_v21 }
 0x267   : > { %7227 = vmatprep.mubr.msk.f32.mxu1 %vm1461_vm0, %v1793_v31 }
 0x26a   : > { %7228 = vmatmul.mubr.msk.f32.gmra.mrb[90].mxu1 %vm1461_vm0, %v1794_v32 }
 0x26b   : > { %7230 = vmatprep.mubr.msk.f32.mxu1 %vm1461_vm0, %v1795_v40 }
 0x26e   : > { %7231 = vmatmul.mubr.msk.f32.gmra.mrb[92].mxu1 %vm1461_vm0, %v1796_v41 }
 0x26f   : > { %7233 = vmatprep.mubr.msk.f32.mxu1 %vm1461_vm0, %v1797_v53 }
 0x272   : > { %7234 = vmatmul.mubr.msk.f32.gmra.mrb[94].mxu1 %vm1461_vm0, %v1798_v54 }
 0x289   : > { %v9307_v62 = vpop.f32.mrb[0].mxu1 }
 0x28a   : > { %v1302_v63 = vpop.f32.mrb[1].mxu1 }
 0x28d   : > { %v9309_v22 = vpop.f32.mrb[2].mxu1 }
 0x28e   : > { %v1307_v2 = vpop.f32.mrb[3].mxu1 }
 0x291   : > { %v9311_v14 = vpop.f32.mrb[4].mxu1 }
 0x292   : > { %v1312_v24 = vpop.f32.mrb[5].mxu1 }
 0x295   : > { %v9313_v30 = vpop.f32.mrb[6].mxu1 }
 0x296   : > { %v1317_v17 = vpop.f32.mrb[7].mxu1 }
 0x299   : > { %v9315_v35 = vpop.f32.mrb[8].mxu1 }
 0x29a   : > { %v1322_v18 = vpop.f32.mrb[9].mxu1 }
 0x29d   : > { %v9317_v38 = vpop.f32.mrb[10].mxu1 }
 0x29e   : > { %v1327_v39 = vpop.f32.mrb[11].mxu1 }
 0x2a1   : > { %v9319_v25 = vpop.f32.mrb[12].mxu1 }
 0x2a2   : > { %v1332_v52 = vpop.f32.mrb[13].mxu1 }
 0x2a5   : > { %v9321_v57 = vpop.f32.mrb[14].mxu1 }
 0x2a6   : > { %v1337_v58 = vpop.f32.mrb[15].mxu1 }
 0x2a9   : > { %v9323_v16 = vpop.f32.mrb[16].mxu1 }
 0x2aa   : > { %v1342_v19 = vpop.f32.mrb[17].mxu1 }
 0x2ad   : > { %v9325_v26 = vpop.f32.mrb[18].mxu1 }
 0x2ae   : > { %v1347_v27 = vpop.f32.mrb[19].mxu1 }
 0x2b1   : > { %v9327_v42 = vpop.f32.mrb[20].mxu1 }
 0x2b2   : > { %v1352_v51 = vpop.f32.mrb[21].mxu1 }
 0x2b5   : > { %v9329_v59 = vpop.f32.mrb[22].mxu1 }
 0x2b6   : > { %v1357_v3 = vpop.f32.mrb[23].mxu1 }
 0x2b9   : > { %v9331_v4 = vpop.f32.mrb[24].mxu1 }
 0x2ba   : > { %v1362_v36 = vpop.f32.mrb[25].mxu1 }
 0x2bd   : > { %v9333_v37 = vpop.f32.mrb[26].mxu1 }
 0x2be   : > { %v1367_v12 = vpop.f32.mrb[27].mxu1 }
 0x2c1   : > { %v9335_v55 = vpop.f32.mrb[28].mxu1 }
 0x2c2   : > { %v1372_v60 = vpop.f32.mrb[29].mxu1 }
 0x2c5   : > { %v9337_v56 = vpop.f32.mrb[30].mxu1 }
 0x2c6   : > { %v1377_v5 = vpop.f32.mrb[31].mxu1 }
 0x2c9   : > { %v9339_v13 = vpop.f32.mrb[32].mxu1 }
 0x2ca   : > { %v1382_v44 = vpop.f32.mrb[33].mxu1 }
 0x2cd   : > { %v9341_v45 = vpop.f32.mrb[34].mxu1 }
 0x2ce   : > { %v1387_v47 = vpop.f32.mrb[35].mxu1 }
 0x2d1   : > { %v9343_v6 = vpop.f32.mrb[36].mxu1 }
 0x2d2   : > { %v1392_v48 = vpop.f32.mrb[37].mxu1 }
 0x2d5   : > { %v9345_v8 = vpop.f32.mrb[38].mxu1 }
 0x2d6   : > { %v1397_v20 = vpop.f32.mrb[39].mxu1 }
 0x2d9   : > { %v9347_v21 = vpop.f32.mrb[40].mxu1 }
 0x2da   : > { %v1402_v31 = vpop.f32.mrb[41].mxu1 }
 0x2dd   : > { %v9349_v32 = vpop.f32.mrb[42].mxu1 }
 0x2de   : > { %v1407_v40 = vpop.f32.mrb[43].mxu1 }
 0x2e1   : > { %v9351_v41 = vpop.f32.mrb[44].mxu1 }
 0x2e2   : > { %v1412_v53 = vpop.f32.mrb[45].mxu1 }
 0x2e5   : > { %v9353_v54 = vpop.f32.mrb[46].mxu1 }
 0x2e6   : > { %v1417_v63 = vpop.f32.mrb[47].mxu1 }
 0x2e9   : > { %v9355_v2 = vpop.f32.mrb[48].mxu1 }
 0x2ea   : > { %v1422_v24 = vpop.f32.mrb[49].mxu1 }
 0x2ed   : > { %v9357_v17 = vpop.f32.mrb[50].mxu1 }
 0x2ee   : > { %v1427_v18 = vpop.f32.mrb[51].mxu1 }
 0x2f1   : > { %v9359_v39 = vpop.f32.mrb[52].mxu1 }
 0x2f2   : > { %v1432_v52 = vpop.f32.mrb[53].mxu1 }
 0x2f5   : > { %v9361_v58 = vpop.f32.mrb[54].mxu1 }
 0x2f6   : > { %v1437_v19 = vpop.f32.mrb[55].mxu1 }
 0x2f9   : > { %v9363_v27 = vpop.f32.mrb[56].mxu1 }
 0x2fa   : > { %v1442_v51 = vpop.f32.mrb[57].mxu1 }
 0x2fd   : > { %v9365_v3 = vpop.f32.mrb[58].mxu1 }
 0x2fe   : > { %v1447_v36 = vpop.f32.mrb[59].mxu1 }
 0x301   : > { %v9367_v12 = vpop.f32.mrb[60].mxu1 }
 0x302   : > { %v1452_v60 = vpop.f32.mrb[61].mxu1 }
 0x305   : > { %v9369_v5 = vpop.f32.mrb[62].mxu1 }
 0x306   : > { %v1457_v44 = vpop.f32.mrb[63].mxu1 }
 0x309   : > { %v7186_v47 = vpop.f32.mrb[64].mxu1 }
 0x30a   : > { %v1704_v48 = vpop.f32.mrb[65].mxu1  ;;  %v1800_v31 = vmul.f32 %v7186_v47, %v8885_v34  ;;  %v9390_v47 = vpop.permute.xlu0 %2177 }
 0x30b   : > { %v1799_v20 = vmul.f32 %v1704_v48, %v8880_v33 }
 0x30d   : > { %v7189_v40 = vpop.f32.mrb[66].mxu1  ;;  %7236 = vmatprep.mubr.msk.f32.mxu1 %vm1461_vm0, %v1799_v20 }
 0x30e   : > { %v1714_v53 = vpop.f32.mrb[67].mxu1  ;;  %7237 = vmatmul.mubr.msk.f32.gmra.mrb[96].mxu1 %vm1461_vm0, %v1800_v31  ;;  %v1802_v24 = vmul.f32 %v7189_v40, %v8898_v49  ;;  %v2139_v31 = vld [vmem:[%s9399_s5 + $0x8] sm:$0xff]  ;;  %v2138_v40 = vld [vmem:[%s9399_s5] sm:$0xff] }
 0x30f   : > { %v1801_v63 = vmul.f32 %v1714_v53, %v8893_v46 }
 0x311   : > { %v7192_v18 = vpop.f32.mrb[68].mxu1  ;;  %7239 = vmatprep.mubr.msk.f32.mxu1 %vm1461_vm0, %v1801_v63  ;;  %v2181_v63 = vmul.f32 %v9390_v47, %v9309_v22  ;;  %v2140_v22 = vld [vmem:[%s9399_s5 + $0x10] sm:$0xff] }
 0x312   : > { %v1724_v52 = vpop.f32.mrb[69].mxu1  ;;  %7240 = vmatmul.mubr.msk.f32.gmra.mrb[98].mxu1 %vm1461_vm0, %v1802_v24  ;;  %v1804_v34 = vmul.f32 %v7192_v18, %v8918_v0 }
 0x313   : > { %v1803_v33 = vmul.f32 %v1724_v52, %v8913_v61 }
 0x315   : > { %v7195_v19 = vpop.f32.mrb[70].mxu1  ;;  %7242 = vmatprep.mubr.msk.f32.mxu1 %vm1461_vm0, %v1803_v33 }
 0x316   : > { %v1734_v51 = vpop.f32.mrb[71].mxu1  ;;  %7243 = vmatmul.mubr.msk.f32.gmra.mrb[100].mxu1 %vm1461_vm0, %v1804_v34  ;;  %v1806_v49 = vmul.f32 %v7195_v19, %v8933_v11  ;;  %v2141_v34 = vld [vmem:[%s9399_s5 + $0x18] sm:$0xff] }
 0x317   : > { %v1805_v46 = vmul.f32 %v1734_v51, %v8928_v9 }
 0x319   : > { %v7198_v36 = vpop.f32.mrb[72].mxu1  ;;  %7245 = vmatprep.mubr.msk.f32.mxu1 %vm1461_vm0, %v1805_v46  ;;  %v2183_v46 = vmul.f32 %v9390_v47, %v9313_v30 }
 0x31a   : > { %v1744_v60 = vpop.f32.mrb[73].mxu1  ;;  %7246 = vmatmul.mubr.msk.f32.gmra.mrb[102].mxu1 %vm1461_vm0, %v1806_v49  ;;  %v1808_v0 = vmul.f32 %v7198_v36, %v8947_v29 }
 0x31b   : > { %v1807_v61 = vmul.f32 %v1744_v60, %v8942_v28  ;;  %v2143_v60 = vld [vmem:[%s9399_s5 + $0x28] sm:$0xff] }
 0x31d   : > { %v7201_v44 = vpop.f32.mrb[74].mxu1  ;;  %7248 = vmatprep.mubr.msk.f32.mxu1 %vm1461_vm0, %v1807_v61  ;;  %v2142_v61 = vld [vmem:[%s9399_s5 + $0x20] sm:$0xff] }
 0x31e   : > { %v1754_v48 = vpop.f32.mrb[75].mxu1  ;;  %7249 = vmatmul.mubr.msk.f32.gmra.mrb[104].mxu1 %vm1461_vm0, %v1808_v0  ;;  %v1810_v11 = vmul.f32 %v7201_v44, %v8960_v50 }
 0x31f   : > { %v1809_v9 = vmul.f32 %v1754_v48, %v8955_v43  ;;  %v9405_v43 = vpop.permute.xlu0 %2213 }
 0x320   : > { %v2217_v18 = vmul.f32 %v9405_v43, %v2139_v31  ;;  %v2216_v33 = vmul.f32 %v9405_v43, %v2138_v40  ;;  %v2219_v36 = vmul.f32 %v9405_v43, %v2141_v34  ;;  %v2218_v30 = vmul.f32 %v9405_v43, %v2140_v22 }
 0x321   : > { %v7204_v28 = vpop.f32.mrb[76].mxu1  ;;  %7251 = vmatprep.mubr.msk.f32.mxu1 %vm1461_vm0, %v1809_v9 }
 0x322   : > { %v1764_v29 = vpop.f32.mrb[77].mxu1  ;;  %7252 = vmatmul.mubr.msk.f32.gmra.mrb[106].mxu1 %vm1461_vm0, %v1810_v11  ;;  %v1812_v50 = vmul.f32 %v7204_v28, %v8973_v10  ;;  %v9417_v10 = vpop.permute.xlu1 %2281  ;;  %v2221_v28 = vmul.f32 %v9405_v43, %v2143_v60  ;;  %v2251_v40 = vadd.f32 %v2219_v36, %v2183_v46  ;;  %v2147_v46 = vld [vmem:[%s9399_s5 + $0x48] sm:$0xff]  ;;  %v2186_v60 = vmul.f32 %v9390_v47, %v9319_v25 }
 0x323   : > { %v1811_v20 = vmul.f32 %v1764_v29, %v8968_v7  ;;  %v2180_v7 = vmul.f32 %v9390_v47, %v9307_v62  ;;  %v2220_v29 = vmul.f32 %v9405_v43, %v2142_v61  ;;  %v2189_v25 = vmul.f32 %v9390_v47, %v9325_v26 }
 0x325   : > { %v7207_v53 = vpop.f32.mrb[78].mxu1  ;;  %7254 = vmatprep.mubr.msk.f32.mxu1 %vm1461_vm0, %v1811_v20  ;;  %v2248_v44 = vadd.f32 %v2216_v33, %v2180_v7  ;;  %v2185_v20 = vmul.f32 %v9390_v47, %v9317_v38 }
 0x326   : > { %v1774_v24 = vpop.f32.mrb[79].mxu1  ;;  %7255 = vmatmul.mubr.msk.f32.gmra.mrb[108].mxu1 %vm1461_vm0, %v1812_v50  ;;  %v1814_v19 = vmul.f32 %v7207_v53, %v8986_v23  ;;  %v2182_v23 = vmul.f32 %v9390_v47, %v9311_v14  ;;  %v2145_v53 = vld [vmem:[%s9399_s5 + $0x38] sm:$0xff] }
 0x327   : > { %v1813_v52 = vmul.f32 %v1774_v24, %v8981_v15  ;;  %v2249_v15 = vadd.f32 %v2217_v18, %v2181_v63  ;;  %v2144_v63 = vld [vmem:[%s9399_s5 + $0x30] sm:$0xff]  ;;  %v2184_v24 = vmul.f32 %v9390_v47, %v9315_v35  ;;  %v2187_v35 = vmul.f32 %v9390_v47, %v9321_v57 }
 0x328   : > { %v2250_v7 = vadd.f32 %v2218_v30, %v2182_v23  ;;  %v2222_v22 = vmul.f32 %v9405_v43, %v2144_v63  ;;  %v2253_v36 = vadd.f32 %v2221_v28, %v2185_v20  ;;  %v2225_v30 = vmul.f32 %v9405_v43, %v2147_v46  ;;  %v2148_v28 = vld [vmem:[%s9399_s5 + $0x50] sm:$0xff]  ;;  %v2149_v20 = vld [vmem:[%s9399_s5 + $0x58] sm:$0xff]  ;;  %v2151_v46 = vld [vmem:[%s9399_s5 + $0x68] sm:$0xff] }
 0x329   : > { %v7214_v51 = vpop.f32.mrb[80].mxu1  ;;  %7257 = vmatprep.mubr.msk.f32.mxu1 %vm1461_vm0, %v1813_v52  ;;  %v2252_v23 = vadd.f32 %v2220_v29, %v2184_v24 }
 0x32a   : > { %v2285_v49 = vmul.f32 %v7214_v51, %v9417_v10  ;;  %v1979_v62 = vpop.f32.mrb[81].mxu1  ;;  %7258 = vmatmul.mubr.msk.f32.gmra.mrb[110].mxu1 %vm1461_vm0, %v1814_v19  ;;  %v2223_v19 = vmul.f32 %v9405_v43, %v2145_v53  ;;  %v2146_v51 = vld [vmem:[%s9399_s5 + $0x40] sm:$0xff]  ;;  %v2188_v53 = vmul.f32 %v9390_v47, %v9323_v16  ;;  %v2254_v24 = vadd.f32 %v2222_v22, %v2186_v60 }
 0x32b   : > { %v2284_v0 = vmul.f32 %v9417_v10, %v1979_v62  ;;  %v2191_v16 = vmul.f32 %v9390_v47, %v9329_v59 }
 0x32c   : > { %v9435_v48 = vadd.f32 %v2285_v49, %v2249_v15 }
 0x32d   : > { %v7217_v9 = vpop.f32.mrb[82].mxu1  ;;  %v9437_v11 = vadd.f32 %v2284_v0, %v2248_v44  ;;  %v2224_v44 = vmul.f32 %v9405_v43, %v2146_v51 }
 0x32e   : > { %v2287_v31 = vmul.f32 %v7217_v9, %v9417_v10  ;;  %v1989_v14 = vpop.f32.mrb[83].mxu1  ;;  %v2351_v50 = vsel %vm1461_vm0, %v9435_v48, 0.0 }
 0x32f   : > { %v2286_v18 = vmul.f32 %v9417_v10, %v1989_v14  ;;  %2352 = vadd.xlane.f32.xlu0 %v2351_v50  ;;  %v2348_v38 = vsel %vm1461_vm0, %v9437_v11, 0.0 }
 0x330   : > { %2349 = vadd.xlane.f32.xlu1 %v2348_v38  ;;  %v9453_v52 = vadd.f32 %v2287_v31, %v2251_v40  ;;  %v2255_v40 = vadd.f32 %v2223_v19, %v2187_v35  ;;  %v2226_v38 = vmul.f32 %v9405_v43, %v2148_v28  ;;  %v2257_v19 = vadd.f32 %v2225_v30, %v2189_v25  ;;  %v2150_v35 = vld [vmem:[%s9399_s5 + $0x60] sm:$0xff]  ;;  %v2152_v25 = vld [vmem:[%s9399_s5 + $0x70] sm:$0xff]  ;;  %v2153_v28 = vld [vmem:[%s9399_s5 + $0x78] sm:$0xff] }
 0x331   : > { %v7220_v33 = vpop.f32.mrb[84].mxu1  ;;  %v9455_v34 = vadd.f32 %v2286_v18, %v2250_v7  ;;  %v2227_v7 = vmul.f32 %v9405_v43, %v2149_v20 }
 0x332   : > { %v2289_v49 = vmul.f32 %v7220_v33, %v9417_v10  ;;  %v1999_v62 = vpop.f32.mrb[85].mxu1  ;;  %v2357_v15 = vsel %vm1461_vm0, %v9453_v52, 0.0 }
 0x333   : > { %v2288_v61 = vmul.f32 %v9417_v10, %v1999_v62  ;;  %2358 = vadd.xlane.f32.xlu0 %v2357_v15  ;;  %v2354_v57 = vsel %vm1461_vm0, %v9455_v34, 0.0  ;;  %v2256_v15 = vadd.f32 %v2224_v44, %v2188_v53  ;;  %v2259_v44 = vadd.f32 %v2227_v7, %v2191_v16 }
 0x334   : > { %2355 = vadd.xlane.f32.xlu1 %v2354_v57  ;;  %v9471_v0 = vadd.f32 %v2289_v49, %v2253_v36  ;;  %v2190_v36 = vmul.f32 %v9390_v47, %v9327_v42  ;;  %v2228_v57 = vmul.f32 %v9405_v43, %v2150_v35  ;;  %v2193_v42 = vmul.f32 %v9390_v47, %v9333_v37 }
 0x335   : > { %v7223_v9 = vpop.f32.mrb[86].mxu1  ;;  %v9475_v31 = vadd.f32 %v2288_v61, %v2252_v23  ;;  %v2229_v23 = vmul.f32 %v9405_v43, %v2151_v46 }
 0x336   : > { %v2291_v14 = vmul.f32 %v7223_v9, %v9417_v10  ;;  %v2009_v50 = vpop.f32.mrb[87].mxu1  ;;  %v2363_v29 = vsel %vm1461_vm0, %v9471_v0, 0.0 }
 0x337   : > { %v2290_v63 = vmul.f32 %v9417_v10, %v2009_v50  ;;  %2364 = vadd.xlane.f32.xlu0 %v2363_v29  ;;  %v2360_v26 = vsel %vm1461_vm0, %v9475_v31, 0.0  ;;  %v2258_v29 = vadd.f32 %v2226_v38, %v2190_v36  ;;  %v2261_v38 = vadd.f32 %v2229_v23, %v2193_v42 }
 0x338   : > { %2361 = vadd.xlane.f32.xlu1 %v2360_v26  ;;  %v9489_v18 = vadd.f32 %v2291_v14, %v2255_v40  ;;  %v2192_v40 = vmul.f32 %v9390_v47, %v9331_v4  ;;  %v2230_v26 = vmul.f32 %v9405_v43, %v2152_v25  ;;  %v2195_v4 = vmul.f32 %v9390_v47, %v9337_v56 }
 0x339   : > { %v7226_v33 = vpop.f32.mrb[88].mxu1  ;;  %v9493_v51 = vadd.f32 %v2290_v63, %v2254_v24  ;;  %v2231_v24 = vmul.f32 %v9405_v43, %v2153_v28 }
 0x33a   : > { %v2293_v49 = vmul.f32 %v7226_v33, %v9417_v10  ;;  %v2019_v22 = vpop.f32.mrb[89].mxu1  ;;  %v2369_v62 = vsel %vm1461_vm0, %v9489_v18, 0.0  ;;  %v2260_v46 = vadd.f32 %v2228_v57, %v2192_v40 }
 0x33b   : > { %v2292_v60 = vmul.f32 %v9417_v10, %v2019_v22  ;;  %2370 = vadd.xlane.f32.xlu0 %v2369_v62  ;;  %v2366_v59 = vsel %vm1461_vm0, %v9493_v51, 0.0 }
 0x33c   : > { %2367 = vadd.xlane.f32.xlu1 %v2366_v59  ;;  %v9507_v61 = vadd.f32 %v2293_v49, %v2257_v19  ;;  %v2194_v49 = vmul.f32 %v9390_v47, %v9335_v55 }
 0x33d   : > { %v7229_v30 = vpop.f32.mrb[90].mxu1  ;;  %v9511_v9 = vadd.f32 %v2292_v60, %v2256_v15  ;;  %v2263_v60 = vadd.f32 %v2231_v24, %v2195_v4  ;;  %v2156_v24 = vld [vmem:[%s9399_s5 + $0x90] sm:$0xff]  ;;  %v2199_v4 = vmul.f32 %v9390_v47, %v9345_v8 }
 0x33e   : > { %v2295_v20 = vmul.f32 %v7229_v30, %v9417_v10  ;;  %v2029_v14 = vpop.f32.mrb[91].mxu1  ;;  %v2375_v50 = vsel %vm1461_vm0, %v9507_v61, 0.0  ;;  %v2262_v23 = vadd.f32 %v2230_v26, %v2194_v49  ;;  %v2157_v26 = vld [vmem:[%s9399_s5 + $0x98] sm:$0xff] }
 0x33f   : > { %v2294_v53 = vmul.f32 %v9417_v10, %v2029_v14  ;;  %2376 = vadd.xlane.f32.xlu0 %v2375_v50  ;;  %v2372_v63 = vsel %vm1461_vm0, %v9511_v9, 0.0  ;;  %v2155_v14 = vld [vmem:[%s9399_s5 + $0x88] sm:$0xff]  ;;  %v2154_v50 = vld [vmem:[%s9399_s5 + $0x80] sm:$0xff] }
 0x340   : > { %2373 = vadd.xlane.f32.xlu1 %v2372_v63  ;;  %v9525_v37 = vadd.f32 %v2295_v20, %v2259_v44  ;;  %v2233_v40 = vmul.f32 %v9405_v43, %v2155_v14  ;;  %v2232_v63 = vmul.f32 %v9405_v43, %v2154_v50  ;;  %v2200_v50 = vmul.f32 %v9390_v47, %v9347_v21 }
 0x341   : > { %v7232_v7 = vpop.f32.mrb[92].mxu1  ;;  %v9529_v33 = vadd.f32 %v2294_v53, %v2258_v29  ;;  %v2197_v29 = vmul.f32 %v9390_v47, %v9341_v45  ;;  %v2196_v53 = vmul.f32 %v9390_v47, %v9339_v13  ;;  %v2159_v45 = vld [vmem:[%s9399_s5 + $0xa8] sm:$0xff]  ;;  %v2198_v13 = vmul.f32 %v9390_v47, %v9343_v6 }
 0x342   : > { %v2297_v19 = vmul.f32 %v7232_v7, %v9417_v10  ;;  %v2039_v16 = vpop.f32.mrb[93].mxu1  ;;  %v2381_v35 = vsel %vm1461_vm0, %v9525_v37, 0.0  ;;  %v2203_v21 = vmul.f32 %v9390_v47, %v9353_v54 }
 0x343   : > { %v2296_v22 = vmul.f32 %v9417_v10, %v2039_v16  ;;  %2382 = vadd.xlane.f32.xlu0 %v2381_v35  ;;  %v2378_v62 = vsel %vm1461_vm0, %v9529_v33, 0.0  ;;  %v2158_v16 = vld [vmem:[%s9399_s5 + $0xa0] sm:$0xff]  ;;  %v2264_v49 = vadd.f32 %v2232_v63, %v2196_v53 }
 0x344   : > { %2379 = vadd.xlane.f32.xlu1 %v2378_v62  ;;  %v9541_v15 = vadd.f32 %v2297_v19, %v2261_v38  ;;  %v2265_v38 = vadd.f32 %v2233_v40, %v2197_v29  ;;  %v2235_v19 = vmul.f32 %v9405_v43, %v2157_v26  ;;  %v2236_v8 = vmul.f32 %v9405_v43, %v2158_v16 }
 0x345   : > { %v7235_v56 = vpop.f32.mrb[94].mxu1  ;;  %v9543_v36 = vadd.f32 %v2296_v22, %v2260_v46  ;;  %v2234_v22 = vmul.f32 %v9405_v43, %v2156_v24 }
 0x346   : > { %v2299_v59 = vmul.f32 %v7235_v56, %v9417_v10  ;;  %v2049_v57 = vpop.f32.mrb[95].mxu1  ;;  %v2387_v55 = vsel %vm1461_vm0, %v9541_v15, 0.0 }
 0x347   : > { %v2298_v30 = vmul.f32 %v9417_v10, %v2049_v57  ;;  %2388 = vadd.xlane.f32.xlu0 %v2387_v55  ;;  %v2384_v44 = vsel %vm1461_vm0, %v9543_v36, 0.0  ;;  %v2267_v55 = vadd.f32 %v2235_v19, %v2199_v4  ;;  %v2266_v14 = vadd.f32 %v2234_v22, %v2198_v13  ;;  %v2162_v4 = vld [vmem:[%s9399_s5 + $0xc0] sm:$0xff]  ;;  %v2163_v19 = vld [vmem:[%s9399_s5 + $0xc8] sm:$0xff] }
 0x348   : > { %2385 = vadd.xlane.f32.xlu1 %v2384_v44  ;;  %v9551_v42 = vadd.f32 %v2299_v59, %v2263_v60  ;;  %v2237_v60 = vmul.f32 %v9405_v43, %v2159_v45  ;;  %v2161_v44 = vld [vmem:[%s9399_s5 + $0xb8] sm:$0xff]  ;;  %v2202_v13 = vmul.f32 %v9390_v47, %v9351_v41  ;;  %v2205_v41 = vmul.f32 %v9390_v47, %v9357_v17 }
 0x349   : > { %v9553_v25 = vadd.f32 %v2298_v30, %v2262_v23  ;;  %v2201_v23 = vmul.f32 %v9390_v47, %v9349_v32  ;;  %v2160_v30 = vld [vmem:[%s9399_s5 + $0xb0] sm:$0xff]  ;;  %v2239_v63 = vmul.f32 %v9405_v43, %v2161_v44  ;;  %v2165_v44 = vld [vmem:[%s9399_s5 + $0xd8] sm:$0xff] }
 0x34a   : > { %v2393_v28 = vsel %vm1461_vm0, %v9551_v42, 0.0  ;;  %v2238_v53 = vmul.f32 %v9405_v43, %v2160_v30  ;;  %v2164_v30 = vld [vmem:[%s9399_s5 + $0xd0] sm:$0xff] }
 0x34b   : > { %2394 = vadd.xlane.f32.xlu0 %v2393_v28  ;;  %v2390_v20 = vsel %vm1461_vm0, %v9553_v25, 0.0 }
 0x34c   : > { %2391 = vadd.xlane.f32.xlu1 %v2390_v20 }
 0x3bc   : > { %v9601_v26 = vpop.xlane.xlu0 %2352 }
 0x3bd   : > { %v9609_v16 = vpop.xlane.xlu1 %2349 }
 0x3e1   : > { %v7238_v7 = vpop.f32.mrb[96].mxu1 }
 0x3e2   : > { %v2301_v35 = vmul.f32 %v7238_v7, %v9417_v10  ;;  %v2059_v46 = vpop.f32.mrb[97].mxu1 }
 0x3e3   : > { %v2300_v62 = vmul.f32 %v9417_v10, %v2059_v46 }
 0x3e4   : > { %v9579_v56 = vadd.f32 %v2301_v35, %v2265_v38  ;;  %v2269_v38 = vadd.f32 %v2237_v60, %v2201_v23  ;;  %v2240_v60 = vmul.f32 %v9405_v43, %v2162_v4 }
 0x3e5   : > { %v7241_v59 = vpop.f32.mrb[98].mxu1  ;;  %v9583_v57 = vadd.f32 %v2300_v62, %v2264_v49  ;;  %v2268_v49 = vadd.f32 %v2236_v8, %v2200_v50  ;;  %v2271_v8 = vadd.f32 %v2239_v63, %v2203_v21  ;;  %v2204_v50 = vmul.f32 %v9390_v47, %v9355_v2  ;;  %v9639_v63 = vpop.xlane.xlu1 %2355 }
 0x3e6   : > { %v2303_v6 = vmul.f32 %v7241_v59, %v9417_v10  ;;  %v2069_v28 = vpop.f32.mrb[99].mxu1  ;;  %v2399_v20 = vsel %vm1461_vm0, %v9579_v56, 0.0  ;;  %v2241_v59 = vmul.f32 %v9405_v43, %v2163_v19  ;;  %v2207_v19 = vmul.f32 %v9390_v47, %v9361_v58 }
 0x3e7   : > { %v2302_v29 = vmul.f32 %v9417_v10, %v2069_v28  ;;  %2400 = vadd.xlane.f32.xlu0 %v2399_v20  ;;  %v2396_v32 = vsel %vm1461_vm0, %v9583_v57, 0.0 }
 0x3e8   : > { %2397 = vadd.xlane.f32.xlu1 %v2396_v32  ;;  %v9597_v40 = vadd.f32 %v2303_v6, %v2267_v55  ;;  %v2273_v2 = vadd.f32 %v2241_v59, %v2205_v41 }
 0x3e9   : > { %v7244_v24 = vpop.f32.mrb[100].mxu1  ;;  %v9603_v7 = vadd.f32 %v2302_v29, %v2266_v14  ;;  %v2270_v14 = vadd.f32 %v2238_v53, %v2202_v13  ;;  %v9634_v29 = vpop.xlane.xlu0 %2358  ;;  %v2243_v53 = vmul.f32 %v9405_v43, %v2165_v44 }
 0x3ea   : > { %v2305_v45 = vmul.f32 %v7244_v24, %v9417_v10  ;;  %v2079_v35 = vpop.f32.mrb[101].mxu1  ;;  %v2405_v46 = vsel %vm1461_vm0, %v9597_v40, 0.0 }
 0x3eb   : > { %v2304_v22 = vmul.f32 %v9417_v10, %v2079_v35  ;;  %2406 = vadd.xlane.f32.xlu0 %v2405_v46  ;;  %v2402_v54 = vsel %vm1461_vm0, %v9603_v7, 0.0  ;;  %v2167_v35 = vld [vmem:[%s9399_s5 + $0xe8] sm:$0xff] }
 0x3ec   : > { %2403 = vadd.xlane.f32.xlu1 %v2402_v54  ;;  %v9619_v62 = vadd.f32 %v2305_v45, %v2269_v38  ;;  %v2242_v38 = vmul.f32 %v9405_v43, %v2164_v30  ;;  %v2166_v45 = vld [vmem:[%s9399_s5 + $0xe0] sm:$0xff]  ;;  %v2206_v54 = vmul.f32 %v9390_v47, %v9359_v39  ;;  %v2245_v41 = vmul.f32 %v9405_v43, %v2167_v35  ;;  %v2168_v30 = vld [vmem:[%s9399_s5 + $0xf0] sm:$0xff] }
 0x3ed   : > { %v7247_v55 = vpop.f32.mrb[102].mxu1  ;;  %v9623_v23 = vadd.f32 %v2304_v22, %v2268_v49  ;;  %v2272_v22 = vadd.f32 %v2240_v60, %v2204_v50  ;;  %v2365_v44 = vpop.xlane.xlu0 %2364  ;;  %v2209_v39 = vmul.f32 %v9390_v47, %v9365_v3  ;;  %v2246_v3 = vmul.f32 %v9405_v43, %v2168_v30 }
 0x3ee   : > { %v2307_v6 = vmul.f32 %v7247_v55, %v9417_v10  ;;  %v2089_v28 = vpop.f32.mrb[103].mxu1  ;;  %v2411_v20 = vsel %vm1461_vm0, %v9619_v62, 0.0  ;;  %v2210_v35 = vmul.f32 %v9390_v47, %v9367_v12  ;;  %v2445_v12 = vmul.f32 0.0625, %v9609_v16 }
 0x3ef   : > { %v2306_v32 = vmul.f32 %v9417_v10, %v2089_v28  ;;  %2412 = vadd.xlane.f32.xlu0 %v2411_v20  ;;  %v2408_v17 = vsel %vm1461_vm0, %v9623_v23, 0.0  ;;  %v2275_v28 = vadd.f32 %v2243_v53, %v2207_v19  ;;  %v2169_v20 = vld [vmem:[%s9399_s5 + $0xf8] sm:$0xff]  ;;  %v2448_v16 = vmul.f32 0.0625, %v9634_v29  ;;  %s11439_s5 = scalar_lea.vmem %s13202_s26, %s8425_s1 }
 0x3f0   : > { %2409 = vadd.xlane.f32.xlu1 %v2408_v17  ;;  %v9641_v24 = vadd.f32 %v2307_v6, %v2271_v8  ;;  %v2244_v8 = vmul.f32 %v9405_v43, %v2166_v45 }
 0x3f1   : > { %v7250_v21 = vpop.f32.mrb[104].mxu1  ;;  %v9645_v4 = vadd.f32 %v2306_v32, %v2270_v14  ;;  %v2362_v14 = vpop.xlane.xlu1 %2361 }
 0x3f2   : > { %v2309_v46 = vmul.f32 %v7250_v21, %v9417_v10  ;;  %v2099_v49 = vpop.f32.mrb[105].mxu1  ;;  %v2417_v13 = vsel %vm1461_vm0, %v9641_v24, 0.0  ;;  %v2274_v21 = vadd.f32 %v2242_v38, %v2206_v54  ;;  %v2211_v38 = vmul.f32 %v9390_v47, %v9369_v5 }
 0x3f3   : > { %v2308_v55 = vmul.f32 %v9417_v10, %v2099_v49  ;;  %2418 = vadd.xlane.f32.xlu0 %v2417_v13  ;;  %v2414_v59 = vsel %vm1461_vm0, %v9645_v4, 0.0  ;;  %v2277_v13 = vadd.f32 %v2245_v41, %v2209_v39 }
 0x3f4   : > { %2415 = vadd.xlane.f32.xlu1 %v2414_v59  ;;  %v9659_v58 = vadd.f32 %v2309_v46, %v2273_v2  ;;  %v2208_v2 = vmul.f32 %v9390_v47, %v9363_v27  ;;  %v2247_v46 = vmul.f32 %v9405_v43, %v2169_v20 }
 0x3f5   : > { %v7253_v6 = vpop.f32.mrb[106].mxu1  ;;  %v9664_v60 = vadd.f32 %v2308_v55, %v2272_v22  ;;  %v2446_v22 = vmul.f32 0.0625, %v9601_v26  ;;  %v2368_v43 = vpop.xlane.xlu1 %2367  ;;  %v2278_v26 = vadd.f32 %v2246_v3, %v2210_v35  ;;  %v9718_v35 = vsub.f32 %v9453_v52, %v2448_v16 }
 0x3f6   : > { %v2311_v50 = vmul.f32 %v7253_v6, %v9417_v10  ;;  %v2109_v32 = vpop.f32.mrb[107].mxu1  ;;  %v2423_v17 = vsel %vm1461_vm0, %v9659_v58, 0.0  ;;  %v2276_v30 = vadd.f32 %v2244_v8, %v2208_v2  ;;  %v2371_v6 = vpop.xlane.xlu0 %2370  ;;  %v2447_v2 = vmul.f32 0.0625, %v9639_v63 }
 0x3f7   : > { %v2310_v45 = vmul.f32 %v9417_v10, %v2109_v32  ;;  %2424 = vadd.xlane.f32.xlu0 %v2423_v17  ;;  %v2420_v53 = vsel %vm1461_vm0, %v9664_v60, 0.0  ;;  %v9700_v8 = vsub.f32 %v9435_v48, %v2446_v22  ;;  %v2452_v22 = vmul.f32 0.0625, %v2371_v6 }
 0x3f8   : > { %2421 = vadd.xlane.f32.xlu1 %v2420_v53  ;;  %v9678_v19 = vadd.f32 %v2311_v50, %v2275_v28  ;;  %v2279_v28 = vadd.f32 %v2247_v46, %v2211_v38  ;;  %v2450_v38 = vmul.f32 0.0625, %v2365_v44  ;;  %v9725_v46 = vsub.f32 %v9455_v34, %v2447_v2 }
 0x3f9   : > { %v7256_v27 = vpop.f32.mrb[108].mxu1  ;;  %v9685_v49 = vadd.f32 %v2310_v45, %v2274_v21  ;;  %v9707_v21 = vsub.f32 %v9437_v11, %v2445_v12  ;;  %v2374_v11 = vpop.xlane.xlu1 %2373 }
 0x3fa   : > { %v2313_v54 = vmul.f32 %v7256_v27, %v9417_v10  ;;  %v2119_v55 = vpop.f32.mrb[109].mxu1  ;;  %v2429_v59 = vsel %vm1461_vm0, %v9678_v19, 0.0  ;;  %v2377_v29 = vpop.xlane.xlu0 %2376  ;;  %v2449_v27 = vmul.f32 0.0625, %v2362_v14  ;;  %v9732_v44 = vsub.f32 %v9471_v0, %v2450_v38 }
 0x3fb   : > { %v2312_v5 = vmul.f32 %v9417_v10, %v2119_v55  ;;  %2430 = vadd.xlane.f32.xlu0 %v2429_v59  ;;  %v2426_v47 = vsel %vm1461_vm0, %v9685_v49, 0.0  ;;  %v2509_v52 = vmul.f32 %v9707_v21, %v9707_v21  ;;  %v2512_v55 = vmul.f32 %v9718_v35, %v9718_v35 }
 0x3fc   : > { %2427 = vadd.xlane.f32.xlu1 %v2426_v47  ;;  %v9695_v41 = vadd.f32 %v2313_v54, %v2277_v13  ;;  %v9738_v34 = vsub.f32 %v9475_v31, %v2449_v27  ;;  %v2451_v14 = vmul.f32 0.0625, %v2368_v43  ;;  %v2511_v12 = vmul.f32 %v9725_v46, %v9725_v46 }
 0x3fd   : > { %v7259_v39 = vpop.f32.mrb[110].mxu1  ;;  %v9697_v20 = vadd.f32 %v2312_v5, %v2276_v30  ;;  %v2541_v30 = vsel %vm1461_vm0, %v2509_v52, 0.0  ;;  %v2380_v5 = vpop.xlane.xlu1 %2379  ;;  %v9744_v0 = vsub.f32 %v9489_v18, %v2452_v22  ;;  %v2454_v6 = vmul.f32 0.0625, %v2377_v29 }
 0x3fe   : > { %v2315_v50 = vmul.f32 %v7259_v39, %v9417_v10  ;;  %v2129_v32 = vpop.f32.mrb[111].mxu1  ;;  %v2435_v17 = vsel %vm1461_vm0, %v9695_v41, 0.0  ;;  %v2383_v59 = vpop.xlane.xlu0 %2382  ;;  %v2550_v47 = vsel %vm1461_vm0, %v2512_v55, 0.0  ;;  %v2514_v31 = vmul.f32 %v9732_v44, %v9732_v44 }
 0x3ff   : > { %v2314_v45 = vmul.f32 %v9417_v10, %v2129_v32  ;;  %2436 = vadd.xlane.f32.xlu0 %v2435_v17  ;;  %v2432_v48 = vsel %vm1461_vm0, %v9697_v20, 0.0  ;;  %v2510_v10 = vmul.f32 %v9700_v8, %v9700_v8  ;;  %v9750_v43 = vsub.f32 %v9493_v51, %v2451_v14 }
 0x400   : > { %2433 = vadd.xlane.f32.xlu1 %v2432_v48  ;;  %v9713_v53 = vadd.f32 %v2315_v50, %v2279_v28  ;;  %v2547_v28 = vsel %vm1461_vm0, %v2511_v12, 0.0  ;;  %v2513_v39 = vmul.f32 %v9738_v34, %v9738_v34  ;;  %v9756_v18 = vsub.f32 %v9507_v61, %v2454_v6 }
 0x401   : > { %v9715_v3 = vadd.f32 %v2314_v45, %v2278_v26  ;;  %v2544_v54 = vsel %vm1461_vm0, %v2510_v10, 0.0  ;;  %v2453_v26 = vmul.f32 0.0625, %v2374_v11  ;;  %v2456_v50 = vmul.f32 0.0625, %v2383_v59  ;;  %v2386_v32 = vpop.xlane.xlu1 %2385 }
 0x402   : > { %v2441_v63 = vsel %vm1461_vm0, %v9713_v53, 0.0  ;;  %v2389_v16 = vpop.xlane.xlu0 %2388  ;;  %v2556_v17 = vsel %vm1461_vm0, %v2514_v31, 0.0  ;;  %v2516_v51 = vmul.f32 %v9744_v0, %v9744_v0  ;;  %v2455_v45 = vmul.f32 0.0625, %v2380_v5 }
 0x403   : > { %2442 = vadd.xlane.f32.xlu0 %v2441_v63  ;;  %v2438_v13 = vsel %vm1461_vm0, %v9715_v3, 0.0  ;;  %v9762_v2 = vsub.f32 %v9511_v9, %v2453_v26  ;;  %v2553_v48 = vsel %vm1461_vm0, %v2513_v39, 0.0  ;;  %v2515_v29 = vmul.f32 %v9750_v43, %v9750_v43 }
 0x404   : > { %2439 = vadd.xlane.f32.xlu1 %v2438_v13  ;;  %v9768_v61 = vsub.f32 %v9525_v37, %v2456_v50  ;;  %v2458_v38 = vmul.f32 0.0625, %v2389_v16  ;;  %v2562_v11 = vsel %vm1461_vm0, %v2516_v51, 0.0  ;;  %v2518_v63 = vmul.f32 %v9756_v18, %v9756_v18  ;;  %v3131_v50 = vld [vmem:[%s13011_s13] sm:$0xff] }
 0x405   : > { %v9774_v9 = vsub.f32 %v9529_v33, %v2455_v45  ;;  %v2457_v10 = vmul.f32 0.0625, %v2386_v32  ;;  %v2559_v13 = vsel %vm1461_vm0, %v2515_v29, 0.0  ;;  %v2517_v52 = vmul.f32 %v9762_v2, %v9762_v2  ;;  %v2392_v22 = vpop.xlane.xlu1 %2391  ;;  %v3132_v32 = vld [vmem:[%s13011_s13 + $0x8] sm:$0xff] }
 0x406   : > { %v2395_v27 = vpop.xlane.xlu0 %2394  ;;  %v9780_v37 = vsub.f32 %v9541_v15, %v2458_v38  ;;  %v2568_v55 = vsel %vm1461_vm0, %v2518_v63, 0.0  ;;  %v2520_v33 = vmul.f32 %v9768_v61, %v9768_v61  ;;  %v2459_v59 = vmul.f32 0.0625, %v2392_v22  ;;  %v9825_v29 = vld [vmem:[%s9822_s27 + $0x8] sm:$0xff]  ;;  %v9841_v22 = vld [vmem:[%s9822_s27 + $0x10] sm:$0xff] }
 0x407   : > { %2545 = vadd.xlane.f32.xlu0 %v2544_v54  ;;  %v2460_v54 = vmul.f32 0.0625, %v2395_v27  ;;  %v9786_v14 = vsub.f32 %v9543_v36, %v2457_v10  ;;  %v2519_v12 = vmul.f32 %v9774_v9, %v9774_v9  ;;  %v9834_v10 = vld [vmem:[%s9822_s27 + $0x18] sm:$0xff] }
 0x408   : > { %2542 = vadd.xlane.f32.xlu1 %v2541_v30  ;;  %v2565_v30 = vsel %vm1461_vm0, %v2517_v52, 0.0  ;;  %v2574_v5 = vsel %vm1461_vm0, %v2520_v33, 0.0  ;;  %v2522_v6 = vmul.f32 %v9780_v37, %v9780_v37  ;;  %v6843_v52 = vmul.f32 -1.442695, %v9825_v29 }
 0x409   : > { %v9792_v15 = vsub.f32 %v9551_v42, %v2460_v54  ;;  %v2571_v36 = vsel %vm1461_vm0, %v2519_v12, 0.0  ;;  %v2521_v31 = vmul.f32 %v9786_v14, %v9786_v14 }
 0x40a   : > { %v2580_v26 = vsel %vm1461_vm0, %v2522_v6, 0.0  ;;  %v6844_v6 = vmul.f32 -1.442695, %v9841_v22  ;;  %7767 = vpow2.f32 %v6843_v52 }
 0x40b   : > { %2551 = vadd.xlane.f32.xlu0 %v2550_v47  ;;  %v9798_v47 = vsub.f32 %v9553_v25, %v2459_v59  ;;  %v2524_v42 = vmul.f32 %v9792_v15, %v9792_v15 }
 0x40c   : > { %2548 = vadd.xlane.f32.xlu1 %v2547_v28  ;;  %v2577_v28 = vsel %vm1461_vm0, %v2521_v31, 0.0 }
 0x40d   : > { %v2523_v25 = vmul.f32 %v9798_v47, %v9798_v47  ;;  %v2586_v39 = vsel %vm1461_vm0, %v2524_v42, 0.0 }
 0x40f   : > { %2557 = vadd.xlane.f32.xlu0 %v2556_v17  ;;  %v2583_v16 = vsel %vm1461_vm0, %v2523_v25, 0.0  ;;  %v7532_v17 = vpack.c.bf16 %v3132_v32, %v3131_v50 }
 0x410   : > { %2554 = vadd.xlane.f32.xlu1 %v2553_v48 }
 0x411   : > { %7533 = vmatprep.subr.bf16.mxu0 %v7532_v17 }
 0x412   : > { %7535 = vmatpush3.bf16.msra.mxu0 %v7532_v17 }
 0x413   : > { %2563 = vadd.xlane.f32.xlu0 %v2562_v11  ;;  %7584 = vmatprep.subr.bf16.mxu0 %v13026_v1  ;;  %v9828_v11 = vld [vmem:[%s9822_s27] sm:$0xff] }
 0x414   : > { %2560 = vadd.xlane.f32.xlu1 %v2559_v13 }
 0x417   : > { %2569 = vadd.xlane.f32.xlu0 %v2568_v55 }
 0x418   : > { %2566 = vadd.xlane.f32.xlu1 %v2565_v30 }
 0x41b   : > { %2575 = vadd.xlane.f32.xlu0 %v2574_v5 }
 0x41c   : > { %2572 = vadd.xlane.f32.xlu1 %v2571_v36  ;;  %v9855_v36 = vld [vmem:[%s9822_s27 + $0x28] sm:$0xff] }
 0x41d   : > { %v6847_v50 = vmul.f32 -1.442695, %v9855_v36 }
 0x41f   : > { %2581 = vadd.xlane.f32.xlu0 %v2580_v26 }
 0x420   : > { %2578 = vadd.xlane.f32.xlu1 %v2577_v28  ;;  %v9862_v28 = vld [vmem:[%s9822_s27 + $0x20] sm:$0xff] }
 0x423   : > { %2587 = vadd.xlane.f32.xlu0 %v2586_v39 }
 0x424   : > { %2584 = vadd.xlane.f32.xlu1 %v2583_v16 }
 0x474   : > { %v2401_v51 = vpop.xlane.xlu0 %2400 }
 0x475   : > { %v2462_v45 = vmul.f32 0.0625, %v2401_v51  ;;  %v2398_v48 = vpop.xlane.xlu1 %2397  ;;  %v6846_v51 = vmul.f32 -1.442695, %v9862_v28 }
 0x476   : > { %v2461_v38 = vmul.f32 0.0625, %v2398_v48 }
 0x477   : > { %v9831_v63 = vsub.f32 %v9579_v56, %v2462_v45  ;;  %v6842_v56 = vmul.f32 -1.442695, %v9828_v11  ;;  %v9875_v45 = vld [vmem:[%s9822_s27 + $0x38] sm:$0xff] }
 0x478   : > { %v9837_v27 = vsub.f32 %v9583_v57, %v2461_v38  ;;  %v2407_v13 = vpop.xlane.xlu0 %2406  ;;  %v6845_v57 = vmul.f32 -1.442695, %v9834_v10 }
 0x479   : > { %v2464_v54 = vmul.f32 0.0625, %v2407_v13  ;;  %v2404_v55 = vpop.xlane.xlu1 %2403  ;;  %v2526_v33 = vmul.f32 %v9831_v63, %v9831_v63  ;;  %7769 = vpow2.f32 %v6842_v56  ;;  %v6849_v56 = vmul.f32 -1.442695, %v9875_v45 }
 0x47a   : > { %v2463_v59 = vmul.f32 0.0625, %v2404_v55  ;;  %v2525_v30 = vmul.f32 %v9837_v27, %v9837_v27  ;;  %7771 = vpow2.f32 %v6845_v57 }
 0x47b   : > { %v9850_v12 = vsub.f32 %v9597_v40, %v2464_v54  ;;  %v2592_v5 = vsel %vm1461_vm0, %v2526_v33, 0.0  ;;  %7773 = vpow2.f32 %v6844_v6 }
 0x47c   : > { %v9858_v31 = vsub.f32 %v9603_v7, %v2463_v59  ;;  %v2413_v26 = vpop.xlane.xlu0 %2412  ;;  %2593 = vadd.xlane.f32.xlu0 %v2592_v5  ;;  %v2589_v42 = vsel %vm1461_vm0, %v2525_v30, 0.0  ;;  %7775 = vpow2.f32 %v6847_v50  ;;  %v9891_v30 = vld [vmem:[%s9822_s27 + $0x30] sm:$0xff] }
 0x47d   : > { %v2466_v25 = vmul.f32 0.0625, %v2413_v26  ;;  %v2410_v40 = vpop.xlane.xlu1 %2409  ;;  %2590 = vadd.xlane.f32.xlu1 %v2589_v42  ;;  %v2528_v39 = vmul.f32 %v9850_v12, %v9850_v12  ;;  %7777 = vpow2.f32 %v6846_v51  ;;  %v9898_v26 = vld [vmem:[%s9822_s27 + $0x48] sm:$0xff] }
 0x47e   : > { %v2465_v16 = vmul.f32 0.0625, %v2410_v40  ;;  %v2527_v7 = vmul.f32 %v9858_v31, %v9858_v31  ;;  %v7768_v40 = vpop.eup %7767  ;;  %7779 = vpow2.f32 %v6849_v56  ;;  %v6851_v51 = vmul.f32 -1.442695, %v9898_v26 }
 0x47f   : > { %v9870_v32 = vsub.f32 %v9619_v62, %v2466_v25  ;;  %v2598_v17 = vsel %vm1461_vm0, %v2528_v39, 0.0  ;;  %v2972_v56 = vadd.f32 1.0, %v7768_v40 }
 0x480   : > { %v9878_v48 = vsub.f32 %v9623_v23, %v2465_v16  ;;  %v2419_v38 = vpop.xlane.xlu0 %2418  ;;  %2599 = vadd.xlane.f32.xlu0 %v2598_v17  ;;  %v2595_v13 = vsel %vm1461_vm0, %v2527_v7, 0.0 }
 0x481   : > { %v2468_v52 = vmul.f32 0.0625, %v2419_v38  ;;  %v2416_v54 = vpop.xlane.xlu1 %2415  ;;  %2596 = vadd.xlane.f32.xlu1 %v2595_v13  ;;  %v2530_v62 = vmul.f32 %v9870_v32, %v9870_v32 }
 0x482   : > { %13156 = vst [vmem:[#allocation2_spill] sm:$0xff] %v9878_v48  ;;  %v2467_v55 = vmul.f32 0.0625, %v2416_v54  ;;  %v2529_v33 = vmul.f32 %v9878_v48, %v9878_v48 }
 0x483   : > { %v9887_v23 = vsub.f32 %v9641_v24, %v2468_v52  ;;  %v2604_v59 = vsel %vm1461_vm0, %v2530_v62, 0.0  ;;  %v7770_v7 = vpop.eup %7769 }
 0x484   : > { %v9894_v57 = vsub.f32 %v9645_v4, %v2467_v55  ;;  %v2425_v5 = vpop.xlane.xlu0 %2424  ;;  %2605 = vadd.xlane.f32.xlu0 %v2604_v59  ;;  %v2601_v6 = vsel %vm1461_vm0, %v2529_v33, 0.0  ;;  %v6848_v4 = vmul.f32 -1.442695, %v9891_v30  ;;  %v7772_v38 = vpop.eup %7771 }
 0x485   : > { %13157 = vst [vmem:[#allocation3_spill] sm:$0xff] %v9887_v23  ;;  %v2470_v42 = vmul.f32 0.0625, %v2425_v5  ;;  %v2422_v25 = vpop.xlane.xlu1 %2421  ;;  %2602 = vadd.xlane.f32.xlu1 %v2601_v6  ;;  %v2532_v24 = vmul.f32 %v9887_v23, %v9887_v23  ;;  %v7774_v62 = vpop.eup %7773  ;;  %v2971_v6 = vadd.f32 1.0, %v7770_v7 }
 0x486   : > { %13158 = vst [vmem:[#allocation4_spill] sm:$0xff] %v9894_v57  ;;  %v2469_v39 = vmul.f32 0.0625, %v2422_v25  ;;  %v2531_v16 = vmul.f32 %v9894_v57, %v9894_v57  ;;  %7781 = vpow2.f32 %v6848_v4  ;;  %v2973_v7 = vadd.f32 1.0, %v7774_v62 }
 0x487   : > { %v9906_v50 = vsub.f32 %v9659_v58, %v2470_v42  ;;  %v2610_v17 = vsel %vm1461_vm0, %v2532_v24, 0.0  ;;  %v2974_v24 = vadd.f32 1.0, %v7772_v38  ;;  %7783 = vpow2.f32 %v6851_v51 }
 0x488   : > { %v9911_v13 = vsub.f32 %v9664_v60, %v2469_v39  ;;  %v2431_v52 = vpop.xlane.xlu0 %2430  ;;  %2611 = vadd.xlane.f32.xlu0 %v2610_v17  ;;  %v2607_v54 = vsel %vm1461_vm0, %v2531_v16, 0.0  ;;  %v9919_v60 = vld [vmem:[%s9822_s27 + $0x40] sm:$0xff]  ;;  %v9926_v39 = vld [vmem:[%s9822_s27 + $0x58] sm:$0xff]  ;;  %v7776_v16 = vpop.eup %7775  ;;  %7785 = vrcp.f32 %v2972_v56  ;;  %v9946_v56 = vld [vmem:[%s9822_s27 + $0x68] sm:$0xff] }
 0x489   : > { %13159 = vst [vmem:[#allocation5_spill] sm:$0xff] %v9906_v50  ;;  %v2472_v55 = vmul.f32 0.0625, %v2431_v52  ;;  %v2428_v33 = vpop.xlane.xlu1 %2427  ;;  %2608 = vadd.xlane.f32.xlu1 %v2607_v54  ;;  %v2534_v58 = vmul.f32 %v9906_v50, %v9906_v50  ;;  %v7778_v52 = vpop.eup %7777  ;;  %v6850_v38 = vmul.f32 -1.442695, %v9919_v60  ;;  %7787 = vrcp.f32 %v2971_v6 }
 0x48a   : > { %13160 = vst [vmem:[#allocation6_spill] sm:$0xff] %v9911_v13  ;;  %v2471_v59 = vmul.f32 0.0625, %v2428_v33  ;;  %v2533_v5 = vmul.f32 %v9911_v13, %v9911_v13  ;;  %v9938_v33 = vld [vmem:[%s9822_s27 + $0x50] sm:$0xff]  ;;  %v6853_v62 = vmul.f32 -1.442695, %v9926_v39  ;;  %7789 = vrcp.f32 %v2974_v24 }
 0x48b   : > { %v9922_v42 = vsub.f32 %v9678_v19, %v2472_v55  ;;  %v2616_v25 = vsel %vm1461_vm0, %v2534_v58, 0.0  ;;  %7791 = vrcp.f32 %v2973_v7 }
 0x48c   : > { %v9929_v40 = vsub.f32 %v9685_v49, %v2471_v59  ;;  %v2437_v17 = vpop.xlane.xlu0 %2436  ;;  %2617 = vadd.xlane.f32.xlu0 %v2616_v25  ;;  %v2613_v4 = vsel %vm1461_vm0, %v2533_v5, 0.0  ;;  %v2976_v5 = vadd.f32 1.0, %v7776_v16  ;;  %v7780_v25 = vpop.eup %7779  ;;  %7793 = vpow2.f32 %v6850_v38 }
 0x48d   : > { %13161 = vst [vmem:[#allocation7_spill] sm:$0xff] %v9922_v42  ;;  %v2474_v19 = vmul.f32 0.0625, %v2437_v17  ;;  %v2434_v54 = vpop.xlane.xlu1 %2433  ;;  %2614 = vadd.xlane.f32.xlu1 %v2613_v4  ;;  %v2536_v51 = vmul.f32 %v9922_v42, %v9922_v42  ;;  %v6852_v16 = vmul.f32 -1.442695, %v9938_v33  ;;  %7795 = vpow2.f32 %v6853_v62 }
 0x48e   : > { %13162 = vst [vmem:[#allocation8_spill] sm:$0xff] %v9929_v40  ;;  %v2473_v55 = vmul.f32 0.0625, %v2434_v54  ;;  %v2535_v49 = vmul.f32 %v9929_v40, %v9929_v40  ;;  %v2975_v54 = vadd.f32 1.0, %v7778_v52  ;;  %7797 = vrcp.f32 %v2976_v5 }
 0x48f   : > { %v9942_v58 = vsub.f32 %v9695_v41, %v2474_v19  ;;  %v2622_v59 = vsel %vm1461_vm0, %v2536_v51, 0.0  ;;  %v9956_v19 = vld [vmem:[%s9822_s27 + $0x60] sm:$0xff] }
 0x490   : > { %v9949_v17 = vsub.f32 %v9697_v20, %v2473_v55  ;;  %2623 = vadd.xlane.f32.xlu0 %v2622_v59  ;;  %v2443_v6 = vpop.xlane.xlu0 %2442  ;;  %v2619_v4 = vsel %vm1461_vm0, %v2535_v49, 0.0  ;;  %v6855_v55 = vmul.f32 -1.442695, %v9946_v56  ;;  %v2978_v49 = vadd.f32 1.0, %v7780_v25  ;;  %v7782_v59 = vpop.eup %7781 }
 0x491   : > { %13163 = vst [vmem:[#allocation9_spill] sm:$0xff] %v9942_v58  ;;  %v2476_v1 = vmul.f32 0.0625, %v2443_v6  ;;  %2620 = vadd.xlane.f32.xlu1 %v2619_v4  ;;  %v2440_v41 = vpop.xlane.xlu1 %2439  ;;  %v2538_v24 = vmul.f32 %v9942_v58, %v9942_v58  ;;  %7799 = vrcp.f32 %v2975_v54  ;;  %v6854_v62 = vmul.f32 -1.442695, %v9956_v19 }
 0x492   : > { %13164 = vst [vmem:[#allocation10_spill] sm:$0xff] %v9949_v17  ;;  %v2475_v51 = vmul.f32 0.0625, %v2440_v41  ;;  %v2537_v20 = vmul.f32 %v9949_v17, %v9949_v17  ;;  %v7784_v41 = vpop.eup %7783  ;;  %7801 = vpow2.f32 %v6852_v16 }
 0x493   : > { %v9962_v7 = vsub.f32 %v9713_v53, %v2476_v1  ;;  %v2628_v52 = vsel %vm1461_vm0, %v2538_v24, 0.0  ;;  %7803 = vpow2.f32 %v6855_v55  ;;  %v7786_v25 = vpop.eup %7785  ;;  %v2980_v16 = vadd.f32 1.0, %v7784_v41 }
 0x494   : > { %v9966_v38 = vsub.f32 %v9715_v3, %v2475_v51  ;;  %2629 = vadd.xlane.f32.xlu0 %v2628_v52  ;;  %v2546_v6 = vpop.xlane.xlu0 %2545  ;;  %v2625_v4 = vsel %vm1461_vm0, %v2537_v20, 0.0  ;;  %v2977_v51 = vadd.f32 1.0, %v7782_v59  ;;  %7805 = vrcp.f32 %v2978_v49  ;;  %v7788_v20 = vpop.eup %7787 }
 0x495   : > { %13165 = vst [vmem:[#allocation11_spill] sm:$0xff] %v9962_v7  ;;  %v2638_v17 = vmul.f32 0.0625, %v2546_v6  ;;  %2626 = vadd.xlane.f32.xlu1 %v2625_v4  ;;  %v2543_v1 = vpop.xlane.xlu1 %2542  ;;  %v2540_v53 = vmul.f32 %v9962_v7, %v9962_v7  ;;  %7807 = vpow2.f32 %v6854_v62  ;;  %v7790_v7 = vpop.eup %7789 }
 0x496   : > { %13166 = vst [vmem:[#allocation12_spill] sm:$0xff] %v9966_v38  ;;  %v2637_v5 = vmul.f32 0.0625, %v2543_v1  ;;  %v2539_v3 = vmul.f32 %v9966_v38, %v9966_v38  ;;  %v9977_v1 = vld [vmem:[%s9822_s27 + $0x70] sm:$0xff]  ;;  %v9980_v38 = vld [vmem:[%s9822_s27 + $0x78] sm:$0xff] }
 0x497   : > { %v2670_v24 = vadd.f32 1e-05, %v2638_v17  ;;  %v2634_v54 = vsel %vm1461_vm0, %v2540_v53, 0.0  ;;  %v7792_v53 = vpop.eup %7791  ;;  %v6857_v58 = vmul.f32 -1.442695, %v9980_v38 }
 0x498   : > { %v2669_v52 = vadd.f32 1e-05, %v2637_v5  ;;  %2635 = vadd.xlane.f32.xlu0 %v2634_v54  ;;  %v2552_v6 = vpop.xlane.xlu0 %2551  ;;  %v2631_v4 = vsel %vm1461_vm0, %v2539_v3, 0.0  ;;  %v7794_v59 = vpop.eup %7793  ;;  %v6856_v54 = vmul.f32 -1.442695, %v9977_v1 }
 0x499   : > { %7809 = vrsqrt.f32 %v2670_v24  ;;  %v2640_v55 = vmul.f32 0.0625, %v2552_v6  ;;  %2632 = vadd.xlane.f32.xlu1 %v2631_v4  ;;  %v2549_v17 = vpop.xlane.xlu1 %2548  ;;  %v7796_v3 = vpop.eup %7795  ;;  %v2979_v13 = vadd.f32 1.0, %v7794_v59 }
 0x49a   : > { %7811 = vrsqrt.f32 %v2669_v52  ;;  %v2639_v49 = vmul.f32 0.0625, %v2549_v17  ;;  %v7798_v24 = vpop.eup %7797  ;;  %v2982_v57 = vadd.f32 1.0, %v7796_v3 }
 0x49b   : > { %v2672_v5 = vadd.f32 1e-05, %v2640_v55  ;;  %7813 = vrcp.f32 %v2977_v51  ;;  %v7800_v40 = vpop.eup %7799 }
 0x49c   : > { %v2671_v41 = vadd.f32 1e-05, %v2639_v49  ;;  %v2558_v62 = vpop.xlane.xlu0 %2557  ;;  %7815 = vrcp.f32 %v2980_v16  ;;  %v7802_v52 = vpop.eup %7801 }
 0x49d   : > { %7817 = vrsqrt.f32 %v2672_v5  ;;  %v2642_v6 = vmul.f32 0.0625, %v2558_v62  ;;  %v2555_v4 = vpop.xlane.xlu1 %2554  ;;  %v7804_v51 = vpop.eup %7803  ;;  %v3068_v5 = vmul.f32 %v7786_v25, %v9825_v29  ;;  %v2981_v29 = vadd.f32 1.0, %v7802_v52 }
 0x49e   : > { %7819 = vrsqrt.f32 %v2671_v41  ;;  %v2641_v42 = vmul.f32 0.0625, %v2555_v4  ;;  %v7806_v49 = vpop.eup %7805  ;;  %v3067_v41 = vmul.f32 %v7788_v20, %v9828_v11  ;;  %v10001_v20 = vld [vmem:[%s13010_s12] ss:$0 sm:$0xff] }
 0x49f   : > { %v2674_v17 = vadd.f32 1e-05, %v2642_v6  ;;  %7821 = vpow2.f32 %v6856_v54  ;;  %v7808_v62 = vpop.eup %7807  ;;  %v9987_v6 = vmul.f32 %v7790_v7, %v9834_v10  ;;  %v2984_v10 = vadd.f32 1.0, %v7804_v51 }
 0x4a0   : > { %v2673_v55 = vadd.f32 1e-05, %v2641_v42  ;;  %v2564_v50 = vpop.xlane.xlu0 %2563  ;;  %7823 = vpow2.f32 %v6857_v58  ;;  %v9992_v42 = vld [vmem:[%s13009_s11] ss:$0 sm:$0xff] }
 0x4a1   : > { %7825 = vrsqrt.f32 %v2674_v17  ;;  %v2644_v16 = vmul.f32 0.0625, %v2564_v50  ;;  %v2561_v23 = vpop.xlane.xlu1 %2560  ;;  %v9995_v50 = vmul.f32 %v7792_v53, %v9841_v22 }
 0x4a2   : > { %7827 = vrsqrt.f32 %v2673_v55  ;;  %v2643_v48 = vmul.f32 0.0625, %v2561_v23  ;;  %v2983_v55 = vadd.f32 1.0, %v7808_v62 }
 0x4a3   : > { %v7810_v59 = vpop.eup %7809  ;;  %v2676_v58 = vadd.f32 1e-05, %v2644_v16  ;;  %7829 = vrcp.f32 %v2979_v13  ;;  %v10005_v13 = vmul.f32 %v7798_v24, %v9855_v36 }
 0x4a4   : > { %v7812_v25 = vpop.eup %7811  ;;  %v2734_v23 = vmul.f32 %v7810_v59, %v9700_v8  ;;  %v2675_v54 = vadd.f32 1e-05, %v2643_v48  ;;  %v2570_v11 = vpop.xlane.xlu0 %2569  ;;  %7831 = vrcp.f32 %v2982_v57  ;;  %v10011_v57 = vmul.f32 %v7800_v40, %v9862_v28 }
 0x4a5   : > { %v7814_v7 = vpop.eup %7813  ;;  %7833 = vrsqrt.f32 %v2676_v58  ;;  %v2646_v3 = vmul.f32 0.0625, %v2570_v11  ;;  %v2567_v4 = vpop.xlane.xlu1 %2566  ;;  %v2733_v22 = vmul.f32 %v7812_v25, %v9707_v21  ;;  %v10020_v11 = vmul.f32 %v7806_v49, %v9875_v45 }
 0x4a6   : > { %v10007_v53 = vpop.eup %7815  ;;  %v2773_v8 = vmul.f32 %v9992_v42, %v2734_v23  ;;  %7835 = vrsqrt.f32 %v2675_v54  ;;  %v2645_v48 = vmul.f32 0.0625, %v2567_v4 }
 0x4a7   : > { %v7818_v52 = vpop.eup %7817  ;;  %v2678_v17 = vadd.f32 1e-05, %v2646_v3  ;;  %v2772_v51 = vmul.f32 %v9992_v42, %v2733_v22  ;;  %7837 = vrcp.f32 %v2981_v29 }
 0x4a8   : > { %v7820_v16 = vpop.eup %7819  ;;  %v2812_v21 = vadd.f32 %v10001_v20, %v2773_v8  ;;  %v2677_v36 = vadd.f32 1e-05, %v2645_v48  ;;  %v2576_v24 = vpop.xlane.xlu0 %2575  ;;  %v2736_v59 = vmul.f32 %v7818_v52, %v9718_v35  ;;  %7839 = vrcp.f32 %v2984_v10 }
 0x4a9   : > { %v7822_v58 = vpop.eup %7821  ;;  %7841 = vrsqrt.f32 %v2678_v17  ;;  %v2648_v25 = vmul.f32 0.0625, %v2576_v24  ;;  %v2573_v23 = vpop.xlane.xlu1 %2572  ;;  %v2811_v28 = vadd.f32 %v10001_v20, %v2772_v51  ;;  %v2735_v40 = vmul.f32 %v7820_v16, %v9725_v46 }
 0x4aa   : > { %v7824_v54 = vpop.eup %7823  ;;  %7843 = vrsqrt.f32 %v2677_v36  ;;  %v2647_v29 = vmul.f32 0.0625, %v2573_v23  ;;  %v2775_v62 = vmul.f32 %v9992_v42, %v2736_v59  ;;  %v3100_v52 = vmul.f32 %v3068_v5, %v2812_v21 }
 0x4ab   : > { %v7826_v3 = vpop.eup %7825  ;;  %v2680_v4 = vadd.f32 1e-05, %v2648_v25  ;;  %v3099_v35 = vmul.f32 %v3067_v41, %v2811_v28  ;;  %v2774_v10 = vmul.f32 %v9992_v42, %v2735_v40  ;;  %7845 = vrcp.f32 %v2983_v55 }
 0x4ac   : > { %v7828_v22 = vpop.eup %7827  ;;  %v2679_v8 = vadd.f32 1e-05, %v2647_v29  ;;  %v2582_v48 = vpop.xlane.xlu0 %2581  ;;  %v2814_v46 = vadd.f32 %v10001_v20, %v2775_v62  ;;  %v2738_v17 = vmul.f32 %v7826_v3, %v9732_v44  ;;  %v3073_v44 = vmul.f32 %v7814_v7, %v9891_v30 }
 0x4ad   : > { %v7830_v51 = vpop.eup %7829  ;;  %7847 = vrsqrt.f32 %v2680_v4  ;;  %v2650_v16 = vmul.f32 0.0625, %v2582_v48  ;;  %7264 = vmatprep.mubr.msk.f32.mxu0 %vm1461_vm0, %v3099_v35  ;;  %v2579_v45 = vpop.xlane.xlu1 %2578  ;;  %v2813_v49 = vadd.f32 %v10001_v20, %v2774_v10  ;;  %v2737_v41 = vmul.f32 %v7828_v22, %v9738_v34 }
 0x4ae   : > { %v10028_v36 = vpop.eup %7831  ;;  %7849 = vrsqrt.f32 %v2679_v8  ;;  %v2649_v55 = vmul.f32 0.0625, %v2579_v45  ;;  %7265 = vmatmul.mubr.msk.f32.vlgmr.msra.gmra.mrb[80].mxu0 %vm1461_vm0, %v3100_v52  ;;  %v2777_v5 = vmul.f32 %v9992_v42, %v2738_v17  ;;  %v2985_v23 = vadd.f32 1.0, %v7822_v58 }
 0x4af   : > { %v7834_v21 = vpop.eup %7833  ;;  %v2682_v24 = vadd.f32 1e-05, %v2650_v16  ;;  %v3101_v59 = vmul.f32 %v9995_v50, %v2813_v49  ;;  %v2776_v25 = vmul.f32 %v9992_v42, %v2737_v41  ;;  %v3102_v29 = vmul.f32 %v9987_v6, %v2814_v46 }
 0x4b0   : > { %v7836_v28 = vpop.eup %7835  ;;  %v2681_v40 = vadd.f32 1e-05, %v2649_v55  ;;  %v2588_v34 = vpop.xlane.xlu0 %2587  ;;  %v2816_v62 = vadd.f32 %v10001_v20, %v2777_v5  ;;  %v2740_v3 = vmul.f32 %v7834_v21, %v9744_v0  ;;  %v2986_v22 = vadd.f32 1.0, %v7824_v54 }
 0x4b1   : > { %v7838_v4 = vpop.eup %7837  ;;  %7851 = vrsqrt.f32 %v2682_v24  ;;  %v2652_v35 = vmul.f32 0.0625, %v2588_v34  ;;  %7267 = vmatprep.mubr.msk.f32.mxu0 %vm1461_vm0, %v3101_v59  ;;  %v2585_v30 = vpop.xlane.xlu1 %2584  ;;  %v2815_v50 = vadd.f32 %v10001_v20, %v2776_v25  ;;  %v2739_v7 = vmul.f32 %v7836_v28, %v9750_v43 }
 0x4b2   : > { %v7840_v58 = vpop.eup %7839  ;;  %7853 = vrsqrt.f32 %v2681_v40  ;;  %v2651_v10 = vmul.f32 0.0625, %v2585_v30  ;;  %7268 = vmatmul.mubr.msk.f32.gmra.mrb[82].mxu0 %vm1461_vm0, %v3102_v29  ;;  %v2779_v6 = vmul.f32 %v9992_v42, %v2740_v3  ;;  %v3104_v16 = vmul.f32 %v10005_v13, %v2816_v62 }
 0x4b3   : > { %v7842_v8 = vpop.eup %7841  ;;  %v2684_v0 = vadd.f32 1e-05, %v2652_v35  ;;  %v3103_v48 = vmul.f32 %v10011_v57, %v2815_v50  ;;  %v2778_v52 = vmul.f32 %v9992_v42, %v2739_v7  ;;  %7855 = vrcp.f32 %v2985_v23 }
 0x4b4   : > { %v7844_v46 = vpop.eup %7843  ;;  %v2683_v17 = vadd.f32 1e-05, %v2651_v10  ;;  %v2818_v43 = vadd.f32 %v10001_v20, %v2779_v6  ;;  %v2742_v45 = vmul.f32 %v7842_v8, %v9756_v18  ;;  %v3075_v21 = vmul.f32 %v7830_v51, %v9919_v60 }
 0x4b5   : > { %v7846_v49 = vpop.eup %7845  ;;  %7857 = vrsqrt.f32 %v2684_v0  ;;  %7270 = vmatprep.mubr.msk.f32.mxu0 %vm1461_vm0, %v3103_v48  ;;  %v2817_v54 = vadd.f32 %v10001_v20, %v2778_v52  ;;  %v2741_v41 = vmul.f32 %v7844_v46, %v9762_v2  ;;  %v3076_v2 = vmul.f32 %v10007_v53, %v9898_v26 }
 0x4b6   : > { %7859 = vrsqrt.f32 %v2683_v17  ;;  %7271 = vmatmul.mubr.msk.f32.gmra.mrb[84].mxu0 %vm1461_vm0, %v3104_v16  ;;  %v2781_v57 = vmul.f32 %v9992_v42, %v2742_v45  ;;  %v3106_v24 = vmul.f32 %v10020_v11, %v2818_v43  ;;  %v3077_v40 = vmul.f32 %v7838_v4, %v9938_v33  ;;  %v10099_v17 = vld [vmem:[%s9822_s27 + $0x80] sm:$0xff]  ;;  %v10103_v16 = vld [vmem:[%s9822_s27 + $0x98] sm:$0xff]  ;;  %v10107_v45 = vld [vmem:[%s9822_s27 + $0x90] sm:$0xff] }
 0x4b7   : > { %v7848_v55 = vpop.eup %7847  ;;  %v3105_v5 = vmul.f32 %v3073_v44, %v2817_v54  ;;  %v2780_v13 = vmul.f32 %v9992_v42, %v2741_v41  ;;  %7861 = vrcp.f32 %v2986_v22  ;;  %v3078_v53 = vmul.f32 %v10028_v36, %v9926_v39 }
 0x4b8   : > { %v7850_v18 = vpop.eup %7849  ;;  %v2820_v59 = vadd.f32 %v10001_v20, %v2781_v57  ;;  %v2744_v25 = vmul.f32 %v7848_v55, %v9768_v61  ;;  %v3079_v50 = vmul.f32 %v7846_v49, %v9956_v19  ;;  %v3080_v7 = vmul.f32 %v7840_v58, %v9946_v56  ;;  %v10110_v49 = vld [vmem:[%s9822_s27 + $0xa0] sm:$0xff]  ;;  %v10115_v57 = vld [vmem:[%s9822_s27 + $0xa8] sm:$0xff] }
 0x4b9   : > { %7273 = vmatprep.mubr.msk.f32.mxu0 %vm1461_vm0, %v3105_v5  ;;  %v2819_v23 = vadd.f32 %v10001_v20, %v2780_v13  ;;  %v2743_v44 = vmul.f32 %v7850_v18, %v9774_v9  ;;  %v6858_v43 = vmul.f32 -1.442695, %v10099_v17  ;;  %v6861_v54 = vmul.f32 -1.442695, %v10103_v16  ;;  %v10119_v5 = vld [vmem:[%s9822_s27 + $0xb8] sm:$0xff]  ;;  %v10122_v13 = vld [vmem:[%s9822_s27 + $0xb0] sm:$0xff] }
 0x4ba   : > { %7274 = vmatmul.mubr.msk.f32.gmra.mrb[86].mxu0 %vm1461_vm0, %v3106_v24  ;;  %v2783_v60 = vmul.f32 %v9992_v42, %v2744_v25  ;;  %v3108_v26 = vmul.f32 %v3076_v2, %v2820_v59  ;;  %v6860_v41 = vmul.f32 -1.442695, %v10107_v45  ;;  %v6862_v55 = vmul.f32 -1.442695, %v10110_v49  ;;  %v10128_v25 = vld [vmem:[%s9822_s27 + $0xc0] sm:$0xff] }
 0x4bb   : > { %v7852_v51 = vpop.eup %7851  ;;  %v3107_v28 = vmul.f32 %v3075_v21, %v2819_v23  ;;  %v2782_v11 = vmul.f32 %v9992_v42, %v2743_v44  ;;  %v6863_v21 = vmul.f32 -1.442695, %v10115_v57  ;;  %v6865_v18 = vmul.f32 -1.442695, %v10119_v5 }
 0x4bc   : > { %v7854_v34 = vpop.eup %7853  ;;  %v2822_v61 = vadd.f32 %v10001_v20, %v2783_v60  ;;  %v2746_v29 = vmul.f32 %v7852_v51, %v9780_v37  ;;  %v6864_v24 = vmul.f32 -1.442695, %v10122_v13 }
 0x4bd   : > { %v7856_v9 = vpop.eup %7855  ;;  %7276 = vmatprep.mubr.msk.f32.mxu0 %vm1461_vm0, %v3107_v28  ;;  %v2821_v62 = vadd.f32 %v10001_v20, %v2782_v11  ;;  %v2745_v3 = vmul.f32 %v7854_v34, %v9786_v14  ;;  %v6866_v11 = vmul.f32 -1.442695, %v10128_v25  ;;  %v10132_v34 = vld [vmem:[%s9822_s27 + $0xc8] sm:$0xff] }
 0x4be   : > { %7277 = vmatmul.mubr.msk.f32.gmra.mrb[88].mxu0 %vm1461_vm0, %v3108_v26  ;;  %v2785_v33 = vmul.f32 %v9992_v42, %v2746_v29  ;;  %v3110_v36 = vmul.f32 %v3078_v53, %v2822_v61  ;;  %v3081_v56 = vmul.f32 %v7856_v9, %v9977_v1  ;;  %v10096_v1 = vld [vmem:[%s9822_s27 + $0x88] sm:$0xff] }
 0x4bf   : > { %v7858_v4 = vpop.eup %7857  ;;  %v3109_v35 = vmul.f32 %v3077_v40, %v2821_v62  ;;  %v2784_v30 = vmul.f32 %v9992_v42, %v2745_v3  ;;  %v6867_v62 = vmul.f32 -1.442695, %v10132_v34 }
 0x4c0   : > { %v7860_v39 = vpop.eup %7859  ;;  %v2824_v37 = vadd.f32 %v10001_v20, %v2785_v33  ;;  %v2748_v10 = vmul.f32 %v7858_v4, %v9792_v15  ;;  %v10136_v33 = vld [vmem:[%s9822_s27 + $0xd0] sm:$0xff] }
 0x4c1   : > { %v7862_v6 = vpop.eup %7861  ;;  %7279 = vmatprep.mubr.msk.f32.mxu0 %vm1461_vm0, %v3109_v35  ;;  %v2823_v14 = vadd.f32 %v10001_v20, %v2784_v30  ;;  %v2747_v22 = vmul.f32 %v7860_v39, %v9798_v47  ;;  %v10139_v35 = vld [vmem:[%s9822_s27 + $0xd8] sm:$0xff]  ;;  %v6868_v39 = vmul.f32 -1.442695, %v10136_v33 }
 0x4c2   : > { %7280 = vmatmul.mubr.msk.f32.gmra.mrb[90].mxu0 %vm1461_vm0, %v3110_v36  ;;  %v2787_v19 = vmul.f32 %v9992_v42, %v2748_v10  ;;  %v3112_v15 = vmul.f32 %v3080_v7, %v2824_v37  ;;  %v3082_v48 = vmul.f32 %v7862_v6, %v9980_v38  ;;  %v6859_v38 = vmul.f32 -1.442695, %v10096_v1 }
 0x4c3   : > { %v3111_v8 = vmul.f32 %v3079_v50, %v2823_v14  ;;  %v2786_v0 = vmul.f32 %v9992_v42, %v2747_v22  ;;  %v10142_v50 = vld [vmem:[%s9822_s27 + $0xe0] sm:$0xff]  ;;  %v6869_v36 = vmul.f32 -1.442695, %v10139_v35  ;;  %v10148_v14 = vld [vmem:[%s9822_s27 + $0xe8] sm:$0xff] }
 0x4c4   : > { %v2826_v58 = vadd.f32 %v10001_v20, %v2787_v19  ;;  %7863 = vpow2.f32 %v6859_v38  ;;  %v6870_v7 = vmul.f32 -1.442695, %v10142_v50  ;;  %v10152_v38 = vld [vmem:[%s9822_s27 + $0xf0] sm:$0xff] }
 0x4c5   : > { %7282 = vmatprep.mubr.msk.f32.mxu0 %vm1461_vm0, %v3111_v8  ;;  %v2825_v47 = vadd.f32 %v10001_v20, %v2786_v0  ;;  %7865 = vpow2.f32 %v6858_v43 }
 0x4c6   : > { %7283 = vmatmul.mubr.msk.f32.gmra.mrb[92].mxu0 %vm1461_vm0, %v3112_v15  ;;  %v3114_v46 = vmul.f32 %v3082_v48, %v2826_v58  ;;  %7867 = vpow2.f32 %v6861_v54  ;;  %v6871_v48 = vmul.f32 -1.442695, %v10148_v14 }
 0x4c7   : > { %v3113_v52 = vmul.f32 %v3081_v56, %v2825_v47  ;;  %7869 = vpow2.f32 %v6860_v41 }
 0x4c8   : > { %7871 = vpow2.f32 %v6862_v55 }
 0x4c9   : > { %7285 = vmatprep.mubr.msk.f32.mxu0 %vm1461_vm0, %v3113_v52  ;;  %7873 = vpow2.f32 %v6863_v21 }
 0x4ca   : > { %7286 = vmatmul.mubr.msk.f32.gmra.mrb[94].mxu0 %vm1461_vm0, %v3114_v46  ;;  %7875 = vpow2.f32 %v6865_v18 }
 0x4cb   : > { %7877 = vpow2.f32 %v6864_v24 }
 0x4ce   : > { %v7864_v59 = vpop.eup %7863 }
 0x4cf   : > { %v7866_v2 = vpop.eup %7865  ;;  %v2988_v44 = vadd.f32 1.0, %v7864_v59 }
 0x4d0   : > { %v7868_v23 = vpop.eup %7867  ;;  %v2987_v51 = vadd.f32 1.0, %v7866_v2  ;;  %v6872_v2 = vmul.f32 -1.442695, %v10152_v38 }
 0x4d1   : > { %v7870_v60 = vpop.eup %7869  ;;  %v2990_v40 = vadd.f32 1.0, %v7868_v23  ;;  %7879 = vrcp.f32 %v2988_v44 }
 0x4d2   : > { %v7872_v28 = vpop.eup %7871  ;;  %v2989_v61 = vadd.f32 1.0, %v7870_v60  ;;  %7881 = vrcp.f32 %v2987_v51  ;;  %v10156_v51 = vld [vmem:[%s9822_s27 + $0xf8] sm:$0xff] }
 0x4d3   : > { %v7874_v26 = vpop.eup %7873  ;;  %v2991_v29 = vadd.f32 1.0, %v7872_v28  ;;  %7883 = vpow2.f32 %v6866_v11 }
 0x4d4   : > { %v7876_v53 = vpop.eup %7875  ;;  %7885 = vrcp.f32 %v2990_v40  ;;  %v2992_v3 = vadd.f32 1.0, %v7874_v26 }
 0x4d5   : > { %v7878_v9 = vpop.eup %7877  ;;  %7887 = vrcp.f32 %v2989_v61  ;;  %v2994_v4 = vadd.f32 1.0, %v7876_v53 }
 0x4d6   : > { %7889 = vrcp.f32 %v2991_v29  ;;  %v2993_v30 = vadd.f32 1.0, %v7878_v9 }
 0x4d7   : > { %7891 = vpow2.f32 %v6867_v62 }
 0x4d8   : > { %7893 = vrcp.f32 %v2992_v3  ;;  %v6873_v3 = vmul.f32 -1.442695, %v10156_v51 }
 0x4d9   : > { %7895 = vrcp.f32 %v2994_v4 }
 0x4da   : > { %7897 = vrcp.f32 %v2993_v30 }
 0x4db   : > { %v7880_v22 = vpop.eup %7879  ;;  %7899 = vpow2.f32 %v6868_v39 }
 0x4dc   : > { %v7882_v8 = vpop.eup %7881  ;;  %7901 = vpow2.f32 %v6869_v36  ;;  %v10159_v62 = vmul.f32 %v7880_v22, %v10096_v1 }
 0x4dd   : > { %v7884_v56 = vpop.eup %7883  ;;  %7903 = vpow2.f32 %v6870_v7  ;;  %v3083_v36 = vmul.f32 %v7882_v8, %v10099_v17 }
 0x4de   : > { %v7886_v47 = vpop.eup %7885  ;;  %v2995_v21 = vadd.f32 1.0, %v7884_v56 }
 0x4df   : > { %v7888_v43 = vpop.eup %7887 }
 0x4e0   : > { %v7890_v41 = vpop.eup %7889 }
 0x4e1   : > { %v7892_v18 = vpop.eup %7891  ;;  %v10170_v1 = vmul.f32 %v7890_v41, %v10110_v49 }
 0x4e2   : > { %v7894_v23 = vpop.eup %7893  ;;  %v2996_v61 = vadd.f32 1.0, %v7892_v18 }
 0x4e3   : > { %v7896_v28 = vpop.eup %7895 }
 0x4e4   : > { %v7898_v40 = vpop.eup %7897 }
 0x4e5   : > { %v7900_v53 = vpop.eup %7899 }
 0x4e6   : > { %v7902_v4 = vpop.eup %7901  ;;  %v2997_v56 = vadd.f32 1.0, %v7900_v53 }
 0x4e7   : > { %v7904_v7 = vpop.eup %7903 }
 0x509   : > { %v2594_v37 = vpop.xlane.xlu0 %2593 }
 0x50a   : > { %v2654_v10 = vmul.f32 0.0625, %v2594_v37  ;;  %v2591_v6 = vpop.xlane.xlu1 %2590  ;;  %v10164_v37 = vmul.f32 %v7886_v47, %v10103_v16  ;;  %v10178_v47 = vmul.f32 %v7896_v28, %v10119_v5 }
 0x50b   : > { %v2653_v19 = vmul.f32 0.0625, %v2591_v6  ;;  %v10167_v6 = vmul.f32 %v7888_v43, %v10107_v45  ;;  %v10182_v43 = vmul.f32 %v7898_v40, %v10122_v13 }
 0x50c   : > { %v2686_v0 = vadd.f32 1e-05, %v2654_v10 }
 0x50d   : > { %v2685_v15 = vadd.f32 1e-05, %v2653_v19  ;;  %v2600_v58 = vpop.xlane.xlu0 %2599 }
 0x50e   : > { %7905 = vrsqrt.f32 %v2686_v0  ;;  %v2656_v52 = vmul.f32 0.0625, %v2600_v58  ;;  %v2597_v46 = vpop.xlane.xlu1 %2596  ;;  %v10173_v0 = vmul.f32 %v7894_v23, %v10115_v57  ;;  %v2998_v58 = vadd.f32 1.0, %v7902_v4 }
 0x50f   : > { %7907 = vrsqrt.f32 %v2685_v15  ;;  %v2655_v54 = vmul.f32 0.0625, %v2597_v46 }
 0x510   : > { %v2688_v55 = vadd.f32 1e-05, %v2656_v52  ;;  %7909 = vpow2.f32 %v6871_v48 }
 0x511   : > { %v2687_v24 = vadd.f32 1e-05, %v2655_v54  ;;  %v2606_v59 = vpop.xlane.xlu0 %2605 }
 0x512   : > { %7911 = vrsqrt.f32 %v2688_v55  ;;  %v2658_v44 = vmul.f32 0.0625, %v2606_v59  ;;  %v2603_v60 = vpop.xlane.xlu1 %2602  ;;  %v2999_v55 = vadd.f32 1.0, %v7904_v7 }
 0x513   : > { %7913 = vrsqrt.f32 %v2687_v24  ;;  %v2657_v11 = vmul.f32 0.0625, %v2603_v60 }
 0x514   : > { %v2690_v26 = vadd.f32 1e-05, %v2658_v44  ;;  %7915 = vrcp.f32 %v2995_v21 }
 0x515   : > { %v2689_v29 = vadd.f32 1e-05, %v2657_v11  ;;  %v2612_v9 = vpop.xlane.xlu0 %2611  ;;  %7917 = vpow2.f32 %v6872_v2 }
 0x516   : > { %7919 = vrsqrt.f32 %v2690_v26  ;;  %v2660_v30 = vmul.f32 0.0625, %v2612_v9  ;;  %v2609_v39 = vpop.xlane.xlu1 %2608 }
 0x517   : > { %7921 = vrsqrt.f32 %v2689_v29  ;;  %v2659_v10 = vmul.f32 0.0625, %v2609_v39 }
 0x518   : > { %v7906_v22 = vpop.eup %7905  ;;  %v2692_v19 = vadd.f32 1e-05, %v2660_v30  ;;  %7923 = vrcp.f32 %v2996_v61 }
 0x519   : > { %v7908_v17 = vpop.eup %7907  ;;  %v2691_v8 = vadd.f32 1e-05, %v2659_v10  ;;  %v2618_v16 = vpop.xlane.xlu0 %2617  ;;  %v2750_v15 = vmul.f32 %v7906_v22, %v9831_v63  ;;  %7925 = vpow2.f32 %v6873_v3  ;;  %v13167_v22 = vld [vmem:[#allocation2_spill] sm:$0xff] }
 0x51a   : > { %7927 = vrsqrt.f32 %v2692_v19  ;;  %v2662_v45 = vmul.f32 0.0625, %v2618_v16  ;;  %v2615_v48 = vpop.xlane.xlu1 %2614  ;;  %v2749_v49 = vmul.f32 %v7908_v17, %v9837_v27  ;;  %v7910_v52 = vpop.eup %7909 }
 0x51b   : > { %7929 = vrsqrt.f32 %v2691_v8  ;;  %v2661_v57 = vmul.f32 0.0625, %v2615_v48  ;;  %v2789_v46 = vmul.f32 %v9992_v42, %v2750_v15  ;;  %v3000_v40 = vadd.f32 1.0, %v7910_v52 }
 0x51c   : > { %v7912_v54 = vpop.eup %7911  ;;  %v2694_v63 = vadd.f32 1e-05, %v2662_v45  ;;  %v2788_v41 = vmul.f32 %v9992_v42, %v2749_v49  ;;  %7931 = vrcp.f32 %v2997_v56 }
 0x51d   : > { %v7914_v21 = vpop.eup %7913  ;;  %v2693_v18 = vadd.f32 1e-05, %v2661_v57  ;;  %v2624_v27 = vpop.xlane.xlu0 %2623  ;;  %v2828_v5 = vadd.f32 %v10001_v20, %v2789_v46  ;;  %v2752_v24 = vmul.f32 %v7912_v54, %v9850_v12  ;;  %7933 = vrcp.f32 %v2998_v58  ;;  %v13168_v46 = vld [vmem:[#allocation3_spill] sm:$0xff] }
 0x51e   : > { %v10187_v59 = vpop.eup %7915  ;;  %7935 = vrsqrt.f32 %v2694_v63  ;;  %v2664_v2 = vmul.f32 0.0625, %v2624_v27  ;;  %v2621_v13 = vpop.xlane.xlu1 %2620  ;;  %v2827_v23 = vadd.f32 %v10001_v20, %v2788_v41  ;;  %v2751_v44 = vmul.f32 %v7914_v21, %v9858_v31  ;;  %v13169_v21 = vld [vmem:[#allocation4_spill] sm:$0xff] }
 0x51f   : > { %v7918_v60 = vpop.eup %7917  ;;  %7937 = vrsqrt.f32 %v2693_v18  ;;  %v2663_v28 = vmul.f32 0.0625, %v2621_v13  ;;  %v2791_v11 = vmul.f32 %v9992_v42, %v2752_v24  ;;  %v3116_v4 = vmul.f32 %v10159_v62, %v2828_v5 }
 0x520   : > { %v7920_v26 = vpop.eup %7919  ;;  %v2696_v61 = vadd.f32 1e-05, %v2664_v2  ;;  %v3115_v53 = vmul.f32 %v3083_v36, %v2827_v23  ;;  %v2790_v12 = vmul.f32 %v9992_v42, %v2751_v44  ;;  %7939 = vrcp.f32 %v2999_v55 }
 0x521   : > { %v7922_v29 = vpop.eup %7921  ;;  %v2695_v9 = vadd.f32 1e-05, %v2663_v28  ;;  %v2630_v3 = vpop.xlane.xlu0 %2629  ;;  %v2830_v30 = vadd.f32 %v10001_v20, %v2791_v11  ;;  %v2754_v31 = vmul.f32 %v7920_v26, %v9870_v32  ;;  %v3001_v8 = vadd.f32 1.0, %v7918_v60  ;;  %v13170_v26 = vld [vmem:[#allocation5_spill] sm:$0xff] }
 0x522   : > { %v10196_v39 = vpop.eup %7923  ;;  %7941 = vrsqrt.f32 %v2696_v61  ;;  %v2666_v7 = vmul.f32 0.0625, %v2630_v3  ;;  %7288 = vmatprep.mubr.msk.f32.mxu0 %vm1461_vm0, %v3115_v53  ;;  %v2627_v10 = vpop.xlane.xlu1 %2626  ;;  %v2829_v36 = vadd.f32 %v10001_v20, %v2790_v12  ;;  %v2753_v19 = vmul.f32 %v7922_v29, %v13167_v22  ;;  %v13171_v29 = vld [vmem:[#allocation6_spill] sm:$0xff]  ;;  %v13172_v22 = vld [vmem:[#allocation7_spill] sm:$0xff] }
 0x523   : > { %v7926_v56 = vpop.eup %7925  ;;  %7943 = vrsqrt.f32 %v2695_v9  ;;  %v2665_v17 = vmul.f32 0.0625, %v2627_v10  ;;  %7289 = vmatmul.mubr.msk.f32.gmra.mrb[96].mxu0 %vm1461_vm0, %v3116_v4  ;;  %v2793_v62 = vmul.f32 %v9992_v42, %v2754_v31  ;;  %v3118_v52 = vmul.f32 %v10164_v37, %v2830_v30 }
 0x524   : > { %v7928_v32 = vpop.eup %7927  ;;  %v2698_v16 = vadd.f32 1e-05, %v2666_v7  ;;  %v3117_v15 = vmul.f32 %v10167_v6, %v2829_v36  ;;  %v2792_v58 = vmul.f32 %v9992_v42, %v2753_v19  ;;  %7945 = vrcp.f32 %v3000_v40 }
 0x525   : > { %v7930_v45 = vpop.eup %7929  ;;  %v2697_v48 = vadd.f32 1e-05, %v2665_v17  ;;  %v2636_v49 = vpop.xlane.xlu0 %2635  ;;  %v2832_v57 = vadd.f32 %v10001_v20, %v2793_v62  ;;  %v2756_v54 = vmul.f32 %v7928_v32, %v13168_v46  ;;  %v3002_v24 = vadd.f32 1.0, %v7926_v56  ;;  %v13173_v17 = vld [vmem:[#allocation8_spill] sm:$0xff] }
 0x526   : > { %v7932_v63 = vpop.eup %7931  ;;  %7947 = vrsqrt.f32 %v2698_v16  ;;  %v2668_v41 = vmul.f32 0.0625, %v2636_v49  ;;  %7291 = vmatprep.mubr.msk.f32.mxu0 %vm1461_vm0, %v3117_v15  ;;  %v2633_v55 = vpop.xlane.xlu1 %2632  ;;  %v2831_v6 = vadd.f32 %v10001_v20, %v2792_v58  ;;  %v2755_v18 = vmul.f32 %v7930_v45, %v13169_v21  ;;  %v13174_v58 = vld [vmem:[#allocation9_spill] sm:$0xff] }
 0x527   : > { %v7934_v27 = vpop.eup %7933  ;;  %7949 = vrsqrt.f32 %v2697_v48  ;;  %v2667_v5 = vmul.f32 0.0625, %v2633_v55  ;;  %7292 = vmatmul.mubr.msk.f32.gmra.mrb[98].mxu0 %vm1461_vm0, %v3118_v52  ;;  %v2795_v37 = vmul.f32 %v9992_v42, %v2756_v54  ;;  %v3120_v11 = vmul.f32 %v10173_v0, %v2832_v57  ;;  %v13175_v52 = vld [vmem:[#allocation10_spill] sm:$0xff] }
 0x528   : > { %v7936_v2 = vpop.eup %7935  ;;  %v2700_v13 = vadd.f32 1e-05, %v2668_v41  ;;  %v3119_v23 = vmul.f32 %v10170_v1, %v2831_v6  ;;  %v2794_v44 = vmul.f32 %v9992_v42, %v2755_v18  ;;  %7951 = vrcp.f32 %v3001_v8  ;;  %v13176_v18 = vld [vmem:[#allocation11_spill] sm:$0xff] }
 0x529   : > { %v7938_v60 = vpop.eup %7937  ;;  %v2699_v28 = vadd.f32 1e-05, %v2667_v5  ;;  %v2834_v40 = vadd.f32 %v10001_v20, %v2795_v37  ;;  %v2758_v61 = vmul.f32 %v7936_v2, %v13170_v26  ;;  %v3091_v30 = vmul.f32 %v10187_v59, %v10128_v25 }
 0x52a   : > { %v7940_v53 = vpop.eup %7939  ;;  %7953 = vrsqrt.f32 %v2700_v13  ;;  %7294 = vmatprep.mubr.msk.f32.mxu0 %vm1461_vm0, %v3119_v23  ;;  %v2833_v12 = vadd.f32 %v10001_v20, %v2794_v44  ;;  %v2757_v9 = vmul.f32 %v7938_v60, %v13171_v29  ;;  %v3092_v36 = vmul.f32 %v10196_v39, %v10132_v34 }
 0x52b   : > { %7955 = vrsqrt.f32 %v2699_v28  ;;  %7295 = vmatmul.mubr.msk.f32.gmra.mrb[100].mxu0 %vm1461_vm0, %v3120_v11  ;;  %v2797_v1 = vmul.f32 %v9992_v42, %v2758_v61  ;;  %v3122_v7 = vmul.f32 %v10178_v47, %v2834_v40  ;;  %v3093_v32 = vmul.f32 %v7932_v63, %v10136_v33 }
 0x52c   : > { %v7942_v3 = vpop.eup %7941  ;;  %v3121_v0 = vmul.f32 %v10182_v43, %v2833_v12  ;;  %v2796_v4 = vmul.f32 %v9992_v42, %v2757_v9  ;;  %7957 = vrcp.f32 %v3002_v24  ;;  %v3094_v15 = vmul.f32 %v7934_v27, %v10139_v35  ;;  %v13177_v24 = vld [vmem:[#allocation12_spill] sm:$0xff] }
 0x52d   : > { %v7944_v31 = vpop.eup %7943  ;;  %v2836_v10 = vadd.f32 %v10001_v20, %v2797_v1  ;;  %v2760_v19 = vmul.f32 %v7942_v3, %v13172_v22  ;;  %v3095_v41 = vmul.f32 %v7940_v53, %v10142_v50  ;;  %v13178_v3 = vmov 0.0|0.0  }
 0x52e   : > { %v7946_v56 = vpop.eup %7945  ;;  %7297 = vmatprep.mubr.msk.f32.mxu0 %vm1461_vm0, %v3121_v0  ;;  %v2835_v43 = vadd.f32 %v10001_v20, %v2796_v4  ;;  %v2759_v62 = vmul.f32 %v7944_v31, %v13173_v17 }
 0x52f   : > { %7298 = vmatmul.mubr.msk.f32.gmra.mrb[102].mxu0 %vm1461_vm0, %v3122_v7  ;;  %v2799_v25 = vmul.f32 %v9992_v42, %v2760_v19  ;;  %v3124_v39 = vmul.f32 %v3092_v36, %v2836_v10  ;;  %v3096_v21 = vmul.f32 %v7946_v56, %v10148_v14 }
 0x530   : > { %v7948_v59 = vpop.eup %7947  ;;  %v3123_v47 = vmul.f32 %v3091_v30, %v2835_v43  ;;  %v2798_v8 = vmul.f32 %v9992_v42, %v2759_v62 }
 0x531   : > { %v7950_v34 = vpop.eup %7949  ;;  %v2838_v16 = vadd.f32 %v10001_v20, %v2799_v25  ;;  %v2762_v45 = vmul.f32 %v7948_v59, %v13174_v58 }
 0x532   : > { %v7952_v48 = vpop.eup %7951  ;;  %7300 = vmatprep.mubr.msk.f32.mxu0 %vm1461_vm0, %v3123_v47  ;;  %v2837_v49 = vadd.f32 %v10001_v20, %v2798_v8  ;;  %v2761_v57 = vmul.f32 %v7950_v34, %v13175_v52 }
 0x533   : > { %7301 = vmatmul.mubr.msk.f32.gmra.mrb[104].mxu0 %vm1461_vm0, %v3124_v39  ;;  %v2801_v46 = vmul.f32 %v9992_v42, %v2762_v45  ;;  %v3126_v55 = vmul.f32 %v3094_v15, %v2838_v16  ;;  %v3097_v44 = vmul.f32 %v7952_v48, %v10152_v38  ;;  %v3462_v16 = vld [vmem:[%s13008_s10 + $0x8] sm:$0xff] }
 0x534   : > { %v7954_v33 = vpop.eup %7953  ;;  %v3125_v54 = vmul.f32 %v3093_v32, %v2837_v49  ;;  %v2800_v63 = vmul.f32 %v9992_v42, %v2761_v57  ;;  %3589 = vmatprep.mubr.f32.mxu1 %v3462_v16 }
 0x535   : > { %v7956_v35 = vpop.eup %7955  ;;  %v2840_v6 = vadd.f32 %v10001_v20, %v2801_v46  ;;  %v2764_v27 = vmul.f32 %v7954_v33, %v13176_v18 }
 0x536   : > { %v7958_v5 = vpop.eup %7957  ;;  %7303 = vmatprep.mubr.msk.f32.mxu0 %vm1461_vm0, %v3125_v54  ;;  %v2839_v37 = vadd.f32 %v10001_v20, %v2800_v63  ;;  %v2763_v2 = vmul.f32 %v7956_v35, %v13177_v24 }
 0x537   : > { %7304 = vmatmul.mubr.msk.f32.gmra.mrb[106].mxu0 %vm1461_vm0, %v3126_v55  ;;  %v2803_v13 = vmul.f32 %v9992_v42, %v2764_v27  ;;  %v3128_v60 = vmul.f32 %v3096_v21, %v2840_v6  ;;  %v3098_v28 = vmul.f32 %v7958_v5, %v10156_v51 }
 0x538   : > { %v3127_v50 = vmul.f32 %v3095_v41, %v2839_v37  ;;  %v2802_v23 = vmul.f32 %v9992_v42, %v2763_v2  ;;  %v10269_v42 = vld [vmem:[%s13012_s14] ss:$0 sm:$0xff] }
 0x539   : > { %v2842_v14 = vadd.f32 %v10001_v20, %v2803_v13 }
 0x53a   : > { %7306 = vmatprep.mubr.msk.f32.mxu0 %vm1461_vm0, %v3127_v50  ;;  %v2841_v11 = vadd.f32 %v10001_v20, %v2802_v23 }
 0x53b   : > { %7307 = vmatmul.mubr.msk.f32.gmra.mrb[108].mxu0 %vm1461_vm0, %v3128_v60  ;;  %v3130_v26 = vmul.f32 %v3098_v28, %v2842_v14 }
 0x53c   : > { %v3129_v40 = vmul.f32 %v3097_v44, %v2841_v11 }
 0x53e   : > { %7309 = vmatprep.mubr.msk.f32.mxu0 %vm1461_vm0, %v3129_v40 }
 0x53f   : > { %7310 = vmatmul.mubr.msk.f32.gmra.mrb[110].mxu0 %vm1461_vm0, %v3130_v26 }
 0x540   : > { %3878 = vmatprep.mubr.f32.mxu0 %v3462_v16 }
 0x581   : > { %v7266_v38 = vpop.f32.mrb[80].mxu0 }
 0x582   : > { %v10272_v51 = vadd.f32 %v7266_v38, %v10269_v42  ;;  %v3302_v61 = vpop.f32.mrb[81].mxu0 }
 0x583   : > { %v10275_v20 = vadd.f32 %v10269_v42, %v3302_v61 }
 0x585   : > { %v7537_v53 = vpack.c.bf16 %v10272_v51, %v10275_v20  ;;  %v7269_v12 = vpop.f32.mrb[82].mxu0 }
 0x586   : > { %v10280_v29 = vadd.f32 %v7269_v12, %v10269_v42  ;;  %v3312_v9 = vpop.f32.mrb[83].mxu0 }
 0x587   : > { %v10283_v1 = vadd.f32 %v10269_v42, %v3312_v9  ;;  %7538 = vmatpush1.bf16.msra.mxu1 %v7537_v53 }
 0x588   : > { %7539 = vmatprep.subr.bf16.mxu1 %v13178_v3 }
 0x589   : > { %v7540_v0 = vpack.c.bf16 %v10280_v29, %v10283_v1  ;;  %v7272_v4 = vpop.f32.mrb[84].mxu0 }
 0x58a   : > { %v10289_v30 = vadd.f32 %v7272_v4, %v10269_v42  ;;  %v3322_v31 = vpop.f32.mrb[85].mxu0 }
 0x58b   : > { %v10292_v7 = vadd.f32 %v10269_v42, %v3322_v31  ;;  %7541 = vmatpush1.bf16.msra.mxu1 %v7540_v0 }
 0x58c   : > { %7542 = vmatprep.subr.bf16.mxu1 %v13178_v3 }
 0x58d   : > { %v7543_v10 = vpack.c.bf16 %v10289_v30, %v10292_v7  ;;  %v7275_v36 = vpop.f32.mrb[86].mxu0 }
 0x58e   : > { %v10298_v22 = vadd.f32 %v7275_v36, %v10269_v42  ;;  %v3332_v19 = vpop.f32.mrb[87].mxu0 }
 0x58f   : > { %v10301_v56 = vadd.f32 %v10269_v42, %v3332_v19  ;;  %7544 = vmatpush1.bf16.msra.mxu1 %v7543_v10 }
 0x590   : > { %7545 = vmatprep.subr.bf16.mxu1 %v13178_v3 }
 0x591   : > { %v7546_v43 = vpack.c.bf16 %v10298_v22, %v10301_v56  ;;  %v7278_v17 = vpop.f32.mrb[88].mxu0 }
 0x592   : > { %v10307_v62 = vadd.f32 %v7278_v17, %v10269_v42  ;;  %v3342_v25 = vpop.f32.mrb[89].mxu0 }
 0x593   : > { %v10310_v59 = vadd.f32 %v10269_v42, %v3342_v25  ;;  %7547 = vmatpush1.bf16.msra.mxu1 %v7546_v43 }
 0x594   : > { %7548 = vmatprep.subr.bf16.mxu1 %v13178_v3 }
 0x595   : > { %v7549_v47 = vpack.c.bf16 %v10307_v62, %v10310_v59  ;;  %v7281_v8 = vpop.f32.mrb[90].mxu0 }
 0x596   : > { %v10316_v32 = vadd.f32 %v7281_v8, %v10269_v42  ;;  %v3352_v34 = vpop.f32.mrb[91].mxu0 }
 0x597   : > { %v10319_v39 = vadd.f32 %v10269_v42, %v3352_v34  ;;  %7550 = vmatpush1.bf16.msra.mxu1 %v7549_v47 }
 0x598   : > { %7551 = vmatprep.subr.bf16.mxu1 %v13178_v3 }
 0x599   : > { %v7552_v15 = vpack.c.bf16 %v10316_v32, %v10319_v39  ;;  %v7284_v58 = vpop.f32.mrb[92].mxu0 }
 0x59a   : > { %v10328_v45 = vadd.f32 %v7284_v58, %v10269_v42  ;;  %v3362_v48 = vpop.f32.mrb[93].mxu0  ;;  %v4103_v58 = vld [vmem:[%s13013_s15] sm:$0xff] }
 0x59b   : > { %v10331_v49 = vadd.f32 %v10269_v42, %v3362_v48  ;;  %7553 = vmatpush1.bf16.msra.mxu1 %v7552_v15  ;;  %v3461_v48 = vld [vmem:[%s13008_s10] sm:$0xff]  ;;  %4137 = vperm.xlu1 %7765, %v4103_v58  }
 0x59c   : > { %7554 = vmatprep.subr.bf16.mxu1 %v13178_v3  ;;  %v3481_v58 = vld [vmem:[%s13008_s10 + $0xa0] sm:$0xff] }
 0x59d   : > { %v7555_v52 = vpack.c.bf16 %v10328_v45, %v10331_v49  ;;  %v7287_v57 = vpop.f32.mrb[94].mxu0 }
 0x59e   : > { %v10337_v46 = vadd.f32 %v7287_v57, %v10269_v42  ;;  %v3372_v33 = vpop.f32.mrb[95].mxu0  ;;  %v3463_v57 = vld [vmem:[%s13008_s10 + $0x10] sm:$0xff] }
 0x59f   : > { %v10340_v54 = vadd.f32 %v10269_v42, %v3372_v33  ;;  %7556 = vmatpush1.bf16.msra.mxu1 %v7555_v52  ;;  %v4327_v52 = vld [vmem:[%s13014_s16] sm:$0xff]  ;;  %v3466_v33 = vld [vmem:[%s13008_s10 + $0x28] sm:$0xff] }
 0x5a0   : > { %7557 = vmatprep.subr.bf16.mxu1 %v13178_v3  ;;  %4361 = vperm.xlu1 %7765, %v4327_v52   ;;  %v3483_v52 = vld [vmem:[%s13008_s10 + $0xb0] sm:$0xff] }
 0x5a1   : > { %v7558_v63 = vpack.c.bf16 %v10337_v46, %v10340_v54 }
 0x5a3   : > { %7559 = vmatpush1.bf16.msra.mxu1 %v7558_v63  ;;  %v4328_v63 = vld [vmem:[%s13014_s16 + $0x8] sm:$0xff] }
 0x5a4   : > { %7560 = vmatprep.subr.bf16.mxu1 %v13178_v3  ;;  %4366 = vperm.xlu1 %7765, %v4328_v63   ;;  %v3485_v63 = vld [vmem:[%s13008_s10 + $0xc0] sm:$0xff] }
 0x5f6   : > { %v7290_v41 = vpop.f32.mrb[96].mxu0 }
 0x5f7   : > { %v10347_v35 = vadd.f32 %v7290_v41, %v10269_v42  ;;  %v3382_v55 = vpop.f32.mrb[97].mxu0  ;;  %v3465_v41 = vld [vmem:[%s13008_s10 + $0x20] sm:$0xff] }
 0x5f8   : > { %v10350_v6 = vadd.f32 %v10269_v42, %v3382_v55  ;;  %v3468_v55 = vld [vmem:[%s13008_s10 + $0x38] sm:$0xff] }
 0x5fa   : > { %v7561_v21 = vpack.c.bf16 %v10347_v35, %v10350_v6  ;;  %v7293_v18 = vpop.f32.mrb[98].mxu0 }
 0x5fb   : > { %v10355_v27 = vadd.f32 %v7293_v18, %v10269_v42  ;;  %v3392_v5 = vpop.f32.mrb[99].mxu0  ;;  %v3467_v18 = vld [vmem:[%s13008_s10 + $0x30] sm:$0xff] }
 0x5fc   : > { %v10358_v37 = vadd.f32 %v10269_v42, %v3392_v5  ;;  %7562 = vmatpush1.bf16.msra.mxu1 %v7561_v21  ;;  %v4105_v21 = vld [vmem:[%s13013_s15 + $0x10] sm:$0xff]  ;;  %v3470_v5 = vld [vmem:[%s13008_s10 + $0x48] sm:$0xff] }
 0x5fd   : > { %7563 = vmatprep.subr.bf16.mxu1 %v13178_v3  ;;  %4147 = vperm.xlu1 %7765, %v4105_v21   ;;  %v3490_v21 = vld [vmem:[%s13008_s10 + $0xe8] sm:$0xff] }
 0x5fe   : > { %v7564_v24 = vpack.c.bf16 %v10355_v27, %v10358_v37  ;;  %v7296_v2 = vpop.f32.mrb[100].mxu0 }
 0x5ff   : > { %v10364_v13 = vadd.f32 %v7296_v2, %v10269_v42  ;;  %v3402_v50 = vpop.f32.mrb[101].mxu0  ;;  %v3469_v2 = vld [vmem:[%s13008_s10 + $0x40] sm:$0xff] }
 0x600   : > { %v10367_v23 = vadd.f32 %v10269_v42, %v3402_v50  ;;  %7565 = vmatpush1.bf16.msra.mxu1 %v7564_v24  ;;  %v4106_v24 = vld [vmem:[%s13013_s15 + $0x18] sm:$0xff] }
 0x601   : > { %7566 = vmatprep.subr.bf16.mxu1 %v13178_v3  ;;  %4152 = vperm.xlu1 %7765, %v4106_v24   ;;  %v3472_v50 = vld [vmem:[%s13008_s10 + $0x58] sm:$0xff]  ;;  %v3491_v24 = vld [vmem:[%s13008_s10 + $0xf0] sm:$0xff] }
 0x602   : > { %v7567_v44 = vpack.c.bf16 %v10364_v13, %v10367_v23  ;;  %v7299_v60 = vpop.f32.mrb[102].mxu0 }
 0x603   : > { %v10373_v14 = vadd.f32 %v7299_v60, %v10269_v42  ;;  %v3412_v28 = vpop.f32.mrb[103].mxu0  ;;  %v3471_v60 = vld [vmem:[%s13008_s10 + $0x50] sm:$0xff] }
 0x604   : > { %v10376_v11 = vadd.f32 %v10269_v42, %v3412_v28  ;;  %7568 = vmatpush1.bf16.msra.mxu1 %v7567_v44  ;;  %v4329_v44 = vld [vmem:[%s13014_s16 + $0x10] sm:$0xff]  ;;  %v3474_v28 = vld [vmem:[%s13008_s10 + $0x68] sm:$0xff] }
 0x605   : > { %7569 = vmatprep.subr.bf16.mxu1 %v13178_v3  ;;  %4371 = vperm.xlu1 %7765, %v4329_v44   ;;  %v3496_v44 = vld [vmem:[%s13008_s10 + $0x118] sm:$0xff] }
 0x606   : > { %v7570_v40 = vpack.c.bf16 %v10373_v14, %v10376_v11  ;;  %v7302_v26 = vpop.f32.mrb[104].mxu0 }
 0x607   : > { %v10382_v38 = vadd.f32 %v7302_v26, %v10269_v42  ;;  %v3422_v61 = vpop.f32.mrb[105].mxu0  ;;  %v3473_v26 = vld [vmem:[%s13008_s10 + $0x60] sm:$0xff] }
 0x608   : > { %v10385_v53 = vadd.f32 %v10269_v42, %v3422_v61  ;;  %7571 = vmatpush1.bf16.msra.mxu1 %v7570_v40  ;;  %v4330_v40 = vld [vmem:[%s13014_s16 + $0x18] sm:$0xff] }
 0x609   : > { %7572 = vmatprep.subr.bf16.mxu1 %v13178_v3  ;;  %4376 = vperm.xlu1 %7765, %v4330_v40   ;;  %v3476_v61 = vld [vmem:[%s13008_s10 + $0x78] sm:$0xff]  ;;  %v3497_v40 = vld [vmem:[%s13008_s10 + $0x120] sm:$0xff] }
 0x60a   : > { %v7573_v12 = vpack.c.bf16 %v10382_v38, %v10385_v53  ;;  %v7305_v9 = vpop.f32.mrb[106].mxu0 }
 0x60b   : > { %v10391_v0 = vadd.f32 %v7305_v9, %v10269_v42  ;;  %v3432_v4 = vpop.f32.mrb[107].mxu0  ;;  %v3475_v9 = vld [vmem:[%s13008_s10 + $0x70] sm:$0xff] }
 0x60c   : > { %v10394_v31 = vadd.f32 %v10269_v42, %v3432_v4  ;;  %7574 = vmatpush1.bf16.msra.mxu1 %v7573_v12  ;;  %v4107_v12 = vld [vmem:[%s13013_s15 + $0x20] sm:$0xff]  ;;  %v3478_v4 = vld [vmem:[%s13008_s10 + $0x88] sm:$0xff] }
 0x60d   : > { %7575 = vmatprep.subr.bf16.mxu1 %v13178_v3  ;;  %4157 = vperm.xlu1 %7765, %v4107_v12   ;;  %v3502_v12 = vld [vmem:[%s13008_s10 + $0x148] sm:$0xff] }
 0x60e   : > { %v7576_v10 = vpack.c.bf16 %v10391_v0, %v10394_v31  ;;  %v7308_v36 = vpop.f32.mrb[108].mxu0 }
 0x60f   : > { %v10400_v19 = vadd.f32 %v7308_v36, %v10269_v42  ;;  %v3442_v43 = vpop.f32.mrb[109].mxu0  ;;  %v3477_v36 = vld [vmem:[%s13008_s10 + $0x80] sm:$0xff] }
 0x610   : > { %v10403_v17 = vadd.f32 %v10269_v42, %v3442_v43  ;;  %7577 = vmatpush1.bf16.msra.mxu1 %v7576_v10  ;;  %v4108_v10 = vld [vmem:[%s13013_s15 + $0x28] sm:$0xff]  ;;  %v3480_v43 = vld [vmem:[%s13008_s10 + $0x98] sm:$0xff] }
 0x611   : > { %7578 = vmatprep.subr.bf16.mxu1 %v13178_v3  ;;  %4162 = vperm.xlu1 %7765, %v4108_v10   ;;  %v3503_v10 = vld [vmem:[%s13008_s10 + $0x150] sm:$0xff] }
 0x612   : > { %v7579_v25 = vpack.c.bf16 %v10400_v19, %v10403_v17  ;;  %v7311_v47 = vpop.f32.mrb[110].mxu0 }
 0x613   : > { %v10409_v8 = vadd.f32 %v7311_v47, %v10269_v42  ;;  %v3452_v34 = vpop.f32.mrb[111].mxu0  ;;  %v3479_v47 = vld [vmem:[%s13008_s10 + $0x90] sm:$0xff] }
 0x614   : > { %v10412_v16 = vadd.f32 %v10269_v42, %v3452_v34  ;;  %7580 = vmatpush1.bf16.msra.mxu1 %v7579_v25  ;;  %v3464_v42 = vld [vmem:[%s13008_s10 + $0x18] sm:$0xff]  ;;  %v4332_v25 = vld [vmem:[%s13014_s16 + $0x28] sm:$0xff] }
 0x615   : > { %7581 = vmatprep.subr.bf16.mxu1 %v13178_v3  ;;  %4386 = vperm.xlu1 %7765, %v4332_v25   ;;  %v3482_v34 = vld [vmem:[%s13008_s10 + $0xa8] sm:$0xff] }
 0x616   : > { %v7582_v15 = vpack.c.bf16 %v10409_v8, %v10412_v16  ;;  %v4336_v25 = vld [vmem:[%s13014_s16 + $0x48] sm:$0xff] }
 0x618   : > { %7583 = vmatpush1.bf16.msra.mxu1 %v7582_v15  ;;  %v4110_v15 = vld [vmem:[%s13013_s15 + $0x38] sm:$0xff] }
 0x619   : > { %4172 = vperm.xlu1 %7765, %v4110_v15   ;;  %v4114_v15 = vld [vmem:[%s13013_s15 + $0x58] sm:$0xff] }
 0x61b   : > { %3590 = vmatmul.mubr.f32.vlgmr.msra.gmra.mrb[112].mxu1 %v3461_v48  ;;  %v3484_v48 = vld [vmem:[%s13008_s10 + $0xb8] sm:$0xff] }
 0x61c   : > { %3594 = vmatprep.mubr.f32.mxu1 %v3464_v42  ;;  %v4334_v42 = vld [vmem:[%s13014_s16 + $0x38] sm:$0xff] }
 0x61d   : > { %4396 = vperm.xlu1 %7765, %v4334_v42   ;;  %v4338_v42 = vld [vmem:[%s13014_s16 + $0x58] sm:$0xff] }
 0x61f   : > { %3595 = vmatmul.mubr.f32.gmra.mrb[114].mxu1 %v3463_v57  ;;  %v3486_v57 = vld [vmem:[%s13008_s10 + $0xc8] sm:$0xff] }
 0x620   : > { %3599 = vmatprep.mubr.f32.mxu1 %v3466_v33  ;;  %v4112_v33 = vld [vmem:[%s13013_s15 + $0x48] sm:$0xff] }
 0x621   : > { %4182 = vperm.xlu1 %7765, %v4112_v33   ;;  %v10621_v33 = vld [vmem:[%s13008_s10 + $0x190] sm:$0xff] }
 0x623   : > { %3600 = vmatmul.mubr.f32.gmra.mrb[116].mxu1 %v3465_v41  ;;  %v3488_v41 = vld [vmem:[%s13008_s10 + $0xd8] sm:$0xff] }
 0x624   : > { %3604 = vmatprep.mubr.f32.mxu1 %v3468_v55  ;;  %v3487_v55 = vld [vmem:[%s13008_s10 + $0xd0] sm:$0xff] }
 0x625   : > { %4406 = vperm.xlu1 %7765, %v4336_v25   ;;  %v10719_v25 = vld [vmem:[%s13008_s10 + $0x1f8] sm:$0xff] }
 0x627   : > { %3605 = vmatmul.mubr.f32.gmra.mrb[118].mxu1 %v3467_v18  ;;  %v3489_v18 = vld [vmem:[%s13008_s10 + $0xe0] sm:$0xff] }
 0x628   : > { %3609 = vmatprep.mubr.f32.mxu1 %v3470_v5  ;;  %v3492_v5 = vld [vmem:[%s13008_s10 + $0xf8] sm:$0xff] }
 0x629   : > { %4192 = vperm.xlu1 %7765, %v4114_v15   ;;  %v4122_v15 = vld [vmem:[%s13013_s15 + $0x98] sm:$0xff] }
 0x62b   : > { %3610 = vmatmul.mubr.f32.gmra.mrb[120].mxu1 %v3469_v2  ;;  %v3494_v2 = vld [vmem:[%s13008_s10 + $0x108] sm:$0xff] }
 0x62c   : > { %3614 = vmatprep.mubr.f32.mxu1 %v3472_v50  ;;  %v3493_v50 = vld [vmem:[%s13008_s10 + $0x100] sm:$0xff] }
 0x62d   : > { %4416 = vperm.xlu1 %7765, %v4338_v42   ;;  %v4115_v42 = vld [vmem:[%s13013_s15 + $0x60] sm:$0xff] }
 0x62f   : > { %3615 = vmatmul.mubr.f32.gmra.mrb[122].mxu1 %v3471_v60  ;;  %v3495_v60 = vld [vmem:[%s13008_s10 + $0x110] sm:$0xff] }
 0x630   : > { %3619 = vmatprep.mubr.f32.mxu1 %v3474_v28  ;;  %v3498_v28 = vld [vmem:[%s13008_s10 + $0x128] sm:$0xff] }
 0x633   : > { %3620 = vmatmul.mubr.f32.gmra.mrb[124].mxu1 %v3473_v26  ;;  %v3500_v26 = vld [vmem:[%s13008_s10 + $0x138] sm:$0xff] }
 0x634   : > { %3624 = vmatprep.mubr.f32.mxu1 %v3476_v61  ;;  %v3499_v61 = vld [vmem:[%s13008_s10 + $0x130] sm:$0xff] }
 0x637   : > { %3625 = vmatmul.mubr.f32.gmra.mrb[126].mxu1 %v3475_v9  ;;  %v3501_v9 = vld [vmem:[%s13008_s10 + $0x140] sm:$0xff] }
 0x638   : > { %3629 = vmatprep.mubr.f32.mxu1 %v3478_v4  ;;  %v3504_v4 = vld [vmem:[%s13008_s10 + $0x158] sm:$0xff] }
 0x63b   : > { %3630 = vmatmul.mubr.f32.gmra.mrb[128].mxu1 %v3477_v36  ;;  %v3506_v36 = vld [vmem:[%s13008_s10 + $0x168] sm:$0xff] }
 0x63c   : > { %3634 = vmatprep.mubr.f32.mxu1 %v3480_v43  ;;  %v3505_v43 = vld [vmem:[%s13008_s10 + $0x160] sm:$0xff] }
 0x63f   : > { %3635 = vmatmul.mubr.f32.gmra.mrb[130].mxu1 %v3479_v47  ;;  %v3508_v47 = vld [vmem:[%s13008_s10 + $0x178] sm:$0xff] }
 0x640   : > { %3639 = vmatprep.mubr.f32.mxu1 %v3482_v34  ;;  %v3507_v34 = vld [vmem:[%s13008_s10 + $0x170] sm:$0xff] }
 0x643   : > { %3640 = vmatmul.mubr.f32.gmra.mrb[132].mxu1 %v3481_v58  ;;  %v3510_v58 = vld [vmem:[%s13008_s10 + $0x188] sm:$0xff] }
 0x644   : > { %3644 = vmatprep.mubr.f32.mxu1 %v3484_v48  ;;  %v3509_v48 = vld [vmem:[%s13008_s10 + $0x180] sm:$0xff] }
 0x647   : > { %3645 = vmatmul.mubr.f32.gmra.mrb[134].mxu1 %v3483_v52  ;;  %v3512_v52 = vld [vmem:[%s13008_s10 + $0x198] sm:$0xff] }
 0x648   : > { %3649 = vmatprep.mubr.f32.mxu1 %v3486_v57  ;;  %v4104_v57 = vld [vmem:[%s13013_s15 + $0x8] sm:$0xff] }
 0x649   : > { %4142 = vperm.xlu0 %7766, %v4104_v57   ;;  %v4339_v57 = vld [vmem:[%s13014_s16 + $0x60] sm:$0xff] }
 0x64b   : > { %3650 = vmatmul.mubr.f32.gmra.mrb[136].mxu1 %v3485_v63  ;;  %v4116_v63 = vld [vmem:[%s13013_s15 + $0x68] sm:$0xff] }
 0x64c   : > { %3654 = vmatprep.mubr.f32.mxu1 %v3488_v41  ;;  %v10629_v41 = vld [vmem:[%s13008_s10 + $0x1a8] sm:$0xff]  ;;  %4202 = vperm.xlu1 %7765, %v4116_v63  }
 0x64d   : > { %v4348_v63 = vld [vmem:[%s13014_s16 + $0xa8] sm:$0xff] }
 0x64f   : > { %3655 = vmatmul.mubr.f32.gmra.mrb[138].mxu1 %v3487_v55  ;;  %v4331_v55 = vld [vmem:[%s13014_s16 + $0x20] sm:$0xff] }
 0x650   : > { %3659 = vmatprep.mubr.f32.mxu1 %v3490_v21  ;;  %v10639_v21 = vld [vmem:[%s13008_s10 + $0x1a0] sm:$0xff]  ;;  %4381 = vperm.xlu0 %7766, %v4331_v55   ;;  %v4117_v55 = vld [vmem:[%s13013_s15 + $0x70] sm:$0xff] }
 0x653   : > { %3660 = vmatmul.mubr.f32.gmra.mrb[140].mxu1 %v3489_v18  ;;  %v4340_v18 = vld [vmem:[%s13014_s16 + $0x68] sm:$0xff] }
 0x654   : > { %3664 = vmatprep.mubr.f32.mxu1 %v3492_v5  ;;  %v10647_v5 = vld [vmem:[%s13008_s10 + $0x1b8] sm:$0xff]  ;;  %4426 = vperm.xlu1 %7765, %v4340_v18  }
 0x655   : > { %v4126_v18 = vld [vmem:[%s13013_s15 + $0xb8] sm:$0xff] }
 0x657   : > { %3665 = vmatmul.mubr.f32.gmra.mrb[142].mxu1 %v3491_v24  ;;  %v4109_v24 = vld [vmem:[%s13013_s15 + $0x30] sm:$0xff] }
 0x658   : > { %3669 = vmatprep.mubr.f32.mxu1 %v3494_v2  ;;  %v10657_v2 = vld [vmem:[%s13008_s10 + $0x1b0] sm:$0xff]  ;;  %4167 = vperm.xlu0 %7766, %v4109_v24  }
 0x659   : > { %v4341_v24 = vld [vmem:[%s13014_s16 + $0x70] sm:$0xff] }
 0x65b   : > { %3670 = vmatmul.mubr.f32.gmra.mrb[144].mxu1 %v3493_v50  ;;  %v4118_v50 = vld [vmem:[%s13013_s15 + $0x78] sm:$0xff] }
 0x65c   : > { %3674 = vmatprep.mubr.f32.mxu1 %v3496_v44  ;;  %v10665_v44 = vld [vmem:[%s13008_s10 + $0x1c8] sm:$0xff]  ;;  %4212 = vperm.xlu1 %7765, %v4118_v50   ;;  %v4350_v50 = vld [vmem:[%s13014_s16 + $0xb8] sm:$0xff] }
 0x65f   : > { %3675 = vmatmul.mubr.f32.gmra.mrb[146].mxu1 %v3495_v60  ;;  %v4333_v60 = vld [vmem:[%s13014_s16 + $0x30] sm:$0xff] }
 0x660   : > { %3679 = vmatprep.mubr.f32.mxu1 %v3498_v28  ;;  %v10675_v28 = vld [vmem:[%s13008_s10 + $0x1c0] sm:$0xff]  ;;  %4391 = vperm.xlu0 %7766, %v4333_v60  }
 0x661   : > { %v4119_v60 = vld [vmem:[%s13013_s15 + $0x80] sm:$0xff] }
 0x663   : > { %3680 = vmatmul.mubr.f32.gmra.mrb[148].mxu1 %v3497_v40  ;;  %v4342_v40 = vld [vmem:[%s13014_s16 + $0x78] sm:$0xff] }
 0x664   : > { %3684 = vmatprep.mubr.f32.mxu1 %v3500_v26  ;;  %v10683_v26 = vld [vmem:[%s13008_s10 + $0x1d8] sm:$0xff]  ;;  %4436 = vperm.xlu1 %7765, %v4342_v40   ;;  %v4128_v40 = vld [vmem:[%s13013_s15 + $0xc8] sm:$0xff] }
 0x667   : > { %3685 = vmatmul.mubr.f32.gmra.mrb[150].mxu1 %v3499_v61  ;;  %v4111_v61 = vld [vmem:[%s13013_s15 + $0x40] sm:$0xff] }
 0x668   : > { %3689 = vmatprep.mubr.f32.mxu1 %v3502_v12  ;;  %v10693_v12 = vld [vmem:[%s13008_s10 + $0x1d0] sm:$0xff]  ;;  %4177 = vperm.xlu0 %7766, %v4111_v61   ;;  %v4343_v61 = vld [vmem:[%s13014_s16 + $0x80] sm:$0xff] }
 0x66b   : > { %3690 = vmatmul.mubr.f32.gmra.mrb[152].mxu1 %v3501_v9  ;;  %v4120_v9 = vld [vmem:[%s13013_s15 + $0x88] sm:$0xff] }
 0x66c   : > { %3694 = vmatprep.mubr.f32.mxu1 %v3504_v4  ;;  %v10701_v4 = vld [vmem:[%s13008_s10 + $0x1e8] sm:$0xff]  ;;  %4222 = vperm.xlu1 %7765, %v4120_v9  }
 0x66d   : > { %v4352_v9 = vld [vmem:[%s13014_s16 + $0xc8] sm:$0xff] }
 0x66f   : > { %3695 = vmatmul.mubr.f32.gmra.mrb[154].mxu1 %v3503_v10  ;;  %v4335_v10 = vld [vmem:[%s13014_s16 + $0x40] sm:$0xff] }
 0x670   : > { %3699 = vmatprep.mubr.f32.mxu1 %v3506_v36  ;;  %v10711_v36 = vld [vmem:[%s13008_s10 + $0x1e0] sm:$0xff]  ;;  %4401 = vperm.xlu0 %7766, %v4335_v10   ;;  %v4121_v10 = vld [vmem:[%s13013_s15 + $0x90] sm:$0xff] }
 0x673   : > { %3700 = vmatmul.mubr.f32.gmra.mrb[156].mxu1 %v3505_v43  ;;  %v4344_v43 = vld [vmem:[%s13014_s16 + $0x88] sm:$0xff] }
 0x674   : > { %3704 = vmatprep.mubr.f32.mxu1 %v3508_v47  ;;  %4446 = vperm.xlu1 %7765, %v4344_v43   ;;  %v4113_v47 = vld [vmem:[%s13013_s15 + $0x50] sm:$0xff]  ;;  %v4130_v43 = vld [vmem:[%s13013_s15 + $0xd8] sm:$0xff] }
 0x675   : > { %4187 = vperm.xlu0 %7766, %v4113_v47   ;;  %v4345_v47 = vld [vmem:[%s13014_s16 + $0x90] sm:$0xff] }
 0x677   : > { %3705 = vmatmul.mubr.f32.gmra.mrb[158].mxu1 %v3507_v34  ;;  %v10729_v34 = vld [vmem:[%s13008_s10 + $0x1f0] sm:$0xff] }
 0x678   : > { %3709 = vmatprep.mubr.f32.mxu1 %v3510_v58  ;;  %4232 = vperm.xlu1 %7765, %v4122_v15   ;;  %v4337_v58 = vld [vmem:[%s13014_s16 + $0x50] sm:$0xff]  ;;  %v4354_v15 = vld [vmem:[%s13014_s16 + $0xd8] sm:$0xff] }
 0x679   : > { %4411 = vperm.xlu0 %7766, %v4337_v58   ;;  %v4123_v58 = vld [vmem:[%s13013_s15 + $0xa0] sm:$0xff] }
 0x67b   : > { %3710 = vmatmul.mubr.f32.gmra.mrb[160].mxu1 %v3509_v48  ;;  %v4346_v48 = vld [vmem:[%s13014_s16 + $0x98] sm:$0xff] }
 0x67c   : > { %3714 = vmatprep.mubr.f32.mxu1 %v3512_v52  ;;  %4456 = vperm.xlu1 %7765, %v4346_v48   ;;  %v4124_v52 = vld [vmem:[%s13013_s15 + $0xa8] sm:$0xff] }
 0x67d   : > { %4197 = vperm.xlu0 %7766, %v4115_v42   ;;  %v4132_v48 = vld [vmem:[%s13013_s15 + $0xe8] sm:$0xff]  ;;  %v4347_v42 = vld [vmem:[%s13014_s16 + $0xa0] sm:$0xff] }
 0x67f   : > { %3715 = vmatmul.mubr.f32.gmra.mrb[162].mxu1 %v10621_v33 }
 0x680   : > { %3719 = vmatprep.mubr.f32.mxu1 %v10629_v41  ;;  %4242 = vperm.xlu1 %7765, %v4124_v52   ;;  %v4356_v52 = vld [vmem:[%s13014_s16 + $0xe8] sm:$0xff] }
 0x681   : > { %4421 = vperm.xlu0 %7766, %v4339_v57   ;;  %v4125_v57 = vld [vmem:[%s13013_s15 + $0xb0] sm:$0xff] }
 0x683   : > { %3720 = vmatmul.mubr.f32.gmra.mrb[164].mxu1 %v10639_v21 }
 0x684   : > { %3724 = vmatprep.mubr.f32.mxu1 %v10647_v5  ;;  %4466 = vperm.xlu1 %7765, %v4348_v63   ;;  %v4134_v63 = vld [vmem:[%s13013_s15 + $0xf8] sm:$0xff] }
 0x685   : > { %4207 = vperm.xlu0 %7766, %v4117_v55   ;;  %v4349_v55 = vld [vmem:[%s13014_s16 + $0xb0] sm:$0xff] }
 0x687   : > { %3725 = vmatmul.mubr.f32.gmra.mrb[166].mxu1 %v10657_v2 }
 0x688   : > { %3729 = vmatprep.mubr.f32.mxu1 %v10665_v44  ;;  %4252 = vperm.xlu1 %7765, %v4126_v18   ;;  %v4358_v18 = vld [vmem:[%s13014_s16 + $0xf8] sm:$0xff] }
 0x689   : > { %4431 = vperm.xlu0 %7766, %v4341_v24   ;;  %v4127_v24 = vld [vmem:[%s13013_s15 + $0xc0] sm:$0xff] }
 0x68b   : > { %3730 = vmatmul.mubr.f32.gmra.mrb[168].mxu1 %v10675_v28 }
 0x68c   : > { %3734 = vmatprep.mubr.f32.mxu1 %v10683_v26  ;;  %4476 = vperm.xlu1 %7765, %v4350_v50   ;;  %v6149_v50 = vld [vmem:[%s13019_s21 + $0x8] sm:$0xff] }
 0x68d   : > { %4217 = vperm.xlu0 %7766, %v4119_v60   ;;  %v4351_v60 = vld [vmem:[%s13014_s16 + $0xc0] sm:$0xff] }
 0x68f   : > { %3735 = vmatmul.mubr.f32.gmra.mrb[170].mxu1 %v10693_v12 }
 0x690   : > { %3739 = vmatprep.mubr.f32.mxu1 %v10701_v4  ;;  %4262 = vperm.xlu1 %7765, %v4128_v40   ;;  %v6151_v40 = vld [vmem:[%s13019_s21 + $0x18] sm:$0xff] }
 0x691   : > { %4441 = vperm.xlu0 %7766, %v4343_v61   ;;  %v4129_v61 = vld [vmem:[%s13013_s15 + $0xd0] sm:$0xff] }
 0x693   : > { %3740 = vmatmul.mubr.f32.gmra.mrb[172].mxu1 %v10711_v36 }
 0x694   : > { %3744 = vmatprep.mubr.f32.mxu1 %v10719_v25  ;;  %4486 = vperm.xlu1 %7765, %v4352_v9   ;;  %v6153_v9 = vld [vmem:[%s13019_s21 + $0x28] sm:$0xff] }
 0x695   : > { %4227 = vperm.xlu0 %7766, %v4121_v10   ;;  %v4353_v10 = vld [vmem:[%s13014_s16 + $0xd0] sm:$0xff] }
 0x697   : > { %3745 = vmatmul.mubr.f32.gmra.mrb[174].mxu1 %v10729_v34 }
 0x698   : > { %4272 = vperm.xlu1 %7765, %v4130_v43   ;;  %v6155_v43 = vld [vmem:[%s13019_s21 + $0x38] sm:$0xff] }
 0x699   : > { %4451 = vperm.xlu0 %7766, %v4345_v47   ;;  %v4131_v47 = vld [vmem:[%s13013_s15 + $0xe0] sm:$0xff] }
 0x69c   : > { %4496 = vperm.xlu1 %7765, %v4354_v15   ;;  %v6157_v15 = vld [vmem:[%s13019_s21 + $0x48] sm:$0xff] }
 0x69d   : > { %4237 = vperm.xlu0 %7766, %v4123_v58   ;;  %v10843_v58 = vpop.permute.xlu1 %4137 }
 0x6a0   : > { %4282 = vperm.xlu1 %7765, %v4132_v48   ;;  %v4355_v48 = vld [vmem:[%s13014_s16 + $0xe0] sm:$0xff] }
 0x6a1   : > { %4461 = vperm.xlu0 %7766, %v4347_v42   ;;  %v6159_v42 = vld [vmem:[%s13019_s21 + $0x58] sm:$0xff] }
 0x6a4   : > { %4506 = vperm.xlu1 %7765, %v4356_v52   ;;  %v10851_v52 = vpop.permute.xlu1 %4361 }
 0x6a5   : > { %4247 = vperm.xlu0 %7766, %v4125_v57   ;;  %v4133_v57 = vld [vmem:[%s13013_s15 + $0xf0] sm:$0xff] }
 0x6a8   : > { %4292 = vperm.xlu1 %7765, %v4134_v63   ;;  %v6161_v63 = vld [vmem:[%s13019_s21 + $0x68] sm:$0xff] }
 0x6a9   : > { %4471 = vperm.xlu0 %7766, %v4349_v55   ;;  %v4357_v55 = vld [vmem:[%s13014_s16 + $0xf0] sm:$0xff] }
 0x6ac   : > { %4516 = vperm.xlu1 %7765, %v4358_v18   ;;  %v6163_v18 = vld [vmem:[%s13019_s21 + $0x78] sm:$0xff] }
 0x6ad   : > { %4257 = vperm.xlu0 %7766, %v4127_v24   ;;  %v10865_v24 = vpop.permute.xlu1 %4366 }
 0x6b0   : > { %6187 = vperm.xlu1 %7765, %v6149_v50   ;;  %v6148_v50 = vld [vmem:[%s13019_s21] sm:$0xff] }
 0x6b1   : > { %4481 = vperm.xlu0 %7766, %v4351_v60   ;;  %v6165_v60 = vld [vmem:[%s13019_s21 + $0x88] sm:$0xff] }
 0x6b4   : > { %6197 = vperm.xlu1 %7765, %v6151_v40  }
 0x6b5   : > { %4267 = vperm.xlu0 %7766, %v4129_v61  }
 0x6b8   : > { %6207 = vperm.xlu1 %7765, %v6153_v9   ;;  %v10873_v9 = vpop.permute.xlu1 %4147 }
 0x6b9   : > { %4491 = vperm.xlu0 %7766, %v4353_v10   ;;  %v6150_v10 = vld [vmem:[%s13019_s21 + $0x10] sm:$0xff] }
 0x6bc   : > { %6217 = vperm.xlu1 %7765, %v6155_v43   ;;  %v6167_v43 = vld [vmem:[%s13019_s21 + $0x98] sm:$0xff] }
 0x6bd   : > { %4277 = vperm.xlu0 %7766, %v4131_v47  }
 0x6c0   : > { %6227 = vperm.xlu1 %7765, %v6157_v15   ;;  %v6152_v15 = vld [vmem:[%s13019_s21 + $0x20] sm:$0xff] }
 0x6c1   : > { %4501 = vperm.xlu0 %7766, %v4355_v48  }
 0x6c4   : > { %6237 = vperm.xlu1 %7765, %v6159_v42  }
 0x6c5   : > { %4287 = vperm.xlu0 %7766, %v4133_v57  }
 0x6c8   : > { %6247 = vperm.xlu1 %7765, %v6161_v63   ;;  %v6169_v63 = vld [vmem:[%s13019_s21 + $0xa8] sm:$0xff] }
 0x6c9   : > { %4511 = vperm.xlu0 %7766, %v4357_v55  }
 0x6cc   : > { %6257 = vperm.xlu1 %7765, %v6163_v18   ;;  %v10897_v18 = vpop.permute.xlu1 %4152 }
 0x6cd   : > { %6182 = vperm.xlu0 %7766, %v6148_v50  }
 0x6d0   : > { %6267 = vperm.xlu1 %7765, %v6165_v60  }
 0x6d1   : > { %6192 = vperm.xlu0 %7766, %v6150_v10  }
 0x6d4   : > { %6277 = vperm.xlu1 %7765, %v6167_v43   ;;  %v6156_v43 = vld [vmem:[%s13019_s21 + $0x40] sm:$0xff] }
 0x6d5   : > { %6202 = vperm.xlu0 %7766, %v6152_v15  }
 0x6d8   : > { %6287 = vperm.xlu1 %7765, %v6169_v63   ;;  %v10915_v63 = vpop.permute.xlu1 %4371 }
 0x6ee   : > { %v3591_v40 = vpop.f32.mrb[112].mxu1 }
 0x6ef   : > { %v3593_v61 = vpop.f32.mrb[113].mxu1  ;;  %v10882_v47 = vsub.f32 %v10275_v20, %v3591_v40 }
 0x6f0   : > { %v6171_v61 = vld [vmem:[%s13019_s21 + $0xb8] sm:$0xff] }
 0x6f1   : > { %v3782_v55 = vmul.f32 %v10882_v47, %v10882_v47  ;;  %6297 = vperm.xlu1 %7765, %v6171_v61  }
 0x6f2   : > { %v3596_v48 = vpop.f32.mrb[114].mxu1 }
 0x6f3   : > { %v10888_v42 = vsub.f32 %v10272_v51, %v3596_v48  ;;  %v3598_v57 = vpop.f32.mrb[115].mxu1  ;;  %v6154_v51 = vld [vmem:[%s13019_s21 + $0x30] sm:$0xff] }
 0x6f4   : > { %6212 = vperm.xlu0 %7766, %v6154_v51  }
 0x6f5   : > { %v3783_v20 = vmul.f32 %v10888_v42, %v10888_v42 }
 0x6f6   : > { %v3601_v50 = vpop.f32.mrb[116].mxu1 }
 0x6f7   : > { %v7585_v60 = vpack.c.bf16 %v3783_v20, %v3782_v55  ;;  %v3603_v40 = vpop.f32.mrb[117].mxu1  ;;  %v10906_v10 = vsub.f32 %v10283_v1, %v3601_v50  ;;  %v6173_v1 = vld [vmem:[%s13019_s21 + $0xc8] sm:$0xff] }
 0x6f8   : > { %6222 = vperm.xlu0 %7766, %v6156_v43   ;;  %6307 = vperm.xlu1 %7765, %v6173_v1   ;;  %v6175_v40 = vld [vmem:[%s13019_s21 + $0xd8] sm:$0xff]  ;;  %v10933_v43 = vpop.permute.xlu1 %4376 }
 0x6f9   : > { %7586 = vmatpush1.bf16.msra.mxu0 %v7585_v60  ;;  %v3784_v55 = vmul.f32 %v10906_v10, %v10906_v10 }
 0x6fa   : > { %v3606_v15 = vpop.f32.mrb[118].mxu1  ;;  %7587 = vmatprep.subr.bf16.mxu0 %v13178_v3 }
 0x6fb   : > { %v10913_v48 = vsub.f32 %v10280_v29, %v3606_v15  ;;  %v3608_v57 = vpop.f32.mrb[119].mxu1  ;;  %v6158_v29 = vld [vmem:[%s13019_s21 + $0x50] sm:$0xff]  ;;  %v6160_v15 = vld [vmem:[%s13019_s21 + $0x60] sm:$0xff] }
 0x6fc   : > { %6232 = vperm.xlu0 %7766, %v6158_v29   ;;  %6317 = vperm.xlu1 %7765, %v6175_v40   ;;  %v10952_v40 = vpop.permute.xlu1 %4157 }
 0x6fd   : > { %v3785_v20 = vmul.f32 %v10913_v48, %v10913_v48 }
 0x6fe   : > { %v3611_v51 = vpop.f32.mrb[120].mxu1 }
 0x6ff   : > { %v7588_v50 = vpack.c.bf16 %v3785_v20, %v3784_v55  ;;  %v3613_v60 = vpop.f32.mrb[121].mxu1  ;;  %v10931_v61 = vsub.f32 %v10292_v7, %v3611_v51  ;;  %v6177_v7 = vld [vmem:[%s13019_s21 + $0xe8] sm:$0xff]  ;;  %v6162_v51 = vld [vmem:[%s13019_s21 + $0x70] sm:$0xff] }
 0x700   : > { %6242 = vperm.xlu0 %7766, %v6160_v15   ;;  %6327 = vperm.xlu1 %7765, %v6177_v7   ;;  %v6179_v15 = vld [vmem:[%s13019_s21 + $0xf8] sm:$0xff] }
 0x701   : > { %7589 = vmatpush1.bf16.msra.mxu0 %v7588_v50  ;;  %v3786_v20 = vmul.f32 %v10931_v61, %v10931_v61 }
 0x702   : > { %v3616_v57 = vpop.f32.mrb[122].mxu1  ;;  %7590 = vmatprep.subr.bf16.mxu0 %v13178_v3 }
 0x703   : > { %v10940_v1 = vsub.f32 %v10289_v30, %v3616_v57  ;;  %v3618_v55 = vpop.f32.mrb[123].mxu1 }
 0x704   : > { %6252 = vperm.xlu0 %7766, %v6162_v51   ;;  %6337 = vperm.xlu1 %7765, %v6179_v15   ;;  %v6164_v55 = vld [vmem:[%s13019_s21 + $0x80] sm:$0xff]  ;;  %v6373_v51 = vld [vmem:[%s13020_s22 + $0x8] sm:$0xff] }
 0x705   : > { %v3787_v29 = vmul.f32 %v10940_v1, %v10940_v1 }
 0x706   : > { %v3621_v50 = vpop.f32.mrb[124].mxu1 }
 0x707   : > { %v7591_v30 = vpack.c.bf16 %v3787_v29, %v3786_v20  ;;  %v3623_v60 = vpop.f32.mrb[125].mxu1  ;;  %v10958_v57 = vsub.f32 %v10301_v56, %v3621_v50 }
 0x708   : > { %6262 = vperm.xlu0 %7766, %v6164_v55   ;;  %6411 = vperm.xlu1 %7765, %v6373_v51   ;;  %v6168_v51 = vld [vmem:[%s13019_s21 + $0xa0] sm:$0xff] }
 0x709   : > { %7592 = vmatpush1.bf16.msra.mxu0 %v7591_v30  ;;  %v3788_v56 = vmul.f32 %v10958_v57, %v10958_v57  ;;  %v10974_v30 = vpop.permute.xlu1 %4162 }
 0x70a   : > { %v3626_v7 = vpop.f32.mrb[126].mxu1  ;;  %7593 = vmatprep.subr.bf16.mxu0 %v13178_v3 }
 0x70b   : > { %v10965_v20 = vsub.f32 %v10298_v22, %v3626_v7  ;;  %v3628_v29 = vpop.f32.mrb[127].mxu1  ;;  %v6166_v22 = vld [vmem:[%s13019_s21 + $0x90] sm:$0xff]  ;;  %v6375_v7 = vld [vmem:[%s13020_s22 + $0x18] sm:$0xff] }
 0x70c   : > { %6272 = vperm.xlu0 %7766, %v6166_v22   ;;  %6421 = vperm.xlu1 %7765, %v6375_v7  }
 0x70d   : > { %13179 = vst [vmem:[#allocation2_spill] sm:$0xff] %v10965_v20  ;;  %v3789_v50 = vmul.f32 %v10965_v20, %v10965_v20  ;;  %v10992_v22 = vpop.permute.xlu1 %4386 }
 0x70e   : > { %v3631_v60 = vpop.f32.mrb[128].mxu1 }
 0x70f   : > { %v7594_v15 = vpack.c.bf16 %v3789_v50, %v3788_v56  ;;  %v3633_v55 = vpop.f32.mrb[129].mxu1  ;;  %v10983_v29 = vsub.f32 %v10310_v59, %v3631_v60  ;;  %v6377_v59 = vld [vmem:[%s13020_s22 + $0x28] sm:$0xff] }
 0x710   : > { %6282 = vperm.xlu0 %7766, %v6168_v51   ;;  %6431 = vperm.xlu1 %7765, %v6377_v59   ;;  %v6379_v51 = vld [vmem:[%s13020_s22 + $0x38] sm:$0xff]  ;;  %v6172_v59 = vld [vmem:[%s13019_s21 + $0xc0] sm:$0xff] }
 0x711   : > { %13180 = vst [vmem:[#allocation3_spill] sm:$0xff] %v10983_v29  ;;  %7595 = vmatpush1.bf16.msra.mxu0 %v7594_v15  ;;  %v3790_v60 = vmul.f32 %v10983_v29, %v10983_v29  ;;  %v11010_v29 = vpop.permute.xlu1 %4172 }
 0x712   : > { %v3636_v20 = vpop.f32.mrb[130].mxu1  ;;  %7596 = vmatprep.subr.bf16.mxu0 %v13178_v3 }
 0x713   : > { %v10990_v56 = vsub.f32 %v10307_v62, %v3636_v20  ;;  %v3638_v50 = vpop.f32.mrb[131].mxu1  ;;  %v6170_v62 = vld [vmem:[%s13019_s21 + $0xb0] sm:$0xff] }
 0x714   : > { %6292 = vperm.xlu0 %7766, %v6170_v62   ;;  %6441 = vperm.xlu1 %7765, %v6379_v51  }
 0x715   : > { %13181 = vst [vmem:[#allocation4_spill] sm:$0xff] %v10990_v56  ;;  %v3791_v15 = vmul.f32 %v10990_v56, %v10990_v56  ;;  %v11029_v51 = vpop.permute.xlu1 %4396 }
 0x716   : > { %v3641_v20 = vpop.f32.mrb[132].mxu1 }
 0x717   : > { %v7597_v55 = vpack.c.bf16 %v3791_v15, %v3790_v60  ;;  %v3643_v7 = vpop.f32.mrb[133].mxu1  ;;  %v11008_v50 = vsub.f32 %v10319_v39, %v3641_v20  ;;  %v6381_v39 = vld [vmem:[%s13020_s22 + $0x48] sm:$0xff] }
 0x718   : > { %6302 = vperm.xlu0 %7766, %v6172_v59   ;;  %6451 = vperm.xlu1 %7765, %v6381_v39   ;;  %v6383_v59 = vld [vmem:[%s13020_s22 + $0x58] sm:$0xff]  ;;  %v6176_v39 = vld [vmem:[%s13019_s21 + $0xe0] sm:$0xff] }
 0x719   : > { %7598 = vmatpush1.bf16.msra.mxu0 %v7597_v55  ;;  %v3792_v62 = vmul.f32 %v11008_v50, %v11008_v50  ;;  %v6174_v55 = vld [vmem:[%s13019_s21 + $0xd0] sm:$0xff] }
 0x71a   : > { %v3646_v56 = vpop.f32.mrb[134].mxu1  ;;  %7599 = vmatprep.subr.bf16.mxu0 %v13178_v3 }
 0x71b   : > { %v11017_v60 = vsub.f32 %v10316_v32, %v3646_v56  ;;  %v3648_v15 = vpop.f32.mrb[135].mxu1 }
 0x71c   : > { %6312 = vperm.xlu0 %7766, %v6174_v55   ;;  %6461 = vperm.xlu1 %7765, %v6383_v59   ;;  %v6385_v55 = vld [vmem:[%s13020_s22 + $0x68] sm:$0xff] }
 0x71d   : > { %13182 = vst [vmem:[#allocation5_spill] sm:$0xff] %v11017_v60  ;;  %v3793_v20 = vmul.f32 %v11017_v60, %v11017_v60 }
 0x71e   : > { %v3651_v7 = vpop.f32.mrb[136].mxu1 }
 0x71f   : > { %v7600_v32 = vpack.c.bf16 %v3793_v20, %v3792_v62  ;;  %v3653_v56 = vpop.f32.mrb[137].mxu1  ;;  %v11035_v15 = vsub.f32 %v10331_v49, %v3651_v7 }
 0x720   : > { %6322 = vperm.xlu0 %7766, %v6176_v39   ;;  %6471 = vperm.xlu1 %7765, %v6385_v55   ;;  %v6387_v39 = vld [vmem:[%s13020_s22 + $0x78] sm:$0xff]  ;;  %v6372_v55 = vld [vmem:[%s13020_s22] sm:$0xff] }
 0x721   : > { %13183 = vst [vmem:[#allocation6_spill] sm:$0xff] %v11035_v15  ;;  %7601 = vmatpush1.bf16.msra.mxu0 %v7600_v32  ;;  %v3794_v49 = vmul.f32 %v11035_v15, %v11035_v15  ;;  %v11051_v32 = vpop.permute.xlu1 %4182 }
 0x722   : > { %v3656_v60 = vpop.f32.mrb[138].mxu1  ;;  %7602 = vmatprep.subr.bf16.mxu0 %v13178_v3 }
 0x723   : > { %v11042_v62 = vsub.f32 %v10328_v45, %v3656_v60  ;;  %v3658_v20 = vpop.f32.mrb[139].mxu1  ;;  %v6178_v45 = vld [vmem:[%s13019_s21 + $0xf0] sm:$0xff] }
 0x724   : > { %6332 = vperm.xlu0 %7766, %v6178_v45   ;;  %6481 = vperm.xlu1 %7765, %v6387_v39  }
 0x725   : > { %13184 = vst [vmem:[#allocation7_spill] sm:$0xff] %v11042_v62  ;;  %v3795_v7 = vmul.f32 %v11042_v62, %v11042_v62  ;;  %v11069_v45 = vpop.permute.xlu1 %4406 }
 0x726   : > { %v3661_v60 = vpop.f32.mrb[140].mxu1 }
 0x727   : > { %v7603_v56 = vpack.c.bf16 %v3795_v7, %v3794_v49  ;;  %v3663_v59 = vpop.f32.mrb[141].mxu1  ;;  %v11060_v20 = vsub.f32 %v10340_v54, %v3661_v60  ;;  %v6389_v54 = vld [vmem:[%s13020_s22 + $0x88] sm:$0xff] }
 0x728   : > { %v11071_v59 = vpop.permute.xlu0 %4142  ;;  %6406 = vperm.xlu0 %7766, %v6372_v55   ;;  %6491 = vperm.xlu1 %7765, %v6389_v54   ;;  %v6391_v55 = vld [vmem:[%s13020_s22 + $0x98] sm:$0xff]  ;;  %v6376_v54 = vld [vmem:[%s13020_s22 + $0x20] sm:$0xff] }
 0x729   : > { %13185 = vst [vmem:[#allocation8_spill] sm:$0xff] %v11060_v20  ;;  %7604 = vmatpush1.bf16.msra.mxu0 %v7603_v56  ;;  %v3796_v60 = vmul.f32 %v11060_v20, %v11060_v20  ;;  %v11089_v20 = vpop.permute.xlu1 %4192 }
 0x72a   : > { %v3666_v62 = vpop.f32.mrb[142].mxu1  ;;  %7605 = vmatprep.subr.bf16.mxu0 %v13178_v3  ;;  %13188 = vst [vmem:[#allocation11_spill] sm:$0xff] %v11089_v20 }
 0x72b   : > { %v11067_v49 = vsub.f32 %v10337_v46, %v3666_v62  ;;  %v3668_v7 = vpop.f32.mrb[143].mxu1  ;;  %v6374_v46 = vld [vmem:[%s13020_s22 + $0x10] sm:$0xff] }
 0x72c   : > { %6416 = vperm.xlu0 %7766, %v6374_v46   ;;  %6501 = vperm.xlu1 %7765, %v6391_v55  }
 0x72d   : > { %13186 = vst [vmem:[#allocation9_spill] sm:$0xff] %v11067_v49  ;;  %v3797_v56 = vmul.f32 %v11067_v49, %v11067_v49 }
 0x72e   : > { %v3671_v62 = vpop.f32.mrb[144].mxu1 }
 0x72f   : > { %v7606_v39 = vpack.c.bf16 %v3797_v56, %v3796_v60  ;;  %v3673_v7 = vpop.f32.mrb[145].mxu1  ;;  %v11087_v15 = vsub.f32 %v10350_v6, %v3671_v62  ;;  %v11095_v60 = vpop.permute.xlu0 %4381  ;;  %v6393_v6 = vld [vmem:[%s13020_s22 + $0xa8] sm:$0xff] }
 0x730   : > { %6426 = vperm.xlu0 %7766, %v6376_v54   ;;  %6511 = vperm.xlu1 %7765, %v6393_v6   ;;  %v6378_v7 = vld [vmem:[%s13020_s22 + $0x30] sm:$0xff]  ;;  %v6380_v6 = vld [vmem:[%s13020_s22 + $0x40] sm:$0xff] }
 0x731   : > { %13187 = vst [vmem:[#allocation10_spill] sm:$0xff] %v11087_v15  ;;  %7607 = vmatpush1.bf16.msra.mxu0 %v7606_v39  ;;  %v3798_v62 = vmul.f32 %v11087_v15, %v11087_v15  ;;  %v6395_v15 = vld [vmem:[%s13020_s22 + $0xb8] sm:$0xff] }
 0x732   : > { %v3676_v49 = vpop.f32.mrb[146].mxu1  ;;  %7608 = vmatprep.subr.bf16.mxu0 %v13178_v3 }
 0x733   : > { %v11098_v56 = vsub.f32 %v10347_v35, %v3676_v49  ;;  %v3678_v46 = vpop.f32.mrb[147].mxu1  ;;  %v11112_v54 = vpop.permute.xlu0 %4167 }
 0x734   : > { %v11110_v46 = vpop.permute.xlu1 %4416  ;;  %6436 = vperm.xlu0 %7766, %v6378_v7   ;;  %6521 = vperm.xlu1 %7765, %v6395_v15  }
 0x735   : > { %13189 = vst [vmem:[#allocation12_spill] sm:$0xff] %v11098_v56  ;;  %v3799_v39 = vmul.f32 %v11098_v56, %v11098_v56 }
 0x736   : > { %v3681_v55 = vpop.f32.mrb[148].mxu1 }
 0x737   : > { %v7609_v35 = vpack.c.bf16 %v3799_v39, %v3798_v62  ;;  %v3683_v49 = vpop.f32.mrb[149].mxu1  ;;  %v11118_v20 = vsub.f32 %v10358_v37, %v3681_v55 }
 0x738   : > { %6446 = vperm.xlu0 %7766, %v6380_v6   ;;  %v6397_v49 = vld [vmem:[%s13020_s22 + $0xc8] sm:$0xff]  ;;  %v11134_v55 = vpop.permute.xlu1 %4202 }
 0x739   : > { %13190 = vst [vmem:[#allocation13_spill] sm:$0xff] %v11118_v20  ;;  %7610 = vmatpush1.bf16.msra.mxu0 %v7609_v35  ;;  %v3800_v37 = vmul.f32 %v11118_v20, %v11118_v20  ;;  %13192 = vst [vmem:[#allocation15_spill] sm:$0xff] %v11134_v55  ;;  %6531 = vperm.xlu1 %7765, %v6397_v49   ;;  %v6399_v20 = vld [vmem:[%s13020_s22 + $0xd8] sm:$0xff]  ;;  %v6384_v49 = vld [vmem:[%s13020_s22 + $0x60] sm:$0xff] }
 0x73a   : > { %v3686_v62 = vpop.f32.mrb[150].mxu1  ;;  %7611 = vmatprep.subr.bf16.mxu0 %v13178_v3 }
 0x73b   : > { %v11125_v39 = vsub.f32 %v10355_v27, %v3686_v62  ;;  %v3688_v7 = vpop.f32.mrb[151].mxu1  ;;  %v6382_v27 = vld [vmem:[%s13020_s22 + $0x50] sm:$0xff]  ;;  %v11139_v62 = vpop.permute.xlu0 %4391 }
 0x73c   : > { %6456 = vperm.xlu0 %7766, %v6382_v27   ;;  %v11154_v27 = vpop.permute.xlu1 %4426 }
 0x73d   : > { %13191 = vst [vmem:[#allocation14_spill] sm:$0xff] %v11125_v39  ;;  %v3801_v15 = vmul.f32 %v11125_v39, %v11125_v39  ;;  %6541 = vperm.xlu1 %7765, %v6399_v20   ;;  %13195 = vst [vmem:[#allocation18_spill] sm:$0xff] %v11154_v27 }
 0x73e   : > { %v3691_v35 = vpop.f32.mrb[152].mxu1 }
 0x73f   : > { %v7612_v6 = vpack.c.bf16 %v3801_v15, %v3800_v37  ;;  %v3693_v7 = vpop.f32.mrb[153].mxu1  ;;  %v11145_v56 = vsub.f32 %v10367_v23, %v3691_v35  ;;  %v6401_v23 = vld [vmem:[%s13020_s22 + $0xe8] sm:$0xff] }
 0x740   : > { %v11156_v7 = vpop.permute.xlu0 %4177  ;;  %6466 = vperm.xlu0 %7766, %v6384_v49   ;;  %v6403_v49 = vld [vmem:[%s13020_s22 + $0xf8] sm:$0xff] }
 0x741   : > { %13193 = vst [vmem:[#allocation16_spill] sm:$0xff] %v11145_v56  ;;  %7613 = vmatpush1.bf16.msra.mxu0 %v7612_v6  ;;  %v3802_v20 = vmul.f32 %v11145_v56, %v11145_v56  ;;  %6551 = vperm.xlu1 %7765, %v6401_v23   ;;  %v11174_v56 = vpop.permute.xlu1 %4212  ;;  %v6388_v23 = vld [vmem:[%s13020_s22 + $0x80] sm:$0xff] }
 0x742   : > { %v3696_v39 = vpop.f32.mrb[154].mxu1  ;;  %7614 = vmatprep.subr.bf16.mxu0 %v13178_v3  ;;  %13196 = vst [vmem:[#allocation19_spill] sm:$0xff] %v11174_v56 }
 0x743   : > { %v11152_v37 = vsub.f32 %v10364_v13, %v3696_v39  ;;  %v3698_v15 = vpop.f32.mrb[155].mxu1  ;;  %v6386_v13 = vld [vmem:[%s13020_s22 + $0x70] sm:$0xff] }
 0x744   : > { %6476 = vperm.xlu0 %7766, %v6386_v13  }
 0x745   : > { %13194 = vst [vmem:[#allocation17_spill] sm:$0xff] %v11152_v37  ;;  %v3803_v35 = vmul.f32 %v11152_v37, %v11152_v37  ;;  %6561 = vperm.xlu1 %7765, %v6403_v49  }
 0x746   : > { %v3701_v39 = vpop.f32.mrb[156].mxu1 }
 0x747   : > { %v7615_v6 = vpack.c.bf16 %v3803_v35, %v3802_v20  ;;  %v3703_v15 = vpop.f32.mrb[157].mxu1  ;;  %v11172_v27 = vsub.f32 %v10376_v11, %v3701_v39  ;;  %v11180_v20 = vpop.permute.xlu0 %4401 }
 0x748   : > { %6486 = vperm.xlu0 %7766, %v6388_v23  }
 0x749   : > { %7616 = vmatpush1.bf16.msra.mxu0 %v7615_v6  ;;  %v3804_v11 = vmul.f32 %v11172_v27, %v11172_v27  ;;  %v6390_v6 = vld [vmem:[%s13020_s22 + $0x90] sm:$0xff] }
 0x74a   : > { %v3706_v37 = vpop.f32.mrb[158].mxu1  ;;  %7617 = vmatprep.subr.bf16.mxu0 %v13178_v3 }
 0x74b   : > { %v11183_v35 = vsub.f32 %v10373_v14, %v3706_v37  ;;  %v3708_v13 = vpop.f32.mrb[159].mxu1  ;;  %v11192_v55 = vpop.permute.xlu0 %4187  ;;  %v6392_v37 = vld [vmem:[%s13020_s22 + $0xa0] sm:$0xff] }
 0x74c   : > { %6496 = vperm.xlu0 %7766, %v6390_v6  }
 0x74d   : > { %13197 = vst [vmem:[#allocation20_spill] sm:$0xff] %v11183_v35  ;;  %v3805_v39 = vmul.f32 %v11183_v35, %v11183_v35 }
 0x74e   : > { %v3711_v15 = vpop.f32.mrb[160].mxu1 }
 0x74f   : > { %v7618_v49 = vpack.c.bf16 %v3805_v39, %v3804_v11  ;;  %v3713_v56 = vpop.f32.mrb[161].mxu1  ;;  %v11195_v14 = vsub.f32 %v10385_v53, %v3711_v15  ;;  %v6394_v11 = vld [vmem:[%s13020_s22 + $0xb0] sm:$0xff]  ;;  %v11211_v6 = vpop.permute.xlu0 %4411 }
 0x750   : > { %6506 = vperm.xlu0 %7766, %v6392_v37  }
 0x751   : > { %13198 = vst [vmem:[#allocation21_spill] sm:$0xff] %v11195_v14  ;;  %7619 = vmatpush1.bf16.msra.mxu0 %v7618_v49  ;;  %v3806_v56 = vmul.f32 %v11195_v14, %v11195_v14 }
 0x752   : > { %v3716_v23 = vpop.f32.mrb[162].mxu1  ;;  %7620 = vmatprep.subr.bf16.mxu0 %v13178_v3 }
 0x753   : > { %v11202_v13 = vsub.f32 %v10382_v38, %v3716_v23  ;;  %v3718_v35 = vpop.f32.mrb[163].mxu1  ;;  %v11223_v14 = vpop.permute.xlu0 %4197 }
 0x754   : > { %6516 = vperm.xlu0 %7766, %v6394_v11   ;;  %v6396_v35 = vld [vmem:[%s13020_s22 + $0xc0] sm:$0xff] }
 0x755   : > { %13199 = vst [vmem:[#allocation22_spill] sm:$0xff] %v11202_v13  ;;  %v3807_v53 = vmul.f32 %v11202_v13, %v11202_v13 }
 0x756   : > { %v3721_v39 = vpop.f32.mrb[164].mxu1 }
 0x757   : > { %v7621_v15 = vpack.c.bf16 %v3807_v53, %v3806_v56  ;;  %v3723_v49 = vpop.f32.mrb[165].mxu1  ;;  %v11214_v38 = vsub.f32 %v10394_v31, %v3721_v39  ;;  %v6398_v53 = vld [vmem:[%s13020_s22 + $0xd0] sm:$0xff] }
 0x758   : > { %6526 = vperm.xlu0 %7766, %v6396_v35   ;;  %v11239_v35 = vpop.permute.xlu0 %4421 }
 0x759   : > { %7622 = vmatpush1.bf16.msra.mxu0 %v7621_v15  ;;  %v3808_v56 = vmul.f32 %v11214_v38, %v11214_v38 }
 0x75a   : > { %v3726_v37 = vpop.f32.mrb[166].mxu1  ;;  %7623 = vmatprep.subr.bf16.mxu0 %v13178_v3 }
 0x75b   : > { %v11221_v23 = vsub.f32 %v10391_v0, %v3726_v37  ;;  %v3728_v13 = vpop.f32.mrb[167].mxu1 }
 0x75c   : > { %6536 = vperm.xlu0 %7766, %v6398_v53   ;;  %v6400_v13 = vld [vmem:[%s13020_s22 + $0xe0] sm:$0xff] }
 0x75d   : > { %13200 = vst [vmem:[#allocation23_spill] sm:$0xff] %v11221_v23  ;;  %v3809_v31 = vmul.f32 %v11221_v23, %v11221_v23 }
 0x75e   : > { %v3731_v11 = vpop.f32.mrb[168].mxu1 }
 0x75f   : > { %v7624_v39 = vpack.c.bf16 %v3809_v31, %v3808_v56  ;;  %v3733_v15 = vpop.f32.mrb[169].mxu1  ;;  %v11233_v0 = vsub.f32 %v10403_v17, %v3731_v11  ;;  %v6402_v31 = vld [vmem:[%s13020_s22 + $0xf0] sm:$0xff] }
 0x760   : > { %6546 = vperm.xlu0 %7766, %v6400_v13   ;;  %v11251_v15 = vpop.permute.xlu0 %4207 }
 0x761   : > { %7625 = vmatpush1.bf16.msra.mxu0 %v7624_v39  ;;  %v3810_v56 = vmul.f32 %v11233_v0, %v11233_v0 }
 0x762   : > { %v3736_v49 = vpop.f32.mrb[170].mxu1  ;;  %7626 = vmatprep.subr.bf16.mxu0 %v13178_v3 }
 0x763   : > { %v11242_v37 = vsub.f32 %v10400_v19, %v3736_v49  ;;  %v3738_v23 = vpop.f32.mrb[171].mxu1 }
 0x764   : > { %6556 = vperm.xlu0 %7766, %v6402_v31   ;;  %v4616_v31 = vld [vmem:[%s13015_s17 + $0x8] sm:$0xff] }
 0x765   : > { %13201 = vst [vmem:[#allocation24_spill] sm:$0xff] %v11242_v37  ;;  %v3811_v17 = vmul.f32 %v11242_v37, %v11242_v37 }
 0x766   : > { %v3741_v53 = vpop.f32.mrb[172].mxu1 }
 0x767   : > { %v7627_v11 = vpack.c.bf16 %v3811_v17, %v3810_v56  ;;  %v3743_v39 = vpop.f32.mrb[173].mxu1  ;;  %v11254_v19 = vsub.f32 %v10412_v16, %v3741_v53  ;;  %v4615_v16 = vld [vmem:[%s13015_s17] sm:$0xff] }
 0x768   : > { %v7632_v53 = vpack.c.bf16 %v4616_v31, %v4615_v16  ;;  %v8166_v39 = vld [vmem:[%s13008_s10 + $0x28] sm:$0xff]  ;;  %v8171_v16 = vld [vmem:[%s13008_s10 + $0x40] sm:$0xff]  ;;  %v8172_v31 = vld [vmem:[%s13008_s10 + $0x58] sm:$0xff] }
 0x769   : > { %7628 = vmatpush1.bf16.msra.mxu0 %v7627_v11  ;;  %v3812_v37 = vmul.f32 %v11254_v19, %v11254_v19  ;;  %v8165_v11 = vld [vmem:[%s13008_s10 + $0x10] sm:$0xff] }
 0x76a   : > { %v3746_v23 = vpop.f32.mrb[174].mxu1  ;;  %7629 = vmatprep.subr.bf16.mxu0 %v13178_v3  ;;  %7633 = vmatprep.subr.bf16.mxu1 %v7632_v53 }
 0x76b   : > { %v11258_v13 = vsub.f32 %v10409_v8, %v3746_v23  ;;  %v3748_v49 = vpop.f32.mrb[175].mxu1  ;;  %v8163_v8 = vld [vmem:[%s13008_s10] sm:$0xff]  ;;  %7635 = vmatpush3.bf16.msra.mxu1 %v7632_v53  ;;  %v8173_v53 = vld [vmem:[%s13008_s10 + $0x50] sm:$0xff] }
 0x76c   : > { %7652 = vmatprep.subr.bf16.mxu1 %v13178_v3  ;;  %v8167_v23 = vld [vmem:[%s13008_s10 + $0x20] sm:$0xff]  ;;  %v8168_v49 = vld [vmem:[%s13008_s10 + $0x38] sm:$0xff] }
 0x76d   : > { %v3813_v56 = vmul.f32 %v11258_v13, %v11258_v13 }
 0x76f   : > { %v7630_v17 = vpack.c.bf16 %v3813_v56, %v3812_v37  ;;  %v8164_v37 = vld [vmem:[%s13008_s10 + $0x18] sm:$0xff]  ;;  %v8169_v56 = vld [vmem:[%s13008_s10 + $0x30] sm:$0xff] }
 0x771   : > { %7631 = vmatpush1.bf16.msra.mxu0 %v7630_v17  ;;  %v8170_v17 = vld [vmem:[%s13008_s10 + $0x48] sm:$0xff] }
 0x774   : > { %3879 = vmatmul.mubr.f32.vlgmr.msra.gmra.mrb[112].mxu0 %v8163_v8  ;;  %v8174_v8 = vld [vmem:[%s13008_s10 + $0x68] sm:$0xff] }
 0x775   : > { %3883 = vmatprep.mubr.f32.mxu0 %v8164_v37  ;;  %v8175_v37 = vld [vmem:[%s13008_s10 + $0x60] sm:$0xff] }
 0x778   : > { %3884 = vmatmul.mubr.f32.gmra.mrb[114].mxu0 %v8165_v11  ;;  %v8176_v11 = vld [vmem:[%s13008_s10 + $0x78] sm:$0xff] }
 0x779   : > { %3888 = vmatprep.mubr.f32.mxu0 %v8166_v39  ;;  %v8177_v39 = vld [vmem:[%s13008_s10 + $0x70] sm:$0xff] }
 0x77c   : > { %3889 = vmatmul.mubr.f32.gmra.mrb[116].mxu0 %v8167_v23  ;;  %v8178_v23 = vld [vmem:[%s13008_s10 + $0x88] sm:$0xff] }
 0x77d   : > { %3893 = vmatprep.mubr.f32.mxu0 %v8168_v49  ;;  %v8179_v49 = vld [vmem:[%s13008_s10 + $0x80] sm:$0xff] }
 0x780   : > { %3894 = vmatmul.mubr.f32.gmra.mrb[118].mxu0 %v8169_v56  ;;  %v8180_v56 = vld [vmem:[%s13008_s10 + $0x98] sm:$0xff] }
 0x781   : > { %3898 = vmatprep.mubr.f32.mxu0 %v8170_v17  ;;  %v8181_v17 = vld [vmem:[%s13008_s10 + $0x90] sm:$0xff] }
 0x784   : > { %3899 = vmatmul.mubr.f32.gmra.mrb[120].mxu0 %v8171_v16  ;;  %v8182_v16 = vld [vmem:[%s13008_s10 + $0xa8] sm:$0xff] }
 0x785   : > { %3903 = vmatprep.mubr.f32.mxu0 %v8172_v31  ;;  %v8183_v31 = vld [vmem:[%s13008_s10 + $0xa0] sm:$0xff] }
 0x788   : > { %3904 = vmatmul.mubr.f32.gmra.mrb[122].mxu0 %v8173_v53  ;;  %v8184_v53 = vld [vmem:[%s13008_s10 + $0xb8] sm:$0xff] }
 0x789   : > { %3908 = vmatprep.mubr.f32.mxu0 %v8174_v8  ;;  %v8185_v8 = vld [vmem:[%s13008_s10 + $0xb0] sm:$0xff] }
 0x78c   : > { %3909 = vmatmul.mubr.f32.gmra.mrb[124].mxu0 %v8175_v37  ;;  %v8186_v37 = vld [vmem:[%s13008_s10 + $0xc8] sm:$0xff] }
 0x78d   : > { %3913 = vmatprep.mubr.f32.mxu0 %v8176_v11  ;;  %v8187_v11 = vld [vmem:[%s13008_s10 + $0xc0] sm:$0xff] }
 0x790   : > { %3914 = vmatmul.mubr.f32.gmra.mrb[126].mxu0 %v8177_v39  ;;  %v8188_v39 = vld [vmem:[%s13008_s10 + $0xd8] sm:$0xff] }
 0x791   : > { %3918 = vmatprep.mubr.f32.mxu0 %v8178_v23  ;;  %v8189_v23 = vld [vmem:[%s13008_s10 + $0xd0] sm:$0xff] }
 0x794   : > { %3919 = vmatmul.mubr.f32.gmra.mrb[128].mxu0 %v8179_v49  ;;  %v8190_v49 = vld [vmem:[%s13008_s10 + $0xe8] sm:$0xff] }
 0x795   : > { %3923 = vmatprep.mubr.f32.mxu0 %v8180_v56  ;;  %v8191_v56 = vld [vmem:[%s13008_s10 + $0xe0] sm:$0xff] }
 0x798   : > { %3924 = vmatmul.mubr.f32.gmra.mrb[130].mxu0 %v8181_v17  ;;  %v8192_v17 = vld [vmem:[%s13008_s10 + $0xf8] sm:$0xff] }
 0x799   : > { %3928 = vmatprep.mubr.f32.mxu0 %v8182_v16  ;;  %v8193_v16 = vld [vmem:[%s13008_s10 + $0xf0] sm:$0xff] }
 0x79c   : > { %3929 = vmatmul.mubr.f32.gmra.mrb[132].mxu0 %v8183_v31  ;;  %v8194_v31 = vld [vmem:[%s13008_s10 + $0x108] sm:$0xff] }
 0x79d   : > { %3933 = vmatprep.mubr.f32.mxu0 %v8184_v53  ;;  %v8195_v53 = vld [vmem:[%s13008_s10 + $0x100] sm:$0xff] }
 0x7a0   : > { %3934 = vmatmul.mubr.f32.gmra.mrb[134].mxu0 %v8185_v8  ;;  %v8196_v8 = vld [vmem:[%s13008_s10 + $0x118] sm:$0xff] }
 0x7a1   : > { %3938 = vmatprep.mubr.f32.mxu0 %v8186_v37  ;;  %v8197_v37 = vld [vmem:[%s13008_s10 + $0x110] sm:$0xff] }
 0x7a4   : > { %3939 = vmatmul.mubr.f32.gmra.mrb[136].mxu0 %v8187_v11  ;;  %v8198_v11 = vld [vmem:[%s13008_s10 + $0x128] sm:$0xff] }
 0x7a5   : > { %3943 = vmatprep.mubr.f32.mxu0 %v8188_v39  ;;  %v8199_v39 = vld [vmem:[%s13008_s10 + $0x120] sm:$0xff] }
 0x7a8   : > { %3944 = vmatmul.mubr.f32.gmra.mrb[138].mxu0 %v8189_v23  ;;  %v8200_v23 = vld [vmem:[%s13008_s10 + $0x138] sm:$0xff] }
 0x7a9   : > { %3948 = vmatprep.mubr.f32.mxu0 %v8190_v49  ;;  %v8201_v49 = vld [vmem:[%s13008_s10 + $0x130] sm:$0xff] }
 0x7ac   : > { %3949 = vmatmul.mubr.f32.gmra.mrb[140].mxu0 %v8191_v56  ;;  %v8202_v56 = vld [vmem:[%s13008_s10 + $0x148] sm:$0xff] }
 0x7ad   : > { %3953 = vmatprep.mubr.f32.mxu0 %v8192_v17  ;;  %v8203_v17 = vld [vmem:[%s13008_s10 + $0x140] sm:$0xff] }
 0x7b0   : > { %3954 = vmatmul.mubr.f32.gmra.mrb[142].mxu0 %v8193_v16  ;;  %v8204_v16 = vld [vmem:[%s13008_s10 + $0x158] sm:$0xff] }
 0x7b1   : > { %3958 = vmatprep.mubr.f32.mxu0 %v8194_v31  ;;  %v8205_v31 = vld [vmem:[%s13008_s10 + $0x150] sm:$0xff] }
 0x7b4   : > { %3959 = vmatmul.mubr.f32.gmra.mrb[144].mxu0 %v8195_v53  ;;  %v8206_v53 = vld [vmem:[%s13008_s10 + $0x168] sm:$0xff] }
 0x7b5   : > { %3963 = vmatprep.mubr.f32.mxu0 %v8196_v8  ;;  %v8207_v8 = vld [vmem:[%s13008_s10 + $0x160] sm:$0xff] }
 0x7b8   : > { %3964 = vmatmul.mubr.f32.gmra.mrb[146].mxu0 %v8197_v37  ;;  %v8208_v37 = vld [vmem:[%s13008_s10 + $0x178] sm:$0xff] }
 0x7b9   : > { %3968 = vmatprep.mubr.f32.mxu0 %v8198_v11  ;;  %v8209_v11 = vld [vmem:[%s13008_s10 + $0x170] sm:$0xff] }
 0x7bc   : > { %3969 = vmatmul.mubr.f32.gmra.mrb[148].mxu0 %v8199_v39  ;;  %v8210_v39 = vld [vmem:[%s13008_s10 + $0x188] sm:$0xff] }
 0x7bd   : > { %3973 = vmatprep.mubr.f32.mxu0 %v8200_v23  ;;  %v8211_v23 = vld [vmem:[%s13008_s10 + $0x180] sm:$0xff] }
 0x7c0   : > { %3974 = vmatmul.mubr.f32.gmra.mrb[150].mxu0 %v8201_v49  ;;  %v8212_v49 = vld [vmem:[%s13008_s10 + $0x198] sm:$0xff] }
 0x7c1   : > { %3978 = vmatprep.mubr.f32.mxu0 %v8202_v56 }
 0x7c4   : > { %3979 = vmatmul.mubr.f32.gmra.mrb[152].mxu0 %v8203_v17 }
 0x7c5   : > { %3983 = vmatprep.mubr.f32.mxu0 %v8204_v16 }
 0x7c8   : > { %3984 = vmatmul.mubr.f32.gmra.mrb[154].mxu0 %v8205_v31 }
 0x7c9   : > { %3988 = vmatprep.mubr.f32.mxu0 %v8206_v53 }
 0x7cc   : > { %3989 = vmatmul.mubr.f32.gmra.mrb[156].mxu0 %v8207_v8 }
 0x7cd   : > { %3993 = vmatprep.mubr.f32.mxu0 %v8208_v37  ;;  %v4551_v37 = vld [vmem:[%s11439_s5] sm:$0xff] }
 0x7d0   : > { %3994 = vmatmul.mubr.f32.gmra.mrb[158].mxu0 %v8209_v11 }
 0x7d1   : > { %3998 = vmatprep.mubr.f32.mxu0 %v8210_v39 }
 0x7d4   : > { %3999 = vmatmul.mubr.f32.gmra.mrb[160].mxu0 %v8211_v23  ;;  %v5234_v23 = vld [vmem:[%s13017_s19 + $0x8] sm:$0xff] }
 0x7d5   : > { %4003 = vmatprep.mubr.f32.mxu0 %v8212_v49 }
 0x7d8   : > { %4004 = vmatmul.mubr.f32.gmra.mrb[162].mxu0 %v10621_v33 }
 0x7d9   : > { %4008 = vmatprep.mubr.f32.mxu0 %v10629_v41 }
 0x7dc   : > { %4009 = vmatmul.mubr.f32.gmra.mrb[164].mxu0 %v10639_v21 }
 0x7dd   : > { %4013 = vmatprep.mubr.f32.mxu0 %v10647_v5 }
 0x7e0   : > { %4014 = vmatmul.mubr.f32.gmra.mrb[166].mxu0 %v10657_v2 }
 0x7e1   : > { %4018 = vmatprep.mubr.f32.mxu0 %v10665_v44 }
 0x7e4   : > { %4019 = vmatmul.mubr.f32.gmra.mrb[168].mxu0 %v10675_v28 }
 0x7e5   : > { %4023 = vmatprep.mubr.f32.mxu0 %v10683_v26 }
 0x7e8   : > { %4024 = vmatmul.mubr.f32.gmra.mrb[170].mxu0 %v10693_v12 }
 0x7e9   : > { %4028 = vmatprep.mubr.f32.mxu0 %v10701_v4 }
 0x7ec   : > { %4029 = vmatmul.mubr.f32.gmra.mrb[172].mxu0 %v10711_v36 }
 0x7ed   : > { %4033 = vmatprep.mubr.f32.mxu0 %v10719_v25 }
 0x7f0   : > { %4034 = vmatmul.mubr.f32.gmra.mrb[174].mxu0 %v10729_v34 }
 0x847   : > { %v3880_v33 = vpop.f32.mrb[112].mxu0 }
 0x848   : > { %v3881_v41 = vadd.f32 1e-06, %v3880_v33  ;;  %v3882_v21 = vpop.f32.mrb[113].mxu0 }
 0x84a   : > { %7959 = vrsqrt.f32 %v3881_v41 }
 0x84b   : > { %v3885_v5 = vpop.f32.mrb[114].mxu0 }
 0x84c   : > { %v3886_v2 = vadd.f32 1e-06, %v3885_v5  ;;  %v3887_v44 = vpop.f32.mrb[115].mxu0 }
 0x84e   : > { %7961 = vrsqrt.f32 %v3886_v2 }
 0x84f   : > { %v3890_v28 = vpop.f32.mrb[116].mxu0 }
 0x850   : > { %v3891_v26 = vadd.f32 1e-06, %v3890_v28  ;;  %v3892_v12 = vpop.f32.mrb[117].mxu0  ;;  %v4552_v28 = vld [vmem:[%s11439_s5 + $0x8] sm:$0xff] }
 0x852   : > { %7963 = vrsqrt.f32 %v3891_v26 }
 0x853   : > { %v3895_v4 = vpop.f32.mrb[118].mxu0 }
 0x854   : > { %v7960_v56 = vpop.eup %7959  ;;  %v3896_v36 = vadd.f32 1e-06, %v3895_v4  ;;  %v3897_v17 = vpop.f32.mrb[119].mxu0 }
 0x855   : > { %v4071_v25 = vmul.f32 %v7960_v56, %v10882_v47  ;;  %v5233_v47 = vld [vmem:[%s13017_s19] sm:$0xff] }
 0x856   : > { %7965 = vrsqrt.f32 %v3896_v36  ;;  %v7636_v49 = vpack.c.bf16 %v5234_v23, %v5233_v47 }
 0x857   : > { %v3900_v34 = vpop.f32.mrb[120].mxu0  ;;  %v4295_v16 = vmul.f32 %v10843_v58, %v4071_v25  ;;  %v5235_v58 = vld [vmem:[%s13017_s19 + $0x10] sm:$0xff] }
 0x858   : > { %v7962_v31 = vpop.eup %7961  ;;  %v3901_v53 = vadd.f32 1e-06, %v3900_v34  ;;  %v3902_v8 = vpop.f32.mrb[121].mxu0  ;;  %7637 = vmatprep.subr.bf16.mxu0 %v7636_v49  ;;  %v4553_v34 = vld [vmem:[%s11439_s5 + $0x10] sm:$0xff] }
 0x859   : > { %v4072_v11 = vmul.f32 %v7962_v31, %v10888_v42  ;;  %v4519_v39 = vadd.f32 %v10851_v52, %v4295_v16  ;;  %v5236_v42 = vld [vmem:[%s13017_s19 + $0x18] sm:$0xff]  ;;  %7639 = vmatpush3.bf16.msra.mxu0 %v7636_v49 }
 0x85a   : > { %7967 = vrsqrt.f32 %v3901_v53  ;;  %v7640_v21 = vpack.c.bf16 %v5236_v42, %v5235_v58  ;;  %v4555_v42 = vld [vmem:[%s11439_s5 + $0x20] sm:$0xff] }
 0x85b   : > { %v4296_v52 = vmul.f32 %v11071_v59, %v4072_v11  ;;  %v3905_v33 = vpop.f32.mrb[122].mxu0  ;;  %v11458_v41 = vadd.f32 %v4551_v37, %v4519_v39  ;;  %v4554_v11 = vld [vmem:[%s11439_s5 + $0x18] sm:$0xff] }
 0x85c   : > { %v7964_v5 = vpop.eup %7963  ;;  %v3906_v2 = vadd.f32 1e-06, %v3905_v33  ;;  %v3907_v44 = vpop.f32.mrb[123].mxu0  ;;  %7641 = vmatprep.subr.bf16.mxu0 %v7640_v21 }
 0x85d   : > { %13203 = vst [vmem:[#allocation25_spill] sm:$0xff] %v11458_v41  ;;  %v4520_v26 = vadd.f32 %v10865_v24, %v4296_v52  ;;  %v4073_v12 = vmul.f32 %v7964_v5, %v10906_v10  ;;  %7316 = vmatprep.mubr.msk.f32.mxu1 %vm1461_vm0, %v11458_v41  ;;  %7643 = vmatpush3.bf16.msra.mxu0 %v7640_v21  ;;  %v4556_v44 = vld [vmem:[%s11439_s5 + $0x28] sm:$0xff]  ;;  %v12338_v41 = vld [vmem:[%s13008_s10 + $0xf0] sm:$0xff] }
 0x85e   : > { %7969 = vrsqrt.f32 %v3906_v2  ;;  %13269 = vst [vmem:[#allocation45_spill] sm:$0xff] %v12338_v41 }
 0x85f   : > { %v3910_v59 = vpop.f32.mrb[124].mxu0  ;;  %v11465_v4 = vadd.f32 %v4552_v28, %v4520_v26  ;;  %v4297_v56 = vmul.f32 %v10873_v9, %v4073_v12 }
 0x860   : > { %v7966_v36 = vpop.eup %7965  ;;  %v3911_v17 = vadd.f32 1e-06, %v3910_v59  ;;  %v3912_v25 = vpop.f32.mrb[125].mxu0 }
 0x861   : > { %13204 = vst [vmem:[#allocation26_spill] sm:$0xff] %v11465_v4  ;;  %v4074_v24 = vmul.f32 %v7966_v36, %v10913_v48  ;;  %7317 = vmatmul.mubr.msk.f32.vlgmr.msra.gmra.mrb[176].mxu1 %vm1461_vm0, %v11465_v4  ;;  %v4521_v10 = vadd.f32 %v10915_v63, %v4297_v56  ;;  %v13209_v25 = vld [vmem:[#allocation2_spill] sm:$0xff]  ;;  %v12332_v4 = vld [vmem:[%s13008_s10 + $0xf8] sm:$0xff] }
 0x862   : > { %7971 = vrsqrt.f32 %v3911_v17  ;;  %v4557_v17 = vld [vmem:[%s11439_s5 + $0x30] sm:$0xff]  ;;  %13268 = vst [vmem:[#allocation44_spill] sm:$0xff] %v12332_v4 }
 0x863   : > { %v3915_v16 = vpop.f32.mrb[126].mxu0  ;;  %v11473_v31 = vadd.f32 %v4553_v34, %v4521_v10  ;;  %v4298_v9 = vmul.f32 %v10897_v18, %v4074_v24 }
 0x864   : > { %v7968_v53 = vpop.eup %7967  ;;  %v3916_v8 = vadd.f32 1e-06, %v3915_v16  ;;  %v3917_v37 = vpop.f32.mrb[127].mxu0 }
 0x865   : > { %13205 = vst [vmem:[#allocation27_spill] sm:$0xff] %v11473_v31  ;;  %v4075_v39 = vmul.f32 %v7968_v53, %v10931_v61  ;;  %7319 = vmatprep.mubr.msk.f32.mxu1 %vm1461_vm0, %v11473_v31  ;;  %v4522_v48 = vadd.f32 %v10933_v43, %v4298_v9  ;;  %v11510_v16 = vpop.permute.xlu1 %4436  ;;  %v13211_v37 = vld [vmem:[#allocation3_spill] sm:$0xff]  ;;  %v12326_v31 = vld [vmem:[%s13008_s10 + $0xe0] sm:$0xff] }
 0x866   : > { %7973 = vrsqrt.f32 %v3916_v8  ;;  %v4558_v8 = vld [vmem:[%s11439_s5 + $0x38] sm:$0xff]  ;;  %13267 = vst [vmem:[#allocation43_spill] sm:$0xff] %v12326_v31 }
 0x867   : > { %v3920_v63 = vpop.f32.mrb[128].mxu0  ;;  %v11481_v47 = vadd.f32 %v4554_v11, %v4522_v48  ;;  %v4299_v23 = vmul.f32 %v10952_v40, %v4075_v39 }
 0x868   : > { %v7970_v58 = vpop.eup %7969  ;;  %v3921_v18 = vadd.f32 1e-06, %v3920_v63  ;;  %v3922_v49 = vpop.f32.mrb[129].mxu0 }
 0x869   : > { %13206 = vst [vmem:[#allocation28_spill] sm:$0xff] %v11481_v47  ;;  %v4076_v52 = vmul.f32 %v7970_v58, %v10940_v1  ;;  %7320 = vmatmul.mubr.msk.f32.gmra.mrb[178].mxu1 %vm1461_vm0, %v11481_v47  ;;  %v4523_v61 = vadd.f32 %v11095_v60, %v4299_v23  ;;  %v4559_v49 = vld [vmem:[%s11439_s5 + $0x40] sm:$0xff]  ;;  %v12320_v47 = vld [vmem:[%s13008_s10 + $0xe8] sm:$0xff] }
 0x86a   : > { %7975 = vrsqrt.f32 %v3921_v18  ;;  %13266 = vst [vmem:[#allocation42_spill] sm:$0xff] %v12320_v47 }
 0x86b   : > { %v3925_v43 = vpop.f32.mrb[130].mxu0  ;;  %v11489_v33 = vadd.f32 %v4555_v42, %v4523_v61  ;;  %v4300_v21 = vmul.f32 %v10974_v30, %v4076_v52  ;;  %v11500_v30 = vpop.permute.xlu0 %4431  ;;  %v13213_v42 = vld [vmem:[#allocation4_spill] sm:$0xff] }
 0x86c   : > { %v7972_v5 = vpop.eup %7971  ;;  %v3926_v40 = vadd.f32 1e-06, %v3925_v43  ;;  %v3927_v2 = vpop.f32.mrb[131].mxu0 }
 0x86d   : > { %13207 = vst [vmem:[#allocation29_spill] sm:$0xff] %v11489_v33  ;;  %v4077_v28 = vmul.f32 %v7972_v5, %v10958_v57  ;;  %7322 = vmatprep.mubr.msk.f32.mxu1 %vm1461_vm0, %v11489_v33  ;;  %v4524_v1 = vadd.f32 %v10992_v22, %v4300_v21  ;;  %v11527_v61 = vpop.permute.xlu1 %4222  ;;  %v12314_v33 = vld [vmem:[%s13008_s10 + $0xd0] sm:$0xff] }
 0x86e   : > { %7977 = vrsqrt.f32 %v3926_v40  ;;  %13265 = vst [vmem:[#allocation41_spill] sm:$0xff] %v12314_v33 }
 0x86f   : > { %v3930_v60 = vpop.f32.mrb[132].mxu0  ;;  %v11497_v26 = vadd.f32 %v4556_v44, %v4524_v1  ;;  %v4301_v12 = vmul.f32 %v11112_v54, %v4077_v28  ;;  %v11517_v39 = vpop.permute.xlu0 %4217  ;;  %v4560_v28 = vld [vmem:[%s11439_s5 + $0x48] sm:$0xff] }
 0x870   : > { %v7974_v59 = vpop.eup %7973  ;;  %v3931_v56 = vadd.f32 1e-06, %v3930_v60  ;;  %v3932_v36 = vpop.f32.mrb[133].mxu0 }
 0x871   : > { %13208 = vst [vmem:[#allocation30_spill] sm:$0xff] %v11497_v26  ;;  %v4078_v57 = vmul.f32 %v7974_v59, %v13209_v25  ;;  %7323 = vmatmul.mubr.msk.f32.gmra.mrb[180].mxu1 %vm1461_vm0, %v11497_v26  ;;  %v4525_v22 = vadd.f32 %v11139_v62, %v4301_v12  ;;  %v4561_v25 = vld [vmem:[%s11439_s5 + $0x50] sm:$0xff]  ;;  %v12308_v26 = vld [vmem:[%s13008_s10 + $0xd8] sm:$0xff] }
 0x872   : > { %7979 = vrsqrt.f32 %v3931_v56  ;;  %v11542_v56 = vpop.permute.xlu1 %4446  ;;  %13264 = vst [vmem:[#allocation40_spill] sm:$0xff] %v12308_v26 }
 0x873   : > { %v3935_v34 = vpop.f32.mrb[134].mxu0  ;;  %v11507_v24 = vadd.f32 %v4557_v17, %v4525_v22  ;;  %v4302_v54 = vmul.f32 %v11010_v29, %v4078_v57  ;;  %v11532_v40 = vpop.permute.xlu0 %4441  ;;  %v13216_v57 = vld [vmem:[#allocation5_spill] sm:$0xff] }
 0x874   : > { %v7976_v10 = vpop.eup %7975  ;;  %v3936_v9 = vadd.f32 1e-06, %v3935_v34  ;;  %v3937_v53 = vpop.f32.mrb[135].mxu0 }
 0x875   : > { %13210 = vst [vmem:[#allocation2_spill] sm:$0xff] %v11507_v24  ;;  %v4079_v11 = vmul.f32 %v7976_v10, %v13211_v37  ;;  %7325 = vmatprep.mubr.msk.f32.mxu1 %vm1461_vm0, %v11507_v24  ;;  %v4526_v62 = vadd.f32 %v11029_v51, %v4302_v54  ;;  %v4562_v37 = vld [vmem:[%s11439_s5 + $0x58] sm:$0xff]  ;;  %v12302_v24 = vld [vmem:[%s13008_s10 + $0xc0] sm:$0xff] }
 0x876   : > { %7981 = vrsqrt.f32 %v3936_v9  ;;  %13263 = vst [vmem:[#allocation39_spill] sm:$0xff] %v12302_v24 }
 0x877   : > { %v3940_v48 = vpop.f32.mrb[136].mxu0  ;;  %v11519_v63 = vadd.f32 %v4558_v8, %v4526_v62  ;;  %v4303_v29 = vmul.f32 %v11156_v7, %v4079_v11  ;;  %v11549_v22 = vpop.permute.xlu0 %4227  ;;  %v13219_v11 = vld [vmem:[#allocation6_spill] sm:$0xff] }
 0x878   : > { %v7978_v23 = vpop.eup %7977  ;;  %v3941_v58 = vadd.f32 1e-06, %v3940_v48  ;;  %v3942_v18 = vpop.f32.mrb[137].mxu0 }
 0x879   : > { %13212 = vst [vmem:[#allocation3_spill] sm:$0xff] %v11519_v63  ;;  %v4080_v52 = vmul.f32 %v7978_v23, %v13213_v42  ;;  %7326 = vmatmul.mubr.msk.f32.gmra.mrb[182].mxu1 %vm1461_vm0, %v11519_v63  ;;  %v4527_v51 = vadd.f32 %v11180_v20, %v4303_v29  ;;  %v11559_v48 = vpop.permute.xlu1 %4232  ;;  %v12296_v63 = vld [vmem:[%s13008_s10 + $0xc8] sm:$0xff] }
 0x87a   : > { %7983 = vrsqrt.f32 %v3941_v58  ;;  %13262 = vst [vmem:[#allocation38_spill] sm:$0xff] %v12296_v63 }
 0x87b   : > { %v3945_v43 = vpop.f32.mrb[138].mxu0  ;;  %v11529_v21 = vadd.f32 %v4559_v49, %v4527_v51  ;;  %v4304_v7 = vmul.f32 %v11051_v32, %v4080_v52  ;;  %v11564_v49 = vpop.permute.xlu0 %4451  ;;  %v4563_v51 = vld [vmem:[%s11439_s5 + $0x60] sm:$0xff] }
 0x87c   : > { %v7980_v5 = vpop.eup %7979  ;;  %v3946_v2 = vadd.f32 1e-06, %v3945_v43  ;;  %v3947_v44 = vpop.f32.mrb[139].mxu0  ;;  %v13221_v43 = vld [vmem:[#allocation7_spill] sm:$0xff] }
 0x87d   : > { %13214 = vst [vmem:[#allocation4_spill] sm:$0xff] %v11529_v21  ;;  %v4081_v1 = vmul.f32 %v7980_v5, %v11008_v50  ;;  %7328 = vmatprep.mubr.msk.f32.mxu1 %vm1461_vm0, %v11529_v21  ;;  %v4528_v20 = vadd.f32 %v11069_v45, %v4304_v7  ;;  %v13223_v44 = vld [vmem:[#allocation15_spill] sm:$0xff]  ;;  %v12290_v21 = vld [vmem:[%s13008_s10 + $0xb0] sm:$0xff] }
 0x87e   : > { %7985 = vrsqrt.f32 %v3946_v2  ;;  %13261 = vst [vmem:[#allocation37_spill] sm:$0xff] %v12290_v21 }
 0x87f   : > { %v3950_v60 = vpop.f32.mrb[140].mxu0  ;;  %v11539_v12 = vadd.f32 %v4560_v28, %v4528_v20  ;;  %v4305_v32 = vmul.f32 %v11192_v55, %v4081_v1  ;;  %v13218_v55 = vld [vmem:[#allocation11_spill] sm:$0xff]  ;;  %v11574_v1 = vpop.permute.xlu1 %4456 }
 0x880   : > { %v7982_v59 = vpop.eup %7981  ;;  %v3951_v36 = vadd.f32 1e-06, %v3950_v60  ;;  %v3952_v17 = vpop.f32.mrb[141].mxu0 }
 0x881   : > { %13215 = vst [vmem:[#allocation31_spill] sm:$0xff] %v11539_v12  ;;  %v4082_v50 = vmul.f32 %v7982_v59, %v13216_v57  ;;  %7329 = vmatmul.mubr.msk.f32.gmra.mrb[184].mxu1 %vm1461_vm0, %v11539_v12  ;;  %v4529_v45 = vadd.f32 %v11211_v6, %v4305_v32  ;;  %v4564_v32 = vld [vmem:[%s11439_s5 + $0x68] sm:$0xff]  ;;  %v13224_v59 = vld [vmem:[#allocation8_spill] sm:$0xff]  ;;  %v13225_v17 = vld [vmem:[#allocation18_spill] sm:$0xff] }
 0x882   : > { %7987 = vrsqrt.f32 %v3951_v36  ;;  %v12284_v12 = vld [vmem:[%s13008_s10 + $0xb8] sm:$0xff] }
 0x883   : > { %v3955_v34 = vpop.f32.mrb[142].mxu0  ;;  %v11551_v54 = vadd.f32 %v4561_v25, %v4529_v45  ;;  %v4306_v10 = vmul.f32 %v13218_v55, %v4082_v50  ;;  %v11581_v25 = vpop.permute.xlu0 %4237  ;;  %13260 = vst [vmem:[#allocation36_spill] sm:$0xff] %v12284_v12 }
 0x884   : > { %v7984_v9 = vpop.eup %7983  ;;  %v3956_v53 = vadd.f32 1e-06, %v3955_v34  ;;  %v3957_v8 = vpop.f32.mrb[143].mxu0 }
 0x885   : > { %13217 = vst [vmem:[#allocation5_spill] sm:$0xff] %v11551_v54  ;;  %v4083_v62 = vmul.f32 %v7984_v9, %v13219_v11  ;;  %7331 = vmatprep.mubr.msk.f32.mxu1 %vm1461_vm0, %v11551_v54  ;;  %v4530_v6 = vadd.f32 %v11110_v46, %v4306_v10  ;;  %v4565_v9 = vld [vmem:[%s11439_s5 + $0x70] sm:$0xff]  ;;  %v11591_v11 = vpop.permute.xlu1 %4242  ;;  %v12278_v54 = vld [vmem:[%s13008_s10 + $0xa0] sm:$0xff] }
 0x886   : > { %7989 = vrsqrt.f32 %v3956_v53  ;;  %v13227_v53 = vld [vmem:[#allocation9_spill] sm:$0xff]  ;;  %13259 = vst [vmem:[#allocation35_spill] sm:$0xff] %v12278_v54 }
 0x887   : > { %v3960_v29 = vpop.f32.mrb[144].mxu0  ;;  %v11561_v23 = vadd.f32 %v4562_v37, %v4530_v6  ;;  %v4307_v58 = vmul.f32 %v11223_v14, %v4083_v62 }
 0x888   : > { %v7986_v18 = vpop.eup %7985  ;;  %v3961_v42 = vadd.f32 1e-06, %v3960_v29  ;;  %v3962_v52 = vpop.f32.mrb[145].mxu0  ;;  %v13229_v29 = vld [vmem:[#allocation19_spill] sm:$0xff] }
 0x889   : > { %13220 = vst [vmem:[#allocation11_spill] sm:$0xff] %v11561_v23  ;;  %v4084_v7 = vmul.f32 %v7986_v18, %v13221_v43  ;;  %7332 = vmatmul.mubr.msk.f32.gmra.mrb[186].mxu1 %vm1461_vm0, %v11561_v23  ;;  %v4531_v46 = vadd.f32 %v11239_v35, %v4307_v58  ;;  %v11596_v18 = vpop.permute.xlu0 %4461  ;;  %v13230_v43 = vld [vmem:[#allocation10_spill] sm:$0xff]  ;;  %v12272_v23 = vld [vmem:[%s13008_s10 + $0xa8] sm:$0xff] }
 0x88a   : > { %7991 = vrsqrt.f32 %v3961_v42  ;;  %13258 = vst [vmem:[#allocation34_spill] sm:$0xff] %v12272_v23 }
 0x88b   : > { %v3965_v5 = vpop.f32.mrb[146].mxu0  ;;  %v11571_v2 = vadd.f32 %v4563_v51, %v4531_v46  ;;  %v4308_v14 = vmul.f32 %v13223_v44, %v4084_v7  ;;  %v4566_v51 = vld [vmem:[%s11439_s5 + $0x78] sm:$0xff] }
 0x88c   : > { %v7988_v28 = vpop.eup %7987  ;;  %v3966_v20 = vadd.f32 1e-06, %v3965_v5  ;;  %v3967_v60 = vpop.f32.mrb[147].mxu0 }
 0x88d   : > { %13222 = vst [vmem:[#allocation6_spill] sm:$0xff] %v11571_v2  ;;  %v4085_v36 = vmul.f32 %v7988_v28, %v13224_v59  ;;  %7334 = vmatprep.mubr.msk.f32.mxu1 %vm1461_vm0, %v11571_v2  ;;  %v4532_v35 = vadd.f32 %v13225_v17, %v4308_v14  ;;  %v11606_v28 = vpop.permute.xlu1 %4466  ;;  %v13232_v59 = vld [vmem:[#allocation12_spill] sm:$0xff]  ;;  %v11613_v17 = vpop.permute.xlu0 %4247 }
 0x88e   : > { %7993 = vrsqrt.f32 %v3966_v20  ;;  %v12266_v2 = vld [vmem:[%s13008_s10 + $0x90] sm:$0xff] }
 0x88f   : > { %v3970_v57 = vpop.f32.mrb[148].mxu0  ;;  %v11583_v50 = vadd.f32 %v4564_v32, %v4532_v35  ;;  %v4309_v45 = vmul.f32 %v11251_v15, %v4085_v36  ;;  %v4567_v32 = vld [vmem:[%s11439_s5 + $0x80] sm:$0xff] }
 0x890   : > { %v7990_v34 = vpop.eup %7989  ;;  %v3971_v55 = vadd.f32 1e-06, %v3970_v57  ;;  %v3972_v10 = vpop.f32.mrb[149].mxu0 }
 0x891   : > { %13226 = vst [vmem:[#allocation7_spill] sm:$0xff] %v11583_v50  ;;  %v4086_v8 = vmul.f32 %v7990_v34, %v13227_v53  ;;  %7335 = vmatmul.mubr.msk.f32.gmra.mrb[188].mxu1 %vm1461_vm0, %v11583_v50  ;;  %v4533_v37 = vadd.f32 %v11500_v30, %v4309_v45  ;;  %v4568_v10 = vld [vmem:[%s11439_s5 + $0x88] sm:$0xff]  ;;  %v12260_v50 = vld [vmem:[%s13008_s10 + $0x98] sm:$0xff] }
 0x892   : > { %7995 = vrsqrt.f32 %v3971_v55 }
 0x893   : > { %v3975_v62 = vpop.f32.mrb[150].mxu0  ;;  %v11593_v6 = vadd.f32 %v4565_v9, %v4533_v37  ;;  %v4310_v15 = vmul.f32 %v13229_v29, %v4086_v8  ;;  %v13234_v9 = vld [vmem:[#allocation13_spill] sm:$0xff]  ;;  %v11623_v8 = vpop.permute.xlu1 %4252 }
 0x894   : > { %v7992_v58 = vpop.eup %7991  ;;  %v3976_v42 = vadd.f32 1e-06, %v3975_v62  ;;  %v3977_v52 = vpop.f32.mrb[151].mxu0 }
 0x895   : > { %13228 = vst [vmem:[#allocation15_spill] sm:$0xff] %v11593_v6  ;;  %v4087_v7 = vmul.f32 %v7992_v58, %v13230_v43  ;;  %7337 = vmatprep.mubr.msk.f32.mxu1 %vm1461_vm0, %v11593_v6  ;;  %v4534_v30 = vadd.f32 %v11510_v16, %v4310_v15  ;;  %v4472_v15 = vpop.permute.xlu0 %4471  ;;  %v4569_v52 = vld [vmem:[%s11439_s5 + $0x90] sm:$0xff]  ;;  %v12254_v6 = vld [vmem:[%s13008_s10 + $0x80] sm:$0xff] }
 0x896   : > { %7997 = vrsqrt.f32 %v3976_v42 }
 0x897   : > { %v3980_v46 = vpop.f32.mrb[152].mxu0  ;;  %v11603_v5 = vadd.f32 %v4566_v51, %v4534_v30  ;;  %v4311_v44 = vmul.f32 %v11517_v39, %v4087_v7  ;;  %v13236_v51 = vld [vmem:[#allocation14_spill] sm:$0xff] }
 0x898   : > { %v7994_v14 = vpop.eup %7993  ;;  %v3981_v20 = vadd.f32 1e-06, %v3980_v46  ;;  %v3982_v60 = vpop.f32.mrb[153].mxu0 }
 0x899   : > { %13231 = vst [vmem:[#allocation8_spill] sm:$0xff] %v11603_v5  ;;  %v4088_v36 = vmul.f32 %v7994_v14, %v13232_v59  ;;  %7338 = vmatmul.mubr.msk.f32.gmra.mrb[190].mxu1 %vm1461_vm0, %v11603_v5  ;;  %v4535_v16 = vadd.f32 %v11532_v40, %v4311_v44  ;;  %v4477_v44 = vpop.permute.xlu1 %4476  ;;  %v4570_v60 = vld [vmem:[%s11439_s5 + $0x98] sm:$0xff]  ;;  %v12248_v5 = vld [vmem:[%s13008_s10 + $0x88] sm:$0xff] }
 0x89a   : > { %7999 = vrsqrt.f32 %v3981_v20 }
 0x89b   : > { %v3985_v35 = vpop.f32.mrb[154].mxu0  ;;  %v11615_v57 = vadd.f32 %v4567_v32, %v4535_v16  ;;  %v4312_v39 = vmul.f32 %v11527_v61, %v4088_v36  ;;  %v13238_v32 = vld [vmem:[#allocation16_spill] sm:$0xff] }
 0x89c   : > { %v7996_v45 = vpop.eup %7995  ;;  %v3986_v34 = vadd.f32 1e-06, %v3985_v35  ;;  %v3987_v55 = vpop.f32.mrb[155].mxu0 }
 0x89d   : > { %13233 = vst [vmem:[#allocation18_spill] sm:$0xff] %v11615_v57  ;;  %v4089_v53 = vmul.f32 %v7996_v45, %v13234_v9  ;;  %7340 = vmatprep.mubr.msk.f32.mxu1 %vm1461_vm0, %v11615_v57  ;;  %v4536_v40 = vadd.f32 %v11542_v56, %v4312_v39  ;;  %v4571_v55 = vld [vmem:[%s11439_s5 + $0xa0] sm:$0xff]  ;;  %v12242_v57 = vld [vmem:[%s13008_s10 + $0x70] sm:$0xff] }
 0x89e   : > { %8001 = vrsqrt.f32 %v3986_v34 }
 0x89f   : > { %v3990_v37 = vpop.f32.mrb[156].mxu0  ;;  %v11625_v62 = vadd.f32 %v4568_v10, %v4536_v40  ;;  %v4313_v61 = vmul.f32 %v11549_v22, %v4089_v53  ;;  %v13240_v10 = vld [vmem:[#allocation17_spill] sm:$0xff] }
 0x8a0   : > { %v7998_v29 = vpop.eup %7997  ;;  %v3991_v58 = vadd.f32 1e-06, %v3990_v37  ;;  %v3992_v42 = vpop.f32.mrb[157].mxu0 }
 0x8a1   : > { %13235 = vst [vmem:[#allocation9_spill] sm:$0xff] %v11625_v62  ;;  %v4090_v43 = vmul.f32 %v7998_v29, %v13236_v51  ;;  %7341 = vmatmul.mubr.msk.f32.gmra.mrb[192].mxu1 %vm1461_vm0, %v11625_v62  ;;  %v4537_v56 = vadd.f32 %v11564_v49, %v4313_v61  ;;  %v4258_v49 = vpop.permute.xlu0 %4257  ;;  %v12236_v62 = vld [vmem:[%s13008_s10 + $0x78] sm:$0xff] }
 0x8a2   : > { %8003 = vrsqrt.f32 %v3991_v58 }
 0x8a3   : > { %v3995_v7 = vpop.f32.mrb[158].mxu0  ;;  %v11633_v30 = vadd.f32 %v4569_v52, %v4537_v56  ;;  %v4314_v46 = vmul.f32 %v11559_v48, %v4090_v43  ;;  %v4572_v52 = vld [vmem:[%s11439_s5 + $0xa8] sm:$0xff] }
 0x8a4   : > { %v8000_v22 = vpop.eup %7999  ;;  %v3996_v14 = vadd.f32 1e-06, %v3995_v7  ;;  %v3997_v20 = vpop.f32.mrb[159].mxu0 }
 0x8a5   : > { %13237 = vst [vmem:[#allocation19_spill] sm:$0xff] %v11633_v30  ;;  %v4091_v59 = vmul.f32 %v8000_v22, %v13238_v32  ;;  %7343 = vmatprep.mubr.msk.f32.mxu1 %vm1461_vm0, %v11633_v30  ;;  %v4538_v36 = vadd.f32 %v11574_v1, %v4314_v46  ;;  %v4263_v1 = vpop.permute.xlu1 %4262  ;;  %v4482_v29 = vpop.permute.xlu0 %4481  ;;  %v4573_v20 = vld [vmem:[%s11439_s5 + $0xb0] sm:$0xff]  ;;  %v12230_v30 = vld [vmem:[%s13008_s10 + $0x60] sm:$0xff] }
 0x8a6   : > { %8005 = vrsqrt.f32 %v3996_v14 }
 0x8a7   : > { %v4000_v16 = vpop.f32.mrb[160].mxu0  ;;  %v11641_v35 = vadd.f32 %v4570_v60, %v4538_v36  ;;  %v4315_v48 = vmul.f32 %v11581_v25, %v4091_v59  ;;  %v13243_v60 = vld [vmem:[#allocation20_spill] sm:$0xff] }
 0x8a8   : > { %v8002_v39 = vpop.eup %8001  ;;  %v4001_v45 = vadd.f32 1e-06, %v4000_v16  ;;  %v4002_v34 = vpop.f32.mrb[161].mxu0 }
 0x8a9   : > { %13239 = vst [vmem:[#allocation10_spill] sm:$0xff] %v11641_v35  ;;  %v4092_v9 = vmul.f32 %v8002_v39, %v13240_v10  ;;  %7344 = vmatmul.mubr.msk.f32.gmra.mrb[194].mxu1 %vm1461_vm0, %v11641_v35  ;;  %v4539_v53 = vadd.f32 %v11596_v18, %v4315_v48  ;;  %v4487_v46 = vpop.permute.xlu1 %4486  ;;  %v4268_v59 = vpop.permute.xlu0 %4267  ;;  %v13245_v34 = vld [vmem:[#allocation21_spill] sm:$0xff]  ;;  %v12224_v35 = vld [vmem:[%s13008_s10 + $0x68] sm:$0xff] }
 0x8aa   : > { %8007 = vrsqrt.f32 %v4001_v45  ;;  %v4574_v45 = vld [vmem:[%s11439_s5 + $0xb8] sm:$0xff] }
 0x8ab   : > { %v4005_v40 = vpop.f32.mrb[162].mxu0  ;;  %v11649_v37 = vadd.f32 %v4571_v55, %v4539_v53  ;;  %v4316_v61 = vmul.f32 %v11591_v11, %v4092_v9 }
 0x8ac   : > { %v8004_v25 = vpop.eup %8003  ;;  %v4006_v58 = vadd.f32 1e-06, %v4005_v40  ;;  %v4007_v42 = vpop.f32.mrb[163].mxu0 }
 0x8ad   : > { %13241 = vst [vmem:[#allocation12_spill] sm:$0xff] %v11649_v37  ;;  %v4093_v51 = vmul.f32 %v8004_v25, %v11172_v27  ;;  %7346 = vmatprep.mubr.msk.f32.mxu1 %vm1461_vm0, %v11649_v37  ;;  %v4540_v18 = vadd.f32 %v11606_v28, %v4316_v61  ;;  %v4273_v9 = vpop.permute.xlu1 %4272  ;;  %v4575_v42 = vld [vmem:[%s11439_s5 + $0xc0] sm:$0xff]  ;;  %v12218_v37 = vld [vmem:[%s13008_s10 + $0x50] sm:$0xff] }
 0x8ae   : > { %8009 = vrsqrt.f32 %v4006_v58 }
 0x8af   : > { %v4010_v43 = vpop.f32.mrb[164].mxu0  ;;  %v11657_v56 = vadd.f32 %v4572_v52, %v4540_v18  ;;  %v4317_v7 = vmul.f32 %v11613_v17, %v4093_v51  ;;  %v13247_v52 = vld [vmem:[#allocation22_spill] sm:$0xff] }
 0x8b0   : > { %v8006_v11 = vpop.eup %8005  ;;  %v4011_v22 = vadd.f32 1e-06, %v4010_v43  ;;  %v4012_v14 = vpop.f32.mrb[165].mxu0 }
 0x8b1   : > { %13242 = vst [vmem:[#allocation13_spill] sm:$0xff] %v11657_v56  ;;  %v4094_v32 = vmul.f32 %v8006_v11, %v13243_v60  ;;  %7347 = vmatmul.mubr.msk.f32.gmra.mrb[196].mxu1 %vm1461_vm0, %v11657_v56  ;;  %v4541_v27 = vadd.f32 %v4472_v15, %v4317_v7  ;;  %v12212_v56 = vld [vmem:[%s13008_s10 + $0x58] sm:$0xff] }
 0x8b2   : > { %8011 = vrsqrt.f32 %v4011_v22 }
 0x8b3   : > { %v4015_v28 = vpop.f32.mrb[166].mxu0  ;;  %v11664_v36 = vadd.f32 %v4573_v20, %v4541_v27  ;;  %v4318_v16 = vmul.f32 %v11623_v8, %v4094_v32  ;;  %v4492_v8 = vpop.permute.xlu0 %4491  ;;  %v4576_v20 = vld [vmem:[%s11439_s5 + $0xc8] sm:$0xff] }
 0x8b4   : > { %v8008_v17 = vpop.eup %8007  ;;  %v4016_v48 = vadd.f32 1e-06, %v4015_v28  ;;  %v4017_v39 = vpop.f32.mrb[167].mxu0 }
 0x8b5   : > { %13244 = vst [vmem:[#allocation14_spill] sm:$0xff] %v11664_v36  ;;  %v4095_v55 = vmul.f32 %v8008_v17, %v13245_v34  ;;  %7349 = vmatprep.mubr.msk.f32.mxu1 %vm1461_vm0, %v11664_v36  ;;  %v4542_v10 = vadd.f32 %v4477_v44, %v4318_v16  ;;  %v4577_v39 = vld [vmem:[%s11439_s5 + $0xd0] sm:$0xff]  ;;  %v12206_v36 = vld [vmem:[%s13008_s10 + $0x40] sm:$0xff] }
 0x8b6   : > { %8013 = vrsqrt.f32 %v4016_v48 }
 0x8b7   : > { %v4020_v15 = vpop.f32.mrb[168].mxu0  ;;  %v11671_v53 = vadd.f32 %v4574_v45, %v4542_v10  ;;  %v4319_v40 = vmul.f32 %v4258_v49, %v4095_v55  ;;  %v4497_v49 = vpop.permute.xlu1 %4496  ;;  %v13250_v45 = vld [vmem:[#allocation23_spill] sm:$0xff] }
 0x8b8   : > { %v8010_v61 = vpop.eup %8009  ;;  %v4021_v25 = vadd.f32 1e-06, %v4020_v15  ;;  %v4022_v58 = vpop.f32.mrb[169].mxu0 }
 0x8b9   : > { %13246 = vst [vmem:[#allocation16_spill] sm:$0xff] %v11671_v53  ;;  %v4096_v51 = vmul.f32 %v8010_v61, %v13247_v52  ;;  %7350 = vmatmul.mubr.msk.f32.gmra.mrb[198].mxu1 %vm1461_vm0, %v11671_v53  ;;  %v4543_v18 = vadd.f32 %v4482_v29, %v4319_v40  ;;  %v4278_v27 = vpop.permute.xlu0 %4277  ;;  %v4578_v58 = vld [vmem:[%s11439_s5 + $0xd8] sm:$0xff]  ;;  %v12200_v53 = vld [vmem:[%s13008_s10 + $0x48] sm:$0xff] }
 0x8ba   : > { %8015 = vrsqrt.f32 %v4021_v25 }
 0x8bb   : > { %v4025_v44 = vpop.f32.mrb[170].mxu0  ;;  %v11677_v43 = vadd.f32 %v4575_v42, %v4543_v18  ;;  %v4320_v7 = vmul.f32 %v4263_v1, %v4096_v51  ;;  %v4283_v55 = vpop.permute.xlu1 %4282 }
 0x8bc   : > { %v8012_v11 = vpop.eup %8011  ;;  %v4026_v22 = vadd.f32 1e-06, %v4025_v44  ;;  %v4027_v14 = vpop.f32.mrb[171].mxu0 }
 0x8bd   : > { %13248 = vst [vmem:[#allocation17_spill] sm:$0xff] %v11677_v43  ;;  %v4097_v60 = vmul.f32 %v8012_v11, %v11214_v38  ;;  %7352 = vmatprep.mubr.msk.f32.mxu1 %vm1461_vm0, %v11677_v43  ;;  %v4544_v32 = vadd.f32 %v4487_v46, %v4320_v7  ;;  %v4579_v7 = vld [vmem:[%s11439_s5 + $0xe0] sm:$0xff]  ;;  %v12194_v43 = vld [vmem:[%s13008_s10 + $0x30] sm:$0xff] }
 0x8be   : > { %8017 = vrsqrt.f32 %v4026_v22 }
 0x8bf   : > { %v4030_v29 = vpop.f32.mrb[172].mxu0  ;;  %v11683_v28 = vadd.f32 %v4576_v20, %v4544_v32  ;;  %v4321_v16 = vmul.f32 %v4268_v59, %v4097_v60  ;;  %v4502_v59 = vpop.permute.xlu0 %4501 }
 0x8c0   : > { %v8014_v17 = vpop.eup %8013  ;;  %v4031_v1 = vadd.f32 1e-06, %v4030_v29  ;;  %v4032_v48 = vpop.f32.mrb[173].mxu0  ;;  %v4580_v29 = vld [vmem:[%s11439_s5 + $0xe8] sm:$0xff] }
 0x8c1   : > { %13249 = vst [vmem:[#allocation20_spill] sm:$0xff] %v11683_v28  ;;  %v4098_v34 = vmul.f32 %v8014_v17, %v13250_v45  ;;  %7353 = vmatmul.mubr.msk.f32.gmra.mrb[200].mxu1 %vm1461_vm0, %v11683_v28  ;;  %v4545_v38 = vadd.f32 %v4492_v8, %v4321_v16  ;;  %v4507_v44 = vpop.permute.xlu1 %4506  ;;  %v5240_v48 = vld [vmem:[%s13017_s19 + $0x38] sm:$0xff] }
 0x8c2   : > { %8019 = vrsqrt.f32 %v4031_v1  ;;  %v5239_v1 = vld [vmem:[%s13017_s19 + $0x30] sm:$0xff] }
 0x8c3   : > { %v4035_v46 = vpop.f32.mrb[174].mxu0  ;;  %v11689_v10 = vadd.f32 %v4577_v39, %v4545_v38  ;;  %v4322_v15 = vmul.f32 %v4273_v9, %v4098_v34  ;;  %v13253_v9 = vld [vmem:[#allocation24_spill] sm:$0xff]  ;;  %v4288_v14 = vpop.permute.xlu0 %4287  ;;  %v7648_v45 = vpack.c.bf16 %v5240_v48, %v5239_v1 }
 0x8c4   : > { %v8016_v40 = vpop.eup %8015  ;;  %v4036_v61 = vadd.f32 1e-06, %v4035_v46  ;;  %v4037_v25 = vpop.f32.mrb[175].mxu0  ;;  %v4581_v46 = vld [vmem:[%s11439_s5 + $0xf0] sm:$0xff] }
 0x8c5   : > { %13251 = vst [vmem:[#allocation21_spill] sm:$0xff] %v11689_v10  ;;  %v4099_v42 = vmul.f32 %v8016_v40, %v11233_v0  ;;  %7355 = vmatprep.mubr.msk.f32.mxu1 %vm1461_vm0, %v11689_v10  ;;  %v4546_v52 = vadd.f32 %v4497_v49, %v4322_v15  ;;  %v5237_v0 = vld [vmem:[%s13017_s19 + $0x20] sm:$0xff]  ;;  %v5238_v49 = vld [vmem:[%s13017_s19 + $0x28] sm:$0xff]  ;;  %v4293_v39 = vpop.permute.xlu1 %4292 }
 0x8c6   : > { %8021 = vrsqrt.f32 %v4036_v61  ;;  %v7644_v20 = vpack.c.bf16 %v5238_v49, %v5237_v0 }
 0x8c7   : > { %v11695_v8 = vadd.f32 %v4578_v58, %v4546_v52  ;;  %v4323_v51 = vmul.f32 %v4278_v27, %v4099_v42  ;;  %v4582_v58 = vld [vmem:[%s11439_s5 + $0xf8] sm:$0xff] }
 0x8c8   : > { %v8018_v18 = vpop.eup %8017  ;;  %7645 = vmatprep.subr.bf16.mxu0 %v7644_v20 }
 0x8c9   : > { %13252 = vst [vmem:[#allocation22_spill] sm:$0xff] %v11695_v8  ;;  %v4100_v11 = vmul.f32 %v8018_v18, %v13253_v9  ;;  %7356 = vmatmul.mubr.msk.f32.gmra.mrb[202].mxu1 %vm1461_vm0, %v11695_v8  ;;  %v4547_v22 = vadd.f32 %v4502_v59, %v4323_v51  ;;  %7647 = vmatpush3.bf16.msra.mxu0 %v7644_v20  ;;  %v4517_v25 = vpop.permute.xlu1 %4516  ;;  %v11744_v51 = vld [vmem:[%s13016_s18] ss:$0 sm:$0xff] }
 0x8ca   : > { %7649 = vmatprep.subr.bf16.mxu0 %v7648_v45 }
 0x8cb   : > { %v11707_v60 = vadd.f32 %v4579_v7, %v4547_v22  ;;  %v4324_v32 = vmul.f32 %v4283_v55, %v4100_v11  ;;  %v4512_v55 = vpop.permute.xlu0 %4511 }
 0x8cc   : > { %v8020_v27 = vpop.eup %8019 }
 0x8cd   : > { %13254 = vst [vmem:[#allocation23_spill] sm:$0xff] %v11707_v60  ;;  %v4101_v16 = vmul.f32 %v8020_v27, %v11254_v19  ;;  %7358 = vmatprep.mubr.msk.f32.mxu1 %vm1461_vm0, %v11707_v60  ;;  %v4548_v17 = vadd.f32 %v4507_v44, %v4324_v32  ;;  %7651 = vmatpush3.bf16.msra.mxu0 %v7648_v45 }
 0x8ce   : > { %7700 = vmatprep.subr.bf16.mxu0 %v13178_v3 }
 0x8cf   : > { %v11719_v34 = vadd.f32 %v4580_v29, %v4548_v17  ;;  %v4325_v38 = vmul.f32 %v4288_v14, %v4101_v16 }
 0x8d0   : > { %v8022_v19 = vpop.eup %8021 }
 0x8d1   : > { %13255 = vst [vmem:[#allocation24_spill] sm:$0xff] %v11719_v34  ;;  %v4102_v15 = vmul.f32 %v8022_v19, %v11258_v13  ;;  %7359 = vmatmul.mubr.msk.f32.gmra.mrb[204].mxu1 %vm1461_vm0, %v11719_v34  ;;  %v4549_v40 = vadd.f32 %v4512_v55, %v4325_v38  ;;  %v11738_v13 = vld [vmem:[%s13008_s10 + $0x8] sm:$0xff] }
 0x8d3   : > { %v11726_v59 = vadd.f32 %v4581_v46, %v4549_v40  ;;  %v4326_v61 = vmul.f32 %v4293_v39, %v4102_v15 }
 0x8d5   : > { %13256 = vst [vmem:[#allocation32_spill] sm:$0xff] %v11726_v59  ;;  %7361 = vmatprep.mubr.msk.f32.mxu1 %vm1461_vm0, %v11726_v59  ;;  %v4550_v42 = vadd.f32 %v4517_v25, %v4326_v61 }
 0x8d7   : > { %v11731_v52 = vadd.f32 %v4582_v58, %v4550_v42 }
 0x8d9   : > { %13257 = vst [vmem:[#allocation33_spill] sm:$0xff] %v11731_v52  ;;  %7362 = vmatmul.mubr.msk.f32.gmra.mrb[206].mxu1 %vm1461_vm0, %v11731_v52 }
 0x8da   : > { %5634 = vmatprep.mubr.f32.mxu1 %v11738_v13 }
 0x934   : > { %v7318_v18 = vpop.f32.mrb[176].mxu1 }
 0x935   : > { %v4792_v44 = vadd.f32 %v7318_v18, %v11744_v51  ;;  %v4786_v7 = vpop.f32.mrb[177].mxu1 }
 0x936   : > { %v4787_v9 = vadd.f32 %v11744_v51, %v4786_v7 }
 0x937   : > { %v4946_v11 = vmul.f32 %v4792_v44, %v4792_v44 }
 0x938   : > { %v4945_v22 = vmul.f32 %v4787_v9, %v4787_v9 }
 0x939   : > { %v4978_v0 = vmul.f32 %v4946_v11, %v4792_v44 }
 0x93a   : > { %v4977_v49 = vmul.f32 %v4945_v22, %v4787_v9 }
 0x93b   : > { %v5010_v14 = vmul.f32 0.044715, %v4978_v0 }
 0x93c   : > { %v5009_v20 = vmul.f32 0.044715, %v4977_v49  ;;  %v7321_v32 = vpop.f32.mrb[178].mxu1 }
 0x93d   : > { %v5042_v27 = vadd.f32 %v5010_v14, %v4792_v44  ;;  %v11749_v29 = vadd.f32 %v7321_v32, %v11744_v51  ;;  %v4796_v16 = vpop.f32.mrb[179].mxu1 }
 0x93e   : > { %v5041_v17 = vadd.f32 %v5009_v20, %v4787_v9  ;;  %v11752_v1 = vadd.f32 %v11744_v51, %v4796_v16 }
 0x93f   : > { %v5074_v48 = vmul.f32 0.7978846, %v5042_v27  ;;  %v4948_v39 = vmul.f32 %v11749_v29, %v11749_v29 }
 0x940   : > { %v5073_v45 = vmul.f32 0.7978846, %v5041_v17  ;;  %v4947_v38 = vmul.f32 %v11752_v1, %v11752_v1 }
 0x941   : > { %8023 = vtanh.f32 %v5074_v48  ;;  %v4980_v19 = vmul.f32 %v4948_v39, %v11749_v29 }
 0x942   : > { %8025 = vtanh.f32 %v5073_v45  ;;  %v4979_v55 = vmul.f32 %v4947_v38, %v11752_v1 }
 0x943   : > { %v5012_v46 = vmul.f32 0.044715, %v4980_v19 }
 0x944   : > { %v5011_v15 = vmul.f32 0.044715, %v4979_v55  ;;  %v7324_v40 = vpop.f32.mrb[180].mxu1 }
 0x945   : > { %v5044_v61 = vadd.f32 %v5012_v46, %v11749_v29  ;;  %v11762_v25 = vadd.f32 %v7324_v40, %v11744_v51  ;;  %v4806_v58 = vpop.f32.mrb[181].mxu1 }
 0x946   : > { %v5043_v42 = vadd.f32 %v5011_v15, %v11752_v1  ;;  %v11766_v18 = vadd.f32 %v11744_v51, %v4806_v58 }
 0x947   : > { %v5076_v7 = vmul.f32 0.7978846, %v5044_v61  ;;  %v4950_v11 = vmul.f32 %v11762_v25, %v11762_v25 }
 0x948   : > { %v5075_v22 = vmul.f32 0.7978846, %v5043_v42  ;;  %v4949_v0 = vmul.f32 %v11766_v18, %v11766_v18 }
 0x949   : > { %8027 = vtanh.f32 %v5076_v7  ;;  %v4982_v49 = vmul.f32 %v4950_v11, %v11762_v25 }
 0x94a   : > { %8029 = vtanh.f32 %v5075_v22  ;;  %v4981_v14 = vmul.f32 %v4949_v0, %v11766_v18 }
 0x94b   : > { %v8024_v20 = vpop.eup %8023  ;;  %v5014_v32 = vmul.f32 0.044715, %v4982_v49 }
 0x94c   : > { %v8026_v27 = vpop.eup %8025  ;;  %v5138_v16 = vadd.f32 1.0, %v8024_v20  ;;  %v5013_v17 = vmul.f32 0.044715, %v4981_v14  ;;  %v7327_v48 = vpop.f32.mrb[182].mxu1 }
 0x94d   : > { %v5046_v39 = vadd.f32 %v5014_v32, %v11762_v25  ;;  %v11776_v45 = vadd.f32 %v7327_v48, %v11744_v51  ;;  %v4816_v38 = vpop.f32.mrb[183].mxu1  ;;  %v5137_v19 = vadd.f32 1.0, %v8026_v27 }
 0x94e   : > { %v5170_v55 = vmul.f32 0.5, %v5138_v16  ;;  %v5045_v46 = vadd.f32 %v5013_v17, %v11766_v18  ;;  %v11780_v15 = vadd.f32 %v11744_v51, %v4816_v38 }
 0x94f   : > { %v5078_v40 = vmul.f32 0.7978846, %v5046_v39  ;;  %v4952_v61 = vmul.f32 %v11776_v45, %v11776_v45  ;;  %v5169_v58 = vmul.f32 0.5, %v5137_v19 }
 0x950   : > { %v5077_v42 = vmul.f32 0.7978846, %v5045_v46  ;;  %v4951_v7 = vmul.f32 %v11780_v15, %v11780_v15  ;;  %v5202_v0 = vmul.f32 %v5170_v55, %v4792_v44 }
 0x951   : > { %8031 = vtanh.f32 %v5078_v40  ;;  %v4984_v11 = vmul.f32 %v4952_v61, %v11776_v45  ;;  %v5201_v22 = vmul.f32 %v5169_v58, %v4787_v9 }
 0x952   : > { %8033 = vtanh.f32 %v5077_v42  ;;  %v4983_v49 = vmul.f32 %v4951_v7, %v11780_v15 }
 0x953   : > { %v8028_v14 = vpop.eup %8027  ;;  %v5016_v20 = vmul.f32 0.044715, %v4984_v11  ;;  %7380 = vmatprep.mubr.msk.f32.mxu0 %vm5248_vm1, %v5201_v22 }
 0x954   : > { %v8030_v32 = vpop.eup %8029  ;;  %v5015_v27 = vmul.f32 0.044715, %v4983_v49  ;;  %v7330_v16 = vpop.f32.mrb[184].mxu1  ;;  %7381 = vmatmul.mubr.msk.f32.vlgmr.msra.gmra.mrb[176].mxu0 %vm5248_vm1, %v5202_v0  ;;  %v5140_v17 = vadd.f32 1.0, %v8028_v14 }
 0x955   : > { %v5048_v48 = vadd.f32 %v5016_v20, %v11776_v45  ;;  %v11792_v39 = vadd.f32 %v7330_v16, %v11744_v51  ;;  %v4826_v9 = vpop.f32.mrb[185].mxu1  ;;  %v5139_v44 = vadd.f32 1.0, %v8030_v32 }
 0x956   : > { %v5047_v38 = vadd.f32 %v5015_v27, %v11780_v15  ;;  %v11796_v19 = vadd.f32 %v11744_v51, %v4826_v9  ;;  %v5172_v55 = vmul.f32 0.5, %v5140_v17 }
 0x957   : > { %v5080_v46 = vmul.f32 0.7978846, %v5048_v48  ;;  %v4954_v40 = vmul.f32 %v11792_v39, %v11792_v39  ;;  %v5171_v61 = vmul.f32 0.5, %v5139_v44 }
 0x958   : > { %v5079_v58 = vmul.f32 0.7978846, %v5047_v38  ;;  %v4953_v42 = vmul.f32 %v11796_v19, %v11796_v19  ;;  %v5204_v0 = vmul.f32 %v5172_v55, %v11749_v29 }
 0x959   : > { %8035 = vtanh.f32 %v5080_v46  ;;  %v4986_v7 = vmul.f32 %v4954_v40, %v11792_v39  ;;  %v5203_v11 = vmul.f32 %v5171_v61, %v11752_v1 }
 0x95a   : > { %8037 = vtanh.f32 %v5079_v58  ;;  %v4985_v22 = vmul.f32 %v4953_v42, %v11796_v19 }
 0x95b   : > { %v8032_v49 = vpop.eup %8031  ;;  %v5018_v14 = vmul.f32 0.044715, %v4986_v7  ;;  %7383 = vmatprep.mubr.msk.f32.mxu0 %vm5248_vm1, %v5203_v11 }
 0x95c   : > { %v8034_v20 = vpop.eup %8033  ;;  %v5017_v32 = vmul.f32 0.044715, %v4985_v22  ;;  %v7333_v27 = vpop.f32.mrb[186].mxu1  ;;  %7384 = vmatmul.mubr.msk.f32.gmra.mrb[178].mxu0 %vm5248_vm1, %v5204_v0  ;;  %v5142_v16 = vadd.f32 1.0, %v8032_v49 }
 0x95d   : > { %v5050_v17 = vadd.f32 %v5018_v14, %v11792_v39  ;;  %v11810_v48 = vadd.f32 %v7333_v27, %v11744_v51  ;;  %v4836_v1 = vpop.f32.mrb[187].mxu1  ;;  %v5141_v9 = vadd.f32 1.0, %v8034_v20 }
 0x95e   : > { %v5049_v44 = vadd.f32 %v5017_v32, %v11796_v19  ;;  %v11814_v29 = vadd.f32 %v11744_v51, %v4836_v1  ;;  %v5174_v38 = vmul.f32 0.5, %v5142_v16 }
 0x95f   : > { %v5082_v55 = vmul.f32 0.7978846, %v5050_v17  ;;  %v4956_v46 = vmul.f32 %v11810_v48, %v11810_v48  ;;  %v5173_v40 = vmul.f32 0.5, %v5141_v9 }
 0x960   : > { %v5081_v61 = vmul.f32 0.7978846, %v5049_v44  ;;  %v4955_v58 = vmul.f32 %v11814_v29, %v11814_v29  ;;  %v5206_v22 = vmul.f32 %v5174_v38, %v11762_v25 }
 0x961   : > { %8039 = vtanh.f32 %v5082_v55  ;;  %v4988_v42 = vmul.f32 %v4956_v46, %v11810_v48  ;;  %v5205_v7 = vmul.f32 %v5173_v40, %v11766_v18 }
 0x962   : > { %8041 = vtanh.f32 %v5081_v61  ;;  %v4987_v11 = vmul.f32 %v4955_v58, %v11814_v29 }
 0x963   : > { %v8036_v0 = vpop.eup %8035  ;;  %v5020_v49 = vmul.f32 0.044715, %v4988_v42  ;;  %7386 = vmatprep.mubr.msk.f32.mxu0 %vm5248_vm1, %v5205_v7 }
 0x964   : > { %v8038_v14 = vpop.eup %8037  ;;  %v5019_v20 = vmul.f32 0.044715, %v4987_v11  ;;  %v7336_v32 = vpop.f32.mrb[188].mxu1  ;;  %7387 = vmatmul.mubr.msk.f32.gmra.mrb[180].mxu0 %vm5248_vm1, %v5206_v22  ;;  %v5144_v27 = vadd.f32 1.0, %v8036_v0 }
 0x965   : > { %v5052_v16 = vadd.f32 %v5020_v49, %v11810_v48  ;;  %v11828_v17 = vadd.f32 %v7336_v32, %v11744_v51  ;;  %v4846_v18 = vpop.f32.mrb[189].mxu1  ;;  %v5143_v1 = vadd.f32 1.0, %v8038_v14 }
 0x966   : > { %v5051_v9 = vadd.f32 %v5019_v20, %v11814_v29  ;;  %v11832_v25 = vadd.f32 %v11744_v51, %v4846_v18  ;;  %v5176_v44 = vmul.f32 0.5, %v5144_v27 }
 0x967   : > { %v5084_v38 = vmul.f32 0.7978846, %v5052_v16  ;;  %v4958_v55 = vmul.f32 %v11828_v17, %v11828_v17  ;;  %v5175_v46 = vmul.f32 0.5, %v5143_v1 }
 0x968   : > { %v5083_v40 = vmul.f32 0.7978846, %v5051_v9  ;;  %v4957_v61 = vmul.f32 %v11832_v25, %v11832_v25  ;;  %v5208_v11 = vmul.f32 %v5176_v44, %v11776_v45 }
 0x969   : > { %8043 = vtanh.f32 %v5084_v38  ;;  %v4990_v58 = vmul.f32 %v4958_v55, %v11828_v17  ;;  %v5207_v42 = vmul.f32 %v5175_v46, %v11780_v15 }
 0x96a   : > { %8045 = vtanh.f32 %v5083_v40  ;;  %v4989_v7 = vmul.f32 %v4957_v61, %v11832_v25 }
 0x96b   : > { %v8040_v22 = vpop.eup %8039  ;;  %v5022_v0 = vmul.f32 0.044715, %v4990_v58  ;;  %7389 = vmatprep.mubr.msk.f32.mxu0 %vm5248_vm1, %v5207_v42 }
 0x96c   : > { %v8042_v49 = vpop.eup %8041  ;;  %v5021_v14 = vmul.f32 0.044715, %v4989_v7  ;;  %v7339_v20 = vpop.f32.mrb[190].mxu1  ;;  %7390 = vmatmul.mubr.msk.f32.gmra.mrb[182].mxu0 %vm5248_vm1, %v5208_v11  ;;  %v5146_v32 = vadd.f32 1.0, %v8040_v22 }
 0x96d   : > { %v5054_v27 = vadd.f32 %v5022_v0, %v11828_v17  ;;  %v11846_v16 = vadd.f32 %v7339_v20, %v11744_v51  ;;  %v4856_v15 = vpop.f32.mrb[191].mxu1  ;;  %v5145_v18 = vadd.f32 1.0, %v8042_v49 }
 0x96e   : > { %v5053_v1 = vadd.f32 %v5021_v14, %v11832_v25  ;;  %v11850_v45 = vadd.f32 %v11744_v51, %v4856_v15  ;;  %v5178_v9 = vmul.f32 0.5, %v5146_v32 }
 0x96f   : > { %v5086_v44 = vmul.f32 0.7978846, %v5054_v27  ;;  %v4960_v38 = vmul.f32 %v11846_v16, %v11846_v16  ;;  %v5177_v55 = vmul.f32 0.5, %v5145_v18 }
 0x970   : > { %v5085_v46 = vmul.f32 0.7978846, %v5053_v1  ;;  %v4959_v40 = vmul.f32 %v11850_v45, %v11850_v45  ;;  %v5210_v7 = vmul.f32 %v5178_v9, %v11792_v39 }
 0x971   : > { %8047 = vtanh.f32 %v5086_v44  ;;  %v4992_v61 = vmul.f32 %v4960_v38, %v11846_v16  ;;  %v5209_v58 = vmul.f32 %v5177_v55, %v11796_v19 }
 0x972   : > { %8049 = vtanh.f32 %v5085_v46  ;;  %v4991_v42 = vmul.f32 %v4959_v40, %v11850_v45 }
 0x973   : > { %v8044_v11 = vpop.eup %8043  ;;  %v5024_v22 = vmul.f32 0.044715, %v4992_v61  ;;  %7392 = vmatprep.mubr.msk.f32.mxu0 %vm5248_vm1, %v5209_v58 }
 0x974   : > { %v8046_v0 = vpop.eup %8045  ;;  %v5023_v49 = vmul.f32 0.044715, %v4991_v42  ;;  %v7342_v14 = vpop.f32.mrb[192].mxu1  ;;  %7393 = vmatmul.mubr.msk.f32.gmra.mrb[184].mxu0 %vm5248_vm1, %v5210_v7  ;;  %v5148_v20 = vadd.f32 1.0, %v8044_v11 }
 0x975   : > { %v5056_v32 = vadd.f32 %v5024_v22, %v11846_v16  ;;  %v11864_v27 = vadd.f32 %v7342_v14, %v11744_v51  ;;  %v4866_v19 = vpop.f32.mrb[193].mxu1  ;;  %v5147_v15 = vadd.f32 1.0, %v8046_v0 }
 0x976   : > { %v5055_v18 = vadd.f32 %v5023_v49, %v11850_v45  ;;  %v11868_v39 = vadd.f32 %v11744_v51, %v4866_v19  ;;  %v5180_v1 = vmul.f32 0.5, %v5148_v20 }
 0x977   : > { %v5088_v9 = vmul.f32 0.7978846, %v5056_v32  ;;  %v4962_v44 = vmul.f32 %v11864_v27, %v11864_v27  ;;  %v5179_v38 = vmul.f32 0.5, %v5147_v15 }
 0x978   : > { %v5087_v55 = vmul.f32 0.7978846, %v5055_v18  ;;  %v4961_v46 = vmul.f32 %v11868_v39, %v11868_v39  ;;  %v5212_v42 = vmul.f32 %v5180_v1, %v11810_v48 }
 0x979   : > { %8051 = vtanh.f32 %v5088_v9  ;;  %v4994_v40 = vmul.f32 %v4962_v44, %v11864_v27  ;;  %v5211_v61 = vmul.f32 %v5179_v38, %v11814_v29 }
 0x97a   : > { %8053 = vtanh.f32 %v5087_v55  ;;  %v4993_v58 = vmul.f32 %v4961_v46, %v11868_v39 }
 0x97b   : > { %v8048_v7 = vpop.eup %8047  ;;  %v5026_v11 = vmul.f32 0.044715, %v4994_v40  ;;  %7395 = vmatprep.mubr.msk.f32.mxu0 %vm5248_vm1, %v5211_v61 }
 0x97c   : > { %v8050_v22 = vpop.eup %8049  ;;  %v5025_v0 = vmul.f32 0.044715, %v4993_v58  ;;  %v7345_v49 = vpop.f32.mrb[194].mxu1  ;;  %7396 = vmatmul.mubr.msk.f32.gmra.mrb[186].mxu0 %vm5248_vm1, %v5212_v42  ;;  %v5150_v14 = vadd.f32 1.0, %v8048_v7 }
 0x97d   : > { %v5058_v20 = vadd.f32 %v5026_v11, %v11864_v27  ;;  %v11882_v32 = vadd.f32 %v7345_v49, %v11744_v51  ;;  %v4876_v29 = vpop.f32.mrb[195].mxu1  ;;  %v5149_v19 = vadd.f32 1.0, %v8050_v22 }
 0x97e   : > { %v5057_v15 = vadd.f32 %v5025_v0, %v11868_v39  ;;  %v11886_v48 = vadd.f32 %v11744_v51, %v4876_v29  ;;  %v5182_v18 = vmul.f32 0.5, %v5150_v14 }
 0x97f   : > { %v5090_v1 = vmul.f32 0.7978846, %v5058_v20  ;;  %v4964_v9 = vmul.f32 %v11882_v32, %v11882_v32  ;;  %v5181_v44 = vmul.f32 0.5, %v5149_v19 }
 0x980   : > { %v5089_v38 = vmul.f32 0.7978846, %v5057_v15  ;;  %v4963_v55 = vmul.f32 %v11886_v48, %v11886_v48  ;;  %v5214_v58 = vmul.f32 %v5182_v18, %v11828_v17 }
 0x981   : > { %8055 = vtanh.f32 %v5090_v1  ;;  %v4996_v46 = vmul.f32 %v4964_v9, %v11882_v32  ;;  %v5213_v40 = vmul.f32 %v5181_v44, %v11832_v25 }
 0x982   : > { %8057 = vtanh.f32 %v5089_v38  ;;  %v4995_v61 = vmul.f32 %v4963_v55, %v11886_v48 }
 0x983   : > { %v8052_v42 = vpop.eup %8051  ;;  %v5028_v7 = vmul.f32 0.044715, %v4996_v46  ;;  %7398 = vmatprep.mubr.msk.f32.mxu0 %vm5248_vm1, %v5213_v40 }
 0x984   : > { %v8054_v11 = vpop.eup %8053  ;;  %v5027_v22 = vmul.f32 0.044715, %v4995_v61  ;;  %v7348_v0 = vpop.f32.mrb[196].mxu1  ;;  %7399 = vmatmul.mubr.msk.f32.gmra.mrb[188].mxu0 %vm5248_vm1, %v5214_v58  ;;  %v5152_v49 = vadd.f32 1.0, %v8052_v42 }
 0x985   : > { %v5060_v14 = vadd.f32 %v5028_v7, %v11882_v32  ;;  %v11900_v20 = vadd.f32 %v7348_v0, %v11744_v51  ;;  %v4886_v25 = vpop.f32.mrb[197].mxu1  ;;  %v5151_v29 = vadd.f32 1.0, %v8054_v11 }
 0x986   : > { %v5059_v19 = vadd.f32 %v5027_v22, %v11886_v48  ;;  %v11904_v17 = vadd.f32 %v11744_v51, %v4886_v25  ;;  %v5184_v15 = vmul.f32 0.5, %v5152_v49 }
 0x987   : > { %v5092_v18 = vmul.f32 0.7978846, %v5060_v14  ;;  %v4966_v1 = vmul.f32 %v11900_v20, %v11900_v20  ;;  %v5183_v9 = vmul.f32 0.5, %v5151_v29 }
 0x988   : > { %v5091_v44 = vmul.f32 0.7978846, %v5059_v19  ;;  %v4965_v38 = vmul.f32 %v11904_v17, %v11904_v17  ;;  %v5216_v61 = vmul.f32 %v5184_v15, %v11846_v16 }
 0x989   : > { %8059 = vtanh.f32 %v5092_v18  ;;  %v4998_v55 = vmul.f32 %v4966_v1, %v11900_v20  ;;  %v5215_v46 = vmul.f32 %v5183_v9, %v11850_v45 }
 0x98a   : > { %8061 = vtanh.f32 %v5091_v44  ;;  %v4997_v40 = vmul.f32 %v4965_v38, %v11904_v17 }
 0x98b   : > { %v8056_v58 = vpop.eup %8055  ;;  %v5030_v42 = vmul.f32 0.044715, %v4998_v55  ;;  %7401 = vmatprep.mubr.msk.f32.mxu0 %vm5248_vm1, %v5215_v46 }
 0x98c   : > { %v8058_v7 = vpop.eup %8057  ;;  %v5029_v11 = vmul.f32 0.044715, %v4997_v40  ;;  %v7351_v22 = vpop.f32.mrb[198].mxu1  ;;  %7402 = vmatmul.mubr.msk.f32.gmra.mrb[190].mxu0 %vm5248_vm1, %v5216_v61  ;;  %v5154_v0 = vadd.f32 1.0, %v8056_v58 }
 0x98d   : > { %v5062_v49 = vadd.f32 %v5030_v42, %v11900_v20  ;;  %v11918_v14 = vadd.f32 %v7351_v22, %v11744_v51  ;;  %v4896_v45 = vpop.f32.mrb[199].mxu1  ;;  %v5153_v25 = vadd.f32 1.0, %v8058_v7 }
 0x98e   : > { %v5061_v29 = vadd.f32 %v5029_v11, %v11904_v17  ;;  %v11922_v16 = vadd.f32 %v11744_v51, %v4896_v45  ;;  %v5186_v19 = vmul.f32 0.5, %v5154_v0 }
 0x98f   : > { %v5094_v15 = vmul.f32 0.7978846, %v5062_v49  ;;  %v4968_v18 = vmul.f32 %v11918_v14, %v11918_v14  ;;  %v5185_v1 = vmul.f32 0.5, %v5153_v25 }
 0x990   : > { %v5093_v9 = vmul.f32 0.7978846, %v5061_v29  ;;  %v4967_v44 = vmul.f32 %v11922_v16, %v11922_v16  ;;  %v5218_v40 = vmul.f32 %v5186_v19, %v11864_v27 }
 0x991   : > { %8063 = vtanh.f32 %v5094_v15  ;;  %v5000_v38 = vmul.f32 %v4968_v18, %v11918_v14  ;;  %v5217_v55 = vmul.f32 %v5185_v1, %v11868_v39 }
 0x992   : > { %8065 = vtanh.f32 %v5093_v9  ;;  %v4999_v46 = vmul.f32 %v4967_v44, %v11922_v16 }
 0x993   : > { %v8060_v61 = vpop.eup %8059  ;;  %v5032_v58 = vmul.f32 0.044715, %v5000_v38  ;;  %7404 = vmatprep.mubr.msk.f32.mxu0 %vm5248_vm1, %v5217_v55 }
 0x994   : > { %v8062_v42 = vpop.eup %8061  ;;  %v5031_v7 = vmul.f32 0.044715, %v4999_v46  ;;  %v7354_v11 = vpop.f32.mrb[200].mxu1  ;;  %7405 = vmatmul.mubr.msk.f32.gmra.mrb[192].mxu0 %vm5248_vm1, %v5218_v40  ;;  %v5156_v22 = vadd.f32 1.0, %v8060_v61 }
 0x995   : > { %v5064_v0 = vadd.f32 %v5032_v58, %v11918_v14  ;;  %v11936_v49 = vadd.f32 %v7354_v11, %v11744_v51  ;;  %v4906_v39 = vpop.f32.mrb[201].mxu1  ;;  %v5155_v45 = vadd.f32 1.0, %v8062_v42 }
 0x996   : > { %v5063_v25 = vadd.f32 %v5031_v7, %v11922_v16  ;;  %v11940_v27 = vadd.f32 %v11744_v51, %v4906_v39  ;;  %v5188_v29 = vmul.f32 0.5, %v5156_v22 }
 0x997   : > { %v5096_v19 = vmul.f32 0.7978846, %v5064_v0  ;;  %v4970_v15 = vmul.f32 %v11936_v49, %v11936_v49  ;;  %v5187_v18 = vmul.f32 0.5, %v5155_v45 }
 0x998   : > { %v5095_v1 = vmul.f32 0.7978846, %v5063_v25  ;;  %v4969_v9 = vmul.f32 %v11940_v27, %v11940_v27  ;;  %v5220_v46 = vmul.f32 %v5188_v29, %v11882_v32 }
 0x999   : > { %8067 = vtanh.f32 %v5096_v19  ;;  %v5002_v44 = vmul.f32 %v4970_v15, %v11936_v49  ;;  %v5219_v38 = vmul.f32 %v5187_v18, %v11886_v48 }
 0x99a   : > { %8069 = vtanh.f32 %v5095_v1  ;;  %v5001_v55 = vmul.f32 %v4969_v9, %v11940_v27 }
 0x99b   : > { %v8064_v40 = vpop.eup %8063  ;;  %v5034_v61 = vmul.f32 0.044715, %v5002_v44  ;;  %7407 = vmatprep.mubr.msk.f32.mxu0 %vm5248_vm1, %v5219_v38 }
 0x99c   : > { %v8066_v58 = vpop.eup %8065  ;;  %v5033_v42 = vmul.f32 0.044715, %v5001_v55  ;;  %v7357_v7 = vpop.f32.mrb[202].mxu1  ;;  %7408 = vmatmul.mubr.msk.f32.gmra.mrb[194].mxu0 %vm5248_vm1, %v5220_v46  ;;  %v5158_v11 = vadd.f32 1.0, %v8064_v40 }
 0x99d   : > { %v5066_v22 = vadd.f32 %v5034_v61, %v11936_v49  ;;  %v11954_v0 = vadd.f32 %v7357_v7, %v11744_v51  ;;  %v4916_v48 = vpop.f32.mrb[203].mxu1  ;;  %v5157_v39 = vadd.f32 1.0, %v8066_v58 }
 0x99e   : > { %v5065_v45 = vadd.f32 %v5033_v42, %v11940_v27  ;;  %v11958_v32 = vadd.f32 %v11744_v51, %v4916_v48  ;;  %v5190_v25 = vmul.f32 0.5, %v5158_v11 }
 0x99f   : > { %v5098_v29 = vmul.f32 0.7978846, %v5066_v22  ;;  %v4972_v19 = vmul.f32 %v11954_v0, %v11954_v0  ;;  %v5189_v15 = vmul.f32 0.5, %v5157_v39 }
 0x9a0   : > { %v5097_v18 = vmul.f32 0.7978846, %v5065_v45  ;;  %v4971_v1 = vmul.f32 %v11958_v32, %v11958_v32  ;;  %v5222_v55 = vmul.f32 %v5190_v25, %v11900_v20 }
 0x9a1   : > { %8071 = vtanh.f32 %v5098_v29  ;;  %v5004_v9 = vmul.f32 %v4972_v19, %v11954_v0  ;;  %v5221_v44 = vmul.f32 %v5189_v15, %v11904_v17 }
 0x9a2   : > { %8073 = vtanh.f32 %v5097_v18  ;;  %v5003_v38 = vmul.f32 %v4971_v1, %v11958_v32 }
 0x9a3   : > { %v8068_v46 = vpop.eup %8067  ;;  %v5036_v40 = vmul.f32 0.044715, %v5004_v9  ;;  %7410 = vmatprep.mubr.msk.f32.mxu0 %vm5248_vm1, %v5221_v44 }
 0x9a4   : > { %v8070_v61 = vpop.eup %8069  ;;  %v5035_v58 = vmul.f32 0.044715, %v5003_v38  ;;  %v7360_v42 = vpop.f32.mrb[204].mxu1  ;;  %7411 = vmatmul.mubr.msk.f32.gmra.mrb[196].mxu0 %vm5248_vm1, %v5222_v55  ;;  %v5160_v7 = vadd.f32 1.0, %v8068_v46 }
 0x9a5   : > { %v5068_v11 = vadd.f32 %v5036_v40, %v11954_v0  ;;  %v11972_v22 = vadd.f32 %v7360_v42, %v11744_v51  ;;  %v4926_v17 = vpop.f32.mrb[205].mxu1  ;;  %v5159_v48 = vadd.f32 1.0, %v8070_v61 }
 0x9a6   : > { %v5067_v39 = vadd.f32 %v5035_v58, %v11958_v32  ;;  %v11976_v20 = vadd.f32 %v11744_v51, %v4926_v17  ;;  %v5192_v45 = vmul.f32 0.5, %v5160_v7 }
 0x9a7   : > { %v5100_v25 = vmul.f32 0.7978846, %v5068_v11  ;;  %v4974_v29 = vmul.f32 %v11972_v22, %v11972_v22  ;;  %v5191_v19 = vmul.f32 0.5, %v5159_v48 }
 0x9a8   : > { %v5099_v15 = vmul.f32 0.7978846, %v5067_v39  ;;  %v4973_v18 = vmul.f32 %v11976_v20, %v11976_v20  ;;  %v5224_v38 = vmul.f32 %v5192_v45, %v11918_v14 }
 0x9a9   : > { %8075 = vtanh.f32 %v5100_v25  ;;  %v5006_v1 = vmul.f32 %v4974_v29, %v11972_v22  ;;  %v5223_v9 = vmul.f32 %v5191_v19, %v11922_v16 }
 0x9aa   : > { %8077 = vtanh.f32 %v5099_v15  ;;  %v5005_v44 = vmul.f32 %v4973_v18, %v11976_v20 }
 0x9ab   : > { %v8072_v55 = vpop.eup %8071  ;;  %v5038_v46 = vmul.f32 0.044715, %v5006_v1  ;;  %7413 = vmatprep.mubr.msk.f32.mxu0 %vm5248_vm1, %v5223_v9 }
 0x9ac   : > { %v8074_v40 = vpop.eup %8073  ;;  %v5037_v61 = vmul.f32 0.044715, %v5005_v44  ;;  %v7363_v58 = vpop.f32.mrb[206].mxu1  ;;  %7414 = vmatmul.mubr.msk.f32.gmra.mrb[198].mxu0 %vm5248_vm1, %v5224_v38  ;;  %v5162_v42 = vadd.f32 1.0, %v8072_v55 }
 0x9ad   : > { %v5070_v7 = vadd.f32 %v5038_v46, %v11972_v22  ;;  %v4942_v11 = vadd.f32 %v7363_v58, %v11744_v51  ;;  %v4936_v16 = vpop.f32.mrb[207].mxu1  ;;  %v5161_v17 = vadd.f32 1.0, %v8074_v40 }
 0x9ae   : > { %v5069_v48 = vadd.f32 %v5037_v61, %v11976_v20  ;;  %v4937_v14 = vadd.f32 %v11744_v51, %v4936_v16  ;;  %v5194_v39 = vmul.f32 0.5, %v5162_v42 }
 0x9af   : > { %v5102_v45 = vmul.f32 0.7978846, %v5070_v7  ;;  %v4976_v25 = vmul.f32 %v4942_v11, %v4942_v11  ;;  %v5193_v29 = vmul.f32 0.5, %v5161_v17 }
 0x9b0   : > { %v5101_v19 = vmul.f32 0.7978846, %v5069_v48  ;;  %v4975_v15 = vmul.f32 %v4937_v14, %v4937_v14  ;;  %v5226_v44 = vmul.f32 %v5194_v39, %v11936_v49 }
 0x9b1   : > { %8079 = vtanh.f32 %v5102_v45  ;;  %v5008_v18 = vmul.f32 %v4976_v25, %v4942_v11  ;;  %v5225_v1 = vmul.f32 %v5193_v29, %v11940_v27 }
 0x9b2   : > { %8081 = vtanh.f32 %v5101_v19  ;;  %v5007_v9 = vmul.f32 %v4975_v15, %v4937_v14 }
 0x9b3   : > { %v8076_v38 = vpop.eup %8075  ;;  %v5040_v55 = vmul.f32 0.044715, %v5008_v18  ;;  %7416 = vmatprep.mubr.msk.f32.mxu0 %vm5248_vm1, %v5225_v1 }
 0x9b4   : > { %v8078_v46 = vpop.eup %8077  ;;  %v5039_v51 = vmul.f32 0.044715, %v5007_v9  ;;  %7417 = vmatmul.mubr.msk.f32.gmra.mrb[200].mxu0 %vm5248_vm1, %v5226_v44  ;;  %v5164_v40 = vadd.f32 1.0, %v8076_v38 }
 0x9b5   : > { %v5072_v61 = vadd.f32 %v5040_v55, %v4942_v11  ;;  %v5163_v58 = vadd.f32 1.0, %v8078_v46 }
 0x9b6   : > { %v5071_v42 = vadd.f32 %v5039_v51, %v4937_v14  ;;  %v5196_v7 = vmul.f32 0.5, %v5164_v40 }
 0x9b7   : > { %v5104_v16 = vmul.f32 0.7978846, %v5072_v61  ;;  %v5195_v17 = vmul.f32 0.5, %v5163_v58 }
 0x9b8   : > { %v5103_v27 = vmul.f32 0.7978846, %v5071_v42  ;;  %v5228_v49 = vmul.f32 %v5196_v7, %v11954_v0 }
 0x9b9   : > { %8083 = vtanh.f32 %v5104_v16  ;;  %v5227_v48 = vmul.f32 %v5195_v17, %v11958_v32 }
 0x9ba   : > { %8085 = vtanh.f32 %v5103_v27 }
 0x9bb   : > { %v8080_v39 = vpop.eup %8079  ;;  %7419 = vmatprep.mubr.msk.f32.mxu0 %vm5248_vm1, %v5227_v48 }
 0x9bc   : > { %v8082_v45 = vpop.eup %8081  ;;  %7420 = vmatmul.mubr.msk.f32.gmra.mrb[202].mxu0 %vm5248_vm1, %v5228_v49  ;;  %v5166_v25 = vadd.f32 1.0, %v8080_v39 }
 0x9bd   : > { %v5165_v29 = vadd.f32 1.0, %v8082_v45 }
 0x9be   : > { %v5198_v19 = vmul.f32 0.5, %v5166_v25 }
 0x9bf   : > { %v5197_v15 = vmul.f32 0.5, %v5165_v29 }
 0x9c0   : > { %v5230_v1 = vmul.f32 %v5198_v19, %v11972_v22  ;;  %v12010_v22 = vld [vmem:[%s13018_s20] ss:$0 sm:$0xff] }
 0x9c1   : > { %v5229_v18 = vmul.f32 %v5197_v15, %v11976_v20 }
 0x9c3   : > { %v8084_v9 = vpop.eup %8083  ;;  %7422 = vmatprep.mubr.msk.f32.mxu0 %vm5248_vm1, %v5229_v18 }
 0x9c4   : > { %v8086_v32 = vpop.eup %8085  ;;  %7423 = vmatmul.mubr.msk.f32.gmra.mrb[204].mxu0 %vm5248_vm1, %v5230_v1  ;;  %v5168_v0 = vadd.f32 1.0, %v8084_v9 }
 0x9c5   : > { %v5167_v44 = vadd.f32 1.0, %v8086_v32 }
 0x9c6   : > { %v5200_v38 = vmul.f32 0.5, %v5168_v0 }
 0x9c7   : > { %v5199_v55 = vmul.f32 0.5, %v5167_v44 }
 0x9c8   : > { %v5232_v51 = vmul.f32 %v5200_v38, %v4942_v11 }
 0x9c9   : > { %v5231_v46 = vmul.f32 %v5199_v55, %v4937_v14 }
 0x9cb   : > { %7425 = vmatprep.mubr.msk.f32.mxu0 %vm5248_vm1, %v5231_v46 }
 0x9cc   : > { %7426 = vmatmul.mubr.msk.f32.gmra.mrb[206].mxu0 %vm5248_vm1, %v5232_v51 }
 0x9cd   : > { %5923 = vmatprep.mubr.f32.mxu0 %v11738_v13 }
 0xa27   : > { %v7382_v20 = vpop.f32.mrb[176].mxu0 }
 0xa28   : > { %v12013_v40 = vadd.f32 %v7382_v20, %v12010_v22  ;;  %v5411_v61 = vpop.f32.mrb[177].mxu0 }
 0xa29   : > { %v12016_v58 = vadd.f32 %v12010_v22, %v5411_v61 }
 0xa2b   : > { %v7653_v11 = vpack.c.bf16 %v12013_v40, %v12016_v58 }
 0xa2d   : > { %7654 = vmatpush1.bf16.msra.mxu1 %v7653_v11 }
 0xa2e   : > { %7655 = vmatprep.subr.bf16.mxu1 %v13178_v3 }
 0xa2f   : > { %v7385_v13 = vpop.f32.mrb[178].mxu0 }
 0xa30   : > { %v12022_v14 = vadd.f32 %v7385_v13, %v12010_v22  ;;  %v5421_v42 = vpop.f32.mrb[179].mxu0 }
 0xa31   : > { %v12025_v7 = vadd.f32 %v12010_v22, %v5421_v42 }
 0xa33   : > { %v7656_v16 = vpack.c.bf16 %v12022_v14, %v12025_v7 }
 0xa35   : > { %7657 = vmatpush1.bf16.msra.mxu1 %v7656_v16 }
 0xa36   : > { %7658 = vmatprep.subr.bf16.mxu1 %v13178_v3 }
 0xa37   : > { %v7388_v17 = vpop.f32.mrb[180].mxu0 }
 0xa38   : > { %v12031_v27 = vadd.f32 %v7388_v17, %v12010_v22  ;;  %v5431_v48 = vpop.f32.mrb[181].mxu0 }
 0xa39   : > { %v12034_v49 = vadd.f32 %v12010_v22, %v5431_v48 }
 0xa3b   : > { %v7659_v39 = vpack.c.bf16 %v12031_v27, %v12034_v49 }
 0xa3d   : > { %7660 = vmatpush1.bf16.msra.mxu1 %v7659_v39 }
 0xa3e   : > { %7661 = vmatprep.subr.bf16.mxu1 %v13178_v3 }
 0xa3f   : > { %v7391_v45 = vpop.f32.mrb[182].mxu0 }
 0xa40   : > { %v12040_v25 = vadd.f32 %v7391_v45, %v12010_v22  ;;  %v5441_v29 = vpop.f32.mrb[183].mxu0 }
 0xa41   : > { %v12043_v19 = vadd.f32 %v12010_v22, %v5441_v29 }
 0xa43   : > { %v7662_v15 = vpack.c.bf16 %v12040_v25, %v12043_v19 }
 0xa45   : > { %7663 = vmatpush1.bf16.msra.mxu1 %v7662_v15 }
 0xa46   : > { %7664 = vmatprep.subr.bf16.mxu1 %v13178_v3 }
 0xa47   : > { %v7394_v18 = vpop.f32.mrb[184].mxu0 }
 0xa48   : > { %v12049_v1 = vadd.f32 %v7394_v18, %v12010_v22  ;;  %v5451_v9 = vpop.f32.mrb[185].mxu0 }
 0xa49   : > { %v12052_v32 = vadd.f32 %v12010_v22, %v5451_v9 }
 0xa4b   : > { %v7665_v0 = vpack.c.bf16 %v12049_v1, %v12052_v32 }
 0xa4d   : > { %7666 = vmatpush1.bf16.msra.mxu1 %v7665_v0 }
 0xa4e   : > { %7667 = vmatprep.subr.bf16.mxu1 %v13178_v3 }
 0xa4f   : > { %v7397_v44 = vpop.f32.mrb[186].mxu0 }
 0xa50   : > { %v12058_v38 = vadd.f32 %v7397_v44, %v12010_v22  ;;  %v5461_v55 = vpop.f32.mrb[187].mxu0 }
 0xa51   : > { %v12061_v46 = vadd.f32 %v12010_v22, %v5461_v55 }
 0xa53   : > { %v7668_v51 = vpack.c.bf16 %v12058_v38, %v12061_v46 }
 0xa55   : > { %7669 = vmatpush1.bf16.msra.mxu1 %v7668_v51 }
 0xa56   : > { %7670 = vmatprep.subr.bf16.mxu1 %v13178_v3 }
 0xa57   : > { %v7400_v20 = vpop.f32.mrb[188].mxu0 }
 0xa58   : > { %v12067_v61 = vadd.f32 %v7400_v20, %v12010_v22  ;;  %v5471_v11 = vpop.f32.mrb[189].mxu0 }
 0xa59   : > { %v12070_v13 = vadd.f32 %v12010_v22, %v5471_v11 }
 0xa5b   : > { %v7671_v42 = vpack.c.bf16 %v12067_v61, %v12070_v13 }
 0xa5d   : > { %7672 = vmatpush1.bf16.msra.mxu1 %v7671_v42 }
 0xa5e   : > { %7673 = vmatprep.subr.bf16.mxu1 %v13178_v3 }
 0xa5f   : > { %v7403_v16 = vpop.f32.mrb[190].mxu0 }
 0xa60   : > { %v12076_v17 = vadd.f32 %v7403_v16, %v12010_v22  ;;  %v5481_v48 = vpop.f32.mrb[191].mxu0 }
 0xa61   : > { %v12079_v39 = vadd.f32 %v12010_v22, %v5481_v48 }
 0xa63   : > { %v7674_v45 = vpack.c.bf16 %v12076_v17, %v12079_v39 }
 0xa65   : > { %7675 = vmatpush1.bf16.msra.mxu1 %v7674_v45 }
 0xa66   : > { %7676 = vmatprep.subr.bf16.mxu1 %v13178_v3 }
 0xa67   : > { %v7406_v29 = vpop.f32.mrb[192].mxu0 }
 0xa68   : > { %v12085_v15 = vadd.f32 %v7406_v29, %v12010_v22  ;;  %v5491_v18 = vpop.f32.mrb[193].mxu0 }
 0xa69   : > { %v12088_v9 = vadd.f32 %v12010_v22, %v5491_v18 }
 0xa6b   : > { %v7677_v0 = vpack.c.bf16 %v12085_v15, %v12088_v9 }
 0xa6d   : > { %7678 = vmatpush1.bf16.msra.mxu1 %v7677_v0 }
 0xa6e   : > { %7679 = vmatprep.subr.bf16.mxu1 %v13178_v3 }
 0xa6f   : > { %v7409_v44 = vpop.f32.mrb[194].mxu0 }
 0xa70   : > { %v12094_v55 = vadd.f32 %v7409_v44, %v12010_v22  ;;  %v5501_v51 = vpop.f32.mrb[195].mxu0 }
 0xa71   : > { %v12097_v20 = vadd.f32 %v12010_v22, %v5501_v51 }
 0xa73   : > { %v7680_v11 = vpack.c.bf16 %v12094_v55, %v12097_v20 }
 0xa75   : > { %7681 = vmatpush1.bf16.msra.mxu1 %v7680_v11 }
 0xa76   : > { %7682 = vmatprep.subr.bf16.mxu1 %v13178_v3 }
 0xa77   : > { %v7412_v42 = vpop.f32.mrb[196].mxu0 }
 0xa78   : > { %v12103_v16 = vadd.f32 %v7412_v42, %v12010_v22  ;;  %v5511_v48 = vpop.f32.mrb[197].mxu0 }
 0xa79   : > { %v12106_v45 = vadd.f32 %v12010_v22, %v5511_v48 }
 0xa7b   : > { %v7683_v29 = vpack.c.bf16 %v12103_v16, %v12106_v45 }
 0xa7d   : > { %7684 = vmatpush1.bf16.msra.mxu1 %v7683_v29 }
 0xa7e   : > { %7685 = vmatprep.subr.bf16.mxu1 %v13178_v3 }
 0xa7f   : > { %v7415_v18 = vpop.f32.mrb[198].mxu0 }
 0xa80   : > { %v12112_v0 = vadd.f32 %v7415_v18, %v12010_v22  ;;  %v5521_v44 = vpop.f32.mrb[199].mxu0 }
 0xa81   : > { %v12115_v51 = vadd.f32 %v12010_v22, %v5521_v44 }
 0xa83   : > { %v7686_v11 = vpack.c.bf16 %v12112_v0, %v12115_v51 }
 0xa85   : > { %7687 = vmatpush1.bf16.msra.mxu1 %v7686_v11 }
 0xa86   : > { %7688 = vmatprep.subr.bf16.mxu1 %v13178_v3 }
 0xa87   : > { %v7418_v42 = vpop.f32.mrb[200].mxu0 }
 0xa88   : > { %v12121_v48 = vadd.f32 %v7418_v42, %v12010_v22  ;;  %v5531_v29 = vpop.f32.mrb[201].mxu0 }
 0xa89   : > { %v12124_v52 = vadd.f32 %v12010_v22, %v5531_v29 }
 0xa8b   : > { %v7689_v18 = vpack.c.bf16 %v12121_v48, %v12124_v52 }
 0xa8d   : > { %7690 = vmatpush1.bf16.msra.mxu1 %v7689_v18 }
 0xa8e   : > { %7691 = vmatprep.subr.bf16.mxu1 %v13178_v3 }
 0xa8f   : > { %v7421_v44 = vpop.f32.mrb[202].mxu0 }
 0xa90   : > { %v12130_v59 = vadd.f32 %v7421_v44, %v12010_v22  ;;  %v5541_v11 = vpop.f32.mrb[203].mxu0 }
 0xa91   : > { %v12133_v34 = vadd.f32 %v12010_v22, %v5541_v11 }
 0xa93   : > { %v7692_v42 = vpack.c.bf16 %v12130_v59, %v12133_v34 }
 0xa95   : > { %7693 = vmatpush1.bf16.msra.mxu1 %v7692_v42 }
 0xa96   : > { %7694 = vmatprep.subr.bf16.mxu1 %v13178_v3 }
 0xa97   : > { %v7424_v29 = vpop.f32.mrb[204].mxu0 }
 0xa98   : > { %v12139_v60 = vadd.f32 %v7424_v29, %v12010_v22  ;;  %v5551_v18 = vpop.f32.mrb[205].mxu0 }
 0xa99   : > { %v12142_v8 = vadd.f32 %v12010_v22, %v5551_v18  ;;  %v12158_v18 = vld [vmem:[%s13008_s10] sm:$0xff] }
 0xa9b   : > { %v7695_v44 = vpack.c.bf16 %v12139_v60, %v12142_v8 }
 0xa9d   : > { %7696 = vmatpush1.bf16.msra.mxu1 %v7695_v44  ;;  %v12164_v44 = vld [vmem:[%s13008_s10 + $0x18] sm:$0xff] }
 0xa9e   : > { %7697 = vmatprep.subr.bf16.mxu1 %v13178_v3 }
 0xa9f   : > { %v7427_v11 = vpop.f32.mrb[206].mxu0 }
 0xaa0   : > { %v12148_v10 = vadd.f32 %v7427_v11, %v12010_v22  ;;  %v5561_v42 = vpop.f32.mrb[207].mxu0  ;;  %v12176_v11 = vld [vmem:[%s13008_s10 + $0x28] sm:$0xff] }
 0xaa1   : > { %v12151_v28 = vadd.f32 %v12010_v22, %v5561_v42  ;;  %v12170_v22 = vld [vmem:[%s13008_s10 + $0x10] sm:$0xff]  ;;  %v12182_v42 = vld [vmem:[%s13008_s10 + $0x20] sm:$0xff] }
 0xaa3   : > { %v7698_v29 = vpack.c.bf16 %v12148_v10, %v12151_v28 }
 0xaa5   : > { %7699 = vmatpush1.bf16.msra.mxu1 %v7698_v29  ;;  %v12188_v29 = vld [vmem:[%s13008_s10 + $0x38] sm:$0xff] }
 0xaa8   : > { %5635 = vmatmul.mubr.f32.vlgmr.msra.gmra.mrb[208].mxu1 %v12158_v18 }
 0xaa9   : > { %5639 = vmatprep.mubr.f32.mxu1 %v12164_v44 }
 0xaac   : > { %5640 = vmatmul.mubr.f32.gmra.mrb[210].mxu1 %v12170_v22 }
 0xaad   : > { %5644 = vmatprep.mubr.f32.mxu1 %v12176_v11 }
 0xab0   : > { %5645 = vmatmul.mubr.f32.gmra.mrb[212].mxu1 %v12182_v42 }
 0xab1   : > { %5649 = vmatprep.mubr.f32.mxu1 %v12188_v29 }
 0xab4   : > { %5650 = vmatmul.mubr.f32.gmra.mrb[214].mxu1 %v12194_v43 }
 0xab5   : > { %5654 = vmatprep.mubr.f32.mxu1 %v12200_v53 }
 0xab8   : > { %5655 = vmatmul.mubr.f32.gmra.mrb[216].mxu1 %v12206_v36 }
 0xab9   : > { %5659 = vmatprep.mubr.f32.mxu1 %v12212_v56 }
 0xabc   : > { %5660 = vmatmul.mubr.f32.gmra.mrb[218].mxu1 %v12218_v37 }
 0xabd   : > { %5664 = vmatprep.mubr.f32.mxu1 %v12224_v35 }
 0xac0   : > { %5665 = vmatmul.mubr.f32.gmra.mrb[220].mxu1 %v12230_v30 }
 0xac1   : > { %5669 = vmatprep.mubr.f32.mxu1 %v12236_v62 }
 0xac4   : > { %5670 = vmatmul.mubr.f32.gmra.mrb[222].mxu1 %v12242_v57 }
 0xac5   : > { %5674 = vmatprep.mubr.f32.mxu1 %v12248_v5 }
 0xac8   : > { %5675 = vmatmul.mubr.f32.gmra.mrb[224].mxu1 %v12254_v6 }
 0xac9   : > { %5679 = vmatprep.mubr.f32.mxu1 %v12260_v50 }
 0xacc   : > { %5680 = vmatmul.mubr.f32.gmra.mrb[226].mxu1 %v12266_v2 }
 0xacd   : > { %5684 = vmatprep.mubr.f32.mxu1 %v12272_v23 }
 0xad0   : > { %5685 = vmatmul.mubr.f32.gmra.mrb[228].mxu1 %v12278_v54 }
 0xad1   : > { %5689 = vmatprep.mubr.f32.mxu1 %v12284_v12 }
 0xad4   : > { %5690 = vmatmul.mubr.f32.gmra.mrb[230].mxu1 %v12290_v21 }
 0xad5   : > { %5694 = vmatprep.mubr.f32.mxu1 %v12296_v63 }
 0xad8   : > { %5695 = vmatmul.mubr.f32.gmra.mrb[232].mxu1 %v12302_v24 }
 0xad9   : > { %5699 = vmatprep.mubr.f32.mxu1 %v12308_v26 }
 0xadc   : > { %5700 = vmatmul.mubr.f32.gmra.mrb[234].mxu1 %v12314_v33 }
 0xadd   : > { %5704 = vmatprep.mubr.f32.mxu1 %v12320_v47  ;;  %v12344_v47 = vld [vmem:[%s13008_s10 + $0x108] sm:$0xff] }
 0xade   : > { %13270 = vst [vmem:[#allocation46_spill] sm:$0xff] %v12344_v47 }
 0xae0   : > { %5705 = vmatmul.mubr.f32.gmra.mrb[236].mxu1 %v12326_v31  ;;  %v12350_v31 = vld [vmem:[%s13008_s10 + $0x100] sm:$0xff] }
 0xae1   : > { %5709 = vmatprep.mubr.f32.mxu1 %v12332_v4  ;;  %13271 = vst [vmem:[#allocation47_spill] sm:$0xff] %v12350_v31  ;;  %v12356_v4 = vld [vmem:[%s13008_s10 + $0x118] sm:$0xff] }
 0xae2   : > { %13272 = vst [vmem:[#allocation48_spill] sm:$0xff] %v12356_v4 }
 0xae4   : > { %5710 = vmatmul.mubr.f32.gmra.mrb[238].mxu1 %v12338_v41  ;;  %v12362_v41 = vld [vmem:[%s13008_s10 + $0x110] sm:$0xff] }
 0xae5   : > { %5714 = vmatprep.mubr.f32.mxu1 %v12344_v47  ;;  %13273 = vst [vmem:[#allocation49_spill] sm:$0xff] %v12362_v41  ;;  %v12368_v47 = vld [vmem:[%s13008_s10 + $0x128] sm:$0xff] }
 0xae6   : > { %13274 = vst [vmem:[#allocation50_spill] sm:$0xff] %v12368_v47 }
 0xae8   : > { %5715 = vmatmul.mubr.f32.gmra.mrb[240].mxu1 %v12350_v31  ;;  %v12374_v31 = vld [vmem:[%s13008_s10 + $0x120] sm:$0xff] }
 0xae9   : > { %5719 = vmatprep.mubr.f32.mxu1 %v12356_v4  ;;  %13275 = vst [vmem:[#allocation51_spill] sm:$0xff] %v12374_v31  ;;  %v12380_v4 = vld [vmem:[%s13008_s10 + $0x138] sm:$0xff] }
 0xaea   : > { %13276 = vst [vmem:[#allocation52_spill] sm:$0xff] %v12380_v4 }
 0xaec   : > { %5720 = vmatmul.mubr.f32.gmra.mrb[242].mxu1 %v12362_v41  ;;  %v12386_v41 = vld [vmem:[%s13008_s10 + $0x130] sm:$0xff] }
 0xaed   : > { %5724 = vmatprep.mubr.f32.mxu1 %v12368_v47  ;;  %13277 = vst [vmem:[#allocation53_spill] sm:$0xff] %v12386_v41  ;;  %v12392_v47 = vld [vmem:[%s13008_s10 + $0x148] sm:$0xff] }
 0xaee   : > { %13278 = vst [vmem:[#allocation54_spill] sm:$0xff] %v12392_v47 }
 0xaf0   : > { %5725 = vmatmul.mubr.f32.gmra.mrb[244].mxu1 %v12374_v31  ;;  %v12398_v31 = vld [vmem:[%s13008_s10 + $0x140] sm:$0xff] }
 0xaf1   : > { %5729 = vmatprep.mubr.f32.mxu1 %v12380_v4  ;;  %13279 = vst [vmem:[#allocation55_spill] sm:$0xff] %v12398_v31  ;;  %v12404_v4 = vld [vmem:[%s13008_s10 + $0x158] sm:$0xff] }
 0xaf2   : > { %13280 = vst [vmem:[#allocation56_spill] sm:$0xff] %v12404_v4 }
 0xaf4   : > { %5730 = vmatmul.mubr.f32.gmra.mrb[246].mxu1 %v12386_v41  ;;  %v12410_v41 = vld [vmem:[%s13008_s10 + $0x150] sm:$0xff] }
 0xaf5   : > { %5734 = vmatprep.mubr.f32.mxu1 %v12392_v47  ;;  %13281 = vst [vmem:[#allocation57_spill] sm:$0xff] %v12410_v41  ;;  %v12416_v47 = vld [vmem:[%s13008_s10 + $0x168] sm:$0xff] }
 0xaf6   : > { %13282 = vst [vmem:[#allocation58_spill] sm:$0xff] %v12416_v47 }
 0xaf8   : > { %5735 = vmatmul.mubr.f32.gmra.mrb[248].mxu1 %v12398_v31  ;;  %v12422_v31 = vld [vmem:[%s13008_s10 + $0x160] sm:$0xff] }
 0xaf9   : > { %5739 = vmatprep.mubr.f32.mxu1 %v12404_v4  ;;  %13283 = vst [vmem:[#allocation59_spill] sm:$0xff] %v12422_v31  ;;  %v12428_v4 = vld [vmem:[%s13008_s10 + $0x178] sm:$0xff] }
 0xafa   : > { %13284 = vst [vmem:[#allocation60_spill] sm:$0xff] %v12428_v4 }
 0xafc   : > { %5740 = vmatmul.mubr.f32.gmra.mrb[250].mxu1 %v12410_v41  ;;  %v12434_v41 = vld [vmem:[%s13008_s10 + $0x170] sm:$0xff] }
 0xafd   : > { %5744 = vmatprep.mubr.f32.mxu1 %v12416_v47  ;;  %13285 = vst [vmem:[#allocation61_spill] sm:$0xff] %v12434_v41  ;;  %v12440_v47 = vld [vmem:[%s13008_s10 + $0x188] sm:$0xff] }
 0xafe   : > { %13286 = vst [vmem:[#allocation62_spill] sm:$0xff] %v12440_v47 }
 0xb00   : > { %5745 = vmatmul.mubr.f32.gmra.mrb[252].mxu1 %v12422_v31  ;;  %v12446_v31 = vld [vmem:[%s13008_s10 + $0x180] sm:$0xff] }
 0xb01   : > { %5749 = vmatprep.mubr.f32.mxu1 %v12428_v4  ;;  %13287 = vst [vmem:[#allocation63_spill] sm:$0xff] %v12446_v31  ;;  %v12452_v4 = vld [vmem:[%s13008_s10 + $0x198] sm:$0xff] }
 0xb02   : > { %13288 = vst [vmem:[#allocation64_spill] sm:$0xff] %v12452_v4 }
 0xb04   : > { %5750 = vmatmul.mubr.f32.gmra.mrb[254].mxu1 %v12434_v41  ;;  %v12458_v41 = vld [vmem:[%s13008_s10 + $0x190] sm:$0xff] }
 0xb05   : > { %5754 = vmatprep.mubr.f32.mxu1 %v12440_v47  ;;  %13289 = vst [vmem:[#allocation65_spill] sm:$0xff] %v12458_v41  ;;  %v12464_v47 = vld [vmem:[%s13008_s10 + $0x1a8] sm:$0xff] }
 0xb06   : > { %13290 = vst [vmem:[#allocation66_spill] sm:$0xff] %v12464_v47 }
 0xb08   : > { %5755 = vmatmul.mubr.f32.gmra.mrb[0].mxu1 %v12446_v31  ;;  %v12470_v31 = vld [vmem:[%s13008_s10 + $0x1a0] sm:$0xff] }
 0xb09   : > { %5759 = vmatprep.mubr.f32.mxu1 %v12452_v4  ;;  %13291 = vst [vmem:[#allocation67_spill] sm:$0xff] %v12470_v31  ;;  %v12476_v4 = vld [vmem:[%s13008_s10 + $0x1b8] sm:$0xff] }
 0xb0a   : > { %13292 = vst [vmem:[#allocation68_spill] sm:$0xff] %v12476_v4 }
 0xb0c   : > { %5760 = vmatmul.mubr.f32.gmra.mrb[2].mxu1 %v12458_v41  ;;  %v12482_v41 = vld [vmem:[%s13008_s10 + $0x1b0] sm:$0xff] }
 0xb0d   : > { %5764 = vmatprep.mubr.f32.mxu1 %v12464_v47  ;;  %13293 = vst [vmem:[#allocation69_spill] sm:$0xff] %v12482_v41  ;;  %v12488_v47 = vld [vmem:[%s13008_s10 + $0x1c8] sm:$0xff] }
 0xb0e   : > { %13294 = vst [vmem:[#allocation70_spill] sm:$0xff] %v12488_v47 }
 0xb10   : > { %5765 = vmatmul.mubr.f32.gmra.mrb[4].mxu1 %v12470_v31  ;;  %v12494_v31 = vld [vmem:[%s13008_s10 + $0x1c0] sm:$0xff] }
 0xb11   : > { %5769 = vmatprep.mubr.f32.mxu1 %v12476_v4  ;;  %13295 = vst [vmem:[#allocation71_spill] sm:$0xff] %v12494_v31  ;;  %v12500_v4 = vld [vmem:[%s13008_s10 + $0x1d8] sm:$0xff] }
 0xb12   : > { %13296 = vst [vmem:[#allocation72_spill] sm:$0xff] %v12500_v4 }
 0xb14   : > { %5770 = vmatmul.mubr.f32.gmra.mrb[6].mxu1 %v12482_v41  ;;  %v12506_v41 = vld [vmem:[%s13008_s10 + $0x1d0] sm:$0xff] }
 0xb15   : > { %5774 = vmatprep.mubr.f32.mxu1 %v12488_v47  ;;  %13297 = vst [vmem:[#allocation73_spill] sm:$0xff] %v12506_v41  ;;  %v12512_v47 = vld [vmem:[%s13008_s10 + $0x1e8] sm:$0xff] }
 0xb16   : > { %13298 = vst [vmem:[#allocation74_spill] sm:$0xff] %v12512_v47 }
 0xb18   : > { %5775 = vmatmul.mubr.f32.gmra.mrb[8].mxu1 %v12494_v31  ;;  %v12518_v31 = vld [vmem:[%s13008_s10 + $0x1e0] sm:$0xff] }
 0xb19   : > { %5779 = vmatprep.mubr.f32.mxu1 %v12500_v4  ;;  %13299 = vst [vmem:[#allocation75_spill] sm:$0xff] %v12518_v31  ;;  %v12524_v4 = vld [vmem:[%s13008_s10 + $0x1f8] sm:$0xff] }
 0xb1a   : > { %13300 = vst [vmem:[#allocation76_spill] sm:$0xff] %v12524_v4 }
 0xb1c   : > { %5780 = vmatmul.mubr.f32.gmra.mrb[10].mxu1 %v12506_v41  ;;  %v12530_v41 = vld [vmem:[%s13008_s10 + $0x1f0] sm:$0xff] }
 0xb1d   : > { %5784 = vmatprep.mubr.f32.mxu1 %v12512_v47  ;;  %13301 = vst [vmem:[#allocation77_spill] sm:$0xff] %v12530_v41 }
 0xb20   : > { %5785 = vmatmul.mubr.f32.gmra.mrb[12].mxu1 %v12518_v31 }
 0xb21   : > { %5789 = vmatprep.mubr.f32.mxu1 %v12524_v4 }
 0xb24   : > { %5790 = vmatmul.mubr.f32.gmra.mrb[14].mxu1 %v12530_v41 }
 0xb7b   : > { %v5636_v47 = vpop.f32.mrb[208].mxu1 }
 0xb7c   : > { %v5638_v33 = vpop.f32.mrb[209].mxu1  ;;  %v12534_v26 = vsub.f32 %v12016_v58, %v5636_v47 }
 0xb7e   : > { %v5827_v4 = vmul.f32 %v12534_v26, %v12534_v26 }
 0xb7f   : > { %v5641_v31 = vpop.f32.mrb[210].mxu1 }
 0xb80   : > { %v12537_v24 = vsub.f32 %v12013_v40, %v5641_v31  ;;  %v5643_v63 = vpop.f32.mrb[211].mxu1 }
 0xb82   : > { %v5828_v21 = vmul.f32 %v12537_v24, %v12537_v24 }
 0xb83   : > { %v5646_v12 = vpop.f32.mrb[212].mxu1 }
 0xb84   : > { %v7701_v54 = vpack.c.bf16 %v5828_v21, %v5827_v4  ;;  %v5648_v23 = vpop.f32.mrb[213].mxu1  ;;  %v12544_v41 = vsub.f32 %v12025_v7, %v5646_v12 }
 0xb86   : > { %7702 = vmatpush1.bf16.msra.mxu0 %v7701_v54  ;;  %v5829_v63 = vmul.f32 %v12544_v41, %v12544_v41 }
 0xb87   : > { %v5651_v47 = vpop.f32.mrb[214].mxu1  ;;  %7703 = vmatprep.subr.bf16.mxu0 %v13178_v3 }
 0xb88   : > { %v12548_v31 = vsub.f32 %v12022_v14, %v5651_v47  ;;  %v5653_v33 = vpop.f32.mrb[215].mxu1 }
 0xb8a   : > { %v5830_v40 = vmul.f32 %v12548_v31, %v12548_v31 }
 0xb8b   : > { %v5656_v58 = vpop.f32.mrb[216].mxu1 }
 0xb8c   : > { %v7704_v4 = vpack.c.bf16 %v5830_v40, %v5829_v63  ;;  %v5658_v21 = vpop.f32.mrb[217].mxu1  ;;  %v12555_v12 = vsub.f32 %v12034_v49, %v5656_v58 }
 0xb8e   : > { %7705 = vmatpush1.bf16.msra.mxu0 %v7704_v4  ;;  %v5831_v7 = vmul.f32 %v12555_v12, %v12555_v12 }
 0xb8f   : > { %v5661_v54 = vpop.f32.mrb[218].mxu1  ;;  %7706 = vmatprep.subr.bf16.mxu0 %v13178_v3 }
 0xb90   : > { %v12559_v23 = vsub.f32 %v12031_v27, %v5661_v54  ;;  %v5663_v14 = vpop.f32.mrb[219].mxu1 }
 0xb92   : > { %v5832_v47 = vmul.f32 %v12559_v23, %v12559_v23 }
 0xb93   : > { %v5666_v33 = vpop.f32.mrb[220].mxu1 }
 0xb94   : > { %v7707_v63 = vpack.c.bf16 %v5832_v47, %v5831_v7  ;;  %v5668_v40 = vpop.f32.mrb[221].mxu1  ;;  %v12566_v49 = vsub.f32 %v12043_v19, %v5666_v33 }
 0xb96   : > { %7708 = vmatpush1.bf16.msra.mxu0 %v7707_v63  ;;  %v5833_v21 = vmul.f32 %v12566_v49, %v12566_v49 }
 0xb97   : > { %v5671_v58 = vpop.f32.mrb[222].mxu1  ;;  %7709 = vmatprep.subr.bf16.mxu0 %v13178_v3 }
 0xb98   : > { %v12570_v27 = vsub.f32 %v12040_v25, %v5671_v58  ;;  %v5673_v4 = vpop.f32.mrb[223].mxu1 }
 0xb9a   : > { %v5834_v54 = vmul.f32 %v12570_v27, %v12570_v27 }
 0xb9b   : > { %v5676_v14 = vpop.f32.mrb[224].mxu1 }
 0xb9c   : > { %v7710_v7 = vpack.c.bf16 %v5834_v54, %v5833_v21  ;;  %v5678_v47 = vpop.f32.mrb[225].mxu1  ;;  %v12577_v19 = vsub.f32 %v12052_v32, %v5676_v14 }
 0xb9e   : > { %7711 = vmatpush1.bf16.msra.mxu0 %v7710_v7  ;;  %v5835_v40 = vmul.f32 %v12577_v19, %v12577_v19 }
 0xb9f   : > { %v5681_v33 = vpop.f32.mrb[226].mxu1  ;;  %7712 = vmatprep.subr.bf16.mxu0 %v13178_v3 }
 0xba0   : > { %v12581_v25 = vsub.f32 %v12049_v1, %v5681_v33  ;;  %v5683_v63 = vpop.f32.mrb[227].mxu1 }
 0xba2   : > { %v5836_v58 = vmul.f32 %v12581_v25, %v12581_v25 }
 0xba3   : > { %v5686_v4 = vpop.f32.mrb[228].mxu1 }
 0xba4   : > { %v7713_v21 = vpack.c.bf16 %v5836_v58, %v5835_v40  ;;  %v5688_v54 = vpop.f32.mrb[229].mxu1  ;;  %v12588_v32 = vsub.f32 %v12061_v46, %v5686_v4 }
 0xba6   : > { %7714 = vmatpush1.bf16.msra.mxu0 %v7713_v21  ;;  %v5837_v47 = vmul.f32 %v12588_v32, %v12588_v32 }
 0xba7   : > { %v5691_v14 = vpop.f32.mrb[230].mxu1  ;;  %7715 = vmatprep.subr.bf16.mxu0 %v13178_v3 }
 0xba8   : > { %v12592_v1 = vsub.f32 %v12058_v38, %v5691_v14  ;;  %v5693_v7 = vpop.f32.mrb[231].mxu1 }
 0xbaa   : > { %v5838_v33 = vmul.f32 %v12592_v1, %v12592_v1 }
 0xbab   : > { %v5696_v63 = vpop.f32.mrb[232].mxu1 }
 0xbac   : > { %v7716_v40 = vpack.c.bf16 %v5838_v33, %v5837_v47  ;;  %v5698_v58 = vpop.f32.mrb[233].mxu1  ;;  %v12599_v46 = vsub.f32 %v12070_v13, %v5696_v63 }
 0xbae   : > { %7717 = vmatpush1.bf16.msra.mxu0 %v7716_v40  ;;  %v5839_v54 = vmul.f32 %v12599_v46, %v12599_v46 }
 0xbaf   : > { %v5701_v4 = vpop.f32.mrb[234].mxu1  ;;  %7718 = vmatprep.subr.bf16.mxu0 %v13178_v3 }
 0xbb0   : > { %v12603_v38 = vsub.f32 %v12067_v61, %v5701_v4  ;;  %v5703_v21 = vpop.f32.mrb[235].mxu1 }
 0xbb2   : > { %v5840_v14 = vmul.f32 %v12603_v38, %v12603_v38 }
 0xbb3   : > { %v5706_v7 = vpop.f32.mrb[236].mxu1 }
 0xbb4   : > { %v7719_v47 = vpack.c.bf16 %v5840_v14, %v5839_v54  ;;  %v5708_v33 = vpop.f32.mrb[237].mxu1  ;;  %v12610_v13 = vsub.f32 %v12079_v39, %v5706_v7 }
 0xbb6   : > { %7720 = vmatpush1.bf16.msra.mxu0 %v7719_v47  ;;  %v5841_v58 = vmul.f32 %v12610_v13, %v12610_v13 }
 0xbb7   : > { %v5711_v63 = vpop.f32.mrb[238].mxu1  ;;  %7721 = vmatprep.subr.bf16.mxu0 %v13178_v3 }
 0xbb8   : > { %v12614_v61 = vsub.f32 %v12076_v17, %v5711_v63  ;;  %v5713_v40 = vpop.f32.mrb[239].mxu1 }
 0xbba   : > { %v5842_v4 = vmul.f32 %v12614_v61, %v12614_v61 }
 0xbbb   : > { %v5716_v21 = vpop.f32.mrb[240].mxu1 }
 0xbbc   : > { %v7722_v54 = vpack.c.bf16 %v5842_v4, %v5841_v58  ;;  %v5718_v14 = vpop.f32.mrb[241].mxu1  ;;  %v12621_v39 = vsub.f32 %v12088_v9, %v5716_v21 }
 0xbbe   : > { %7723 = vmatpush1.bf16.msra.mxu0 %v7722_v54  ;;  %v5843_v33 = vmul.f32 %v12621_v39, %v12621_v39 }
 0xbbf   : > { %v5721_v7 = vpop.f32.mrb[242].mxu1  ;;  %7724 = vmatprep.subr.bf16.mxu0 %v13178_v3 }
 0xbc0   : > { %v12625_v17 = vsub.f32 %v12085_v15, %v5721_v7  ;;  %v5723_v47 = vpop.f32.mrb[243].mxu1 }
 0xbc2   : > { %v5844_v63 = vmul.f32 %v12625_v17, %v12625_v17 }
 0xbc3   : > { %v5726_v40 = vpop.f32.mrb[244].mxu1 }
 0xbc4   : > { %v7725_v58 = vpack.c.bf16 %v5844_v63, %v5843_v33  ;;  %v5728_v4 = vpop.f32.mrb[245].mxu1  ;;  %v12632_v9 = vsub.f32 %v12097_v20, %v5726_v40 }
 0xbc6   : > { %7726 = vmatpush1.bf16.msra.mxu0 %v7725_v58  ;;  %v5845_v14 = vmul.f32 %v12632_v9, %v12632_v9 }
 0xbc7   : > { %v5731_v21 = vpop.f32.mrb[246].mxu1  ;;  %7727 = vmatprep.subr.bf16.mxu0 %v13178_v3 }
 0xbc8   : > { %v12636_v15 = vsub.f32 %v12094_v55, %v5731_v21  ;;  %v5733_v54 = vpop.f32.mrb[247].mxu1 }
 0xbca   : > { %v5846_v7 = vmul.f32 %v12636_v15, %v12636_v15 }
 0xbcb   : > { %v5736_v47 = vpop.f32.mrb[248].mxu1 }
 0xbcc   : > { %v7728_v33 = vpack.c.bf16 %v5846_v7, %v5845_v14  ;;  %v5738_v63 = vpop.f32.mrb[249].mxu1  ;;  %v12643_v20 = vsub.f32 %v12106_v45, %v5736_v47 }
 0xbce   : > { %7729 = vmatpush1.bf16.msra.mxu0 %v7728_v33  ;;  %v5847_v4 = vmul.f32 %v12643_v20, %v12643_v20 }
 0xbcf   : > { %v5741_v40 = vpop.f32.mrb[250].mxu1  ;;  %7730 = vmatprep.subr.bf16.mxu0 %v13178_v3 }
 0xbd0   : > { %v12647_v55 = vsub.f32 %v12103_v16, %v5741_v40  ;;  %v5743_v58 = vpop.f32.mrb[251].mxu1 }
 0xbd2   : > { %v5848_v21 = vmul.f32 %v12647_v55, %v12647_v55 }
 0xbd3   : > { %v5746_v54 = vpop.f32.mrb[252].mxu1 }
 0xbd4   : > { %v7731_v14 = vpack.c.bf16 %v5848_v21, %v5847_v4  ;;  %v5748_v7 = vpop.f32.mrb[253].mxu1  ;;  %v12654_v45 = vsub.f32 %v12115_v51, %v5746_v54 }
 0xbd6   : > { %7732 = vmatpush1.bf16.msra.mxu0 %v7731_v14  ;;  %v5849_v63 = vmul.f32 %v12654_v45, %v12654_v45 }
 0xbd7   : > { %v5751_v47 = vpop.f32.mrb[254].mxu1  ;;  %7733 = vmatprep.subr.bf16.mxu0 %v13178_v3 }
 0xbd8   : > { %v12658_v16 = vsub.f32 %v12112_v0, %v5751_v47  ;;  %v5753_v33 = vpop.f32.mrb[255].mxu1 }
 0xbda   : > { %v5850_v40 = vmul.f32 %v12658_v16, %v12658_v16 }
 0xbdb   : > { %v5756_v58 = vpop.f32.mrb[0].mxu1 }
 0xbdc   : > { %v7734_v4 = vpack.c.bf16 %v5850_v40, %v5849_v63  ;;  %v5758_v21 = vpop.f32.mrb[1].mxu1  ;;  %v12665_v51 = vsub.f32 %v12124_v52, %v5756_v58 }
 0xbde   : > { %7735 = vmatpush1.bf16.msra.mxu0 %v7734_v4  ;;  %v5851_v7 = vmul.f32 %v12665_v51, %v12665_v51 }
 0xbdf   : > { %v5761_v54 = vpop.f32.mrb[2].mxu1  ;;  %7736 = vmatprep.subr.bf16.mxu0 %v13178_v3 }
 0xbe0   : > { %v12669_v0 = vsub.f32 %v12121_v48, %v5761_v54  ;;  %v5763_v14 = vpop.f32.mrb[3].mxu1 }
 0xbe2   : > { %13302 = vst [vmem:[#allocation78_spill] sm:$0xff] %v12669_v0  ;;  %v5852_v47 = vmul.f32 %v12669_v0, %v12669_v0 }
 0xbe3   : > { %v5766_v33 = vpop.f32.mrb[4].mxu1 }
 0xbe4   : > { %v7737_v63 = vpack.c.bf16 %v5852_v47, %v5851_v7  ;;  %v5768_v40 = vpop.f32.mrb[5].mxu1  ;;  %v12676_v52 = vsub.f32 %v12133_v34, %v5766_v33 }
 0xbe6   : > { %13303 = vst [vmem:[#allocation79_spill] sm:$0xff] %v12676_v52  ;;  %7738 = vmatpush1.bf16.msra.mxu0 %v7737_v63  ;;  %v5853_v21 = vmul.f32 %v12676_v52, %v12676_v52 }
 0xbe7   : > { %v5771_v58 = vpop.f32.mrb[6].mxu1  ;;  %7739 = vmatprep.subr.bf16.mxu0 %v13178_v3 }
 0xbe8   : > { %v12680_v48 = vsub.f32 %v12130_v59, %v5771_v58  ;;  %v5773_v4 = vpop.f32.mrb[7].mxu1 }
 0xbea   : > { %13304 = vst [vmem:[#allocation80_spill] sm:$0xff] %v12680_v48  ;;  %v5854_v54 = vmul.f32 %v12680_v48, %v12680_v48 }
 0xbeb   : > { %v5776_v14 = vpop.f32.mrb[8].mxu1 }
 0xbec   : > { %v7740_v7 = vpack.c.bf16 %v5854_v54, %v5853_v21  ;;  %v5778_v47 = vpop.f32.mrb[9].mxu1  ;;  %v12687_v34 = vsub.f32 %v12142_v8, %v5776_v14 }
 0xbee   : > { %13305 = vst [vmem:[#allocation81_spill] sm:$0xff] %v12687_v34  ;;  %7741 = vmatpush1.bf16.msra.mxu0 %v7740_v7  ;;  %v5855_v40 = vmul.f32 %v12687_v34, %v12687_v34 }
 0xbef   : > { %v5781_v33 = vpop.f32.mrb[10].mxu1  ;;  %7742 = vmatprep.subr.bf16.mxu0 %v13178_v3 }
 0xbf0   : > { %v12691_v59 = vsub.f32 %v12139_v60, %v5781_v33  ;;  %v5783_v63 = vpop.f32.mrb[11].mxu1 }
 0xbf2   : > { %13306 = vst [vmem:[#allocation82_spill] sm:$0xff] %v12691_v59  ;;  %v5856_v58 = vmul.f32 %v12691_v59, %v12691_v59 }
 0xbf3   : > { %v5786_v4 = vpop.f32.mrb[12].mxu1 }
 0xbf4   : > { %v7743_v21 = vpack.c.bf16 %v5856_v58, %v5855_v40  ;;  %v5788_v54 = vpop.f32.mrb[13].mxu1  ;;  %v12698_v8 = vsub.f32 %v12151_v28, %v5786_v4  ;;  %v13323_v28 = vld [vmem:[#allocation48_spill] sm:$0xff]  ;;  %v13332_v58 = vld [vmem:[#allocation57_spill] sm:$0xff]  ;;  %v13333_v4 = vld [vmem:[#allocation58_spill] sm:$0xff] }
 0xbf5   : > { %v13331_v40 = vld [vmem:[#allocation56_spill] sm:$0xff] }
 0xbf6   : > { %13307 = vst [vmem:[#allocation83_spill] sm:$0xff] %v12698_v8  ;;  %7744 = vmatpush1.bf16.msra.mxu0 %v7743_v21  ;;  %v5857_v47 = vmul.f32 %v12698_v8, %v12698_v8  ;;  %v13334_v21 = vld [vmem:[#allocation59_spill] sm:$0xff]  ;;  %v13335_v54 = vld [vmem:[#allocation60_spill] sm:$0xff] }
 0xbf7   : > { %v5791_v14 = vpop.f32.mrb[14].mxu1  ;;  %7745 = vmatprep.subr.bf16.mxu0 %v13178_v3  ;;  %v13309_v3 = vld [vmem:[#allocation34_spill] sm:$0xff] }
 0xbf8   : > { %v12702_v60 = vsub.f32 %v12148_v10, %v5791_v14  ;;  %v5793_v7 = vpop.f32.mrb[15].mxu1  ;;  %v13324_v10 = vld [vmem:[#allocation49_spill] sm:$0xff] }
 0xbf9   : > { %v13336_v14 = vld [vmem:[#allocation61_spill] sm:$0xff]  ;;  %v13337_v7 = vld [vmem:[#allocation62_spill] sm:$0xff] }
 0xbfa   : > { %13308 = vst [vmem:[#allocation84_spill] sm:$0xff] %v12702_v60  ;;  %v5858_v33 = vmul.f32 %v12702_v60, %v12702_v60 }
 0xbfc   : > { %v7746_v63 = vpack.c.bf16 %v5858_v33, %v5857_v47  ;;  %v13338_v47 = vld [vmem:[#allocation63_spill] sm:$0xff]  ;;  %v13339_v33 = vld [vmem:[#allocation64_spill] sm:$0xff] }
 0xbfe   : > { %7747 = vmatpush1.bf16.msra.mxu0 %v7746_v63  ;;  %v13340_v63 = vld [vmem:[#allocation65_spill] sm:$0xff] }
 0xc01   : > { %5924 = vmatmul.mubr.f32.vlgmr.msra.gmra.mrb[208].mxu0 %v12158_v18  ;;  %v13325_v18 = vld [vmem:[#allocation50_spill] sm:$0xff] }
 0xc02   : > { %5928 = vmatprep.mubr.f32.mxu0 %v12164_v44  ;;  %v13326_v44 = vld [vmem:[#allocation51_spill] sm:$0xff] }
 0xc05   : > { %5929 = vmatmul.mubr.f32.gmra.mrb[210].mxu0 %v12170_v22  ;;  %v13327_v22 = vld [vmem:[#allocation52_spill] sm:$0xff] }
 0xc06   : > { %5933 = vmatprep.mubr.f32.mxu0 %v12176_v11  ;;  %v13328_v11 = vld [vmem:[#allocation53_spill] sm:$0xff] }
 0xc09   : > { %5934 = vmatmul.mubr.f32.gmra.mrb[212].mxu0 %v12182_v42  ;;  %v13329_v42 = vld [vmem:[#allocation54_spill] sm:$0xff] }
 0xc0a   : > { %5938 = vmatprep.mubr.f32.mxu0 %v12188_v29  ;;  %v13330_v29 = vld [vmem:[#allocation55_spill] sm:$0xff] }
 0xc0d   : > { %5939 = vmatmul.mubr.f32.gmra.mrb[214].mxu0 %v12194_v43  ;;  %v13322_v43 = vld [vmem:[#allocation47_spill] sm:$0xff] }
 0xc0e   : > { %5943 = vmatprep.mubr.f32.mxu0 %v12200_v53  ;;  %v13321_v53 = vld [vmem:[#allocation46_spill] sm:$0xff] }
 0xc11   : > { %5944 = vmatmul.mubr.f32.gmra.mrb[216].mxu0 %v12206_v36  ;;  %v13320_v36 = vld [vmem:[#allocation45_spill] sm:$0xff] }
 0xc12   : > { %5948 = vmatprep.mubr.f32.mxu0 %v12212_v56  ;;  %v13310_v56 = vld [vmem:[#allocation35_spill] sm:$0xff] }
 0xc15   : > { %5949 = vmatmul.mubr.f32.gmra.mrb[218].mxu0 %v12218_v37  ;;  %v13311_v37 = vld [vmem:[#allocation36_spill] sm:$0xff] }
 0xc16   : > { %5953 = vmatprep.mubr.f32.mxu0 %v12224_v35  ;;  %v13312_v35 = vld [vmem:[#allocation37_spill] sm:$0xff] }
 0xc19   : > { %5954 = vmatmul.mubr.f32.gmra.mrb[220].mxu0 %v12230_v30  ;;  %v13313_v30 = vld [vmem:[#allocation38_spill] sm:$0xff] }
 0xc1a   : > { %5958 = vmatprep.mubr.f32.mxu0 %v12236_v62  ;;  %v13314_v62 = vld [vmem:[#allocation39_spill] sm:$0xff] }
 0xc1d   : > { %5959 = vmatmul.mubr.f32.gmra.mrb[222].mxu0 %v12242_v57  ;;  %v13315_v57 = vld [vmem:[#allocation40_spill] sm:$0xff] }
 0xc1e   : > { %5963 = vmatprep.mubr.f32.mxu0 %v12248_v5  ;;  %v13316_v5 = vld [vmem:[#allocation41_spill] sm:$0xff] }
 0xc21   : > { %5964 = vmatmul.mubr.f32.gmra.mrb[224].mxu0 %v12254_v6  ;;  %v13317_v6 = vld [vmem:[#allocation42_spill] sm:$0xff] }
 0xc22   : > { %5968 = vmatprep.mubr.f32.mxu0 %v12260_v50  ;;  %v13318_v50 = vld [vmem:[#allocation43_spill] sm:$0xff] }
 0xc25   : > { %5969 = vmatmul.mubr.f32.gmra.mrb[226].mxu0 %v12266_v2  ;;  %v13319_v2 = vld [vmem:[#allocation44_spill] sm:$0xff] }
 0xc26   : > { %5973 = vmatprep.mubr.f32.mxu0 %v13309_v3  ;;  %v13341_v3 = vld [vmem:[#allocation66_spill] sm:$0xff] }
 0xc29   : > { %5974 = vmatmul.mubr.f32.gmra.mrb[228].mxu0 %v13310_v56  ;;  %v13342_v56 = vld [vmem:[#allocation67_spill] sm:$0xff] }
 0xc2a   : > { %5978 = vmatprep.mubr.f32.mxu0 %v13311_v37  ;;  %v13343_v37 = vld [vmem:[#allocation68_spill] sm:$0xff] }
 0xc2d   : > { %5979 = vmatmul.mubr.f32.gmra.mrb[230].mxu0 %v13312_v35  ;;  %v13344_v35 = vld [vmem:[#allocation69_spill] sm:$0xff] }
 0xc2e   : > { %5983 = vmatprep.mubr.f32.mxu0 %v13313_v30  ;;  %v13345_v30 = vld [vmem:[#allocation70_spill] sm:$0xff] }
 0xc31   : > { %5984 = vmatmul.mubr.f32.gmra.mrb[232].mxu0 %v13314_v62  ;;  %v13346_v62 = vld [vmem:[#allocation71_spill] sm:$0xff] }
 0xc32   : > { %5988 = vmatprep.mubr.f32.mxu0 %v13315_v57  ;;  %v13347_v57 = vld [vmem:[#allocation72_spill] sm:$0xff] }
 0xc35   : > { %5989 = vmatmul.mubr.f32.gmra.mrb[234].mxu0 %v13316_v5  ;;  %v13348_v5 = vld [vmem:[#allocation73_spill] sm:$0xff] }
 0xc36   : > { %5993 = vmatprep.mubr.f32.mxu0 %v13317_v6  ;;  %v13349_v6 = vld [vmem:[#allocation74_spill] sm:$0xff] }
 0xc39   : > { %5994 = vmatmul.mubr.f32.gmra.mrb[236].mxu0 %v13318_v50  ;;  %v13350_v50 = vld [vmem:[#allocation75_spill] sm:$0xff] }
 0xc3a   : > { %5998 = vmatprep.mubr.f32.mxu0 %v13319_v2  ;;  %v13351_v2 = vld [vmem:[#allocation76_spill] sm:$0xff] }
 0xc3d   : > { %5999 = vmatmul.mubr.f32.gmra.mrb[238].mxu0 %v13320_v36  ;;  %v13352_v36 = vld [vmem:[#allocation77_spill] sm:$0xff] }
 0xc3e   : > { %6003 = vmatprep.mubr.f32.mxu0 %v13321_v53  ;;  %v6183_v53 = vpop.permute.xlu0 %6182 }
 0xc41   : > { %6004 = vmatmul.mubr.f32.gmra.mrb[240].mxu0 %v13322_v43  ;;  %v6188_v43 = vpop.permute.xlu1 %6187 }
 0xc42   : > { %6008 = vmatprep.mubr.f32.mxu0 %v13323_v28  ;;  %v12771_v28 = vpop.permute.xlu0 %6192 }
 0xc45   : > { %6009 = vmatmul.mubr.f32.gmra.mrb[242].mxu0 %v13324_v10  ;;  %v12773_v10 = vpop.permute.xlu1 %6197 }
 0xc46   : > { %6013 = vmatprep.mubr.f32.mxu0 %v13325_v18  ;;  %v12775_v18 = vpop.permute.xlu0 %6202 }
 0xc49   : > { %6014 = vmatmul.mubr.f32.gmra.mrb[244].mxu0 %v13326_v44  ;;  %v12777_v44 = vpop.permute.xlu1 %6207 }
 0xc4a   : > { %6018 = vmatprep.mubr.f32.mxu0 %v13327_v22  ;;  %v12779_v22 = vpop.permute.xlu0 %6212 }
 0xc4d   : > { %6019 = vmatmul.mubr.f32.gmra.mrb[246].mxu0 %v13328_v11  ;;  %v12781_v11 = vpop.permute.xlu1 %6217 }
 0xc4e   : > { %6023 = vmatprep.mubr.f32.mxu0 %v13329_v42  ;;  %v12783_v42 = vpop.permute.xlu0 %6222 }
 0xc51   : > { %6024 = vmatmul.mubr.f32.gmra.mrb[248].mxu0 %v13330_v29  ;;  %v12785_v29 = vpop.permute.xlu1 %6227 }
 0xc52   : > { %6028 = vmatprep.mubr.f32.mxu0 %v13331_v40  ;;  %v12787_v40 = vpop.permute.xlu0 %6232 }
 0xc55   : > { %6029 = vmatmul.mubr.f32.gmra.mrb[250].mxu0 %v13332_v58  ;;  %v12789_v58 = vpop.permute.xlu1 %6237 }
 0xc56   : > { %6033 = vmatprep.mubr.f32.mxu0 %v13333_v4  ;;  %v12791_v4 = vpop.permute.xlu0 %6242 }
 0xc59   : > { %6034 = vmatmul.mubr.f32.gmra.mrb[252].mxu0 %v13334_v21  ;;  %v12793_v21 = vpop.permute.xlu1 %6247 }
 0xc5a   : > { %6038 = vmatprep.mubr.f32.mxu0 %v13335_v54  ;;  %v12795_v54 = vpop.permute.xlu0 %6252 }
 0xc5d   : > { %6039 = vmatmul.mubr.f32.gmra.mrb[254].mxu0 %v13336_v14  ;;  %v12797_v14 = vpop.permute.xlu1 %6257 }
 0xc5e   : > { %6043 = vmatprep.mubr.f32.mxu0 %v13337_v7  ;;  %v12799_v7 = vpop.permute.xlu0 %6262 }
 0xc61   : > { %6044 = vmatmul.mubr.f32.gmra.mrb[0].mxu0 %v13338_v47  ;;  %v12801_v47 = vpop.permute.xlu1 %6267 }
 0xc62   : > { %6048 = vmatprep.mubr.f32.mxu0 %v13339_v33  ;;  %v12803_v33 = vpop.permute.xlu0 %6272 }
 0xc65   : > { %6049 = vmatmul.mubr.f32.gmra.mrb[2].mxu0 %v13340_v63  ;;  %v12805_v63 = vpop.permute.xlu1 %6277 }
 0xc66   : > { %6053 = vmatprep.mubr.f32.mxu0 %v13341_v3  ;;  %v12807_v3 = vpop.permute.xlu0 %6282 }
 0xc69   : > { %6054 = vmatmul.mubr.f32.gmra.mrb[4].mxu0 %v13342_v56  ;;  %v12809_v56 = vpop.permute.xlu1 %6287 }
 0xc6a   : > { %6058 = vmatprep.mubr.f32.mxu0 %v13343_v37  ;;  %v12811_v37 = vpop.permute.xlu0 %6292 }
 0xc6d   : > { %6059 = vmatmul.mubr.f32.gmra.mrb[6].mxu0 %v13344_v35  ;;  %v12813_v35 = vpop.permute.xlu1 %6297 }
 0xc6e   : > { %6063 = vmatprep.mubr.f32.mxu0 %v13345_v30  ;;  %v12815_v30 = vpop.permute.xlu0 %6302 }
 0xc6f   : > { %13353 = vst [vmem:[#allocation34_spill] sm:$0xff] %v12815_v30 }
 0xc71   : > { %6064 = vmatmul.mubr.f32.gmra.mrb[8].mxu0 %v13346_v62  ;;  %v12817_v62 = vpop.permute.xlu1 %6307 }
 0xc72   : > { %6068 = vmatprep.mubr.f32.mxu0 %v13347_v57  ;;  %13354 = vst [vmem:[#allocation35_spill] sm:$0xff] %v12817_v62  ;;  %v12819_v57 = vpop.permute.xlu0 %6312 }
 0xc73   : > { %13355 = vst [vmem:[#allocation36_spill] sm:$0xff] %v12819_v57 }
 0xc75   : > { %6069 = vmatmul.mubr.f32.gmra.mrb[10].mxu0 %v13348_v5 }
 0xc76   : > { %6073 = vmatprep.mubr.f32.mxu0 %v13349_v6  ;;  %v12823_v60 = vpop.permute.xlu0 %6322 }
 0xc77   : > { %13357 = vst [vmem:[#allocation38_spill] sm:$0xff] %v12823_v60 }
 0xc79   : > { %6074 = vmatmul.mubr.f32.gmra.mrb[12].mxu0 %v13350_v50 }
 0xc7a   : > { %6078 = vmatprep.mubr.f32.mxu0 %v13351_v2  ;;  %v12821_v2 = vpop.permute.xlu1 %6317  ;;  %v12827_v62 = vpop.permute.xlu0 %6332 }
 0xc7b   : > { %13356 = vst [vmem:[#allocation37_spill] sm:$0xff] %v12821_v2  ;;  %13359 = vst [vmem:[#allocation40_spill] sm:$0xff] %v12827_v62 }
 0xc7d   : > { %6079 = vmatmul.mubr.f32.gmra.mrb[14].mxu0 %v13352_v36 }
 0xc7e   : > { %v12825_v48 = vpop.permute.xlu1 %6327  ;;  %v6407_v60 = vpop.permute.xlu0 %6406 }
 0xc7f   : > { %13358 = vst [vmem:[#allocation39_spill] sm:$0xff] %v12825_v48 }
 0xc82   : > { %v12830_v30 = vpop.permute.xlu1 %6337 }
 0xcd4   : > { %v5925_v5 = vpop.f32.mrb[208].mxu0 }
 0xcd5   : > { %v5926_v6 = vadd.f32 1e-06, %v5925_v5  ;;  %v5927_v50 = vpop.f32.mrb[209].mxu0 }
 0xcd7   : > { %8087 = vrsqrt.f32 %v5926_v6 }
 0xcd8   : > { %v5930_v36 = vpop.f32.mrb[210].mxu0 }
 0xcd9   : > { %v5931_v8 = vadd.f32 1e-06, %v5930_v36  ;;  %v5932_v59 = vpop.f32.mrb[211].mxu0 }
 0xcdb   : > { %8089 = vrsqrt.f32 %v5931_v8 }
 0xcdc   : > { %v5935_v34 = vpop.f32.mrb[212].mxu0 }
 0xcdd   : > { %v5936_v52 = vadd.f32 1e-06, %v5935_v34  ;;  %v5937_v0 = vpop.f32.mrb[213].mxu0 }
 0xcdf   : > { %8091 = vrsqrt.f32 %v5936_v52 }
 0xce0   : > { %v5940_v5 = vpop.f32.mrb[214].mxu0 }
 0xce1   : > { %v8088_v50 = vpop.eup %8087  ;;  %v5941_v57 = vadd.f32 1e-06, %v5940_v5  ;;  %v5942_v2 = vpop.f32.mrb[215].mxu0 }
 0xce2   : > { %v6116_v6 = vmul.f32 %v8088_v50, %v12534_v26  ;;  %v13360_v26 = vld [vmem:[#allocation25_spill] sm:$0xff]  ;;  %v6412_v5 = vpop.permute.xlu1 %6411 }
 0xce3   : > { %8093 = vrsqrt.f32 %v5941_v57 }
 0xce4   : > { %v6340_v59 = vmul.f32 %v6183_v53, %v6116_v6  ;;  %v5945_v8 = vpop.f32.mrb[216].mxu0 }
 0xce5   : > { %v8090_v36 = vpop.eup %8089  ;;  %v5946_v48 = vadd.f32 1e-06, %v5945_v8  ;;  %v5947_v34 = vpop.f32.mrb[217].mxu0 }
 0xce6   : > { %v6564_v0 = vadd.f32 %v6407_v60, %v6340_v59  ;;  %v6117_v62 = vmul.f32 %v8090_v36, %v12537_v24  ;;  %v13361_v59 = vld [vmem:[#allocation26_spill] sm:$0xff] }
 0xce7   : > { %8095 = vrsqrt.f32 %v5946_v48 }
 0xce8   : > { %v6596_v52 = vadd.f32 %v6564_v0, %v13360_v26  ;;  %v6341_v2 = vmul.f32 %v6188_v43, %v6117_v62  ;;  %v5950_v57 = vpop.f32.mrb[218].mxu0  ;;  %v6417_v43 = vpop.permute.xlu0 %6416 }
 0xce9   : > { %v8092_v53 = vpop.eup %8091  ;;  %v5951_v50 = vadd.f32 1e-06, %v5950_v57  ;;  %v5952_v6 = vpop.f32.mrb[219].mxu0 }
 0xcea   : > { %6628 = vst.msk [vmem:[%s12837_s25] sm:$0xff] %vm1461_vm0, %v6596_v52  ;;  %v6565_v60 = vadd.f32 %v6412_v5, %v6341_v2  ;;  %v6118_v24 = vmul.f32 %v8092_v53, %v12544_v41  ;;  %v13362_v52 = vld [vmem:[#allocation27_spill] sm:$0xff] }
 0xceb   : > { %8097 = vrsqrt.f32 %v5951_v50 }
 0xcec   : > { %v6597_v8 = vadd.f32 %v6565_v60, %v13361_v59  ;;  %v6342_v36 = vmul.f32 %v12771_v28, %v6118_v24  ;;  %v5955_v48 = vpop.f32.mrb[220].mxu0  ;;  %v6422_v28 = vpop.permute.xlu1 %6421  ;;  %v13363_v59 = vld [vmem:[#allocation28_spill] sm:$0xff] }
 0xced   : > { %v8094_v34 = vpop.eup %8093  ;;  %v5956_v62 = vadd.f32 1e-06, %v5955_v48  ;;  %v5957_v0 = vpop.f32.mrb[221].mxu0 }
 0xcee   : > { %6629 = vst.msk [vmem:[%s12837_s25 + $0x8] sm:$0xff] %vm1461_vm0, %v6597_v8  ;;  %v6566_v26 = vadd.f32 %v6417_v43, %v6342_v36  ;;  %v6119_v57 = vmul.f32 %v8094_v34, %v12548_v31 }
 0xcef   : > { %8099 = vrsqrt.f32 %v5956_v62 }
 0xcf0   : > { %v6598_v2 = vadd.f32 %v6566_v26, %v13362_v52  ;;  %v6343_v41 = vmul.f32 %v12773_v10, %v6119_v57  ;;  %v5960_v53 = vpop.f32.mrb[222].mxu0  ;;  %v6427_v10 = vpop.permute.xlu0 %6426  ;;  %v13364_v26 = vld [vmem:[#allocation29_spill] sm:$0xff] }
 0xcf1   : > { %v8096_v5 = vpop.eup %8095  ;;  %v5961_v50 = vadd.f32 1e-06, %v5960_v53  ;;  %v5962_v6 = vpop.f32.mrb[223].mxu0 }
 0xcf2   : > { %6630 = vst.msk [vmem:[%s12837_s25 + $0x10] sm:$0xff] %vm1461_vm0, %v6598_v2  ;;  %v6567_v60 = vadd.f32 %v6422_v28, %v6343_v41  ;;  %v6120_v24 = vmul.f32 %v8096_v5, %v12555_v12 }
 0xcf3   : > { %8101 = vrsqrt.f32 %v5961_v50  ;;  %v13365_v50 = vld [vmem:[#allocation30_spill] sm:$0xff] }
 0xcf4   : > { %v6599_v8 = vadd.f32 %v6567_v60, %v13363_v59  ;;  %v6344_v31 = vmul.f32 %v12775_v18, %v6120_v24  ;;  %v5965_v36 = vpop.f32.mrb[224].mxu0  ;;  %v6432_v18 = vpop.permute.xlu1 %6431 }
 0xcf5   : > { %v8098_v48 = vpop.eup %8097  ;;  %v5966_v34 = vadd.f32 1e-06, %v5965_v36  ;;  %v5967_v43 = vpop.f32.mrb[225].mxu0 }
 0xcf6   : > { %6631 = vst.msk [vmem:[%s12837_s25 + $0x18] sm:$0xff] %vm1461_vm0, %v6599_v8  ;;  %v6568_v62 = vadd.f32 %v6427_v10, %v6344_v31  ;;  %v6121_v0 = vmul.f32 %v8098_v48, %v12559_v23  ;;  %v13366_v48 = vld [vmem:[#allocation2_spill] sm:$0xff] }
 0xcf7   : > { %8103 = vrsqrt.f32 %v5966_v34 }
 0xcf8   : > { %v6600_v57 = vadd.f32 %v6568_v62, %v13364_v26  ;;  %v6345_v12 = vmul.f32 %v12777_v44, %v6121_v0  ;;  %v5970_v52 = vpop.f32.mrb[226].mxu0  ;;  %v6437_v44 = vpop.permute.xlu0 %6436 }
 0xcf9   : > { %v8100_v2 = vpop.eup %8099  ;;  %v5971_v41 = vadd.f32 1e-06, %v5970_v52  ;;  %v5972_v53 = vpop.f32.mrb[227].mxu0 }
 0xcfa   : > { %6632 = vst.msk [vmem:[%s12837_s25 + $0x20] sm:$0xff] %vm1461_vm0, %v6600_v57  ;;  %v6569_v5 = vadd.f32 %v6432_v18, %v6345_v12  ;;  %v6122_v28 = vmul.f32 %v8100_v2, %v12566_v49  ;;  %v13367_v12 = vld [vmem:[#allocation3_spill] sm:$0xff] }
 0xcfb   : > { %8105 = vrsqrt.f32 %v5971_v41 }
 0xcfc   : > { %v6601_v6 = vadd.f32 %v6569_v5, %v13365_v50  ;;  %v6346_v23 = vmul.f32 %v12779_v22, %v6122_v28  ;;  %v5975_v60 = vpop.f32.mrb[228].mxu0  ;;  %v6442_v22 = vpop.permute.xlu1 %6441  ;;  %v13368_v50 = vld [vmem:[#allocation4_spill] sm:$0xff] }
 0xcfd   : > { %v8102_v24 = vpop.eup %8101  ;;  %v5976_v59 = vadd.f32 1e-06, %v5975_v60  ;;  %v5977_v8 = vpop.f32.mrb[229].mxu0 }
 0xcfe   : > { %6633 = vst.msk [vmem:[%s12837_s25 + $0x28] sm:$0xff] %vm1461_vm0, %v6601_v6  ;;  %v6570_v31 = vadd.f32 %v6437_v44, %v6346_v23  ;;  %v6123_v36 = vmul.f32 %v8102_v24, %v12570_v27 }
 0xcff   : > { %8107 = vrsqrt.f32 %v5976_v59 }
 0xd00   : > { %v6602_v10 = vadd.f32 %v6570_v31, %v13366_v48  ;;  %v6347_v49 = vmul.f32 %v12781_v11, %v6123_v36  ;;  %v5980_v34 = vpop.f32.mrb[230].mxu0  ;;  %v6447_v11 = vpop.permute.xlu0 %6446  ;;  %v13369_v31 = vld [vmem:[#allocation31_spill] sm:$0xff] }
 0xd01   : > { %v8104_v43 = vpop.eup %8103  ;;  %v5981_v62 = vadd.f32 1e-06, %v5980_v34  ;;  %v5982_v0 = vpop.f32.mrb[231].mxu0 }
 0xd02   : > { %6634 = vst.msk [vmem:[%s12837_s25 + $0x30] sm:$0xff] %vm1461_vm0, %v6602_v10  ;;  %v6571_v26 = vadd.f32 %v6442_v22, %v6347_v49  ;;  %v6124_v57 = vmul.f32 %v8104_v43, %v12577_v19 }
 0xd03   : > { %8109 = vrsqrt.f32 %v5981_v62  ;;  %v13370_v62 = vld [vmem:[#allocation5_spill] sm:$0xff] }
 0xd04   : > { %v6603_v52 = vadd.f32 %v6571_v26, %v13367_v12  ;;  %v6348_v27 = vmul.f32 %v12783_v42, %v6124_v57  ;;  %v5985_v2 = vpop.f32.mrb[232].mxu0  ;;  %v6452_v42 = vpop.permute.xlu1 %6451 }
 0xd05   : > { %v8106_v18 = vpop.eup %8105  ;;  %v5986_v41 = vadd.f32 1e-06, %v5985_v2  ;;  %v5987_v53 = vpop.f32.mrb[233].mxu0 }
 0xd06   : > { %6635 = vst.msk [vmem:[%s12837_s25 + $0x38] sm:$0xff] %vm1461_vm0, %v6603_v52  ;;  %v6572_v5 = vadd.f32 %v6447_v11, %v6348_v27  ;;  %v6125_v28 = vmul.f32 %v8106_v18, %v12581_v25  ;;  %v13371_v18 = vld [vmem:[#allocation11_spill] sm:$0xff] }
 0xd07   : > { %8111 = vrsqrt.f32 %v5986_v41 }
 0xd08   : > { %v6604_v6 = vadd.f32 %v6572_v5, %v13368_v50  ;;  %v6349_v19 = vmul.f32 %v12785_v29, %v6125_v28  ;;  %v5990_v23 = vpop.f32.mrb[234].mxu0  ;;  %v6457_v29 = vpop.permute.xlu0 %6456 }
 0xd09   : > { %v8108_v60 = vpop.eup %8107  ;;  %v5991_v24 = vadd.f32 1e-06, %v5990_v23  ;;  %v5992_v44 = vpop.f32.mrb[235].mxu0 }
 0xd0a   : > { %6636 = vst.msk [vmem:[%s12837_s25 + $0x40] sm:$0xff] %vm1461_vm0, %v6604_v6  ;;  %v6573_v59 = vadd.f32 %v6452_v42, %v6349_v19  ;;  %v6126_v8 = vmul.f32 %v8108_v60, %v12588_v32  ;;  %v13372_v19 = vld [vmem:[#allocation6_spill] sm:$0xff] }
 0xd0b   : > { %8113 = vrsqrt.f32 %v5991_v24 }
 0xd0c   : > { %v6605_v36 = vadd.f32 %v6573_v59, %v13369_v31  ;;  %v6350_v25 = vmul.f32 %v12787_v40, %v6126_v8  ;;  %v5995_v48 = vpop.f32.mrb[236].mxu0  ;;  %v6462_v40 = vpop.permute.xlu1 %6461  ;;  %v13373_v31 = vld [vmem:[#allocation7_spill] sm:$0xff] }
 0xd0d   : > { %v8110_v10 = vpop.eup %8109  ;;  %v5996_v49 = vadd.f32 1e-06, %v5995_v48  ;;  %v5997_v34 = vpop.f32.mrb[237].mxu0 }
 0xd0e   : > { %6637 = vst.msk [vmem:[%s12837_s25 + $0x48] sm:$0xff] %vm1461_vm0, %v6605_v36  ;;  %v6574_v43 = vadd.f32 %v6457_v29, %v6350_v25  ;;  %v6127_v22 = vmul.f32 %v8110_v10, %v12592_v1 }
 0xd0f   : > { %8115 = vrsqrt.f32 %v5996_v49 }
 0xd10   : > { %v6606_v0 = vadd.f32 %v6574_v43, %v13370_v62  ;;  %v6351_v32 = vmul.f32 %v12789_v58, %v6127_v22  ;;  %v6000_v26 = vpop.f32.mrb[238].mxu0  ;;  %v6467_v58 = vpop.permute.xlu0 %6466  ;;  %v13374_v43 = vld [vmem:[#allocation15_spill] sm:$0xff] }
 0xd11   : > { %v8112_v57 = vpop.eup %8111  ;;  %v6001_v12 = vadd.f32 1e-06, %v6000_v26  ;;  %v6002_v52 = vpop.f32.mrb[239].mxu0 }
 0xd12   : > { %6638 = vst.msk [vmem:[%s12837_s25 + $0x50] sm:$0xff] %vm1461_vm0, %v6606_v0  ;;  %v6575_v27 = vadd.f32 %v6462_v40, %v6351_v32  ;;  %v6128_v2 = vmul.f32 %v8112_v57, %v12599_v46 }
 0xd13   : > { %8117 = vrsqrt.f32 %v6001_v12  ;;  %v13375_v12 = vld [vmem:[#allocation8_spill] sm:$0xff] }
 0xd14   : > { %v6607_v11 = vadd.f32 %v6575_v27, %v13371_v18  ;;  %v6352_v1 = vmul.f32 %v12791_v4, %v6128_v2  ;;  %v6005_v41 = vpop.f32.mrb[240].mxu0  ;;  %v6472_v4 = vpop.permute.xlu1 %6471 }
 0xd15   : > { %v8114_v53 = vpop.eup %8113  ;;  %v6006_v5 = vadd.f32 1e-06, %v6005_v41  ;;  %v6007_v28 = vpop.f32.mrb[241].mxu0 }
 0xd16   : > { %6639 = vst.msk [vmem:[%s12837_s25 + $0x58] sm:$0xff] %vm1461_vm0, %v6607_v11  ;;  %v6576_v50 = vadd.f32 %v6467_v58, %v6352_v1  ;;  %v6129_v6 = vmul.f32 %v8114_v53, %v12603_v38  ;;  %v13376_v53 = vld [vmem:[#allocation18_spill] sm:$0xff] }
 0xd17   : > { %8119 = vrsqrt.f32 %v6006_v5 }
 0xd18   : > { %v6608_v23 = vadd.f32 %v6576_v50, %v13372_v19  ;;  %v6353_v46 = vmul.f32 %v12793_v21, %v6129_v6  ;;  %v6010_v60 = vpop.f32.mrb[242].mxu0  ;;  %v6477_v21 = vpop.permute.xlu0 %6476 }
 0xd19   : > { %v8116_v42 = vpop.eup %8115  ;;  %v6011_v24 = vadd.f32 1e-06, %v6010_v60  ;;  %v6012_v44 = vpop.f32.mrb[243].mxu0 }
 0xd1a   : > { %6640 = vst.msk [vmem:[%s12837_s25 + $0x60] sm:$0xff] %vm1461_vm0, %v6608_v23  ;;  %v6577_v59 = vadd.f32 %v6472_v4, %v6353_v46  ;;  %v6130_v8 = vmul.f32 %v8116_v42, %v12610_v13  ;;  %v13377_v46 = vld [vmem:[#allocation9_spill] sm:$0xff] }
 0xd1b   : > { %8121 = vrsqrt.f32 %v6011_v24 }
 0xd1c   : > { %v6609_v36 = vadd.f32 %v6577_v59, %v13373_v31  ;;  %v6354_v38 = vmul.f32 %v12795_v54, %v6130_v8  ;;  %v6015_v25 = vpop.f32.mrb[244].mxu0  ;;  %v6482_v54 = vpop.permute.xlu1 %6481  ;;  %v13378_v31 = vld [vmem:[#allocation19_spill] sm:$0xff] }
 0xd1d   : > { %v8118_v48 = vpop.eup %8117  ;;  %v6016_v10 = vadd.f32 1e-06, %v6015_v25  ;;  %v6017_v29 = vpop.f32.mrb[245].mxu0 }
 0xd1e   : > { %6641 = vst.msk [vmem:[%s12837_s25 + $0x68] sm:$0xff] %vm1461_vm0, %v6609_v36  ;;  %v6578_v49 = vadd.f32 %v6477_v21, %v6354_v38  ;;  %v6131_v34 = vmul.f32 %v8118_v48, %v12614_v61 }
 0xd1f   : > { %8123 = vrsqrt.f32 %v6016_v10 }
 0xd20   : > { %v6610_v22 = vadd.f32 %v6578_v49, %v13374_v43  ;;  %v6355_v13 = vmul.f32 %v12797_v14, %v6131_v34  ;;  %v6020_v62 = vpop.f32.mrb[246].mxu0  ;;  %v6487_v14 = vpop.permute.xlu0 %6486  ;;  %v13379_v49 = vld [vmem:[#allocation10_spill] sm:$0xff] }
 0xd21   : > { %v8120_v0 = vpop.eup %8119  ;;  %v6021_v32 = vadd.f32 1e-06, %v6020_v62  ;;  %v6022_v26 = vpop.f32.mrb[247].mxu0 }
 0xd22   : > { %6642 = vst.msk [vmem:[%s12837_s25 + $0x70] sm:$0xff] %vm1461_vm0, %v6610_v22  ;;  %v6579_v57 = vadd.f32 %v6482_v54, %v6355_v13  ;;  %v6132_v40 = vmul.f32 %v8120_v0, %v12621_v39 }
 0xd23   : > { %8125 = vrsqrt.f32 %v6021_v32  ;;  %v13380_v32 = vld [vmem:[#allocation12_spill] sm:$0xff] }
 0xd24   : > { %v6611_v52 = vadd.f32 %v6579_v57, %v13375_v12  ;;  %v6356_v61 = vmul.f32 %v12799_v7, %v6132_v40  ;;  %v6025_v27 = vpop.f32.mrb[248].mxu0  ;;  %v6492_v7 = vpop.permute.xlu1 %6491 }
 0xd25   : > { %v8122_v2 = vpop.eup %8121  ;;  %v6026_v18 = vadd.f32 1e-06, %v6025_v27  ;;  %v6027_v11 = vpop.f32.mrb[249].mxu0 }
 0xd26   : > { %6643 = vst.msk [vmem:[%s12837_s25 + $0x78] sm:$0xff] %vm1461_vm0, %v6611_v52  ;;  %v6580_v1 = vadd.f32 %v6487_v14, %v6356_v61  ;;  %v6133_v41 = vmul.f32 %v8122_v2, %v12625_v17  ;;  %v13381_v2 = vld [vmem:[#allocation13_spill] sm:$0xff] }
 0xd27   : > { %8127 = vrsqrt.f32 %v6026_v18 }
 0xd28   : > { %v6612_v58 = vadd.f32 %v6580_v1, %v13376_v53  ;;  %v6357_v39 = vmul.f32 %v12801_v47, %v6133_v41  ;;  %v6030_v5 = vpop.f32.mrb[250].mxu0  ;;  %v6497_v47 = vpop.permute.xlu0 %6496 }
 0xd29   : > { %v8124_v28 = vpop.eup %8123  ;;  %v6031_v50 = vadd.f32 1e-06, %v6030_v5  ;;  %v6032_v6 = vpop.f32.mrb[251].mxu0 }
 0xd2a   : > { %6644 = vst.msk [vmem:[%s12837_s25 + $0x80] sm:$0xff] %vm1461_vm0, %v6612_v58  ;;  %v6581_v19 = vadd.f32 %v6492_v7, %v6357_v39  ;;  %v6134_v23 = vmul.f32 %v8124_v28, %v12632_v9  ;;  %v13382_v39 = vld [vmem:[#allocation14_spill] sm:$0xff] }
 0xd2b   : > { %8129 = vrsqrt.f32 %v6031_v50 }
 0xd2c   : > { %v6613_v60 = vadd.f32 %v6581_v19, %v13377_v46  ;;  %v6358_v17 = vmul.f32 %v12803_v33, %v6134_v23  ;;  %v6035_v42 = vpop.f32.mrb[252].mxu0  ;;  %v6502_v33 = vpop.permute.xlu1 %6501  ;;  %v13383_v46 = vld [vmem:[#allocation16_spill] sm:$0xff] }
 0xd2d   : > { %v8126_v4 = vpop.eup %8125  ;;  %v6036_v24 = vadd.f32 1e-06, %v6035_v42  ;;  %v6037_v44 = vpop.f32.mrb[253].mxu0 }
 0xd2e   : > { %6645 = vst.msk [vmem:[%s12837_s25 + $0x88] sm:$0xff] %vm1461_vm0, %v6613_v60  ;;  %v6582_v59 = vadd.f32 %v6497_v47, %v6358_v17  ;;  %v6135_v8 = vmul.f32 %v8126_v4, %v12636_v15 }
 0xd2f   : > { %8131 = vrsqrt.f32 %v6036_v24 }
 0xd30   : > { %v6614_v36 = vadd.f32 %v6582_v59, %v13378_v31  ;;  %v6359_v9 = vmul.f32 %v12805_v63, %v6135_v8  ;;  %v6040_v38 = vpop.f32.mrb[254].mxu0  ;;  %v6507_v63 = vpop.permute.xlu0 %6506  ;;  %v13385_v59 = vld [vmem:[#allocation78_spill] sm:$0xff]  ;;  %v13386_v31 = vld [vmem:[#allocation17_spill] sm:$0xff] }
 0xd31   : > { %v8128_v25 = vpop.eup %8127  ;;  %v6041_v48 = vadd.f32 1e-06, %v6040_v38  ;;  %v6042_v21 = vpop.f32.mrb[255].mxu0 }
 0xd32   : > { %6646 = vst.msk [vmem:[%s12837_s25 + $0x90] sm:$0xff] %vm1461_vm0, %v6614_v36  ;;  %v6583_v10 = vadd.f32 %v6502_v33, %v6359_v9  ;;  %v6136_v29 = vmul.f32 %v8128_v25, %v12643_v20 }
 0xd33   : > { %8133 = vrsqrt.f32 %v6041_v48 }
 0xd34   : > { %v6615_v34 = vadd.f32 %v6583_v10, %v13379_v49  ;;  %v6360_v15 = vmul.f32 %v12807_v3, %v6136_v29  ;;  %v6045_v43 = vpop.f32.mrb[0].mxu0  ;;  %v6512_v3 = vpop.permute.xlu1 %6511  ;;  %v13388_v29 = vld [vmem:[#allocation79_spill] sm:$0xff] }
 0xd35   : > { %v8130_v22 = vpop.eup %8129  ;;  %v6046_v13 = vadd.f32 1e-06, %v6045_v43  ;;  %v6047_v62 = vpop.f32.mrb[1].mxu0  ;;  %v13390_v43 = vld [vmem:[#allocation36_spill] sm:$0xff] }
 0xd36   : > { %6647 = vst.msk [vmem:[%s12837_s25 + $0x98] sm:$0xff] %vm1461_vm0, %v6615_v34  ;;  %v6584_v0 = vadd.f32 %v6507_v63, %v6360_v15  ;;  %v6137_v54 = vmul.f32 %v8130_v22, %v12647_v55  ;;  %v13389_v34 = vld [vmem:[#allocation20_spill] sm:$0xff] }
 0xd37   : > { %8135 = vrsqrt.f32 %v6046_v13 }
 0xd38   : > { %v6616_v26 = vadd.f32 %v6584_v0, %v13380_v32  ;;  %v6361_v20 = vmul.f32 %v12809_v56, %v6137_v54  ;;  %v6050_v57 = vpop.f32.mrb[2].mxu0  ;;  %v6517_v56 = vpop.permute.xlu0 %6516 }
 0xd39   : > { %v8132_v40 = vpop.eup %8131  ;;  %v6051_v12 = vadd.f32 1e-06, %v6050_v57  ;;  %v6052_v52 = vpop.f32.mrb[3].mxu0  ;;  %v13392_v57 = vld [vmem:[#allocation21_spill] sm:$0xff] }
 0xd3a   : > { %6648 = vst.msk [vmem:[%s12837_s25 + $0xa0] sm:$0xff] %vm1461_vm0, %v6616_v26  ;;  %v6585_v61 = vadd.f32 %v6512_v3, %v6361_v20  ;;  %v6138_v27 = vmul.f32 %v8132_v40, %v12654_v45  ;;  %v13391_v26 = vld [vmem:[#allocation80_spill] sm:$0xff]  ;;  %v13393_v3 = vld [vmem:[#allocation37_spill] sm:$0xff] }
 0xd3b   : > { %8137 = vrsqrt.f32 %v6051_v12 }
 0xd3c   : > { %v6617_v14 = vadd.f32 %v6585_v61, %v13381_v2  ;;  %v6362_v55 = vmul.f32 %v12811_v37, %v6138_v27  ;;  %v6055_v18 = vpop.f32.mrb[4].mxu0  ;;  %v6522_v37 = vpop.permute.xlu1 %6521 }
 0xd3d   : > { %v8134_v11 = vpop.eup %8133  ;;  %v6056_v1 = vadd.f32 1e-06, %v6055_v18  ;;  %v6057_v41 = vpop.f32.mrb[5].mxu0  ;;  %v13394_v18 = vld [vmem:[#allocation81_spill] sm:$0xff] }
 0xd3e   : > { %6649 = vst.msk [vmem:[%s12837_s25 + $0xa8] sm:$0xff] %vm1461_vm0, %v6617_v14  ;;  %v6586_v53 = vadd.f32 %v6517_v56, %v6362_v55  ;;  %v6139_v58 = vmul.f32 %v8134_v11, %v12658_v16  ;;  %v13384_v16 = vld [vmem:[#allocation34_spill] sm:$0xff] }
 0xd3f   : > { %8139 = vrsqrt.f32 %v6056_v1  ;;  %v13395_v56 = vld [vmem:[#allocation22_spill] sm:$0xff] }
 0xd40   : > { %v6618_v5 = vadd.f32 %v6586_v53, %v13382_v39  ;;  %v6363_v45 = vmul.f32 %v12813_v35, %v6139_v58  ;;  %v6060_v28 = vpop.f32.mrb[6].mxu0  ;;  %v6527_v35 = vpop.permute.xlu0 %6526  ;;  %v13396_v41 = vld [vmem:[#allocation38_spill] sm:$0xff] }
 0xd41   : > { %v8136_v7 = vpop.eup %8135  ;;  %v6061_v50 = vadd.f32 1e-06, %v6060_v28  ;;  %v6062_v6 = vpop.f32.mrb[7].mxu0 }
 0xd42   : > { %6650 = vst.msk [vmem:[%s12837_s25 + $0xb0] sm:$0xff] %vm1461_vm0, %v6618_v5  ;;  %v6587_v19 = vadd.f32 %v6522_v37, %v6363_v45  ;;  %v6140_v23 = vmul.f32 %v8136_v7, %v12665_v51  ;;  %v13387_v51 = vld [vmem:[#allocation35_spill] sm:$0xff]  ;;  %v6532_v33 = vpop.permute.xlu1 %6531  ;;  %v13397_v45 = vld [vmem:[#allocation82_spill] sm:$0xff] }
 0xd43   : > { %8141 = vrsqrt.f32 %v6061_v50  ;;  %v13398_v7 = vld [vmem:[#allocation23_spill] sm:$0xff] }
 0xd44   : > { %v6619_v60 = vadd.f32 %v6587_v19, %v13383_v46  ;;  %v6364_v17 = vmul.f32 %v13384_v16, %v6140_v23  ;;  %v6065_v42 = vpop.f32.mrb[8].mxu0  ;;  %v6537_v62 = vpop.permute.xlu0 %6536  ;;  %v13399_v50 = vld [vmem:[#allocation39_spill] sm:$0xff] }
 0xd45   : > { %v8138_v4 = vpop.eup %8137  ;;  %v6066_v47 = vadd.f32 1e-06, %v6065_v42  ;;  %v6067_v24 = vpop.f32.mrb[9].mxu0 }
 0xd46   : > { %6651 = vst.msk [vmem:[%s12837_s25 + $0xb8] sm:$0xff] %vm1461_vm0, %v6619_v60  ;;  %v6588_v44 = vadd.f32 %v6527_v35, %v6364_v17  ;;  %v6141_v8 = vmul.f32 %v8138_v4, %v13385_v59  ;;  %v6542_v27 = vpop.permute.xlu1 %6541  ;;  %v13400_v60 = vld [vmem:[#allocation83_spill] sm:$0xff]  ;;  %v13401_v17 = vld [vmem:[#allocation24_spill] sm:$0xff] }
 0xd47   : > { %8143 = vrsqrt.f32 %v6066_v47  ;;  %v13402_v4 = vld [vmem:[#allocation40_spill] sm:$0xff] }
 0xd48   : > { %v6620_v36 = vadd.f32 %v6588_v44, %v13386_v31  ;;  %v6365_v9 = vmul.f32 %v13387_v51, %v6141_v8  ;;  %v6070_v38 = vpop.f32.mrb[10].mxu0  ;;  %v6547_v39 = vpop.permute.xlu0 %6546  ;;  %v13403_v59 = vld [vmem:[#allocation84_spill] sm:$0xff] }
 0xd49   : > { %v8140_v25 = vpop.eup %8139  ;;  %v6071_v48 = vadd.f32 1e-06, %v6070_v38  ;;  %v6072_v21 = vpop.f32.mrb[11].mxu0  ;;  %v13404_v31 = vld [vmem:[#allocation32_spill] sm:$0xff] }
 0xd4a   : > { %6652 = vst.msk [vmem:[%s12837_s25 + $0xc0] sm:$0xff] %vm1461_vm0, %v6620_v36  ;;  %v6589_v10 = vadd.f32 %v6532_v33, %v6365_v9  ;;  %v6142_v49 = vmul.f32 %v8140_v25, %v13388_v29  ;;  %v6552_v23 = vpop.permute.xlu1 %6551  ;;  %v13405_v25 = vld [vmem:[#allocation33_spill] sm:$0xff] }
 0xd4b   : > { %8145 = vrsqrt.f32 %v6071_v48 }
 0xd4c   : > { %v6621_v15 = vadd.f32 %v6589_v10, %v13389_v34  ;;  %v6366_v22 = vmul.f32 %v13390_v43, %v6142_v49  ;;  %v6075_v63 = vpop.f32.mrb[12].mxu0  ;;  %v6557_v24 = vpop.permute.xlu0 %6556 }
 0xd4d   : > { %v8142_v13 = vpop.eup %8141  ;;  %v6076_v0 = vadd.f32 1e-06, %v6075_v63  ;;  %v6077_v54 = vpop.f32.mrb[13].mxu0 }
 0xd4e   : > { %6653 = vst.msk [vmem:[%s12837_s25 + $0xc8] sm:$0xff] %vm1461_vm0, %v6621_v15  ;;  %v6590_v32 = vadd.f32 %v6537_v62, %v6366_v22  ;;  %v6143_v20 = vmul.f32 %v8142_v13, %v13391_v26  ;;  %v6562_v9 = vpop.permute.xlu1 %6561 }
 0xd4f   : > { %8147 = vrsqrt.f32 %v6076_v0 }
 0xd50   : > { %v6622_v40 = vadd.f32 %v6590_v32, %v13392_v57  ;;  %v6367_v12 = vmul.f32 %v13393_v3, %v6143_v20  ;;  %v6080_v52 = vpop.f32.mrb[14].mxu0 }
 0xd51   : > { %v8144_v61 = vpop.eup %8143  ;;  %v6081_v2 = vadd.f32 1e-06, %v6080_v52  ;;  %v6082_v14 = vpop.f32.mrb[15].mxu0 }
 0xd52   : > { %6654 = vst.msk [vmem:[%s12837_s25 + $0xd0] sm:$0xff] %vm1461_vm0, %v6622_v40  ;;  %v6591_v55 = vadd.f32 %v6542_v27, %v6367_v12  ;;  %v6144_v11 = vmul.f32 %v8144_v61, %v13394_v18 }
 0xd53   : > { %8149 = vrsqrt.f32 %v6081_v2 }
 0xd54   : > { %v6623_v1 = vadd.f32 %v6591_v55, %v13395_v56  ;;  %v6368_v53 = vmul.f32 %v13396_v41, %v6144_v11 }
 0xd55   : > { %v8146_v58 = vpop.eup %8145 }
 0xd56   : > { %6655 = vst.msk [vmem:[%s12837_s25 + $0xd8] sm:$0xff] %vm1461_vm0, %v6623_v1  ;;  %v6592_v5 = vadd.f32 %v6547_v39, %v6368_v53  ;;  %v6145_v28 = vmul.f32 %v8146_v58, %v13397_v45 }
 0xd58   : > { %v6624_v37 = vadd.f32 %v6592_v5, %v13398_v7  ;;  %v6369_v6 = vmul.f32 %v13399_v50, %v6145_v28 }
 0xd59   : > { %v8148_v19 = vpop.eup %8147 }
 0xd5a   : > { %6656 = vst.msk [vmem:[%s12837_s25 + $0xe0] sm:$0xff] %vm1461_vm0, %v6624_v37  ;;  %v6593_v46 = vadd.f32 %v6552_v23, %v6369_v6  ;;  %v6146_v16 = vmul.f32 %v8148_v19, %v13400_v60 }
 0xd5c   : > { %v6625_v42 = vadd.f32 %v6593_v46, %v13401_v17  ;;  %v6370_v35 = vmul.f32 %v13402_v4, %v6146_v16 }
 0xd5d   : > { %v8150_v47 = vpop.eup %8149 }
 0xd5e   : > { %6657 = vst.msk [vmem:[%s12837_s25 + $0xe8] sm:$0xff] %vm1461_vm0, %v6625_v42  ;;  %v6594_v44 = vadd.f32 %v6557_v24, %v6370_v35  ;;  %v6147_v8 = vmul.f32 %v8150_v47, %v13403_v59 }
 0xd60   : > { %v6626_v36 = vadd.f32 %v6594_v44, %v13404_v31  ;;  %v6371_v51 = vmul.f32 %v12830_v30, %v6147_v8 }
 0xd62   : > { %6658 = vst.msk [vmem:[%s12837_s25 + $0xf0] sm:$0xff] %vm1461_vm0, %v6626_v36  ;;  %v6595_v38 = vadd.f32 %v6562_v9, %v6371_v51 }
 0xd64   : > { %v6627_v33 = vadd.f32 %v6595_v38, %v13405_v25 }
 0xd66   : > { %6659 = vst.msk [vmem:[%s12837_s25 + $0xf8] sm:$0xff] %vm1461_vm0, %v6627_v33 }
 0xd67 PF: > { %s33_s4 = sadd.s32 1, %s8283_s4  }
 0xd68   : > { %p30_p4 = scmp.ge.s32.totalorder %s33_s4, 4  }
 0xd6a   :  { %32 = sbr.rel (!%p30_p4) target bundleno = 9 (0x9), region = 154 }

</bundles_post_ra>
